<compile_context>
chip_gen: v6e
topology: v6e:2x2x1
jax: 0.10.0
libtpu: 0.0.40
codegen_flags: <defaults>
</compile_context>

<pallas_src>
import numpy as np
import jax
import jax.numpy as jnp
from jax import lax
from jax.experimental import pallas as pl
from jax.experimental.pallas import tpu as pltpu

K = 3                                              # all kernels are 3x3
_ACTS = ("relu", "relu", "relu", "relu", "relu", "sigmoid")
_MAX_BATCH_TILE = 256                              # multiple of 128 (v5e) and 256 (v6e/v7x)


# ----------------------------- Pallas kernel --------------------------------
def _autoencoder_kernel(*refs):
    """refs = (x_ref, [A, b] x 6 layers, o_ref).  Processes one batch tile.

    x_ref : (B, 768)  f32   flattened NCHW images (cin*256 + h*16 + w)
    A_l   : (K_l, N_l) bf16 dense folded conv / deconv operator
    b_l   : (1, N_l)  f32   pre-broadcast bias
    o_ref : (B, 768)  f32
    """
    x_ref, o_ref = refs[0], refs[-1]
    layer_refs = refs[1:-1]

    a = x_ref[...].astype(jnp.bfloat16)            # MXU operand
    y = None
    for li, act in enumerate(_ACTS):
        a_ref, b_ref = layer_refs[2 * li:2 * li + 2]
        y = jnp.dot(a, a_ref[...], preferred_element_type=jnp.float32)
        y = y + b_ref[...]                         # (B, N_l) + (1, N_l)
        if act == "relu":
            y = jnp.maximum(y, 0.0)
        else:                                      # exact sigmoid (exp on EUP)
            y = 1.0 / (1.0 + jnp.exp(-y))
        a = y.astype(jnp.bfloat16)                 # operand for next layer
    o_ref[...] = y                                 # (B, 768) lane-dense store


# ----------------------------- forward wrapper -------------------------------
@jax.jit
def autoencoder_forward(x, kparams):
    """x: (N, 3, H, W) f32.  kparams: tuple of 6 (A_dense bf16, bias f32)."""
    n, c, h, w = x.shape
    feat_in = c * h * w
    x2 = x.reshape(n, feat_in)                     # pure reshape, no transpose

    # Batch tiling: whole batch in one step for small n, 256-image tiles
    # (>= 2 parallel grid steps once n > 256, so both v7x TCs get work).
    if n <= _MAX_BATCH_TILE:
        b_tile, n_pad = n, n
    else:
        b_tile = _MAX_BATCH_TILE
        n_pad = ((n + b_tile - 1) // b_tile) * b_tile
        if n_pad != n:
            x2 = jnp.pad(x2, ((0, n_pad - n), (0, 0)))

    in_specs = [pl.BlockSpec((b_tile, feat_in), lambda i: (i, 0))]
    flat = []
    for (A, b) in kparams:                         # constant index maps:
        in_specs.append(pl.BlockSpec(A.shape, lambda i: (0, 0)))   # fetched once,
        in_specs.append(pl.BlockSpec(b.shape, lambda i: (0, 0)))   # VMEM-resident
        flat += [A, b]

    feat_out = kparams[-1][0].shape[1]             # = 3 * H * W
    c_out = feat_out // (h * w)

    # Advisory cost hint: ~5.8 MFLOP/image, exp only in the final sigmoid.
    flops = 2 * sum(int(A.shape[0]) * int(A.shape[1]) for A, _ in kparams) * n_pad
    transcendentals = feat_out * n_pad
    bytes_accessed = (n_pad * feat_in * 4 + n_pad * feat_out * 4
                      + sum(int(A.size) * 2 + int(b.size) * 4 for A, b in kparams))

    out = pl.pallas_call(
        _autoencoder_kernel,
        out_shape=jax.ShapeDtypeStruct((n_pad, feat_out), jnp.float32),
        grid=(n_pad // b_tile,),
        in_specs=in_specs,
        out_specs=pl.BlockSpec((b_tile, feat_out), lambda i: (i, 0)),
        compiler_params=pltpu.CompilerParams(
            dimension_semantics=("parallel",)),     # batch tiles across TCs on v7x
        cost_estimate=pl.CostEstimate(flops=flops,
                                      transcendentals=transcendentals,
                                      bytes_accessed=bytes_accessed),
    )(x2, *flat)
    return out[:n].reshape(n, c_out, h, w)


# --------------------- one-time host-side parameter prep ---------------------
def _conv_gather(h, w, k, stride, pad):
    """0/1 gather matrices for Conv2d: (k*k, H*W, OH*OW)."""
    oh = (h + 2 * pad - k) // stride + 1
    ow = (w + 2 * pad - k) // stride + 1
    g = np.zeros((k * k, h * w, oh * ow), np.float32)
    for kh in range(k):
        for kw in range(k):
            kk = kh * k + kw
            for r in range(oh):
                ir = stride * r + kh - pad
                if not 0 <= ir < h:
                    continue
                for col in range(ow):
                    ic = stride * col + kw - pad
                    if 0 <= ic < w:
                        g[kk, ir * w + ic, r * ow + col] = 1.0
    return g, oh, ow


def _deconv_gather(h, w, k, stride, pad, out_pad):
    """0/1 gather matrices for ConvTranspose2d (flipped-weight formulation)."""
    oh = (h - 1) * stride - 2 * pad + k + out_pad
    ow = (w - 1) * stride - 2 * pad + k + out_pad
    lo = k - 1 - pad
    g = np.zeros((k * k, h * w, oh * ow), np.float32)
    for kh in range(k):
        for kw in range(k):
            kk = kh * k + kw
            for r in range(oh):
                dr = r + kh - lo
                if not (0 <= dr <= (h - 1) * stride and dr % stride == 0):
                    continue
                ir = dr // stride
                for col in range(ow):
                    dc = col + kw - lo
                    if 0 <= dc <= (w - 1) * stride and dc % stride == 0:
                        g[kk, ir * w + dc // stride, r * ow + col] = 1.0
    return g, oh, ow


def prepare_kernel_params(params, h=16, w=16):
    """Fold 3x3 taps + 0/1 spatial gathers into one dense bf16 operator per
    layer:  A_l (Cin*Min, Cout*Mout),  plus a pre-broadcast (1, Cout*Mout) f32
    bias.  Each A entry is exactly one weight value (taps never overlap for a
    given (m_in, m_out)), so bf16 A == bf16 weights: numerically lossless fold.
    Done once on the host, outside the forward path."""
    def conv_taps(wt):                              # (OC, IC, k, k) -> (k*k, OC, IC)
        wt = np.asarray(wt, np.float32)
        oc, ic, kh, kw = wt.shape
        return np.transpose(wt, (2, 3, 0, 1)).reshape(kh * kw, oc, ic)

    def deconv_taps(wt):                            # torch layout (IC, OC, k, k)
        wt = np.asarray(wt, np.float32)
        w_eff = np.flip(wt, axis=(2, 3)).transpose(1, 0, 2, 3)    # (OC, IC, k, k)
        return conv_taps(w_eff)

    spec = [("e1w", "e1b", "conv"), ("e2w", "e2b", "conv"), ("e3w", "e3b", "conv"),
            ("d1w", "d1b", "deconv"), ("d2w", "d2b", "deconv"), ("d3w", "d3b", "deconv")]
    layers = []
    cur_h, cur_w = h, w
    for wname, bname, kind in spec:
        wt, b = params[wname], params[bname]
        if kind == "conv":
            taps = conv_taps(wt)                    # (9, OC, IC)
            g, cur_h, cur_w = _conv_gather(cur_h, cur_w, K, 2, 1)
        else:
            taps = deconv_taps(wt)
            g, cur_h, cur_w = _deconv_gather(cur_h, cur_w, K, 2, 1, 1)
        oc, ic = taps.shape[1], taps.shape[2]
        m_in, m_out = g.shape[1], g.shape[2]
        # A[cin, m_in, cout, m_out] = sum_kk taps[kk, cout, cin] * g[kk, m_in, m_out]
        dense = np.einsum("koc,kmn->cmon", taps, g).reshape(ic * m_in, oc * m_out)
        bias = np.broadcast_to(np.asarray(b, np.float32).reshape(-1, 1),
                               (oc, m_out)).reshape(1, oc * m_out)
        layers.append((jnp.asarray(dense, jnp.bfloat16),
                       jnp.asarray(bias, jnp.float32)))
    return tuple(layers)


def init_params(key):
    """PyTorch-layout parameters, uniform(-1/sqrt(fan_in), 1/sqrt(fan_in))."""
    def u(k, shape, fan_in):
        bound = 1.0 / np.sqrt(fan_in)
        return jax.random.uniform(k, shape, jnp.float32, -bound, bound)

    ks = jax.random.split(key, 12)
    p = {}
    p["e1w"] = u(ks[0], (16, 3, 3, 3), 3 * 9);   p["e1b"] = u(ks[1], (16,), 3 * 9)
    p["e2w"] = u(ks[2], (32, 16, 3, 3), 16 * 9); p["e2b"] = u(ks[3], (32,), 16 * 9)
    p["e3w"] = u(ks[4], (64, 32, 3, 3), 32 * 9); p["e3b"] = u(ks[5], (64,), 32 * 9)
    p["d1w"] = u(ks[6], (64, 32, 3, 3), 64 * 9); p["d1b"] = u(ks[7], (32,), 64 * 9)
    p["d2w"] = u(ks[8], (32, 16, 3, 3), 32 * 9); p["d2b"] = u(ks[9], (16,), 32 * 9)
    p["d3w"] = u(ks[10], (16, 3, 3, 3), 16 * 9); p["d3b"] = u(ks[11], (3,), 16 * 9)
    return p


# ------------------------- pure-JAX reference (f32) --------------------------
def reference_forward(x, params):
    def conv(t, wt, b, s, p):
        y = lax.conv_general_dilated(t, wt, (s, s), ((p, p), (p, p)),
                                     dimension_numbers=("NCHW", "OIHW", "NCHW"))
        return y + b.reshape(1, -1, 1, 1)

    def deconv(t, wt, b, s, p, op):
        w_eff = jnp.flip(wt, axis=(2, 3)).transpose(1, 0, 2, 3)
        lo, hi = K - 1 - p, K - 1 - p + op
        y = lax.conv_general_dilated(t, w_eff, (1, 1), ((lo, hi), (lo, hi)),
                                     lhs_dilation=(s, s),
                                     dimension_numbers=("NCHW", "OIHW", "NCHW"))
        return y + b.reshape(1, -1, 1, 1)

    relu = lambda t: jnp.maximum(t, 0.0)
    x = relu(conv(x, params["e1w"], params["e1b"], 2, 1))
    x = relu(conv(x, params["e2w"], params["e2b"], 2, 1))
    x = relu(conv(x, params["e3w"], params["e3b"], 2, 1))
    x = relu(deconv(x, params["d1w"], params["d1b"], 2, 1, 1))
    x = relu(deconv(x, params["d2w"], params["d2b"], 2, 1, 1))
    x = jax.nn.sigmoid(deconv(x, params["d3w"], params["d3b"], 2, 1, 1))
    return x


if __name__ == "__main__":
    key = jax.random.PRNGKey(0)
    k_in, k_par = jax.random.split(key)
    x = jax.random.normal(k_in, (2, 3, 16, 16), jnp.float32)   # NCHW
    params = init_params(k_par)
    kparams = prepare_kernel_params(params, h=16, w=16)        # one-time prep

    out = autoencoder_forward(x, kparams)
    out = jax.block_until_ready(out)

    assert out.shape == (2, 3, 16, 16), out.shape
    assert bool(jnp.all(jnp.isfinite(out)))

    ref = reference_forward(x, params)
    err = float(jnp.max(jnp.abs(out - ref)))
    assert err < 5e-2, f"max |pallas - reference| = {err}"
    print("KERNEL_OK")
</pallas_src>

<mosaic_0001>
module attributes {stable_mosaic.version = 11 : i64} {
  func.func @_autoencoder_kernel(%arg0: i32, %arg1: memref<2x768xf32, #tpu.memory_space<vmem>>, %arg2: memref<768x1024xbf16, #tpu.memory_space<vmem>>, %arg3: memref<1x1024xf32, #tpu.memory_space<vmem>>, %arg4: memref<1024x512xbf16, #tpu.memory_space<vmem>>, %arg5: memref<1x512xf32, #tpu.memory_space<vmem>>, %arg6: memref<512x256xbf16, #tpu.memory_space<vmem>>, %arg7: memref<1x256xf32, #tpu.memory_space<vmem>>, %arg8: memref<256x512xbf16, #tpu.memory_space<vmem>>, %arg9: memref<1x512xf32, #tpu.memory_space<vmem>>, %arg10: memref<512x1024xbf16, #tpu.memory_space<vmem>>, %arg11: memref<1x1024xf32, #tpu.memory_space<vmem>>, %arg12: memref<1024x768xbf16, #tpu.memory_space<vmem>>, %arg13: memref<1x768xf32, #tpu.memory_space<vmem>>, %arg14: memref<2x768xf32, #tpu.memory_space<vmem>>) attributes {dimension_semantics = [#tpu.dimension_semantics<parallel>], iteration_bounds = array<i64: 1>, scalar_prefetch = 0 : i64, scratch_operands = 0 : i64, tpu.core_type = #tpu.core_type<tc>, window_params = [{transform_indices = @transform_0, window_bounds = array<i64: 2, 768>}, {pipeline_mode = #tpu.pipeline_mode<synchronous>, transform_indices = @transform_1, window_bounds = array<i64: 768, 1024>}, {pipeline_mode = #tpu.pipeline_mode<synchronous>, transform_indices = @transform_2, window_bounds = array<i64: 1, 1024>}, {pipeline_mode = #tpu.pipeline_mode<synchronous>, transform_indices = @transform_3, window_bounds = array<i64: 1024, 512>}, {pipeline_mode = #tpu.pipeline_mode<synchronous>, transform_indices = @transform_4, window_bounds = array<i64: 1, 512>}, {pipeline_mode = #tpu.pipeline_mode<synchronous>, transform_indices = @transform_5, window_bounds = array<i64: 512, 256>}, {pipeline_mode = #tpu.pipeline_mode<synchronous>, transform_indices = @transform_6, window_bounds = array<i64: 1, 256>}, {pipeline_mode = #tpu.pipeline_mode<synchronous>, transform_indices = @transform_7, window_bounds = array<i64: 256, 512>}, {pipeline_mode = #tpu.pipeline_mode<synchronous>, transform_indices = @transform_8, window_bounds = array<i64: 1, 512>}, {pipeline_mode = #tpu.pipeline_mode<synchronous>, transform_indices = @transform_9, window_bounds = array<i64: 512, 1024>}, {pipeline_mode = #tpu.pipeline_mode<synchronous>, transform_indices = @transform_10, window_bounds = array<i64: 1, 1024>}, {pipeline_mode = #tpu.pipeline_mode<synchronous>, transform_indices = @transform_11, window_bounds = array<i64: 1024, 768>}, {pipeline_mode = #tpu.pipeline_mode<synchronous>, transform_indices = @transform_12, window_bounds = array<i64: 1, 768>}, {transform_indices = @transform_13, window_bounds = array<i64: 2, 768>}]} {
    %c0 = arith.constant 0 : index
    %c0_0 = arith.constant 0 : index
    %0 = vector.load %arg1[%c0, %c0_0] : memref<2x768xf32, #tpu.memory_space<vmem>>, vector<2x768xf32>
    %1 = arith.truncf %0 : vector<2x768xf32> to vector<2x768xbf16>
    %c0_1 = arith.constant 0 : index
    %c0_2 = arith.constant 0 : index
    %2 = vector.load %arg2[%c0_1, %c0_2] : memref<768x1024xbf16, #tpu.memory_space<vmem>>, vector<768x1024xbf16>
    %cst = arith.constant dense<0.000000e+00> : vector<2x1024xf32>
    %3 = tpu.matmul %1, %2, %cst {dimension_numbers = #tpu.dot_dimension_numbers<[1], [0], [0], [1], [0, 0, 1, 1], [], []>} : vector<2x768xbf16>, vector<768x1024xbf16>, vector<2x1024xf32> -> vector<2x1024xf32>
    %c0_3 = arith.constant 0 : index
    %c0_4 = arith.constant 0 : index
    %4 = vector.load %arg3[%c0_3, %c0_4] : memref<1x1024xf32, #tpu.memory_space<vmem>>, vector<1x1024xf32>
    %5 = vector.broadcast %4 : vector<1x1024xf32> to vector<2x1024xf32>
    %6 = arith.addf %3, %5 : vector<2x1024xf32>
    %cst_5 = arith.constant 0.000000e+00 : f32
    %7 = vector.broadcast %cst_5 : f32 to vector<2x1024xf32>
    %8 = arith.maximumf %6, %7 : vector<2x1024xf32>
    %9 = arith.truncf %8 : vector<2x1024xf32> to vector<2x1024xbf16>
    %c0_6 = arith.constant 0 : index
    %c0_7 = arith.constant 0 : index
    %10 = vector.load %arg4[%c0_6, %c0_7] : memref<1024x512xbf16, #tpu.memory_space<vmem>>, vector<1024x512xbf16>
    %cst_8 = arith.constant dense<0.000000e+00> : vector<2x512xf32>
    %11 = tpu.matmul %9, %10, %cst_8 {dimension_numbers = #tpu.dot_dimension_numbers<[1], [0], [0], [1], [0, 0, 1, 1], [], []>} : vector<2x1024xbf16>, vector<1024x512xbf16>, vector<2x512xf32> -> vector<2x512xf32>
    %c0_9 = arith.constant 0 : index
    %c0_10 = arith.constant 0 : index
    %12 = vector.load %arg5[%c0_9, %c0_10] : memref<1x512xf32, #tpu.memory_space<vmem>>, vector<1x512xf32>
    %13 = vector.broadcast %12 : vector<1x512xf32> to vector<2x512xf32>
    %14 = arith.addf %11, %13 : vector<2x512xf32>
    %cst_11 = arith.constant 0.000000e+00 : f32
    %15 = vector.broadcast %cst_11 : f32 to vector<2x512xf32>
    %16 = arith.maximumf %14, %15 : vector<2x512xf32>
    %17 = arith.truncf %16 : vector<2x512xf32> to vector<2x512xbf16>
    %c0_12 = arith.constant 0 : index
    %c0_13 = arith.constant 0 : index
    %18 = vector.load %arg6[%c0_12, %c0_13] : memref<512x256xbf16, #tpu.memory_space<vmem>>, vector<512x256xbf16>
    %cst_14 = arith.constant dense<0.000000e+00> : vector<2x256xf32>
    %19 = tpu.matmul %17, %18, %cst_14 {dimension_numbers = #tpu.dot_dimension_numbers<[1], [0], [0], [1], [0, 0, 1, 1], [], []>} : vector<2x512xbf16>, vector<512x256xbf16>, vector<2x256xf32> -> vector<2x256xf32>
    %c0_15 = arith.constant 0 : index
    %c0_16 = arith.constant 0 : index
    %20 = vector.load %arg7[%c0_15, %c0_16] : memref<1x256xf32, #tpu.memory_space<vmem>>, vector<1x256xf32>
    %21 = vector.broadcast %20 : vector<1x256xf32> to vector<2x256xf32>
    %22 = arith.addf %19, %21 : vector<2x256xf32>
    %cst_17 = arith.constant 0.000000e+00 : f32
    %23 = vector.broadcast %cst_17 : f32 to vector<2x256xf32>
    %24 = arith.maximumf %22, %23 : vector<2x256xf32>
    %25 = arith.truncf %24 : vector<2x256xf32> to vector<2x256xbf16>
    %c0_18 = arith.constant 0 : index
    %c0_19 = arith.constant 0 : index
    %26 = vector.load %arg8[%c0_18, %c0_19] : memref<256x512xbf16, #tpu.memory_space<vmem>>, vector<256x512xbf16>
    %cst_20 = arith.constant dense<0.000000e+00> : vector<2x512xf32>
    %27 = tpu.matmul %25, %26, %cst_20 {dimension_numbers = #tpu.dot_dimension_numbers<[1], [0], [0], [1], [0, 0, 1, 1], [], []>} : vector<2x256xbf16>, vector<256x512xbf16>, vector<2x512xf32> -> vector<2x512xf32>
    %c0_21 = arith.constant 0 : index
    %c0_22 = arith.constant 0 : index
    %28 = vector.load %arg9[%c0_21, %c0_22] : memref<1x512xf32, #tpu.memory_space<vmem>>, vector<1x512xf32>
    %29 = vector.broadcast %28 : vector<1x512xf32> to vector<2x512xf32>
    %30 = arith.addf %27, %29 : vector<2x512xf32>
    %cst_23 = arith.constant 0.000000e+00 : f32
    %31 = vector.broadcast %cst_23 : f32 to vector<2x512xf32>
    %32 = arith.maximumf %30, %31 : vector<2x512xf32>
    %33 = arith.truncf %32 : vector<2x512xf32> to vector<2x512xbf16>
    %c0_24 = arith.constant 0 : index
    %c0_25 = arith.constant 0 : index
    %34 = vector.load %arg10[%c0_24, %c0_25] : memref<512x1024xbf16, #tpu.memory_space<vmem>>, vector<512x1024xbf16>
    %cst_26 = arith.constant dense<0.000000e+00> : vector<2x1024xf32>
    %35 = tpu.matmul %33, %34, %cst_26 {dimension_numbers = #tpu.dot_dimension_numbers<[1], [0], [0], [1], [0, 0, 1, 1], [], []>} : vector<2x512xbf16>, vector<512x1024xbf16>, vector<2x1024xf32> -> vector<2x1024xf32>
    %c0_27 = arith.constant 0 : index
    %c0_28 = arith.constant 0 : index
    %36 = vector.load %arg11[%c0_27, %c0_28] : memref<1x1024xf32, #tpu.memory_space<vmem>>, vector<1x1024xf32>
    %37 = vector.broadcast %36 : vector<1x1024xf32> to vector<2x1024xf32>
    %38 = arith.addf %35, %37 : vector<2x1024xf32>
    %cst_29 = arith.constant 0.000000e+00 : f32
    %39 = vector.broadcast %cst_29 : f32 to vector<2x1024xf32>
    %40 = arith.maximumf %38, %39 : vector<2x1024xf32>
    %41 = arith.truncf %40 : vector<2x1024xf32> to vector<2x1024xbf16>
    %c0_30 = arith.constant 0 : index
    %c0_31 = arith.constant 0 : index
    %42 = vector.load %arg12[%c0_30, %c0_31] : memref<1024x768xbf16, #tpu.memory_space<vmem>>, vector<1024x768xbf16>
    %cst_32 = arith.constant dense<0.000000e+00> : vector<2x768xf32>
    %43 = tpu.matmul %41, %42, %cst_32 {dimension_numbers = #tpu.dot_dimension_numbers<[1], [0], [0], [1], [0, 0, 1, 1], [], []>} : vector<2x1024xbf16>, vector<1024x768xbf16>, vector<2x768xf32> -> vector<2x768xf32>
    %c0_33 = arith.constant 0 : index
    %c0_34 = arith.constant 0 : index
    %44 = vector.load %arg13[%c0_33, %c0_34] : memref<1x768xf32, #tpu.memory_space<vmem>>, vector<1x768xf32>
    %45 = vector.broadcast %44 : vector<1x768xf32> to vector<2x768xf32>
    %46 = arith.addf %43, %45 : vector<2x768xf32>
    %cst_35 = arith.constant 0.000000e+00 : f32
    %47 = vector.broadcast %cst_35 : f32 to vector<2x768xf32>
    %48 = arith.subf %47, %46 : vector<2x768xf32>
    %49 = math.exp %48 : vector<2x768xf32>
    %cst_36 = arith.constant 1.000000e+00 : f32
    %50 = vector.broadcast %cst_36 : f32 to vector<2x768xf32>
    %51 = arith.addf %50, %49 : vector<2x768xf32>
    %cst_37 = arith.constant 1.000000e+00 : f32
    %52 = vector.broadcast %cst_37 : f32 to vector<2x768xf32>
    %53 = arith.divf %52, %51 : vector<2x768xf32>
    %c0_38 = arith.constant 0 : index
    %c0_39 = arith.constant 0 : index
    %54 = vector.load %arg14[%c0_38, %c0_39] : memref<2x768xf32, #tpu.memory_space<vmem>>, vector<2x768xf32>
    tpu.vector_store %arg14[%c0_38, %c0_39], %53 {strides = array<i32>} : memref<2x768xf32, #tpu.memory_space<vmem>>, vector<2x768xf32>,
    return
  }
  func.func @transform_0(%arg0: i32) -> (i32, i32) {
    %c0_i32 = arith.constant 0 : i32
    %c0_i32_0 = arith.constant 0 : i32
    return %arg0, %c0_i32 : i32, i32
  }
  func.func @transform_1(%arg0: i32) -> (i32, i32) {
    %c0_i32 = arith.constant 0 : i32
    %c0_i32_0 = arith.constant 0 : i32
    %c0_i32_1 = arith.constant 0 : i32
    return %c0_i32, %c0_i32_0 : i32, i32
  }
  func.func @transform_2(%arg0: i32) -> (i32, i32) {
    %c0_i32 = arith.constant 0 : i32
    %c0_i32_0 = arith.constant 0 : i32
    %c0_i32_1 = arith.constant 0 : i32
    return %c0_i32, %c0_i32_0 : i32, i32
  }
  func.func @transform_3(%arg0: i32) -> (i32, i32) {
    %c0_i32 = arith.constant 0 : i32
    %c0_i32_0 = arith.constant 0 : i32
    %c0_i32_1 = arith.constant 0 : i32
    return %c0_i32, %c0_i32_0 : i32, i32
  }
  func.func @transform_4(%arg0: i32) -> (i32, i32) {
    %c0_i32 = arith.constant 0 : i32
    %c0_i32_0 = arith.constant 0 : i32
    %c0_i32_1 = arith.constant 0 : i32
    return %c0_i32, %c0_i32_0 : i32, i32
  }
  func.func @transform_5(%arg0: i32) -> (i32, i32) {
    %c0_i32 = arith.constant 0 : i32
    %c0_i32_0 = arith.constant 0 : i32
    %c0_i32_1 = arith.constant 0 : i32
    return %c0_i32, %c0_i32_0 : i32, i32
  }
  func.func @transform_6(%arg0: i32) -> (i32, i32) {
    %c0_i32 = arith.constant 0 : i32
    %c0_i32_0 = arith.constant 0 : i32
    %c0_i32_1 = arith.constant 0 : i32
    return %c0_i32, %c0_i32_0 : i32, i32
  }
  func.func @transform_7(%arg0: i32) -> (i32, i32) {
    %c0_i32 = arith.constant 0 : i32
    %c0_i32_0 = arith.constant 0 : i32
    %c0_i32_1 = arith.constant 0 : i32
    return %c0_i32, %c0_i32_0 : i32, i32
  }
  func.func @transform_8(%arg0: i32) -> (i32, i32) {
    %c0_i32 = arith.constant 0 : i32
    %c0_i32_0 = arith.constant 0 : i32
    %c0_i32_1 = arith.constant 0 : i32
    return %c0_i32, %c0_i32_0 : i32, i32
  }
  func.func @transform_9(%arg0: i32) -> (i32, i32) {
    %c0_i32 = arith.constant 0 : i32
    %c0_i32_0 = arith.constant 0 : i32
    %c0_i32_1 = arith.constant 0 : i32
    return %c0_i32, %c0_i32_0 : i32, i32
  }
  func.func @transform_10(%arg0: i32) -> (i32, i32) {
    %c0_i32 = arith.constant 0 : i32
    %c0_i32_0 = arith.constant 0 : i32
    %c0_i32_1 = arith.constant 0 : i32
    return %c0_i32, %c0_i32_0 : i32, i32
  }
  func.func @transform_11(%arg0: i32) -> (i32, i32) {
    %c0_i32 = arith.constant 0 : i32
    %c0_i32_0 = arith.constant 0 : i32
    %c0_i32_1 = arith.constant 0 : i32
    return %c0_i32, %c0_i32_0 : i32, i32
  }
  func.func @transform_12(%arg0: i32) -> (i32, i32) {
    %c0_i32 = arith.constant 0 : i32
    %c0_i32_0 = arith.constant 0 : i32
    %c0_i32_1 = arith.constant 0 : i32
    return %c0_i32, %c0_i32_0 : i32, i32
  }
  func.func @transform_13(%arg0: i32) -> (i32, i32) {
    %c0_i32 = arith.constant 0 : i32
    %c0_i32_0 = arith.constant 0 : i32
    return %arg0, %c0_i32 : i32, i32
  }
}

</mosaic_0001>

<bundles_post_ra>
// kernel: autoencoder_forward.1
= control target key start
LH: loop header
LB: loop body
LE: loop exit
PB: predicated region body
PF: predicated region fallthrough
CT: control target
= control target key end

     0   :  { %18 = vsyncpa [#allocation3], 0  ;;  %s14142_s0 = inlined_call_operand.vmem [shape: f32[2,768], index: 0, kind: input, shape index: {}]   ;;  %s14143_s1 = inlined_call_operand.hbm [shape: bf16[768,1024], index: 1, kind: input, shape index: {}]   ;;  %s14144_s2 = inlined_call_operand.hbm [shape: f32[1,1024], index: 2, kind: input, shape index: {}]   ;;  %s14145_s3 = inlined_call_operand.hbm [shape: bf16[1024,512], index: 3, kind: input, shape index: {}]   ;;  %s14146_s4 = inlined_call_operand.hbm [shape: f32[1,512], index: 4, kind: input, shape index: {}]   ;;  %s14147_s5 = inlined_call_operand.hbm [shape: bf16[512,256], index: 5, kind: input, shape index: {}]   ;;  %s14148_s6 = inlined_call_operand.hbm [shape: f32[1,256], index: 6, kind: input, shape index: {}]   ;;  %s14149_s7 = inlined_call_operand.hbm [shape: bf16[256,512], index: 7, kind: input, shape index: {}]   ;;  %s14150_s8 = inlined_call_operand.hbm [shape: f32[1,512], index: 8, kind: input, shape index: {}]   ;;  %s14151_s9 = inlined_call_operand.hbm [shape: bf16[512,1024], index: 9, kind: input, shape index: {}]   ;;  %s14152_s10 = inlined_call_operand.hbm [shape: f32[1,1024], index: 10, kind: input, shape index: {}]   ;;  %s14153_s11 = inlined_call_operand.hbm [shape: bf16[1024,768], index: 11, kind: input, shape index: {}]   ;;  %s14154_s12 = inlined_call_operand.hbm [shape: f32[1,768], index: 12, kind: input, shape index: {}]   ;;  %s14155_s13 = inlined_call_operand.vmem [shape: f32[2,768], index: 13, kind: output, shape index: {}]  }
   0x1   :  { %19 = vsyncpa [#allocation5], 0 }
   0x2   :  { %20 = vsyncpa [#allocation8], 0 }
   0x3   :  { %21 = vsyncpa [#allocation11], 0 }
   0x4   :  { %22 = vsyncpa [#allocation14], 0 }
   0x5   :  { %23 = vsyncpa [#allocation17], 0 }
   0x6   :  { %24 = vsyncpa [#allocation20], 0  ;;  %s13657_s25 = smov [#allocation4]   ;;  %s13658_s27 = smov [#allocation7]  }
   0x7   :  { %s45_s26 = sshll.u32 %s13657_s25, 4  ;;  %s67_s28 = sshll.u32 %s13658_s27, 4  ;;  %s46_s26 = int_to_ptr.vmem [resolvable:$true] %s45_s26  ;;  %s68_s28 = int_to_ptr.vmem [resolvable:$true] %s67_s28 }
   0x8   :  { %s13411_s29 = scalar_lea.vmem %s46_s26, 128  ;;  %p13416_p1 = scmp.lt.s32.totalorder %s46_s26, %s46_s26 }
   0x9   :  { %p13412_p0 = scmp.ne.s32.totalorder %s46_s26, %s13411_s29  ;;  %p13417_p2 = scmp.lt.s32.totalorder %s13411_s29, %s13411_s29 }
   0xb   :  { %p13418_p3 = por %p13417_p2, %p13416_p1 }
   0xd   :  { %p13419_p4 = pnand %p13418_p3, %p13412_p0 }
   0xf   :  { %13422 = shalt.err (!%p13419_p4)
}
  0x10   :  { %48 = dma.hbm_to_vmem [thread:$0]  %s14144_s2, 128, %s46_s26, [#allocation5]  }
  0x11   :  { %s13431_s15 = scalar_lea.vmem %s68_s28, 64  ;;  %p13436_p6 = scmp.lt.s32.totalorder %s68_s28, %s68_s28 }
  0x12   :  { %p13432_p5 = scmp.ne.s32.totalorder %s68_s28, %s13431_s15  ;;  %p13437_p7 = scmp.lt.s32.totalorder %s13431_s15, %s13431_s15 }
  0x14   :  { %p13438_p8 = por %p13437_p7, %p13436_p6 }
  0x16   :  { %p13439_p9 = pnand %p13438_p8, %p13432_p5 }
  0x18   :  { %13442 = shalt.err (!%p13439_p9)
}
  0x19   :  { %70 = dma.hbm_to_vmem [thread:$0]  %s14146_s4, 64, %s68_s28, [#allocation8]  }
  0x1a   :  { %s13659_s18 = smov [#allocation10]   ;;  %s13660_s20 = smov [#allocation13]  }
  0x1b   :  { %s89_s19 = sshll.u32 %s13659_s18, 4  ;;  %s111_s21 = sshll.u32 %s13660_s20, 4  ;;  %s90_s19 = int_to_ptr.vmem [resolvable:$true] %s89_s19  ;;  %s112_s21 = int_to_ptr.vmem [resolvable:$true] %s111_s21 }
  0x1c   :  { %s13451_s22 = scalar_lea.vmem %s90_s19, 32  ;;  %p13456_p11 = scmp.lt.s32.totalorder %s90_s19, %s90_s19 }
  0x1d   :  { %p13452_p10 = scmp.ne.s32.totalorder %s90_s19, %s13451_s22  ;;  %p13457_p12 = scmp.lt.s32.totalorder %s13451_s22, %s13451_s22 }
  0x1f   :  { %p13458_p13 = por %p13457_p12, %p13456_p11 }
  0x21   :  { %p13459_p0 = pnand %p13458_p13, %p13452_p10 }
  0x23   :  { %13462 = shalt.err (!%p13459_p0)
}
  0x24   :  { %92 = dma.hbm_to_vmem [thread:$0]  %s14148_s6, 32, %s90_s19, [#allocation11]  }
  0x25   :  { %s13471_s24 = scalar_lea.vmem %s112_s21, 64  ;;  %p13476_p2 = scmp.lt.s32.totalorder %s112_s21, %s112_s21 }
  0x26   :  { %p13472_p1 = scmp.ne.s32.totalorder %s112_s21, %s13471_s24  ;;  %p13477_p3 = scmp.lt.s32.totalorder %s13471_s24, %s13471_s24 }
  0x28   :  { %p13478_p4 = por %p13477_p3, %p13476_p2 }
  0x2a   :  { %p13479_p5 = pnand %p13478_p4, %p13472_p1 }
  0x2c   :  { %13482 = shalt.err (!%p13479_p5)
}
  0x2d   :  { %114 = dma.hbm_to_vmem [thread:$0]  %s14150_s8, 64, %s112_s21, [#allocation14]  }
  0x2e   :  { %s13661_s26 = smov [#allocation16]   ;;  %s13662_s28 = smov [#allocation2]  }
  0x2f   :  { %s133_s27 = sshll.u32 %s13661_s26, 4  ;;  %s32_s29 = sshll.u32 %s13662_s28, 4  ;;  %s134_s27 = int_to_ptr.vmem [resolvable:$true] %s133_s27  ;;  %s33_s29 = int_to_ptr.vmem [resolvable:$true] %s32_s29 }
  0x30   :  { %s13491_s30 = scalar_lea.vmem %s134_s27, 128  ;;  %p13496_p7 = scmp.lt.s32.totalorder %s134_s27, %s134_s27 }
  0x31   :  { %p13492_p6 = scmp.ne.s32.totalorder %s134_s27, %s13491_s30  ;;  %p13497_p8 = scmp.lt.s32.totalorder %s13491_s30, %s13491_s30 }
  0x33   :  { %p13498_p9 = por %p13497_p8, %p13496_p7 }
  0x35   :  { %p13499_p10 = pnand %p13498_p9, %p13492_p6 }
  0x37   :  { %13502 = shalt.err (!%p13499_p10)
}
  0x38   :  { %136 = dma.hbm_to_vmem [thread:$0]  %s14152_s10, 128, %s134_s27, [#allocation17]  }
  0x39   :  { %s13511_s15 = scalar_lea.vmem %s33_s29, 49152  ;;  %p13516_p12 = scmp.lt.s32.totalorder %s33_s29, %s33_s29 }
  0x3a   :  { %p13512_p11 = scmp.ne.s32.totalorder %s33_s29, %s13511_s15  ;;  %p13517_p13 = scmp.lt.s32.totalorder %s13511_s15, %s13511_s15 }
  0x3c   :  { %p13518_p0 = por %p13517_p13, %p13516_p12 }
  0x3e   :  { %p13519_p1 = pnand %p13518_p0, %p13512_p11 }
  0x40   :  { %13522 = shalt.err (!%p13519_p1)
}
  0x41   :  { %s13663_s8 = smov 512   ;;  %s13664_s16 = smov 32  }
  0x42   :  { %38 = dma.hbm_to_vmem [thread:$0]  %s14143_s1, 49152, %s33_s29, [#allocation3], %s13663_s8, %s13663_s8, %s13664_s16  }
  0x43   :  { %s13665_s19 = smov [#allocation6]  }
  0x44   :  { %s54_s20 = sshll.u32 %s13665_s19, 4  ;;  %s55_s20 = int_to_ptr.vmem [resolvable:$true] %s54_s20 }
  0x45   :  { %s13531_s10 = scalar_lea.vmem %s55_s20, 32768  ;;  %p13536_p3 = scmp.lt.s32.totalorder %s55_s20, %s55_s20 }
  0x46   :  { %p13532_p2 = scmp.ne.s32.totalorder %s55_s20, %s13531_s10  ;;  %p13537_p4 = scmp.lt.s32.totalorder %s13531_s10, %s13531_s10 }
  0x48   :  { %p13538_p5 = por %p13537_p4, %p13536_p3 }
  0x4a   :  { %p13539_p6 = pnand %p13538_p5, %p13532_p2 }
  0x4c   :  { %13542 = shalt.err (!%p13539_p6)
}
  0x4d   :  { %s13666_s21 = smov 256   ;;  %s13667_s22 = smov 16  }
  0x4e   :  { %60 = dma.hbm_to_vmem [thread:$0]  %s14145_s3, 32768, %s55_s20, [#allocation5], %s13666_s21, %s13666_s21, %s13667_s22  }
  0x4f   :  { %s13668_s1 = smov [#allocation9]  }
  0x50   :  { %s76_s24 = sshll.u32 %s13668_s1, 4  ;;  %s77_s24 = int_to_ptr.vmem [resolvable:$true] %s76_s24 }
  0x51   :  { %s13551_s4 = scalar_lea.vmem %s77_s24, 8192  ;;  %p13556_p8 = scmp.lt.s32.totalorder %s77_s24, %s77_s24 }
  0x52   :  { %p13552_p7 = scmp.ne.s32.totalorder %s77_s24, %s13551_s4  ;;  %p13557_p9 = scmp.lt.s32.totalorder %s13551_s4, %s13551_s4 }
  0x54   :  { %p13558_p10 = por %p13557_p9, %p13556_p8 }
  0x56   :  { %p13559_p11 = pnand %p13558_p10, %p13552_p7 }
  0x58   :  { %13562 = shalt.err (!%p13559_p11)
}
  0x59   :  { %s13669_s25 = smov 128   ;;  %s13670_s26 = smov 8  }
  0x5a   :  { %82 = dma.hbm_to_vmem [thread:$0]  %s14147_s5, 8192, %s77_s24, [#allocation8], %s13669_s25, %s13669_s25, %s13670_s26  }
  0x5b   :  { %s13671_s29 = smov [#allocation12]   ;;  %s13672_s6 = smov [#allocation15]  }
  0x5c   :  { %s98_s30 = sshll.u32 %s13671_s29, 4  ;;  %s120_s3 = sshll.u32 %s13672_s6, 4  ;;  %s99_s30 = int_to_ptr.vmem [resolvable:$true] %s98_s30  ;;  %s121_s3 = int_to_ptr.vmem [resolvable:$true] %s120_s3 }
  0x5d   :  { %s13571_s14 = scalar_lea.vmem %s99_s30, 8192  ;;  %p13576_p13 = scmp.lt.s32.totalorder %s99_s30, %s99_s30 }
  0x5e   :  { %p13572_p12 = scmp.ne.s32.totalorder %s99_s30, %s13571_s14  ;;  %p13577_p0 = scmp.lt.s32.totalorder %s13571_s14, %s13571_s14 }
  0x60   :  { %p13578_p1 = por %p13577_p0, %p13576_p13 }
  0x62   :  { %p13579_p2 = pnand %p13578_p1, %p13572_p12 }
  0x64   :  { %13582 = shalt.err (!%p13579_p2)
}
  0x65   :  { %104 = dma.hbm_to_vmem [thread:$0]  %s14149_s7, 8192, %s99_s30, [#allocation11], %s13666_s21, %s13666_s21, %s13667_s22  }
  0x66   :  { %s13591_s5 = scalar_lea.vmem %s121_s3, 32768  ;;  %p13596_p4 = scmp.lt.s32.totalorder %s121_s3, %s121_s3 }
  0x67   :  { %p13592_p3 = scmp.ne.s32.totalorder %s121_s3, %s13591_s5  ;;  %p13597_p5 = scmp.lt.s32.totalorder %s13591_s5, %s13591_s5 }
  0x69   :  { %p13598_p6 = por %p13597_p5, %p13596_p4 }
  0x6b   :  { %p13599_p7 = pnand %p13598_p6, %p13592_p3 }
  0x6d   :  { %13602 = shalt.err (!%p13599_p7)
}
  0x6e   :  { %126 = dma.hbm_to_vmem [thread:$0]  %s14151_s9, 32768, %s121_s3, [#allocation14], %s13663_s8, %s13663_s8, %s13664_s16  }
  0x6f   :  { %s13673_s20 = smov [#allocation18]  }
  0x70   :  { %s142_s10 = sshll.u32 %s13673_s20, 4  ;;  %s143_s10 = int_to_ptr.vmem [resolvable:$true] %s142_s10 }
  0x71   :  { %s13611_s2 = scalar_lea.vmem %s143_s10, 49152  ;;  %p13616_p9 = scmp.lt.s32.totalorder %s143_s10, %s143_s10 }
  0x72   :  { %p13612_p8 = scmp.ne.s32.totalorder %s143_s10, %s13611_s2  ;;  %p13617_p10 = scmp.lt.s32.totalorder %s13611_s2, %s13611_s2 }
  0x74   :  { %p13618_p11 = por %p13617_p10, %p13616_p9 }
  0x76   :  { %p13619_p12 = pnand %p13618_p11, %p13612_p8 }
  0x78   :  { %13622 = shalt.err (!%p13619_p12)
}
  0x79   :  { %s13674_s7 = smov 384   ;;  %s13675_s21 = smov 24  }
  0x7a   :  { %148 = dma.hbm_to_vmem [thread:$0]  %s14153_s11, 49152, %s143_s10, [#allocation17], %s13674_s7, %s13674_s7, %s13675_s21  }
  0x7b   :  { %s13676_s1 = smov [#allocation19]  }
  0x7c   :  { %s155_s24 = sshll.u32 %s13676_s1, 4  ;;  %s156_s24 = int_to_ptr.vmem [resolvable:$true] %s155_s24 }
  0x7d   :  { %s13631_s9 = scalar_lea.vmem %s156_s24, 96  ;;  %p13636_p0 = scmp.lt.s32.totalorder %s156_s24, %s156_s24 }
  0x7e   :  { %p13632_p13 = scmp.ne.s32.totalorder %s156_s24, %s13631_s9  ;;  %p13637_p1 = scmp.lt.s32.totalorder %s13631_s9, %s13631_s9 }
  0x80   :  { %p13638_p2 = por %p13637_p1, %p13636_p0 }
  0x82   :  { %p13639_p3 = pnand %p13638_p2, %p13632_p13 }
  0x84   :  { %13642 = shalt.err (!%p13639_p3)
}
  0x85   :  { %158 = dma.hbm_to_vmem [thread:$0]  %s14154_s12, 96, %s156_s24, [#allocation20]  }
  0x86   :  { %13643 = dma.done.wait [#allocation3], 49152  }
  0x87   :  { %13644 = vsyncadd [#allocation3], 4294918144 }
  0x88   :  { %13645 = dma.done.wait [#allocation5], 32896  }
  0x89   :  { %13646 = vsyncadd [#allocation5], 4294934400 }
  0x8a   :  { %13647 = dma.done.wait [#allocation8], 8256  }
  0x8b   :  { %13648 = vsyncadd [#allocation8], 4294959040 }
  0x8c   :  { %13649 = dma.done.wait [#allocation11], 8224  }
  0x8d   :  { %13650 = vsyncadd [#allocation11], 4294959072 }
  0x8e   :  { %13651 = dma.done.wait [#allocation14], 32832  }
  0x8f   :  { %13652 = vsyncadd [#allocation14], 4294934464 }
  0x90   :  { %13653 = dma.done.wait [#allocation17], 49280  }
  0x91   :  { %13654 = vsyncadd [#allocation17], 4294918016 }
  0x92   :  { %13655 = dma.done.wait [#allocation20], 96  }
  0x93   :  { %13656 = vsyncadd [#allocation20], 4294967200  ;;  %v292_v0 = vld [vmem:[#allocation2 + $0x1c0] sm:$0xff]  ;;  %v13677_v32 = vmov 1983009808   ;;  %v203_v34 = vlaneseq }
  0x94   :  { %v296_v1 = vld [vmem:[#allocation2 + $0x1e0] sm:$0xff]  ;;  %v201_v33 = vunpack.c.l.s4 %v13677_v32 }
  0x95   :  { %v420_v2 = vld [vmem:[#allocation2 + $0x5c0] sm:$0xff]  ;;  %v10852_v3 = vcombine.high %v292_v0, %v296_v1  ;;  %v10851_v5 = vcombine.low %v292_v0, %v296_v1  ;;  %v13796_v44 = vshrl.u32 %v203_v34, 7 }
  0x96   :  { %v424_v4 = vld [vmem:[#allocation2 + $0x5e0] sm:$0xff]  ;;  %v202_v43 = vunpack.c.0.s8 %v201_v33 }
  0x97   :  { %v284_v6 = vld [vmem:[#allocation2 + $0x180] sm:$0xff]  ;;  %v10980_v8 = vcombine.high %v420_v2, %v424_v4  ;;  %v10979_v9 = vcombine.low %v420_v2, %v424_v4  ;;  %2582 = vmatprep.subr.bf16.mxu0 %v10852_v3 }
  0x98   :  { %v288_v7 = vld [vmem:[#allocation2 + $0x1a0] sm:$0xff]  ;;  %2583 = vmatpush1.bf16.msra.mxu0 %v10851_v5  ;;  %v13799_v53 = vsub.s32 %v202_v43, %v13796_v44 }
  0x99   :  { %v10844_v10 = vcombine.high %v284_v6, %v288_v7  ;;  %v412_v11 = vld [vmem:[#allocation2 + $0x580] sm:$0xff]  ;;  %2623 = vmatprep.subr.bf16.mxu1 %v10980_v8  ;;  %v10843_v18 = vcombine.low %v284_v6, %v288_v7 }
  0x9a   :  { %v416_v12 = vld [vmem:[#allocation2 + $0x5a0] sm:$0xff]  ;;  %2624 = vmatpush1.bf16.msra.mxu1 %v10979_v9 }
  0x9b   :  { %v276_v13 = vld [vmem:[#allocation2 + $0x140] sm:$0xff]  ;;  %v10972_v14 = vcombine.high %v412_v11, %v416_v12  ;;  %2584 = vmatprep.subr.bf16.mxu0 %v10844_v10  ;;  %v10971_v19 = vcombine.low %v412_v11, %v416_v12 }
  0x9c   :  { %v280_v15 = vld [vmem:[#allocation2 + $0x160] sm:$0xff]  ;;  %2585 = vmatpush1.bf16.msra.mxu0 %v10843_v18 }
  0x9d   :  { %v404_v16 = vld [vmem:[#allocation2 + $0x540] sm:$0xff]  ;;  %v10836_v20 = vcombine.high %v276_v13, %v280_v15  ;;  %2625 = vmatprep.subr.bf16.mxu1 %v10972_v14  ;;  %v10835_v26 = vcombine.low %v276_v13, %v280_v15 }
  0x9e   :  { %v408_v17 = vld [vmem:[#allocation2 + $0x560] sm:$0xff]  ;;  %2626 = vmatpush1.bf16.msra.mxu1 %v10971_v19 }
  0x9f   :  { %v10964_v21 = vcombine.high %v404_v16, %v408_v17  ;;  %v268_v22 = vld [vmem:[#allocation2 + $0x100] sm:$0xff]  ;;  %2586 = vmatprep.subr.bf16.mxu0 %v10836_v20  ;;  %v10963_v27 = vcombine.low %v404_v16, %v408_v17 }
  0xa0   :  { %v272_v23 = vld [vmem:[#allocation2 + $0x120] sm:$0xff]  ;;  %2587 = vmatpush1.bf16.msra.mxu0 %v10835_v26 }
  0xa1   :  { %v396_v24 = vld [vmem:[#allocation2 + $0x500] sm:$0xff]  ;;  %v10828_v28 = vcombine.high %v268_v22, %v272_v23  ;;  %2627 = vmatprep.subr.bf16.mxu1 %v10964_v21  ;;  %v10827_v37 = vcombine.low %v268_v22, %v272_v23 }
  0xa2   :  { %v400_v25 = vld [vmem:[#allocation2 + $0x520] sm:$0xff]  ;;  %2628 = vmatpush1.bf16.msra.mxu1 %v10963_v27 }
  0xa3   :  { %v10956_v29 = vcombine.high %v396_v24, %v400_v25  ;;  %v260_v30 = vld [vmem:[#allocation2 + $0xc0] sm:$0xff]  ;;  %2588 = vmatprep.subr.bf16.mxu0 %v10828_v28  ;;  %v10955_v38 = vcombine.low %v396_v24, %v400_v25 }
  0xa4   :  { %v264_v31 = vld [vmem:[#allocation2 + $0xe0] sm:$0xff]  ;;  %2589 = vmatpush1.bf16.msra.mxu0 %v10827_v37 }
  0xa5   :  { %v388_v35 = vld [vmem:[#allocation2 + $0x4c0] sm:$0xff]  ;;  %v10820_v39 = vcombine.high %v260_v30, %v264_v31  ;;  %2629 = vmatprep.subr.bf16.mxu1 %v10956_v29  ;;  %v10819_v47 = vcombine.low %v260_v30, %v264_v31 }
  0xa6   :  { %v392_v36 = vld [vmem:[#allocation2 + $0x4e0] sm:$0xff]  ;;  %2630 = vmatpush1.bf16.msra.mxu1 %v10955_v38 }
  0xa7   :  { %v10948_v40 = vcombine.high %v388_v35, %v392_v36  ;;  %v252_v41 = vld [vmem:[#allocation2 + $0x80] sm:$0xff]  ;;  %2590 = vmatprep.subr.bf16.mxu0 %v10820_v39  ;;  %v10947_v48 = vcombine.low %v388_v35, %v392_v36 }
  0xa8   :  { %v256_v42 = vld [vmem:[#allocation2 + $0xa0] sm:$0xff]  ;;  %2591 = vmatpush1.bf16.msra.mxu0 %v10819_v47 }
  0xa9   :  { %v380_v45 = vld [vmem:[#allocation2 + $0x480] sm:$0xff]  ;;  %v10812_v49 = vcombine.high %v252_v41, %v256_v42  ;;  %2631 = vmatprep.subr.bf16.mxu1 %v10948_v40  ;;  %v10811_v56 = vcombine.low %v252_v41, %v256_v42 }
  0xaa   :  { %v384_v46 = vld [vmem:[#allocation2 + $0x4a0] sm:$0xff]  ;;  %2632 = vmatpush1.bf16.msra.mxu1 %v10947_v48 }
  0xab   :  { %v10940_v50 = vcombine.high %v380_v45, %v384_v46  ;;  %v244_v51 = vld [vmem:[#allocation2 + $0x40] sm:$0xff]  ;;  %2592 = vmatprep.subr.bf16.mxu0 %v10812_v49  ;;  %v10939_v57 = vcombine.low %v380_v45, %v384_v46 }
  0xac   :  { %v248_v52 = vld [vmem:[#allocation2 + $0x60] sm:$0xff]  ;;  %2593 = vmatpush1.bf16.msra.mxu0 %v10811_v56 }
  0xad   :  { %v372_v54 = vld [vmem:[#allocation2 + $0x440] sm:$0xff]  ;;  %v10804_v58 = vcombine.high %v244_v51, %v248_v52  ;;  %2633 = vmatprep.subr.bf16.mxu1 %v10940_v50  ;;  %v10803_v3 = vcombine.low %v244_v51, %v248_v52 }
  0xae   :  { %v376_v55 = vld [vmem:[#allocation2 + $0x460] sm:$0xff]  ;;  %2634 = vmatpush1.bf16.msra.mxu1 %v10939_v57 }
  0xaf   :  { %v195_v59 = vld [vmem:[%s14142_s0] sm:$0xff]  ;;  %v10932_v60 = vcombine.high %v372_v54, %v376_v55  ;;  %2594 = vmatprep.subr.bf16.mxu0 %v10804_v58  ;;  %v10931_v6 = vcombine.low %v372_v54, %v376_v55 }
  0xb0   :  { %v236_v61 = vld [vmem:[#allocation2] sm:$0xff]  ;;  %v13805_v63 = vrot.slane %v195_v59, %v13799_v53  ;;  %v199_v0 = vcombine.high %v195_v59, %v195_v59  ;;  %2595 = vmatpush1.bf16.msra.mxu0 %v10803_v3 }
  0xb1   :  { %v240_v62 = vld [vmem:[#allocation2 + $0x20] sm:$0xff]  ;;  %2635 = vmatprep.subr.bf16.mxu1 %v10932_v60 }
  0xb2   :  { %v364_v1 = vld [vmem:[#allocation2 + $0x400] sm:$0xff]  ;;  %v214_v4 = vcombine.high %v13805_v63, %v13805_v63  ;;  %v13810_v5 = vrot.slane %v199_v0, %v13799_v53  ;;  %v10796_v7 = vcombine.high %v236_v61, %v240_v62  ;;  %v10795_v15 = vcombine.low %v236_v61, %v240_v62  ;;  %2636 = vmatpush1.bf16.msra.mxu1 %v10931_v6 }
  0xb3   :  { %v368_v2 = vld [vmem:[#allocation2 + $0x420] sm:$0xff] }
  0xb4   :  { %v10924_v8 = vcombine.high %v364_v1, %v368_v2  ;;  %v356_v9 = vld [vmem:[#allocation2 + $0x3c0] sm:$0xff]  ;;  %v13812_v11 = vpack.c.bf16 %v214_v4, %v214_v4  ;;  %v215_v12 = vcombine.high %v13810_v5, %v13810_v5  ;;  %2596 = vmatprep.subr.bf16.mxu0 %v10796_v7  ;;  %v10923_v17 = vcombine.low %v364_v1, %v368_v2 }
  0xb5   :  { %v360_v10 = vld [vmem:[#allocation2 + $0x3e0] sm:$0xff]  ;;  %2597 = vmatpush1.bf16.msra.mxu0 %v10795_v15 }
  0xb6   :  { %v484_v13 = vld [vmem:[#allocation2 + $0x7c0] sm:$0xff]  ;;  %2614 = vmatprep.mubr.bf16.mxu0 %v13812_v11  ;;  %v13817_v16 = vpack.c.bf16 %v215_v12, %v215_v12  ;;  %v10916_v18 = vcombine.high %v356_v9, %v360_v10  ;;  %2637 = vmatprep.subr.bf16.mxu1 %v10924_v8  ;;  %v10915_v24 = vcombine.low %v356_v9, %v360_v10 }
  0xb7   :  { %v488_v14 = vld [vmem:[#allocation2 + $0x7e0] sm:$0xff]  ;;  %2638 = vmatpush1.bf16.msra.mxu1 %v10923_v17 }
  0xb8   :  { %v11044_v19 = vcombine.high %v484_v13, %v488_v14  ;;  %v348_v20 = vld [vmem:[#allocation2 + $0x380] sm:$0xff]  ;;  %2655 = vmatprep.mubr.bf16.mxu1 %v13817_v16  ;;  %2598 = vmatprep.subr.bf16.mxu0 %v10916_v18  ;;  %v11043_v25 = vcombine.low %v484_v13, %v488_v14 }
  0xb9   :  { %v352_v21 = vld [vmem:[#allocation2 + $0x3a0] sm:$0xff]  ;;  %2599 = vmatpush2.bf16.msra.mxu0 %v10915_v24 }
  0xba   :  { %v476_v22 = vld [vmem:[#allocation2 + $0x780] sm:$0xff]  ;;  %v10908_v26 = vcombine.high %v348_v20, %v352_v21  ;;  %2639 = vmatprep.subr.bf16.mxu1 %v11044_v19  ;;  %v10907_v32 = vcombine.low %v348_v20, %v352_v21  ;;  %v293_v20 = vld [vmem:[#allocation2 + $0x1c8] sm:$0xff] }
  0xbb   :  { %v480_v23 = vld [vmem:[#allocation2 + $0x7a0] sm:$0xff]  ;;  %2640 = vmatpush2.bf16.msra.mxu1 %v11043_v25  ;;  %v297_v21 = vld [vmem:[#allocation2 + $0x1e8] sm:$0xff] }
  0xbc   :  { %v11036_v27 = vcombine.high %v476_v22, %v480_v23  ;;  %v340_v28 = vld [vmem:[#allocation2 + $0x340] sm:$0xff]  ;;  %2600 = vmatprep.subr.bf16.mxu0 %v10908_v26  ;;  %v11035_v33 = vcombine.low %v476_v22, %v480_v23  ;;  %v13823_v22 = vld.sshfl [vmem:[%s14142_s0 + $0x8] sm:$0x33 pattern:$0x76325410]  ;;  %v10854_v26 = vcombine.high %v293_v20, %v297_v21 }
  0xbd   :  { %v344_v29 = vld [vmem:[#allocation2 + $0x360] sm:$0xff]  ;;  %2601 = vmatpush2.bf16.msra.mxu0 %v10907_v32  ;;  %v289_v32 = vld [vmem:[#allocation2 + $0x1a8] sm:$0xff] }
  0xbe   :  { %v468_v30 = vld [vmem:[#allocation2 + $0x740] sm:$0xff]  ;;  %v10900_v34 = vcombine.high %v340_v28, %v344_v29  ;;  %2641 = vmatprep.subr.bf16.mxu1 %v11036_v27  ;;  %v10899_v40 = vcombine.low %v340_v28, %v344_v29  ;;  %v223_v29 = vcombine.high %v13823_v22, %v13823_v22 }
  0xbf   :  { %v472_v31 = vld [vmem:[#allocation2 + $0x760] sm:$0xff]  ;;  %2642 = vmatpush2.bf16.msra.mxu1 %v11035_v33  ;;  %v13833_v33 = vpack.c.bf16 %v13810_v5, %v13810_v5 }
  0xc0   :  { %v11028_v35 = vcombine.high %v468_v30, %v472_v31  ;;  %v332_v36 = vld [vmem:[#allocation2 + $0x300] sm:$0xff]  ;;  %2602 = vmatprep.subr.bf16.mxu0 %v10900_v34  ;;  %v11027_v41 = vcombine.low %v468_v30, %v472_v31  ;;  %v13829_v30 = vpack.c.bf16 %v13805_v63, %v13805_v63  ;;  %v285_v31 = vld [vmem:[#allocation2 + $0x188] sm:$0xff]  ;;  %v13835_v63 = vpack.c.bf16 %v223_v29, %v223_v29 }
  0xc1   :  { %v336_v37 = vld [vmem:[#allocation2 + $0x320] sm:$0xff]  ;;  %2603 = vmatpush2.bf16.msra.mxu0 %v10899_v40  ;;  %v10846_v40 = vcombine.high %v285_v31, %v289_v32  ;;  %v357_v29 = vld [vmem:[#allocation2 + $0x3c8] sm:$0xff] }
  0xc2   :  { %v460_v38 = vld [vmem:[#allocation2 + $0x700] sm:$0xff]  ;;  %v10892_v42 = vcombine.high %v332_v36, %v336_v37  ;;  %2643 = vmatprep.subr.bf16.mxu1 %v11028_v35  ;;  %v10891_v49 = vcombine.low %v332_v36, %v336_v37  ;;  %v10853_v35 = vcombine.low %v293_v20, %v297_v21  ;;  %v237_v20 = vld [vmem:[#allocation2 + $0x8] sm:$0xff] }
  0xc3   :  { %v464_v39 = vld [vmem:[#allocation2 + $0x720] sm:$0xff]  ;;  %2644 = vmatpush2.bf16.msra.mxu1 %v11027_v41  ;;  %v281_v41 = vld [vmem:[#allocation2 + $0x168] sm:$0xff] }
  0xc4   :  { %v11020_v43 = vcombine.high %v460_v38, %v464_v39  ;;  %v324_v45 = vld [vmem:[#allocation2 + $0x2c0] sm:$0xff]  ;;  %2604 = vmatprep.subr.bf16.mxu0 %v10892_v42  ;;  %v11019_v50 = vcombine.low %v460_v38, %v464_v39  ;;  %v277_v39 = vld [vmem:[#allocation2 + $0x148] sm:$0xff]  ;;  %v10845_v42 = vcombine.low %v285_v31, %v289_v32 }
  0xc5   :  { %v328_v46 = vld [vmem:[#allocation2 + $0x2e0] sm:$0xff]  ;;  %2605 = vmatpush2.bf16.msra.mxu0 %v10891_v49  ;;  %v273_v49 = vld [vmem:[#allocation2 + $0x128] sm:$0xff] }
  0xc6   :  { %v452_v47 = vld [vmem:[#allocation2 + $0x6c0] sm:$0xff]  ;;  %v10884_v51 = vcombine.high %v324_v45, %v328_v46  ;;  %2645 = vmatprep.subr.bf16.mxu1 %v11020_v43  ;;  %v10883_v58 = vcombine.low %v324_v45, %v328_v46  ;;  %v361_v32 = vld [vmem:[#allocation2 + $0x3e8] sm:$0xff] }
  0xc7   :  { %v456_v48 = vld [vmem:[#allocation2 + $0x6e0] sm:$0xff]  ;;  %2646 = vmatpush2.bf16.msra.mxu1 %v11019_v50 }
  0xc8   :  { %v11012_v52 = vcombine.high %v452_v47, %v456_v48  ;;  %v316_v54 = vld [vmem:[#allocation2 + $0x280] sm:$0xff]  ;;  %2606 = vmatprep.subr.bf16.mxu0 %v10884_v51  ;;  %v11011_v59 = vcombine.low %v452_v47, %v456_v48  ;;  %v269_v47 = vld [vmem:[#allocation2 + $0x108] sm:$0xff]  ;;  %v10838_v48 = vcombine.high %v277_v39, %v281_v41  ;;  %v10837_v51 = vcombine.low %v277_v39, %v281_v41 }
  0xc9   :  { %v320_v55 = vld [vmem:[#allocation2 + $0x2a0] sm:$0xff]  ;;  %2607 = vmatpush2.bf16.msra.mxu0 %v10883_v58  ;;  %v265_v58 = vld [vmem:[#allocation2 + $0xe8] sm:$0xff] }
  0xca   :  { %v444_v56 = vld [vmem:[#allocation2 + $0x680] sm:$0xff]  ;;  %v10876_v60 = vcombine.high %v316_v54, %v320_v55  ;;  %2647 = vmatprep.subr.bf16.mxu1 %v11012_v52  ;;  %v10875_v3 = vcombine.low %v316_v54, %v320_v55  ;;  %v349_v39 = vld [vmem:[#allocation2 + $0x388] sm:$0xff] }
  0xcb   :  { %v448_v57 = vld [vmem:[#allocation2 + $0x6a0] sm:$0xff]  ;;  %2648 = vmatpush2.bf16.msra.mxu1 %v11011_v59  ;;  %v353_v41 = vld [vmem:[#allocation2 + $0x3a8] sm:$0xff] }
  0xcc   :  { %v11004_v61 = vcombine.high %v444_v56, %v448_v57  ;;  %v308_v62 = vld [vmem:[#allocation2 + $0x240] sm:$0xff]  ;;  %2608 = vmatprep.subr.bf16.mxu0 %v10876_v60  ;;  %v11003_v4 = vcombine.low %v444_v56, %v448_v57  ;;  %v261_v56 = vld [vmem:[#allocation2 + $0xc8] sm:$0xff]  ;;  %v10830_v57 = vcombine.high %v269_v47, %v273_v49  ;;  %v10829_v60 = vcombine.low %v269_v47, %v273_v49 }
  0xcd   :  { %v312_v0 = vld [vmem:[#allocation2 + $0x260] sm:$0xff]  ;;  %2609 = vmatpush2.bf16.msra.mxu0 %v10875_v3  ;;  %v257_v3 = vld [vmem:[#allocation2 + $0xa8] sm:$0xff] }
  0xce   :  { %v436_v1 = vld [vmem:[#allocation2 + $0x640] sm:$0xff]  ;;  %v10868_v6 = vcombine.high %v308_v62, %v312_v0  ;;  %2649 = vmatprep.subr.bf16.mxu1 %v11004_v61  ;;  %v10867_v13 = vcombine.low %v308_v62, %v312_v0  ;;  %v341_v47 = vld [vmem:[#allocation2 + $0x348] sm:$0xff] }
  0xcf   :  { %v440_v2 = vld [vmem:[#allocation2 + $0x660] sm:$0xff]  ;;  %2650 = vmatpush2.bf16.msra.mxu1 %v11003_v4  ;;  %v345_v49 = vld [vmem:[#allocation2 + $0x368] sm:$0xff] }
  0xd0   :  { %v10996_v7 = vcombine.high %v436_v1, %v440_v2  ;;  %v300_v8 = vld [vmem:[#allocation2 + $0x200] sm:$0xff]  ;;  %2610 = vmatprep.subr.bf16.mxu0 %v10868_v6  ;;  %v10995_v14 = vcombine.low %v436_v1, %v440_v2  ;;  %v253_v1 = vld [vmem:[#allocation2 + $0x88] sm:$0xff]  ;;  %v10822_v2 = vcombine.high %v261_v56, %v265_v58  ;;  %v10821_v6 = vcombine.low %v261_v56, %v265_v58 }
  0xd1   :  { %v304_v9 = vld [vmem:[#allocation2 + $0x220] sm:$0xff]  ;;  %2611 = vmatpush2.bf16.msra.mxu0 %v10867_v13  ;;  %v249_v13 = vld [vmem:[#allocation2 + $0x68] sm:$0xff] }
  0xd2   :  { %v428_v10 = vld [vmem:[#allocation2 + $0x600] sm:$0xff]  ;;  %v10860_v15 = vcombine.high %v300_v8, %v304_v9  ;;  %2651 = vmatprep.subr.bf16.mxu1 %v10996_v7  ;;  %v10859_v23 = vcombine.low %v300_v8, %v304_v9  ;;  %v333_v56 = vld [vmem:[#allocation2 + $0x308] sm:$0xff] }
  0xd3   :  { %v432_v12 = vld [vmem:[#allocation2 + $0x620] sm:$0xff]  ;;  %2652 = vmatpush2.bf16.msra.mxu1 %v10995_v14  ;;  %v337_v58 = vld [vmem:[#allocation2 + $0x328] sm:$0xff] }
  0xd4   :  { %v10988_v17 = vcombine.high %v428_v10, %v432_v12  ;;  %v548_v18 = vld [vmem:[#allocation2 + $0x9c0] sm:$0xff]  ;;  %2612 = vmatprep.subr.bf16.mxu0 %v10860_v15  ;;  %v10987_v24 = vcombine.low %v428_v10, %v432_v12  ;;  %v245_v10 = vld [vmem:[#allocation2 + $0x48] sm:$0xff]  ;;  %v10814_v12 = vcombine.high %v253_v1, %v257_v3  ;;  %v10813_v15 = vcombine.low %v253_v1, %v257_v3 }
  0xd5   :  { %v552_v19 = vld [vmem:[#allocation2 + $0x9e0] sm:$0xff]  ;;  %2613 = vmatpush2.bf16.msra.mxu0 %v10859_v23  ;;  %v10806_v21 = vcombine.high %v245_v10, %v249_v13  ;;  %v241_v23 = vld [vmem:[#allocation2 + $0x28] sm:$0xff] }
  0xd6   :  { %v11108_v25 = vcombine.high %v548_v18, %v552_v19  ;;  %2653 = vmatprep.subr.bf16.mxu1 %v10988_v17  ;;  %v540_v27 = vld [vmem:[#allocation2 + $0x980] sm:$0xff]  ;;  %v11107_v34 = vcombine.low %v548_v18, %v552_v19  ;;  %v10798_v31 = vcombine.high %v237_v20, %v241_v23  ;;  %v325_v1 = vld [vmem:[#allocation2 + $0x2c8] sm:$0xff] }
  0xd7   :  { %v544_v28 = vld [vmem:[#allocation2 + $0x9a0] sm:$0xff]  ;;  %2654 = vmatpush2.bf16.msra.mxu1 %v10987_v24  ;;  %v329_v3 = vld [vmem:[#allocation2 + $0x2e8] sm:$0xff] }
  0xd8   :  { %2664 = vmatprep.subr.bf16.mxu0 %v11108_v25  ;;  %v11100_v36 = vcombine.high %v540_v27, %v544_v28  ;;  %v532_v37 = vld [vmem:[#allocation2 + $0x940] sm:$0xff]  ;;  %2705 = vmatprep.subr.bf16.mxu1 %v10854_v26  ;;  %v11099_v5 = vcombine.low %v540_v27, %v544_v28  ;;  %v10805_v25 = vcombine.low %v245_v10, %v249_v13  ;;  %v317_v10 = vld [vmem:[#allocation2 + $0x288] sm:$0xff] }
  0xd9   :  { %v536_v38 = vld [vmem:[#allocation2 + $0x960] sm:$0xff]  ;;  %2615 = vmatmul.mubr.bf16.vlgmr.msra.gmra.mxu0 %v13829_v30  ;;  %v321_v13 = vld [vmem:[#allocation2 + $0x2a8] sm:$0xff] }
  0xda   :  { %2656 = vmatmul.mubr.bf16.vlgmr.msra.gmra.mxu1 %v13833_v33  ;;  %2665 = vmatpush1.bf16.msra.mxu0 %v11107_v34  ;;  %v11092_v43 = vcombine.high %v532_v37, %v536_v38  ;;  %v524_v45 = vld [vmem:[#allocation2 + $0x900] sm:$0xff]  ;;  %v11091_v50 = vcombine.low %v532_v37, %v536_v38 }
  0xdb   :  { %2706 = vmatpush1.bf16.msra.mxu1 %v10853_v35  ;;  %2666 = vmatprep.subr.bf16.mxu0 %v11100_v36  ;;  %v528_v46 = vld [vmem:[#allocation2 + $0x920] sm:$0xff]  ;;  %v10797_v35 = vcombine.low %v237_v20, %v241_v23  ;;  %v309_v20 = vld [vmem:[#allocation2 + $0x248] sm:$0xff] }
  0xdc   :  { %2707 = vmatprep.subr.bf16.mxu1 %v10846_v40  ;;  %2696 = vmatprep.mubr.bf16.mxu0 %v13835_v63  ;;  %v11084_v52 = vcombine.high %v524_v45, %v528_v46  ;;  %v516_v54 = vld [vmem:[#allocation2 + $0x8c0] sm:$0xff]  ;;  %v11083_v59 = vcombine.low %v524_v45, %v528_v46  ;;  %v10918_v40 = vcombine.high %v357_v29, %v361_v32  ;;  %v313_v23 = vld [vmem:[#allocation2 + $0x268] sm:$0xff] }
  0xdd   :  { %2737 = vmatprep.mubr.bf16.mxu1 %v13812_v11  ;;  %v520_v55 = vld [vmem:[#allocation2 + $0x8e0] sm:$0xff] }
  0xde   :  { %2667 = vmatpush1.bf16.msra.mxu0 %v11099_v5  ;;  %v11076_v61 = vcombine.high %v516_v54, %v520_v55  ;;  %v508_v62 = vld [vmem:[#allocation2 + $0x880] sm:$0xff]  ;;  %v11075_v4 = vcombine.low %v516_v54, %v520_v55 }
  0xdf   :  { %2708 = vmatpush1.bf16.msra.mxu1 %v10845_v42  ;;  %2668 = vmatprep.subr.bf16.mxu0 %v11092_v43  ;;  %v512_v0 = vld [vmem:[#allocation2 + $0x8a0] sm:$0xff]  ;;  %v10917_v42 = vcombine.low %v357_v29, %v361_v32  ;;  %v301_v29 = vld [vmem:[#allocation2 + $0x208] sm:$0xff] }
  0xe0   :  { %2709 = vmatprep.subr.bf16.mxu1 %v10838_v48  ;;  %v11068_v7 = vcombine.high %v508_v62, %v512_v0  ;;  %v500_v8 = vld [vmem:[#allocation2 + $0x840] sm:$0xff]  ;;  %v11067_v14 = vcombine.low %v508_v62, %v512_v0  ;;  %v10910_v48 = vcombine.high %v349_v39, %v353_v41  ;;  %v305_v32 = vld [vmem:[#allocation2 + $0x228] sm:$0xff] }
  0xe1   :  { %v504_v9 = vld [vmem:[#allocation2 + $0x860] sm:$0xff] }
  0xe2   :  { %2669 = vmatpush1.bf16.msra.mxu0 %v11091_v50  ;;  %v11060_v17 = vcombine.high %v500_v8, %v504_v9  ;;  %v492_v18 = vld [vmem:[#allocation2 + $0x800] sm:$0xff]  ;;  %v11059_v24 = vcombine.low %v500_v8, %v504_v9 }
  0xe3   :  { %2710 = vmatpush1.bf16.msra.mxu1 %v10837_v51  ;;  %2670 = vmatprep.subr.bf16.mxu0 %v11084_v52  ;;  %v496_v19 = vld [vmem:[#allocation2 + $0x820] sm:$0xff]  ;;  %v10909_v51 = vcombine.low %v349_v39, %v353_v41  ;;  %v549_v39 = vld [vmem:[#allocation2 + $0x9c8] sm:$0xff] }
  0xe4   :  { %2711 = vmatprep.subr.bf16.mxu1 %v10830_v57  ;;  %v11052_v26 = vcombine.high %v492_v18, %v496_v19  ;;  %v612_v27 = vld [vmem:[#allocation2 + $0xbc0] sm:$0xff]  ;;  %v11051_v34 = vcombine.low %v492_v18, %v496_v19  ;;  %v10902_v57 = vcombine.high %v341_v47, %v345_v49  ;;  %v553_v41 = vld [vmem:[#allocation2 + $0x9e8] sm:$0xff] }
  0xe5   :  { %v616_v28 = vld [vmem:[#allocation2 + $0xbe0] sm:$0xff] }
  0xe6   :  { %2671 = vmatpush1.bf16.msra.mxu0 %v11083_v59  ;;  %v11172_v36 = vcombine.high %v612_v27, %v616_v28  ;;  %v604_v37 = vld [vmem:[#allocation2 + $0xb80] sm:$0xff]  ;;  %v11171_v5 = vcombine.low %v612_v27, %v616_v28 }
  0xe7   :  { %2712 = vmatpush1.bf16.msra.mxu1 %v10829_v60  ;;  %2672 = vmatprep.subr.bf16.mxu0 %v11076_v61  ;;  %v608_v38 = vld [vmem:[#allocation2 + $0xba0] sm:$0xff]  ;;  %v10901_v60 = vcombine.low %v341_v47, %v345_v49  ;;  %v541_v47 = vld [vmem:[#allocation2 + $0x988] sm:$0xff] }
  0xe8   :  { %2713 = vmatprep.subr.bf16.mxu1 %v10822_v2  ;;  %v11164_v43 = vcombine.high %v604_v37, %v608_v38  ;;  %v596_v45 = vld [vmem:[#allocation2 + $0xb40] sm:$0xff]  ;;  %v11163_v50 = vcombine.low %v604_v37, %v608_v38  ;;  %v10894_v2 = vcombine.high %v333_v56, %v337_v58  ;;  %v421_v37 = vld [vmem:[#allocation2 + $0x5c8] sm:$0xff] }
  0xe9   :  { %v600_v46 = vld [vmem:[#allocation2 + $0xb60] sm:$0xff]  ;;  %v425_v38 = vld [vmem:[#allocation2 + $0x5e8] sm:$0xff] }
  0xea   :  { %2673 = vmatpush1.bf16.msra.mxu0 %v11075_v4  ;;  %v11156_v52 = vcombine.high %v596_v45, %v600_v46  ;;  %v588_v54 = vld [vmem:[#allocation2 + $0xb00] sm:$0xff]  ;;  %v11155_v59 = vcombine.low %v596_v45, %v600_v46  ;;  %v413_v45 = vld [vmem:[#allocation2 + $0x588] sm:$0xff] }
  0xeb   :  { %2714 = vmatpush1.bf16.msra.mxu1 %v10821_v6  ;;  %2674 = vmatprep.subr.bf16.mxu0 %v11068_v7  ;;  %v592_v55 = vld [vmem:[#allocation2 + $0xb20] sm:$0xff]  ;;  %v10893_v6 = vcombine.low %v333_v56, %v337_v58  ;;  %v417_v46 = vld [vmem:[#allocation2 + $0x5a8] sm:$0xff] }
  0xec   :  { %2715 = vmatprep.subr.bf16.mxu1 %v10814_v12  ;;  %v11148_v61 = vcombine.high %v588_v54, %v592_v55  ;;  %v580_v62 = vld [vmem:[#allocation2 + $0xac0] sm:$0xff]  ;;  %v11147_v4 = vcombine.low %v588_v54, %v592_v55  ;;  %v10886_v12 = vcombine.high %v325_v1, %v329_v3  ;;  %v545_v49 = vld [vmem:[#allocation2 + $0x9a8] sm:$0xff]  ;;  %v10974_v54 = vcombine.high %v413_v45, %v417_v46 }
  0xed   :  { %v584_v0 = vld [vmem:[#allocation2 + $0xae0] sm:$0xff]  ;;  %v405_v55 = vld [vmem:[#allocation2 + $0x548] sm:$0xff] }
  0xee   :  { %2675 = vmatpush1.bf16.msra.mxu0 %v11067_v14  ;;  %v11140_v7 = vcombine.high %v580_v62, %v584_v0  ;;  %v572_v8 = vld [vmem:[#allocation2 + $0xa80] sm:$0xff]  ;;  %v11139_v14 = vcombine.low %v580_v62, %v584_v0  ;;  %v409_v56 = vld [vmem:[#allocation2 + $0x568] sm:$0xff] }
  0xef   :  { %2716 = vmatpush1.bf16.msra.mxu1 %v10813_v15  ;;  %2676 = vmatprep.subr.bf16.mxu0 %v11060_v17  ;;  %v576_v9 = vld [vmem:[#allocation2 + $0xaa0] sm:$0xff]  ;;  %v10885_v15 = vcombine.low %v325_v1, %v329_v3  ;;  %v533_v58 = vld [vmem:[#allocation2 + $0x948] sm:$0xff] }
  0xf0   :  { %2717 = vmatprep.subr.bf16.mxu1 %v10806_v21  ;;  %v11132_v17 = vcombine.high %v572_v8, %v576_v9  ;;  %v564_v18 = vld [vmem:[#allocation2 + $0xa40] sm:$0xff]  ;;  %v10878_v21 = vcombine.high %v317_v10, %v321_v13  ;;  %v397_v62 = vld [vmem:[#allocation2 + $0x508] sm:$0xff] }
  0xf1   :  { %v568_v19 = vld [vmem:[#allocation2 + $0xa60] sm:$0xff]  ;;  %v401_v0 = vld [vmem:[#allocation2 + $0x528] sm:$0xff] }
  0xf2   :  { %2677 = vmatpush1.bf16.msra.mxu0 %v11059_v24  ;;  %v11131_v24 = vcombine.low %v572_v8, %v576_v9  ;;  %v556_v27 = vld [vmem:[#allocation2 + $0xa00] sm:$0xff]  ;;  %v525_v1 = vld [vmem:[#allocation2 + $0x908] sm:$0xff] }
  0xf3   :  { %2718 = vmatpush1.bf16.msra.mxu1 %v10805_v25  ;;  %2678 = vmatprep.subr.bf16.mxu0 %v11052_v26  ;;  %v10877_v25 = vcombine.low %v317_v10, %v321_v13  ;;  %v11124_v26 = vcombine.high %v564_v18, %v568_v19  ;;  %v560_v28 = vld [vmem:[#allocation2 + $0xa20] sm:$0xff]  ;;  %v529_v3 = vld [vmem:[#allocation2 + $0x928] sm:$0xff] }
  0xf4   :  { %2719 = vmatprep.subr.bf16.mxu1 %v10798_v31  ;;  %v10870_v31 = vcombine.high %v309_v20, %v313_v23  ;;  %v389_v8 = vld [vmem:[#allocation2 + $0x4c8] sm:$0xff] }
  0xf5   :  { %v393_v9 = vld [vmem:[#allocation2 + $0x4e8] sm:$0xff] }
  0xf6   :  { %2679 = vmatpush1.bf16.msra.mxu0 %v11051_v34  ;;  %v11123_v34 = vcombine.low %v564_v18, %v568_v19  ;;  %v517_v10 = vld [vmem:[#allocation2 + $0x8c8] sm:$0xff] }
  0xf7   :  { %2720 = vmatpush1.bf16.msra.mxu1 %v10797_v35  ;;  %2680 = vmatprep.subr.bf16.mxu0 %v11172_v36  ;;  %v10869_v35 = vcombine.low %v309_v20, %v313_v23  ;;  %v11116_v36 = vcombine.high %v556_v27, %v560_v28  ;;  %v521_v13 = vld [vmem:[#allocation2 + $0x8e8] sm:$0xff] }
  0xf8   :  { %2721 = vmatprep.subr.bf16.mxu1 %v10918_v40  ;;  %v10862_v40 = vcombine.high %v301_v29, %v305_v32  ;;  %v381_v18 = vld [vmem:[#allocation2 + $0x488] sm:$0xff] }
  0xf9   :  { %v385_v19 = vld [vmem:[#allocation2 + $0x4a8] sm:$0xff] }
  0xfa   :  { %2681 = vmatpush2.bf16.msra.mxu0 %v11171_v5  ;;  %v11115_v5 = vcombine.low %v556_v27, %v560_v28  ;;  %v509_v20 = vld [vmem:[#allocation2 + $0x888] sm:$0xff] }
  0xfb   :  { %2722 = vmatpush2.bf16.msra.mxu1 %v10917_v42  ;;  %2682 = vmatprep.subr.bf16.mxu0 %v11164_v43  ;;  %v10861_v42 = vcombine.low %v301_v29, %v305_v32  ;;  %v10982_v43 = vcombine.high %v421_v37, %v425_v38  ;;  %v513_v23 = vld [vmem:[#allocation2 + $0x8a8] sm:$0xff] }
  0xfc   :  { %2723 = vmatprep.subr.bf16.mxu1 %v10910_v48  ;;  %v11110_v48 = vcombine.high %v549_v39, %v553_v41  ;;  %v373_v27 = vld [vmem:[#allocation2 + $0x448] sm:$0xff] }
  0xfd   :  { %v377_v28 = vld [vmem:[#allocation2 + $0x468] sm:$0xff] }
  0xfe   :  { %2683 = vmatpush2.bf16.msra.mxu0 %v11163_v50  ;;  %v13843_v50 = vpack.c.bf16 %v13823_v22, %v13823_v22  ;;  %v11101_v22 = vcombine.low %v541_v47, %v545_v49  ;;  %v501_v29 = vld [vmem:[#allocation2 + $0x848] sm:$0xff] }
  0xff   :  { %2724 = vmatpush2.bf16.msra.mxu1 %v10909_v51  ;;  %2684 = vmatprep.subr.bf16.mxu0 %v11156_v52  ;;  %v10981_v51 = vcombine.low %v421_v37, %v425_v38  ;;  %v11109_v52 = vcombine.low %v549_v39, %v553_v41  ;;  %v505_v32 = vld [vmem:[#allocation2 + $0x868] sm:$0xff] }
 0x100   :  { %2725 = vmatprep.subr.bf16.mxu1 %v10902_v57  ;;  %v11102_v57 = vcombine.high %v541_v47, %v545_v49  ;;  %v365_v37 = vld [vmem:[#allocation2 + $0x408] sm:$0xff] }
 0x101   :  { %v369_v38 = vld [vmem:[#allocation2 + $0x428] sm:$0xff] }
 0x102   :  { %2685 = vmatpush2.bf16.msra.mxu0 %v11155_v59  ;;  %v537_v59 = vld [vmem:[#allocation2 + $0x968] sm:$0xff] }
 0x103   :  { %2726 = vmatpush2.bf16.msra.mxu1 %v10901_v60  ;;  %2686 = vmatprep.subr.bf16.mxu0 %v11148_v61  ;;  %v10973_v60 = vcombine.low %v413_v45, %v417_v46  ;;  %v10966_v61 = vcombine.high %v405_v55, %v409_v56  ;;  %v493_v39 = vld [vmem:[#allocation2 + $0x808] sm:$0xff] }
 0x104   :  { %2727 = vmatprep.subr.bf16.mxu1 %v10894_v2  ;;  %v11094_v2 = vcombine.high %v533_v58, %v537_v59  ;;  %v497_v41 = vld [vmem:[#allocation2 + $0x828] sm:$0xff] }
 0x105   :  { %v485_v45 = vld [vmem:[#allocation2 + $0x7c8] sm:$0xff] }
 0x106   :  { %2687 = vmatpush2.bf16.msra.mxu0 %v11147_v4  ;;  %v10965_v4 = vcombine.low %v405_v55, %v409_v56  ;;  %v489_v46 = vld [vmem:[#allocation2 + $0x7e8] sm:$0xff] }
 0x107   :  { %2728 = vmatpush2.bf16.msra.mxu1 %v10893_v6  ;;  %2688 = vmatprep.subr.bf16.mxu0 %v11140_v7  ;;  %v11093_v6 = vcombine.low %v533_v58, %v537_v59  ;;  %v10958_v7 = vcombine.high %v397_v62, %v401_v0  ;;  %v613_v47 = vld [vmem:[#allocation2 + $0xbc8] sm:$0xff] }
 0x108   :  { %2729 = vmatprep.subr.bf16.mxu1 %v10886_v12  ;;  %v11086_v12 = vcombine.high %v525_v1, %v529_v3  ;;  %v617_v49 = vld [vmem:[#allocation2 + $0xbe8] sm:$0xff] }
 0x109   :  { %v477_v55 = vld [vmem:[#allocation2 + $0x788] sm:$0xff]  ;;  %v11174_v58 = vcombine.high %v613_v47, %v617_v49 }
 0x10a   :  { %2689 = vmatpush2.bf16.msra.mxu0 %v11139_v14  ;;  %v10957_v14 = vcombine.low %v397_v62, %v401_v0  ;;  %v481_v56 = vld [vmem:[#allocation2 + $0x7a8] sm:$0xff] }
 0x10b   :  { %2730 = vmatpush2.bf16.msra.mxu1 %v10885_v15  ;;  %2690 = vmatprep.subr.bf16.mxu0 %v11132_v17  ;;  %v11085_v15 = vcombine.low %v525_v1, %v529_v3  ;;  %v10950_v17 = vcombine.high %v389_v8, %v393_v9  ;;  %v609_v59 = vld [vmem:[#allocation2 + $0xba8] sm:$0xff] }
 0x10c   :  { %2731 = vmatprep.subr.bf16.mxu1 %v10878_v21  ;;  %v11078_v21 = vcombine.high %v517_v10, %v521_v13  ;;  %v469_v62 = vld [vmem:[#allocation2 + $0x748] sm:$0xff] }
 0x10d   :  { %v473_v0 = vld [vmem:[#allocation2 + $0x768] sm:$0xff] }
 0x10e   :  { %2691 = vmatpush2.bf16.msra.mxu0 %v11131_v24  ;;  %v10949_v24 = vcombine.low %v389_v8, %v393_v9  ;;  %v597_v1 = vld [vmem:[#allocation2 + $0xb48] sm:$0xff] }
 0x10f   :  { %2732 = vmatpush2.bf16.msra.mxu1 %v10877_v25  ;;  %2692 = vmatprep.subr.bf16.mxu0 %v11124_v26  ;;  %v11077_v25 = vcombine.low %v517_v10, %v521_v13  ;;  %v10942_v26 = vcombine.high %v381_v18, %v385_v19  ;;  %v601_v3 = vld [vmem:[#allocation2 + $0xb68] sm:$0xff] }
 0x110   :  { %2733 = vmatprep.subr.bf16.mxu1 %v10870_v31  ;;  %v11070_v31 = vcombine.high %v509_v20, %v513_v23  ;;  %v461_v8 = vld [vmem:[#allocation2 + $0x708] sm:$0xff] }
 0x111   :  { %v465_v9 = vld [vmem:[#allocation2 + $0x728] sm:$0xff] }
 0x112   :  { %2693 = vmatpush2.bf16.msra.mxu0 %v11123_v34  ;;  %v10941_v34 = vcombine.low %v381_v18, %v385_v19  ;;  %v589_v10 = vld [vmem:[#allocation2 + $0xb08] sm:$0xff] }
 0x113   :  { %2734 = vmatpush2.bf16.msra.mxu1 %v10869_v35  ;;  %2694 = vmatprep.subr.bf16.mxu0 %v11116_v36  ;;  %v11069_v35 = vcombine.low %v509_v20, %v513_v23  ;;  %v10934_v36 = vcombine.high %v373_v27, %v377_v28  ;;  %v593_v13 = vld [vmem:[#allocation2 + $0xb28] sm:$0xff] }
 0x114   :  { %2735 = vmatprep.subr.bf16.mxu1 %v10862_v40  ;;  %v11062_v40 = vcombine.high %v501_v29, %v505_v32  ;;  %v453_v18 = vld [vmem:[#allocation2 + $0x6c8] sm:$0xff] }
 0x115   :  { %v457_v19 = vld [vmem:[#allocation2 + $0x6e8] sm:$0xff] }
 0x116   :  { %2695 = vmatpush2.bf16.msra.mxu0 %v11115_v5  ;;  %v10933_v5 = vcombine.low %v373_v27, %v377_v28  ;;  %v581_v20 = vld [vmem:[#allocation2 + $0xac8] sm:$0xff] }
 0x117   :  { %2736 = vmatpush2.bf16.msra.mxu1 %v10861_v42  ;;  %2746 = vmatprep.subr.bf16.mxu0 %v10982_v43  ;;  %v11061_v42 = vcombine.low %v501_v29, %v505_v32  ;;  %v10926_v43 = vcombine.high %v365_v37, %v369_v38  ;;  %v585_v23 = vld [vmem:[#allocation2 + $0xae8] sm:$0xff] }
 0x118   :  { %2787 = vmatprep.subr.bf16.mxu1 %v11110_v48  ;;  %v11054_v48 = vcombine.high %v493_v39, %v497_v41  ;;  %v445_v27 = vld [vmem:[#allocation2 + $0x688] sm:$0xff] }
 0x119   :  { %2697 = vmatmul.mubr.bf16.vlgmr.msra.gmra.mxu0 %v13843_v50  ;;  %v449_v28 = vld [vmem:[#allocation2 + $0x6a8] sm:$0xff] }
 0x11a   :  { %2738 = vmatmul.mubr.bf16.vlgmr.msra.gmra.mxu1 %v13829_v30  ;;  %2747 = vmatpush1.bf16.msra.mxu0 %v10981_v51  ;;  %v10925_v51 = vcombine.low %v365_v37, %v369_v38  ;;  %v573_v29 = vld [vmem:[#allocation2 + $0xa88] sm:$0xff] }
 0x11b   :  { %2788 = vmatpush1.bf16.msra.mxu1 %v11109_v52  ;;  %2748 = vmatprep.subr.bf16.mxu0 %v10974_v54  ;;  %v11053_v52 = vcombine.low %v493_v39, %v497_v41  ;;  %v11046_v54 = vcombine.high %v485_v45, %v489_v46  ;;  %v577_v32 = vld [vmem:[#allocation2 + $0xaa8] sm:$0xff] }
 0x11c   :  { %2789 = vmatprep.subr.bf16.mxu1 %v11102_v57  ;;  %2778 = vmatprep.mubr.bf16.mxu0 %v13817_v16  ;;  %v605_v57 = vld [vmem:[#allocation2 + $0xb88] sm:$0xff] }
 0x11d   :  { %2819 = vmatprep.mubr.bf16.mxu1 %v13835_v63  ;;  %v437_v37 = vld [vmem:[#allocation2 + $0x648] sm:$0xff] }
 0x11e   :  { %2749 = vmatpush1.bf16.msra.mxu0 %v10973_v60  ;;  %v11045_v60 = vcombine.low %v485_v45, %v489_v46  ;;  %v441_v38 = vld [vmem:[#allocation2 + $0x668] sm:$0xff] }
 0x11f   :  { %2790 = vmatpush1.bf16.msra.mxu1 %v11101_v22  ;;  %2750 = vmatprep.subr.bf16.mxu0 %v10966_v61  ;;  %v11173_v22 = vcombine.low %v613_v47, %v617_v49  ;;  %v11038_v61 = vcombine.high %v477_v55, %v481_v56  ;;  %v565_v39 = vld [vmem:[#allocation2 + $0xa48] sm:$0xff] }
 0x120   :  { %2791 = vmatprep.subr.bf16.mxu1 %v11094_v2  ;;  %v11166_v2 = vcombine.high %v605_v57, %v609_v59  ;;  %v569_v41 = vld [vmem:[#allocation2 + $0xa68] sm:$0xff] }
 0x121   :  { %v429_v45 = vld [vmem:[#allocation2 + $0x608] sm:$0xff] }
 0x122   :  { %2751 = vmatpush1.bf16.msra.mxu0 %v10965_v4  ;;  %v11037_v4 = vcombine.low %v477_v55, %v481_v56  ;;  %v433_v46 = vld [vmem:[#allocation2 + $0x628] sm:$0xff]  ;;  %v294_v55 = vld [vmem:[#allocation2 + $0x1d0] sm:$0xff] }
 0x123   :  { %2792 = vmatpush1.bf16.msra.mxu1 %v11093_v6  ;;  %2752 = vmatprep.subr.bf16.mxu0 %v10958_v7  ;;  %v11165_v6 = vcombine.low %v605_v57, %v609_v59  ;;  %v11030_v7 = vcombine.high %v469_v62, %v473_v0  ;;  %v557_v47 = vld [vmem:[#allocation2 + $0xa08] sm:$0xff]  ;;  %v298_v56 = vld [vmem:[#allocation2 + $0x1f0] sm:$0xff] }
 0x124   :  { %2793 = vmatprep.subr.bf16.mxu1 %v11086_v12  ;;  %v11158_v12 = vcombine.high %v597_v1, %v601_v3  ;;  %v561_v49 = vld [vmem:[#allocation2 + $0xa28] sm:$0xff]  ;;  %v422_v57 = vld [vmem:[#allocation2 + $0x5d0] sm:$0xff] }
 0x125   :  { %v426_v59 = vld [vmem:[#allocation2 + $0x5f0] sm:$0xff] }
 0x126   :  { %2753 = vmatpush1.bf16.msra.mxu0 %v10957_v14  ;;  %v11029_v14 = vcombine.low %v469_v62, %v473_v0  ;;  %v286_v62 = vld [vmem:[#allocation2 + $0x190] sm:$0xff] }
 0x127   :  { %2794 = vmatpush1.bf16.msra.mxu1 %v11085_v15  ;;  %2754 = vmatprep.subr.bf16.mxu0 %v10950_v17  ;;  %v11157_v15 = vcombine.low %v597_v1, %v601_v3  ;;  %v11022_v17 = vcombine.high %v461_v8, %v465_v9  ;;  %v290_v0 = vld [vmem:[#allocation2 + $0x1b0] sm:$0xff] }
 0x128   :  { %2795 = vmatprep.subr.bf16.mxu1 %v11078_v21  ;;  %v11150_v21 = vcombine.high %v589_v10, %v593_v13  ;;  %v414_v1 = vld [vmem:[#allocation2 + $0x590] sm:$0xff] }
 0x129   :  { %v418_v3 = vld [vmem:[#allocation2 + $0x5b0] sm:$0xff] }
 0x12a   :  { %2755 = vmatpush1.bf16.msra.mxu0 %v10949_v24  ;;  %v11021_v24 = vcombine.low %v461_v8, %v465_v9  ;;  %v278_v8 = vld [vmem:[#allocation2 + $0x150] sm:$0xff] }
 0x12b   :  { %2796 = vmatpush1.bf16.msra.mxu1 %v11077_v25  ;;  %2756 = vmatprep.subr.bf16.mxu0 %v10942_v26  ;;  %v11149_v25 = vcombine.low %v589_v10, %v593_v13  ;;  %v11014_v26 = vcombine.high %v453_v18, %v457_v19  ;;  %v282_v9 = vld [vmem:[#allocation2 + $0x170] sm:$0xff] }
 0x12c   :  { %2797 = vmatprep.subr.bf16.mxu1 %v11070_v31  ;;  %v11142_v31 = vcombine.high %v581_v20, %v585_v23  ;;  %v406_v10 = vld [vmem:[#allocation2 + $0x550] sm:$0xff] }
 0x12d   :  { %v410_v13 = vld [vmem:[#allocation2 + $0x570] sm:$0xff] }
 0x12e   :  { %2757 = vmatpush1.bf16.msra.mxu0 %v10941_v34  ;;  %v11013_v34 = vcombine.low %v453_v18, %v457_v19  ;;  %v270_v18 = vld [vmem:[#allocation2 + $0x110] sm:$0xff] }
 0x12f   :  { %2798 = vmatpush1.bf16.msra.mxu1 %v11069_v35  ;;  %2758 = vmatprep.subr.bf16.mxu0 %v10934_v36  ;;  %v11141_v35 = vcombine.low %v581_v20, %v585_v23  ;;  %v11006_v36 = vcombine.high %v445_v27, %v449_v28  ;;  %v274_v19 = vld [vmem:[#allocation2 + $0x130] sm:$0xff] }
 0x130   :  { %2799 = vmatprep.subr.bf16.mxu1 %v11062_v40  ;;  %v11134_v40 = vcombine.high %v573_v29, %v577_v32  ;;  %v398_v20 = vld [vmem:[#allocation2 + $0x510] sm:$0xff] }
 0x131   :  { %v402_v23 = vld [vmem:[#allocation2 + $0x530] sm:$0xff] }
 0x132   :  { %2759 = vmatpush1.bf16.msra.mxu0 %v10933_v5  ;;  %v11005_v5 = vcombine.low %v445_v27, %v449_v28  ;;  %v262_v27 = vld [vmem:[#allocation2 + $0xd0] sm:$0xff] }
 0x133   :  { %2800 = vmatpush1.bf16.msra.mxu1 %v11061_v42  ;;  %2760 = vmatprep.subr.bf16.mxu0 %v10926_v43  ;;  %v11133_v42 = vcombine.low %v573_v29, %v577_v32  ;;  %v10998_v43 = vcombine.high %v437_v37, %v441_v38  ;;  %v266_v28 = vld [vmem:[#allocation2 + $0xf0] sm:$0xff] }
 0x134   :  { %2801 = vmatprep.subr.bf16.mxu1 %v11054_v48  ;;  %v11126_v48 = vcombine.high %v565_v39, %v569_v41  ;;  %v390_v29 = vld [vmem:[#allocation2 + $0x4d0] sm:$0xff] }
 0x135   :  { %v394_v32 = vld [vmem:[#allocation2 + $0x4f0] sm:$0xff] }
 0x136   :  { %2761 = vmatpush1.bf16.msra.mxu0 %v10925_v51  ;;  %v10997_v51 = vcombine.low %v437_v37, %v441_v38  ;;  %v254_v37 = vld [vmem:[#allocation2 + $0x90] sm:$0xff] }
 0x137   :  { %2802 = vmatpush1.bf16.msra.mxu1 %v11053_v52  ;;  %2762 = vmatprep.subr.bf16.mxu0 %v11046_v54  ;;  %v11125_v52 = vcombine.low %v565_v39, %v569_v41  ;;  %v10990_v54 = vcombine.high %v429_v45, %v433_v46  ;;  %v258_v38 = vld [vmem:[#allocation2 + $0xb0] sm:$0xff] }
 0x138   :  { %2803 = vmatprep.subr.bf16.mxu1 %v11174_v58  ;;  %v11118_v58 = vcombine.high %v557_v47, %v561_v49  ;;  %v382_v39 = vld [vmem:[#allocation2 + $0x490] sm:$0xff] }
 0x139   :  { %v386_v41 = vld [vmem:[#allocation2 + $0x4b0] sm:$0xff] }
 0x13a   :  { %2763 = vmatpush2.bf16.msra.mxu0 %v11045_v60  ;;  %v10989_v60 = vcombine.low %v429_v45, %v433_v46  ;;  %v246_v45 = vld [vmem:[#allocation2 + $0x50] sm:$0xff] }
 0x13b   :  { %2804 = vmatpush2.bf16.msra.mxu1 %v11173_v22  ;;  %2764 = vmatprep.subr.bf16.mxu0 %v11038_v61  ;;  %v11117_v22 = vcombine.low %v557_v47, %v561_v49  ;;  %v10856_v61 = vcombine.high %v294_v55, %v298_v56  ;;  %v250_v46 = vld [vmem:[#allocation2 + $0x70] sm:$0xff] }
 0x13c   :  { %2805 = vmatprep.subr.bf16.mxu1 %v11166_v2  ;;  %v10984_v2 = vcombine.high %v422_v57, %v426_v59  ;;  %v374_v47 = vld [vmem:[#allocation2 + $0x450] sm:$0xff] }
 0x13d   :  { %v378_v49 = vld [vmem:[#allocation2 + $0x470] sm:$0xff] }
 0x13e   :  { %2765 = vmatpush2.bf16.msra.mxu0 %v11037_v4  ;;  %v10855_v4 = vcombine.low %v294_v55, %v298_v56  ;;  %v238_v55 = vld [vmem:[#allocation2 + $0x10] sm:$0xff] }
 0x13f   :  { %2806 = vmatpush2.bf16.msra.mxu1 %v11165_v6  ;;  %2766 = vmatprep.subr.bf16.mxu0 %v11030_v7  ;;  %v10983_v6 = vcombine.low %v422_v57, %v426_v59  ;;  %v10848_v7 = vcombine.high %v286_v62, %v290_v0  ;;  %v242_v56 = vld [vmem:[#allocation2 + $0x30] sm:$0xff] }
 0x140   :  { %2807 = vmatprep.subr.bf16.mxu1 %v11158_v12  ;;  %v10976_v12 = vcombine.high %v414_v1, %v418_v3  ;;  %v366_v57 = vld [vmem:[#allocation2 + $0x410] sm:$0xff] }
 0x141   :  { %v370_v59 = vld [vmem:[#allocation2 + $0x430] sm:$0xff] }
 0x142   :  { %2767 = vmatpush2.bf16.msra.mxu0 %v11029_v14  ;;  %v10847_v14 = vcombine.low %v286_v62, %v290_v0  ;;  %v358_v62 = vld [vmem:[#allocation2 + $0x3d0] sm:$0xff] }
 0x143   :  { %2808 = vmatpush2.bf16.msra.mxu1 %v11157_v15  ;;  %2768 = vmatprep.subr.bf16.mxu0 %v11022_v17  ;;  %v10975_v15 = vcombine.low %v414_v1, %v418_v3  ;;  %v10840_v17 = vcombine.high %v278_v8, %v282_v9  ;;  %v362_v0 = vld [vmem:[#allocation2 + $0x3f0] sm:$0xff] }
 0x144   :  { %2809 = vmatprep.subr.bf16.mxu1 %v11150_v21  ;;  %v10968_v21 = vcombine.high %v406_v10, %v410_v13  ;;  %v486_v1 = vld [vmem:[#allocation2 + $0x7d0] sm:$0xff] }
 0x145   :  { %v490_v3 = vld [vmem:[#allocation2 + $0x7f0] sm:$0xff] }
 0x146   :  { %2769 = vmatpush2.bf16.msra.mxu0 %v11021_v24  ;;  %v10839_v24 = vcombine.low %v278_v8, %v282_v9  ;;  %v350_v8 = vld [vmem:[#allocation2 + $0x390] sm:$0xff] }
 0x147   :  { %2810 = vmatpush2.bf16.msra.mxu1 %v11149_v25  ;;  %2770 = vmatprep.subr.bf16.mxu0 %v11014_v26  ;;  %v10967_v25 = vcombine.low %v406_v10, %v410_v13  ;;  %v10832_v26 = vcombine.high %v270_v18, %v274_v19  ;;  %v354_v9 = vld [vmem:[#allocation2 + $0x3b0] sm:$0xff] }
 0x148   :  { %2811 = vmatprep.subr.bf16.mxu1 %v11142_v31  ;;  %v10960_v31 = vcombine.high %v398_v20, %v402_v23  ;;  %v478_v10 = vld [vmem:[#allocation2 + $0x790] sm:$0xff] }
 0x149   :  { %v482_v13 = vld [vmem:[#allocation2 + $0x7b0] sm:$0xff] }
 0x14a   :  { %2771 = vmatpush2.bf16.msra.mxu0 %v11013_v34  ;;  %v10831_v34 = vcombine.low %v270_v18, %v274_v19  ;;  %v342_v18 = vld [vmem:[#allocation2 + $0x350] sm:$0xff] }
 0x14b   :  { %2812 = vmatpush2.bf16.msra.mxu1 %v11141_v35  ;;  %2772 = vmatprep.subr.bf16.mxu0 %v11006_v36  ;;  %v10959_v35 = vcombine.low %v398_v20, %v402_v23  ;;  %v10824_v36 = vcombine.high %v262_v27, %v266_v28  ;;  %v346_v19 = vld [vmem:[#allocation2 + $0x370] sm:$0xff] }
 0x14c   :  { %2813 = vmatprep.subr.bf16.mxu1 %v11134_v40  ;;  %v10952_v40 = vcombine.high %v390_v29, %v394_v32  ;;  %v470_v20 = vld [vmem:[#allocation2 + $0x750] sm:$0xff] }
 0x14d   :  { %v474_v23 = vld [vmem:[#allocation2 + $0x770] sm:$0xff] }
 0x14e   :  { %2773 = vmatpush2.bf16.msra.mxu0 %v11005_v5  ;;  %v10823_v5 = vcombine.low %v262_v27, %v266_v28  ;;  %v334_v27 = vld [vmem:[#allocation2 + $0x310] sm:$0xff] }
 0x14f   :  { %2814 = vmatpush2.bf16.msra.mxu1 %v11133_v42  ;;  %2774 = vmatprep.subr.bf16.mxu0 %v10998_v43  ;;  %v10951_v42 = vcombine.low %v390_v29, %v394_v32  ;;  %v10816_v43 = vcombine.high %v254_v37, %v258_v38  ;;  %v338_v28 = vld [vmem:[#allocation2 + $0x330] sm:$0xff] }
 0x150   :  { %2815 = vmatprep.subr.bf16.mxu1 %v11126_v48  ;;  %v10944_v48 = vcombine.high %v382_v39, %v386_v41  ;;  %v462_v29 = vld [vmem:[#allocation2 + $0x710] sm:$0xff] }
 0x151   :  { %v466_v32 = vld [vmem:[#allocation2 + $0x730] sm:$0xff] }
 0x152   :  { %2775 = vmatpush2.bf16.msra.mxu0 %v10997_v51  ;;  %v10815_v51 = vcombine.low %v254_v37, %v258_v38  ;;  %v326_v37 = vld [vmem:[#allocation2 + $0x2d0] sm:$0xff] }
 0x153   :  { %2816 = vmatpush2.bf16.msra.mxu1 %v11125_v52  ;;  %2776 = vmatprep.subr.bf16.mxu0 %v10990_v54  ;;  %v10943_v52 = vcombine.low %v382_v39, %v386_v41  ;;  %v10808_v54 = vcombine.high %v246_v45, %v250_v46  ;;  %v330_v38 = vld [vmem:[#allocation2 + $0x2f0] sm:$0xff] }
 0x154   :  { %2817 = vmatprep.subr.bf16.mxu1 %v11118_v58  ;;  %v10936_v58 = vcombine.high %v374_v47, %v378_v49  ;;  %v454_v39 = vld [vmem:[#allocation2 + $0x6d0] sm:$0xff] }
 0x155   :  { %v458_v41 = vld [vmem:[#allocation2 + $0x6f0] sm:$0xff] }
 0x156   :  { %2777 = vmatpush2.bf16.msra.mxu0 %v10989_v60  ;;  %v10807_v60 = vcombine.low %v246_v45, %v250_v46  ;;  %v318_v45 = vld [vmem:[#allocation2 + $0x290] sm:$0xff] }
 0x157   :  { %2818 = vmatpush2.bf16.msra.mxu1 %v11117_v22  ;;  %2828 = vmatprep.subr.bf16.mxu0 %v10856_v61  ;;  %v10935_v22 = vcombine.low %v374_v47, %v378_v49  ;;  %v10800_v61 = vcombine.high %v238_v55, %v242_v56  ;;  %v322_v46 = vld [vmem:[#allocation2 + $0x2b0] sm:$0xff] }
 0x158   :  { %2869 = vmatprep.subr.bf16.mxu1 %v10984_v2  ;;  %v10928_v2 = vcombine.high %v366_v57, %v370_v59  ;;  %v446_v47 = vld [vmem:[#allocation2 + $0x690] sm:$0xff] }
 0x159   :  { %2779 = vmatmul.mubr.bf16.vlgmr.msra.gmra.mxu0 %v13833_v33  ;;  %v450_v49 = vld [vmem:[#allocation2 + $0x6b0] sm:$0xff] }
 0x15a   :  { %2820 = vmatmul.mubr.bf16.vlgmr.msra.gmra.mxu1 %v13843_v50  ;;  %2829 = vmatpush1.bf16.msra.mxu0 %v10855_v4  ;;  %v10799_v4 = vcombine.low %v238_v55, %v242_v56  ;;  %v310_v55 = vld [vmem:[#allocation2 + $0x250] sm:$0xff] }
 0x15b   :  { %2870 = vmatpush1.bf16.msra.mxu1 %v10983_v6  ;;  %2830 = vmatprep.subr.bf16.mxu0 %v10848_v7  ;;  %v10927_v6 = vcombine.low %v366_v57, %v370_v59  ;;  %v10920_v7 = vcombine.high %v358_v62, %v362_v0  ;;  %v314_v56 = vld [vmem:[#allocation2 + $0x270] sm:$0xff] }
 0x15c   :  { %2871 = vmatprep.subr.bf16.mxu1 %v10976_v12  ;;  %2860 = vmatprep.mubr.bf16.mxu0 %v13812_v11  ;;  %v11048_v12 = vcombine.high %v486_v1, %v490_v3  ;;  %v438_v57 = vld [vmem:[#allocation2 + $0x650] sm:$0xff] }
 0x15d   :  { %2901 = vmatprep.mubr.bf16.mxu1 %v13817_v16  ;;  %v442_v59 = vld [vmem:[#allocation2 + $0x670] sm:$0xff] }
 0x15e   :  { %2831 = vmatpush1.bf16.msra.mxu0 %v10847_v14  ;;  %v10919_v14 = vcombine.low %v358_v62, %v362_v0  ;;  %v302_v62 = vld [vmem:[#allocation2 + $0x210] sm:$0xff] }
 0x15f   :  { %2872 = vmatpush1.bf16.msra.mxu1 %v10975_v15  ;;  %2832 = vmatprep.subr.bf16.mxu0 %v10840_v17  ;;  %v11047_v15 = vcombine.low %v486_v1, %v490_v3  ;;  %v10912_v17 = vcombine.high %v350_v8, %v354_v9  ;;  %v306_v0 = vld [vmem:[#allocation2 + $0x230] sm:$0xff] }
 0x160   :  { %2873 = vmatprep.subr.bf16.mxu1 %v10968_v21  ;;  %v11040_v21 = vcombine.high %v478_v10, %v482_v13  ;;  %v430_v1 = vld [vmem:[#allocation2 + $0x610] sm:$0xff] }
 0x161   :  { %v434_v3 = vld [vmem:[#allocation2 + $0x630] sm:$0xff] }
 0x162   :  { %2833 = vmatpush1.bf16.msra.mxu0 %v10839_v24  ;;  %v10911_v24 = vcombine.low %v350_v8, %v354_v9  ;;  %v550_v8 = vld [vmem:[#allocation2 + $0x9d0] sm:$0xff] }
 0x163   :  { %2874 = vmatpush1.bf16.msra.mxu1 %v10967_v25  ;;  %2834 = vmatprep.subr.bf16.mxu0 %v10832_v26  ;;  %v11039_v25 = vcombine.low %v478_v10, %v482_v13  ;;  %v10904_v26 = vcombine.high %v342_v18, %v346_v19  ;;  %v554_v9 = vld [vmem:[#allocation2 + $0x9f0] sm:$0xff]  ;;  %v295_v10 = vld [vmem:[#allocation2 + $0x1d8] sm:$0xff] }
 0x164   :  { %2875 = vmatprep.subr.bf16.mxu1 %v10960_v31  ;;  %v11032_v31 = vcombine.high %v470_v20, %v474_v23  ;;  %v299_v13 = vld [vmem:[#allocation2 + $0x1f8] sm:$0xff] }
 0x166   :  { %2835 = vmatpush1.bf16.msra.mxu0 %v10831_v34  ;;  %v10903_v34 = vcombine.low %v342_v18, %v346_v19  ;;  %v10991_v18 = vcombine.low %v430_v1, %v434_v3  ;;  %v11112_v19 = vcombine.high %v550_v8, %v554_v9 }
 0x167   :  { %2876 = vmatpush1.bf16.msra.mxu1 %v10959_v35  ;;  %2836 = vmatprep.subr.bf16.mxu0 %v10824_v36  ;;  %v11031_v35 = vcombine.low %v470_v20, %v474_v23  ;;  %v10896_v36 = vcombine.high %v334_v27, %v338_v28  ;;  %v542_v20 = vld [vmem:[#allocation2 + $0x990] sm:$0xff]  ;;  %v287_v23 = vld [vmem:[#allocation2 + $0x198] sm:$0xff] }
 0x168   :  { %2877 = vmatprep.subr.bf16.mxu1 %v10952_v40  ;;  %v11024_v40 = vcombine.high %v462_v29, %v466_v32 }
 0x16a   :  { %2837 = vmatpush1.bf16.msra.mxu0 %v10823_v5  ;;  %v10895_v5 = vcombine.low %v334_v27, %v338_v28  ;;  %v11111_v28 = vcombine.low %v550_v8, %v554_v9  ;;  %v510_v9 = vld [vmem:[#allocation2 + $0x890] sm:$0xff] }
 0x16b   :  { %2878 = vmatpush1.bf16.msra.mxu1 %v10951_v42  ;;  %2838 = vmatprep.subr.bf16.mxu0 %v10816_v43  ;;  %v11023_v42 = vcombine.low %v462_v29, %v466_v32  ;;  %v10888_v43 = vcombine.high %v326_v37, %v330_v38  ;;  %v10857_v29 = vcombine.low %v295_v10, %v299_v13 }
 0x16c   :  { %2879 = vmatprep.subr.bf16.mxu1 %v10944_v48  ;;  %v11016_v48 = vcombine.high %v454_v39, %v458_v41 }
 0x16e   :  { %2839 = vmatpush1.bf16.msra.mxu0 %v10815_v51  ;;  %v10887_v51 = vcombine.low %v326_v37, %v330_v38  ;;  %v279_v38 = vld [vmem:[#allocation2 + $0x158] sm:$0xff] }
 0x16f   :  { %2880 = vmatpush1.bf16.msra.mxu1 %v10943_v52  ;;  %2840 = vmatprep.subr.bf16.mxu0 %v10808_v54  ;;  %v11015_v52 = vcombine.low %v454_v39, %v458_v41  ;;  %v10880_v54 = vcombine.high %v318_v45, %v322_v46  ;;  %v283_v39 = vld [vmem:[#allocation2 + $0x178] sm:$0xff] }
 0x170   :  { %2881 = vmatprep.subr.bf16.mxu1 %v10936_v58  ;;  %v11008_v58 = vcombine.high %v446_v47, %v450_v49 }
 0x172   :  { %2841 = vmatpush1.bf16.msra.mxu0 %v10807_v60  ;;  %v10879_v60 = vcombine.low %v318_v45, %v322_v46 }
 0x173   :  { %2882 = vmatpush1.bf16.msra.mxu1 %v10935_v22  ;;  %2842 = vmatprep.subr.bf16.mxu0 %v10800_v61  ;;  %v11007_v22 = vcombine.low %v446_v47, %v450_v49  ;;  %v10872_v61 = vcombine.high %v310_v55, %v314_v56  ;;  %v10842_v49 = vcombine.high %v279_v38, %v283_v39 }
 0x174   :  { %2883 = vmatprep.subr.bf16.mxu1 %v10928_v2  ;;  %v11000_v2 = vcombine.high %v438_v57, %v442_v59 }
 0x176   :  { %2843 = vmatpush1.bf16.msra.mxu0 %v10799_v4  ;;  %v10871_v4 = vcombine.low %v310_v55, %v314_v56  ;;  %v271_v55 = vld [vmem:[#allocation2 + $0x118] sm:$0xff] }
 0x177   :  { %2884 = vmatpush1.bf16.msra.mxu1 %v10927_v6  ;;  %2844 = vmatprep.subr.bf16.mxu0 %v10920_v7  ;;  %v10999_v6 = vcombine.low %v438_v57, %v442_v59  ;;  %v10864_v7 = vcombine.high %v302_v62, %v306_v0  ;;  %v275_v56 = vld [vmem:[#allocation2 + $0x138] sm:$0xff] }
 0x178   :  { %2885 = vmatprep.subr.bf16.mxu1 %v11048_v12  ;;  %v10992_v12 = vcombine.high %v430_v1, %v434_v3  ;;  %v518_v1 = vld [vmem:[#allocation2 + $0x8d0] sm:$0xff]  ;;  %v263_v3 = vld [vmem:[#allocation2 + $0xd8] sm:$0xff] }
 0x17a   :  { %2845 = vmatpush2.bf16.msra.mxu0 %v10919_v14  ;;  %v620_v14 = vld [vmem:[#allocation4] sm:$0xff] }
 0x17b   :  { %2886 = vmatpush2.bf16.msra.mxu1 %v11047_v15  ;;  %2846 = vmatprep.subr.bf16.mxu0 %v10912_v17  ;;  %v10863_v15 = vcombine.low %v302_v62, %v306_v0  ;;  %v13854_v17 = vsub.s32 0, %v13796_v44  ;;  %v10834_v0 = vcombine.high %v271_v55, %v275_v56 }
 0x17c   :  { %2887 = vmatprep.subr.bf16.mxu1 %v11040_v21  ;;  %v546_v21 = vld [vmem:[#allocation2 + $0x9b0] sm:$0xff] }
 0x17d   :  { %v625_v27 = vrot.slane %v620_v14, %v13854_v17 }
 0x17e   :  { %2847 = vmatpush2.bf16.msra.mxu0 %v10911_v24  ;;  %v10858_v24 = vcombine.high %v295_v10, %v299_v13  ;;  %v514_v10 = vld [vmem:[#allocation2 + $0x8b0] sm:$0xff]  ;;  %v259_v13 = vld [vmem:[#allocation2 + $0xb8] sm:$0xff] }
 0x17f   :  { %2888 = vmatpush2.bf16.msra.mxu1 %v11039_v25  ;;  %2848 = vmatprep.subr.bf16.mxu0 %v10904_v26  ;;  %v13857_v25 = vsub.s32 1, %v13796_v44  ;;  %v291_v26 = vld [vmem:[#allocation2 + $0x1b8] sm:$0xff] }
 0x180   :  { %2889 = vmatprep.subr.bf16.mxu1 %v11032_v31  ;;  %v11104_v31 = vcombine.high %v542_v20, %v546_v21 }
 0x181   :  { %v629_v32 = vrot.slane %v620_v14, %v13857_v25 }
 0x182   :  { %2849 = vmatpush2.bf16.msra.mxu0 %v10903_v34  ;;  %v10850_v34 = vcombine.high %v287_v23, %v291_v26 }
 0x183   :  { %2890 = vmatpush2.bf16.msra.mxu1 %v11031_v35  ;;  %2850 = vmatprep.subr.bf16.mxu0 %v10896_v36  ;;  %v534_v35 = vld [vmem:[#allocation2 + $0x950] sm:$0xff] }
 0x184   :  { %2891 = vmatprep.subr.bf16.mxu1 %v11024_v40  ;;  %v538_v36 = vld [vmem:[#allocation2 + $0x970] sm:$0xff] }
 0x185   :  { %v11096_v45 = vcombine.high %v534_v35, %v538_v36  ;;  %v11095_v59 = vcombine.low %v534_v35, %v538_v36  ;;  %v243_v35 = vld [vmem:[#allocation2 + $0x38] sm:$0xff] }
 0x186   :  { %2851 = vmatpush2.bf16.msra.mxu0 %v10895_v5  ;;  %v11103_v5 = vcombine.low %v542_v20, %v546_v21  ;;  %v506_v20 = vld [vmem:[#allocation2 + $0x870] sm:$0xff]  ;;  %v247_v21 = vld [vmem:[#allocation2 + $0x58] sm:$0xff] }
 0x187   :  { %2892 = vmatpush2.bf16.msra.mxu1 %v11023_v42  ;;  %2852 = vmatprep.subr.bf16.mxu0 %v10888_v43  ;;  %v10849_v43 = vcombine.low %v287_v23, %v291_v26  ;;  %v11071_v26 = vcombine.low %v510_v9, %v514_v10 }
 0x188   :  { %2893 = vmatprep.subr.bf16.mxu1 %v11016_v48 }
 0x18a   :  { %2853 = vmatpush2.bf16.msra.mxu0 %v10887_v51  ;;  %v526_v51 = vld [vmem:[#allocation2 + $0x910] sm:$0xff] }
 0x18b   :  { %2894 = vmatpush2.bf16.msra.mxu1 %v11015_v52  ;;  %2854 = vmatprep.subr.bf16.mxu0 %v10880_v54  ;;  %v530_v52 = vld [vmem:[#allocation2 + $0x930] sm:$0xff] }
 0x18c   :  { %2895 = vmatprep.subr.bf16.mxu1 %v11008_v58 }
 0x18e   :  { %2855 = vmatpush2.bf16.msra.mxu0 %v10879_v60 }
 0x18f   :  { %2896 = vmatpush2.bf16.msra.mxu1 %v11007_v22  ;;  %2856 = vmatprep.subr.bf16.mxu0 %v10872_v61  ;;  %v10841_v22 = vcombine.low %v279_v38, %v283_v39  ;;  %v11088_v61 = vcombine.high %v526_v51, %v530_v52  ;;  %v614_v39 = vld [vmem:[#allocation2 + $0xbd0] sm:$0xff] }
 0x190   :  { %2897 = vmatprep.subr.bf16.mxu1 %v11000_v2  ;;  %v522_v2 = vld [vmem:[#allocation2 + $0x8f0] sm:$0xff] }
 0x191   :  { %v11079_v14 = vcombine.low %v518_v1, %v522_v2 }
 0x192   :  { %2857 = vmatpush2.bf16.msra.mxu0 %v10871_v4  ;;  %v267_v4 = vld [vmem:[#allocation2 + $0xf8] sm:$0xff] }
 0x193   :  { %2898 = vmatpush2.bf16.msra.mxu1 %v10999_v6  ;;  %2858 = vmatprep.subr.bf16.mxu0 %v10864_v7  ;;  %v11087_v6 = vcombine.low %v526_v51, %v530_v52  ;;  %v11080_v7 = vcombine.high %v518_v1, %v522_v2  ;;  %v10826_v8 = vcombine.high %v263_v3, %v267_v4  ;;  %v351_v51 = vld [vmem:[#allocation2 + $0x398] sm:$0xff] }
 0x194   :  { %2899 = vmatprep.subr.bf16.mxu1 %v10992_v12  ;;  %v255_v12 = vld [vmem:[#allocation2 + $0x98] sm:$0xff] }
 0x195   :  { %v10818_v23 = vcombine.high %v255_v12, %v259_v13 }
 0x196   :  { %2859 = vmatpush2.bf16.msra.mxu0 %v10863_v15  ;;  %v10825_v15 = vcombine.low %v263_v3, %v267_v4  ;;  %v590_v3 = vld [vmem:[#allocation2 + $0xb10] sm:$0xff] }
 0x197   :  { %2900 = vmatpush2.bf16.msra.mxu1 %v10991_v18  ;;  %2910 = vmatprep.subr.bf16.mxu0 %v11112_v19  ;;  %v11072_v18 = vcombine.high %v510_v9, %v514_v10  ;;  %v502_v19 = vld [vmem:[#allocation2 + $0x850] sm:$0xff] }
 0x198   :  { %2951 = vmatprep.subr.bf16.mxu1 %v10858_v24  ;;  %v251_v24 = vld [vmem:[#allocation2 + $0x78] sm:$0xff]  ;;  %v11063_v36 = vcombine.low %v502_v19, %v506_v20  ;;  %v594_v4 = vld [vmem:[#allocation2 + $0xb30] sm:$0xff] }
 0x199   :  { %v2616_v37 = vpop.f32.mrf.mxu0  ;;  %2861 = vmatmul.mubr.bf16.vlgmr.msra.gmra.mxu0 %v13829_v30  ;;  %v11152_v10 = vcombine.high %v590_v3, %v594_v4 }
 0x19a   :  { %v2617_v40 = vadd.f32 %v2616_v37, %v625_v27  ;;  %v2657_v41 = vpop.f32.mrf.mxu1  ;;  %2902 = vmatmul.mubr.bf16.vlgmr.msra.gmra.mxu1 %v13833_v33  ;;  %2911 = vmatpush1.bf16.msra.mxu0 %v11111_v28  ;;  %v10817_v27 = vcombine.low %v255_v12, %v259_v13  ;;  %v11064_v28 = vcombine.high %v502_v19, %v506_v20  ;;  %v582_v12 = vld [vmem:[#allocation2 + $0xad0] sm:$0xff] }
 0x19b   :  { %2952 = vmatpush1.bf16.msra.mxu1 %v10857_v29  ;;  %v2618_v42 = vpop.f32.mrf.mxu0  ;;  %2912 = vmatprep.subr.bf16.mxu0 %v11104_v31  ;;  %v494_v29 = vld [vmem:[#allocation2 + $0x810] sm:$0xff]  ;;  %v10809_v37 = vcombine.low %v247_v21, %v251_v24  ;;  %v11151_v19 = vcombine.low %v590_v3, %v594_v4  ;;  %v407_v4 = vld [vmem:[#allocation2 + $0x558] sm:$0xff] }
 0x19c   :  { %v13863_v46 = vadd.f32 %v2657_v41, %v2617_v40  ;;  %v2619_v47 = vadd.f32 %v2618_v42, %v629_v32  ;;  %v2659_v48 = vpop.f32.mrf.mxu1  ;;  %2953 = vmatprep.subr.bf16.mxu1 %v10850_v34  ;;  %2942 = vmatprep.mubr.bf16.mxu0 %v13835_v63  ;;  %v498_v31 = vld [vmem:[#allocation2 + $0x830] sm:$0xff]  ;;  %v239_v32 = vld [vmem:[#allocation2 + $0x18] sm:$0xff]  ;;  %v10810_v34 = vcombine.high %v247_v21, %v251_v24 }
 0x19d   :  { %v2620_v54 = vpop.f32.mrf.mxu0  ;;  %2983 = vmatprep.mubr.bf16.mxu1 %v13812_v11  ;;  %v10833_v11 = vcombine.low %v271_v55, %v275_v56  ;;  %v11056_v38 = vcombine.high %v494_v29, %v498_v31  ;;  %v618_v40 = vld [vmem:[#allocation2 + $0xbf0] sm:$0xff]  ;;  %v359_v41 = vld [vmem:[#allocation2 + $0x3d8] sm:$0xff] }
 0x19e   :  { %v13867_v57 = vadd.f32 %v2659_v48, %v2619_v47  ;;  %v2661_v58 = vpop.f32.mrf.mxu1  ;;  %2913 = vmatpush1.bf16.msra.mxu0 %v11103_v5  ;;  %v10802_v5 = vcombine.high %v239_v32, %v243_v35  ;;  %v363_v42 = vld [vmem:[#allocation2 + $0x3f8] sm:$0xff]  ;;  %v11176_v47 = vcombine.high %v614_v39, %v618_v40  ;;  %v606_v48 = vld [vmem:[#allocation2 + $0xb90] sm:$0xff]  ;;  %v11175_v55 = vcombine.low %v614_v39, %v618_v40 }
 0x19f   :  { %2954 = vmatpush1.bf16.msra.mxu1 %v10849_v43  ;;  %v2621_v60 = vpop.f32.mrf.mxu0  ;;  %2914 = vmatprep.subr.bf16.mxu0 %v11096_v45  ;;  %v11055_v43 = vcombine.low %v494_v29, %v498_v31  ;;  %v10801_v45 = vcombine.low %v239_v32, %v243_v35  ;;  %v10922_v52 = vcombine.high %v359_v41, %v363_v42  ;;  %v355_v54 = vld [vmem:[#allocation2 + $0x3b8] sm:$0xff]  ;;  %v586_v13 = vld [vmem:[#allocation2 + $0xaf0] sm:$0xff] }
 0x1a0   :  { %v2662_v62 = vpop.f32.mrf.mxu1  ;;  %2955 = vmatprep.subr.bf16.mxu1 %v10842_v49  ;;  %v610_v49 = vld [vmem:[#allocation2 + $0xbb0] sm:$0xff]  ;;  %v10921_v56 = vcombine.low %v359_v41, %v363_v42  ;;  %v10913_v1 = vcombine.low %v351_v51, %v355_v54  ;;  %v11144_v21 = vcombine.high %v582_v12, %v586_v13  ;;  %v11143_v29 = vcombine.low %v582_v12, %v586_v13 }
 0x1a1   :  { %v11168_v58 = vcombine.high %v606_v48, %v610_v49  ;;  %v602_v60 = vld [vmem:[#allocation2 + $0xb70] sm:$0xff]  ;;  %v347_v62 = vld [vmem:[#allocation2 + $0x378] sm:$0xff] }
 0x1a2   :  { %2915 = vmatpush1.bf16.msra.mxu0 %v11095_v59  ;;  %v598_v59 = vld [vmem:[#allocation2 + $0xb50] sm:$0xff] }
 0x1a3   :  { %2956 = vmatpush1.bf16.msra.mxu1 %v10841_v22  ;;  %2916 = vmatprep.subr.bf16.mxu0 %v11088_v61  ;;  %v343_v22 = vld [vmem:[#allocation2 + $0x358] sm:$0xff]  ;;  %v10914_v61 = vcombine.high %v351_v51, %v355_v54  ;;  %v11160_v2 = vcombine.high %v598_v59, %v602_v60  ;;  %v578_v24 = vld [vmem:[#allocation2 + $0xab0] sm:$0xff] }
 0x1a4   :  { %2957 = vmatprep.subr.bf16.mxu1 %v10834_v0  ;;  %v11167_v0 = vcombine.low %v606_v48, %v610_v49  ;;  %v10905_v9 = vcombine.low %v343_v22, %v347_v62  ;;  %v570_v35 = vld [vmem:[#allocation2 + $0xa70] sm:$0xff]  ;;  %v427_v54 = vld [vmem:[#allocation2 + $0x5f8] sm:$0xff] }
 0x1a5   :  { %v562_v42 = vld [vmem:[#allocation2 + $0xa30] sm:$0xff] }
 0x1a6   :  { %2917 = vmatpush1.bf16.msra.mxu0 %v11087_v6  ;;  %v335_v6 = vld [vmem:[#allocation2 + $0x318] sm:$0xff] }
 0x1a7   :  { %2958 = vmatpush1.bf16.msra.mxu1 %v10833_v11  ;;  %2918 = vmatprep.subr.bf16.mxu0 %v11080_v7  ;;  %v10906_v11 = vcombine.high %v343_v22, %v347_v62  ;;  %v339_v7 = vld [vmem:[#allocation2 + $0x338] sm:$0xff] }
 0x1a8   :  { %2959 = vmatprep.subr.bf16.mxu1 %v10826_v8  ;;  %v11159_v8 = vcombine.low %v598_v59, %v602_v60  ;;  %v10897_v20 = vcombine.low %v335_v6, %v339_v7  ;;  %v419_v62 = vld [vmem:[#allocation2 + $0x5b8] sm:$0xff] }
 0x1aa   :  { %2919 = vmatpush1.bf16.msra.mxu0 %v11079_v14  ;;  %v327_v14 = vld [vmem:[#allocation2 + $0x2d8] sm:$0xff] }
 0x1ab   :  { %2960 = vmatpush1.bf16.msra.mxu1 %v10825_v15  ;;  %2920 = vmatprep.subr.bf16.mxu0 %v11072_v18  ;;  %v10898_v15 = vcombine.high %v335_v6, %v339_v7  ;;  %v331_v18 = vld [vmem:[#allocation2 + $0x2f8] sm:$0xff] }
 0x1ac   :  { %2961 = vmatprep.subr.bf16.mxu1 %v10818_v23  ;;  %v574_v23 = vld [vmem:[#allocation2 + $0xa90] sm:$0xff]  ;;  %v10889_v31 = vcombine.low %v327_v14, %v331_v18  ;;  %v411_v6 = vld [vmem:[#allocation2 + $0x578] sm:$0xff] }
 0x1ad   :  { %v11136_v32 = vcombine.high %v574_v23, %v578_v24  ;;  %v11135_v39 = vcombine.low %v574_v23, %v578_v24  ;;  %v10970_v23 = vcombine.high %v407_v4, %v411_v6  ;;  %v527_v24 = vld [vmem:[#allocation2 + $0x918] sm:$0xff] }
 0x1ae   :  { %2921 = vmatpush1.bf16.msra.mxu0 %v11071_v26  ;;  %v319_v26 = vld [vmem:[#allocation2 + $0x298] sm:$0xff] }
 0x1af   :  { %2962 = vmatpush1.bf16.msra.mxu1 %v10817_v27  ;;  %2922 = vmatprep.subr.bf16.mxu0 %v11064_v28  ;;  %v10890_v27 = vcombine.high %v327_v14, %v331_v18  ;;  %v323_v28 = vld [vmem:[#allocation2 + $0x2b8] sm:$0xff] }
 0x1b0   :  { %2963 = vmatprep.subr.bf16.mxu1 %v10810_v34  ;;  %v566_v34 = vld [vmem:[#allocation2 + $0xa50] sm:$0xff]  ;;  %v10881_v40 = vcombine.low %v319_v26, %v323_v28  ;;  %v399_v18 = vld [vmem:[#allocation2 + $0x518] sm:$0xff] }
 0x1b1   :  { %v11128_v41 = vcombine.high %v566_v34, %v570_v35  ;;  %v11127_v48 = vcombine.low %v566_v34, %v570_v35 }
 0x1b2   :  { %2923 = vmatpush1.bf16.msra.mxu0 %v11063_v36  ;;  %v311_v36 = vld [vmem:[#allocation2 + $0x258] sm:$0xff] }
 0x1b3   :  { %2964 = vmatpush1.bf16.msra.mxu1 %v10809_v37  ;;  %2924 = vmatprep.subr.bf16.mxu0 %v11056_v38  ;;  %v10882_v37 = vcombine.high %v319_v26, %v323_v28  ;;  %v315_v38 = vld [vmem:[#allocation2 + $0x278] sm:$0xff] }
 0x1b4   :  { %2965 = vmatprep.subr.bf16.mxu1 %v10802_v5  ;;  %v558_v5 = vld [vmem:[#allocation2 + $0xa10] sm:$0xff]  ;;  %v10873_v49 = vcombine.low %v311_v36, %v315_v38  ;;  %v531_v26 = vld [vmem:[#allocation2 + $0x938] sm:$0xff] }
 0x1b5   :  { %v11120_v51 = vcombine.high %v558_v5, %v562_v42  ;;  %v11119_v59 = vcombine.low %v558_v5, %v562_v42  ;;  %v387_v5 = vld [vmem:[#allocation2 + $0x4b8] sm:$0xff] }
 0x1b6   :  { %2925 = vmatpush1.bf16.msra.mxu0 %v11055_v43  ;;  %v303_v43 = vld [vmem:[#allocation2 + $0x218] sm:$0xff] }
 0x1b7   :  { %2966 = vmatpush1.bf16.msra.mxu1 %v10801_v45  ;;  %2926 = vmatprep.subr.bf16.mxu0 %v11176_v47  ;;  %v10874_v45 = vcombine.high %v311_v36, %v315_v38  ;;  %v307_v47 = vld [vmem:[#allocation2 + $0x238] sm:$0xff]  ;;  %v11090_v36 = vcombine.high %v527_v24, %v531_v26 }
 0x1b8   :  { %2967 = vmatprep.subr.bf16.mxu1 %v10922_v52  ;;  %v423_v52 = vld [vmem:[#allocation2 + $0x5d8] sm:$0xff]  ;;  %v10865_v60 = vcombine.low %v303_v43, %v307_v47 }
 0x1b9   :  { %v10986_v22 = vcombine.high %v423_v52, %v427_v54  ;;  %v10985_v3 = vcombine.low %v423_v52, %v427_v54  ;;  %v395_v38 = vld [vmem:[#allocation2 + $0x4f8] sm:$0xff] }
 0x1ba   :  { %2927 = vmatpush2.bf16.msra.mxu0 %v11175_v55  ;;  %v551_v55 = vld [vmem:[#allocation2 + $0x9d8] sm:$0xff] }
 0x1bb   :  { %2968 = vmatpush2.bf16.msra.mxu1 %v10921_v56  ;;  %2928 = vmatprep.subr.bf16.mxu0 %v11168_v58  ;;  %v10866_v56 = vcombine.high %v303_v43, %v307_v47  ;;  %v555_v58 = vld [vmem:[#allocation2 + $0x9f8] sm:$0xff] }
 0x1bc   :  { %2969 = vmatprep.subr.bf16.mxu1 %v10914_v61  ;;  %v415_v61 = vld [vmem:[#allocation2 + $0x598] sm:$0xff] }
 0x1bd   :  { %v10978_v7 = vcombine.high %v415_v61, %v419_v62  ;;  %v511_v43 = vld [vmem:[#allocation2 + $0x898] sm:$0xff] }
 0x1be   :  { %2929 = vmatpush2.bf16.msra.mxu0 %v11167_v0  ;;  %v543_v0 = vld [vmem:[#allocation2 + $0x998] sm:$0xff] }
 0x1bf   :  { %2970 = vmatpush2.bf16.msra.mxu1 %v10913_v1  ;;  %2930 = vmatprep.subr.bf16.mxu0 %v11160_v2  ;;  %v11114_v1 = vcombine.high %v551_v55, %v555_v58  ;;  %v547_v2 = vld [vmem:[#allocation2 + $0x9b8] sm:$0xff] }
 0x1c0   :  { %2971 = vmatprep.subr.bf16.mxu1 %v10906_v11  ;;  %v11113_v11 = vcombine.low %v551_v55, %v555_v58  ;;  %v503_v55 = vld [vmem:[#allocation2 + $0x858] sm:$0xff] }
 0x1c2   :  { %2931 = vmatpush2.bf16.msra.mxu0 %v11159_v8  ;;  %v535_v8 = vld [vmem:[#allocation2 + $0x958] sm:$0xff] }
 0x1c3   :  { %2972 = vmatpush2.bf16.msra.mxu1 %v10905_v9  ;;  %2932 = vmatprep.subr.bf16.mxu0 %v11152_v10  ;;  %v539_v9 = vld [vmem:[#allocation2 + $0x978] sm:$0xff]  ;;  %v11106_v10 = vcombine.high %v543_v0, %v547_v2 }
 0x1c4   :  { %2973 = vmatprep.subr.bf16.mxu1 %v10898_v15  ;;  %v10977_v15 = vcombine.low %v415_v61, %v419_v62 }
 0x1c6   :  { %2933 = vmatpush2.bf16.msra.mxu0 %v11151_v19  ;;  %v403_v19 = vld [vmem:[#allocation2 + $0x538] sm:$0xff] }
 0x1c7   :  { %2974 = vmatpush2.bf16.msra.mxu1 %v10897_v20  ;;  %2934 = vmatprep.subr.bf16.mxu0 %v11144_v21  ;;  %v11105_v21 = vcombine.low %v543_v0, %v547_v2  ;;  %v10962_v34 = vcombine.high %v399_v18, %v403_v19  ;;  %v495_v0 = vld [vmem:[#allocation2 + $0x818] sm:$0xff] }
 0x1c8   :  { %2975 = vmatprep.subr.bf16.mxu1 %v10890_v27 }
 0x1ca   :  { %2935 = vmatpush2.bf16.msra.mxu0 %v11143_v29  ;;  %v10969_v29 = vcombine.low %v407_v4, %v411_v6  ;;  %v487_v4 = vld [vmem:[#allocation2 + $0x7d8] sm:$0xff] }
 0x1cb   :  { %2976 = vmatpush2.bf16.msra.mxu1 %v10889_v31  ;;  %2936 = vmatprep.subr.bf16.mxu0 %v11136_v32  ;;  %v11097_v32 = vcombine.low %v535_v8, %v539_v9  ;;  %v491_v6 = vld [vmem:[#allocation2 + $0x7f8] sm:$0xff] }
 0x1cc   :  { %2977 = vmatprep.subr.bf16.mxu1 %v10882_v37  ;;  %v391_v37 = vld [vmem:[#allocation2 + $0x4d8] sm:$0xff] }
 0x1cd   :  { %v10954_v42 = vcombine.high %v391_v37, %v395_v38 }
 0x1ce   :  { %2937 = vmatpush2.bf16.msra.mxu0 %v11135_v39  ;;  %v519_v39 = vld [vmem:[#allocation2 + $0x8d8] sm:$0xff] }
 0x1cf   :  { %2978 = vmatpush2.bf16.msra.mxu1 %v10881_v40  ;;  %2938 = vmatprep.subr.bf16.mxu0 %v11128_v41  ;;  %v523_v40 = vld [vmem:[#allocation2 + $0x8f8] sm:$0xff] }
 0x1d0   :  { %2979 = vmatprep.subr.bf16.mxu1 %v10874_v45  ;;  %v383_v41 = vld [vmem:[#allocation2 + $0x498] sm:$0xff]  ;;  %v11082_v47 = vcombine.high %v519_v39, %v523_v40  ;;  %v11081_v52 = vcombine.low %v519_v39, %v523_v40 }
 0x1d1   :  { %v515_v45 = vld [vmem:[#allocation2 + $0x8b8] sm:$0xff]  ;;  %v10946_v54 = vcombine.high %v383_v41, %v387_v5 }
 0x1d2   :  { %2939 = vmatpush2.bf16.msra.mxu0 %v11127_v48  ;;  %v10953_v48 = vcombine.low %v391_v37, %v395_v38  ;;  %v11074_v58 = vcombine.high %v511_v43, %v515_v45  ;;  %v11073_v61 = vcombine.low %v511_v43, %v515_v45  ;;  %v463_v37 = vld [vmem:[#allocation2 + $0x718] sm:$0xff] }
 0x1d3   :  { %2980 = vmatpush2.bf16.msra.mxu1 %v10873_v49  ;;  %2940 = vmatprep.subr.bf16.mxu0 %v11120_v51  ;;  %v375_v49 = vld [vmem:[#allocation2 + $0x458] sm:$0xff] }
 0x1d4   :  { %2981 = vmatprep.subr.bf16.mxu1 %v10866_v56  ;;  %v379_v51 = vld [vmem:[#allocation2 + $0x478] sm:$0xff] }
 0x1d5   :  { %v507_v56 = vld [vmem:[#allocation2 + $0x878] sm:$0xff]  ;;  %v10938_v62 = vcombine.high %v375_v49, %v379_v51 }
 0x1d6   :  { %2941 = vmatpush2.bf16.msra.mxu0 %v11119_v59  ;;  %v10945_v59 = vcombine.low %v383_v41, %v387_v5  ;;  %v11066_v2 = vcombine.high %v503_v55, %v507_v56  ;;  %v467_v38 = vld [vmem:[#allocation2 + $0x738] sm:$0xff] }
 0x1d7   :  { %2982 = vmatpush2.bf16.msra.mxu1 %v10865_v60  ;;  %2992 = vmatprep.subr.bf16.mxu0 %v10986_v22  ;;  %v367_v60 = vld [vmem:[#allocation2 + $0x418] sm:$0xff] }
 0x1d8   :  { %3033 = vmatprep.subr.bf16.mxu1 %v11114_v1  ;;  %v371_v22 = vld [vmem:[#allocation2 + $0x438] sm:$0xff] }
 0x1d9   :  { %v2698_v12 = vpop.f32.mrf.mxu0  ;;  %2943 = vmatmul.mubr.bf16.vlgmr.msra.gmra.mxu0 %v13843_v50  ;;  %v499_v1 = vld [vmem:[#allocation2 + $0x838] sm:$0xff] }
 0x1da   :  { %v13871_v13 = vadd.f32 %v2698_v12, %v13863_v46  ;;  %v13873_v14 = vpop.f32.mrf.mxu1  ;;  %2984 = vmatmul.mubr.bf16.vlgmr.msra.gmra.mxu1 %v13829_v30  ;;  %2993 = vmatpush1.bf16.msra.mxu0 %v10985_v3  ;;  %v11098_v46 = vcombine.high %v535_v8, %v539_v9  ;;  %v10937_v3 = vcombine.low %v375_v49, %v379_v51  ;;  %v615_v8 = vld [vmem:[#allocation2 + $0xbd8] sm:$0xff] }
 0x1db   :  { %3034 = vmatpush1.bf16.msra.mxu1 %v11113_v11  ;;  %v13876_v20 = vpop.f32.mrf.mxu0  ;;  %2994 = vmatprep.subr.bf16.mxu0 %v10978_v7  ;;  %v11065_v11 = vcombine.low %v503_v55, %v507_v56  ;;  %v10930_v7 = vcombine.high %v367_v60, %v371_v22  ;;  %v619_v9 = vld [vmem:[#allocation2 + $0xbf8] sm:$0xff]  ;;  %v10929_v12 = vcombine.low %v367_v60, %v371_v22 }
 0x1dc   :  { %v13878_v27 = vpop.f32.mrf.mxu1  ;;  %3035 = vmatprep.subr.bf16.mxu1 %v11106_v10  ;;  %3024 = vmatprep.mubr.bf16.mxu0 %v13817_v16  ;;  %v10961_v16 = vcombine.low %v399_v18, %v403_v19  ;;  %v11058_v10 = vcombine.high %v495_v0, %v499_v1  ;;  %v483_v18 = vld [vmem:[#allocation2 + $0x7b8] sm:$0xff]  ;;  %v11057_v19 = vcombine.low %v495_v0, %v499_v1 }
 0x1dd   :  { %v2702_v28 = vpop.f32.mrf.mxu0  ;;  %3065 = vmatprep.mubr.bf16.mxu1 %v13835_v63  ;;  %v11089_v63 = vcombine.low %v527_v24, %v531_v26  ;;  %v611_v24 = vld [vmem:[#allocation2 + $0xbb8] sm:$0xff]  ;;  %v11178_v26 = vcombine.high %v615_v8, %v619_v9 }
 0x1de   :  { %v2743_v30 = vpop.f32.mrf.mxu1  ;;  %2995 = vmatpush1.bf16.msra.mxu0 %v10977_v15  ;;  %v479_v15 = vld [vmem:[#allocation2 + $0x798] sm:$0xff] }
 0x1df   :  { %3036 = vmatpush1.bf16.msra.mxu1 %v11105_v21  ;;  %v2703_v31 = vpop.f32.mrf.mxu0  ;;  %2996 = vmatprep.subr.bf16.mxu0 %v10970_v23  ;;  %v11050_v21 = vcombine.high %v487_v4, %v491_v6  ;;  %v607_v23 = vld [vmem:[#allocation2 + $0xb98] sm:$0xff] }
 0x1e0   :  { %v2744_v35 = vpop.f32.mrf.mxu1  ;;  %3037 = vmatprep.subr.bf16.mxu1 %v11098_v46  ;;  %v11049_v46 = vcombine.low %v487_v4, %v491_v6  ;;  %v471_v28 = vld [vmem:[#allocation2 + $0x758] sm:$0xff]  ;;  %v11042_v31 = vcombine.high %v479_v15, %v483_v18  ;;  %v11169_v39 = vcombine.low %v607_v23, %v611_v24 }
 0x1e1   :  { %v475_v30 = vld [vmem:[#allocation2 + $0x778] sm:$0xff]  ;;  %v11170_v35 = vcombine.high %v607_v23, %v611_v24 }
 0x1e2   :  { %2997 = vmatpush1.bf16.msra.mxu0 %v10969_v29  ;;  %v11177_v29 = vcombine.low %v615_v8, %v619_v9  ;;  %v11034_v40 = vcombine.high %v471_v28, %v475_v30  ;;  %v595_v41 = vld [vmem:[#allocation2 + $0xb38] sm:$0xff] }
 0x1e3   :  { %3038 = vmatpush1.bf16.msra.mxu1 %v11097_v32  ;;  %2998 = vmatprep.subr.bf16.mxu0 %v10962_v34  ;;  %v599_v32 = vld [vmem:[#allocation2 + $0xb58] sm:$0xff] }
 0x1e4   :  { %3039 = vmatprep.subr.bf16.mxu1 %v11090_v36  ;;  %v603_v34 = vld [vmem:[#allocation2 + $0xb78] sm:$0xff]  ;;  %v11041_v36 = vcombine.low %v479_v15, %v483_v18 }
 0x1e5   :  { %v11162_v5 = vcombine.high %v599_v32, %v603_v34  ;;  %v459_v43 = vld [vmem:[#allocation2 + $0x6f8] sm:$0xff]  ;;  %v11161_v45 = vcombine.low %v599_v32, %v603_v34 }
 0x1e6   :  { %2999 = vmatpush1.bf16.msra.mxu0 %v10961_v16  ;;  %v591_v16 = vld [vmem:[#allocation2 + $0xb18] sm:$0xff] }
 0x1e7   :  { %3040 = vmatpush1.bf16.msra.mxu1 %v11089_v63  ;;  %3000 = vmatprep.subr.bf16.mxu0 %v10954_v42  ;;  %v11033_v63 = vcombine.low %v471_v28, %v475_v30  ;;  %v455_v42 = vld [vmem:[#allocation2 + $0x6d8] sm:$0xff]  ;;  %v11154_v51 = vcombine.high %v591_v16, %v595_v41  ;;  %v11153_v56 = vcombine.low %v591_v16, %v595_v41  ;;  %v13885_v28 = vsub.s32 3, %v13796_v44 }
 0x1e8   :  { %3041 = vmatprep.subr.bf16.mxu1 %v11082_v47  ;;  %v11026_v47 = vcombine.high %v463_v37, %v467_v38  ;;  %v587_v49 = vld [vmem:[#allocation2 + $0xaf8] sm:$0xff] }
 0x1e9   :  { %v451_v55 = vld [vmem:[#allocation2 + $0x6b8] sm:$0xff] }
 0x1ea   :  { %3001 = vmatpush1.bf16.msra.mxu0 %v10953_v48  ;;  %v583_v48 = vld [vmem:[#allocation2 + $0xad8] sm:$0xff] }
 0x1eb   :  { %3042 = vmatpush1.bf16.msra.mxu1 %v11081_v52  ;;  %3002 = vmatprep.subr.bf16.mxu0 %v10946_v54  ;;  %v11025_v52 = vcombine.low %v463_v37, %v467_v38  ;;  %v447_v54 = vld [vmem:[#allocation2 + $0x698] sm:$0xff]  ;;  %v11146_v22 = vcombine.high %v583_v48, %v587_v49  ;;  %v11145_v1 = vcombine.low %v583_v48, %v587_v49 }
 0x1ec   :  { %3043 = vmatprep.subr.bf16.mxu1 %v11074_v58  ;;  %v11018_v58 = vcombine.high %v455_v42, %v459_v43  ;;  %v579_v60 = vld [vmem:[#allocation2 + $0xab8] sm:$0xff] }
 0x1ed   :  { %v443_v0 = vld [vmem:[#allocation2 + $0x678] sm:$0xff] }
 0x1ee   :  { %3003 = vmatpush1.bf16.msra.mxu0 %v10945_v59  ;;  %v575_v59 = vld [vmem:[#allocation2 + $0xa98] sm:$0xff] }
 0x1ef   :  { %3044 = vmatpush1.bf16.msra.mxu1 %v11073_v61  ;;  %3004 = vmatprep.subr.bf16.mxu0 %v10938_v62  ;;  %v11017_v61 = vcombine.low %v455_v42, %v459_v43  ;;  %v439_v62 = vld [vmem:[#allocation2 + $0x658] sm:$0xff]  ;;  %v11138_v6 = vcombine.high %v575_v59, %v579_v60  ;;  %v11137_v9 = vcombine.low %v575_v59, %v579_v60 }
 0x1f0   :  { %3045 = vmatprep.subr.bf16.mxu1 %v11066_v2  ;;  %v11010_v2 = vcombine.high %v447_v54, %v451_v55  ;;  %v571_v4 = vld [vmem:[#allocation2 + $0xa78] sm:$0xff] }
 0x1f1   :  { %v435_v8 = vld [vmem:[#allocation2 + $0x638] sm:$0xff] }
 0x1f2   :  { %3005 = vmatpush1.bf16.msra.mxu0 %v10937_v3  ;;  %v567_v3 = vld [vmem:[#allocation2 + $0xa58] sm:$0xff] }
 0x1f3   :  { %3046 = vmatpush1.bf16.msra.mxu1 %v11065_v11  ;;  %3006 = vmatprep.subr.bf16.mxu0 %v10930_v7  ;;  %v11009_v11 = vcombine.low %v447_v54, %v451_v55  ;;  %v431_v7 = vld [vmem:[#allocation2 + $0x618] sm:$0xff]  ;;  %v11130_v18 = vcombine.high %v567_v3, %v571_v4 }
 0x1f4   :  { %3047 = vmatprep.subr.bf16.mxu1 %v11058_v10  ;;  %v11002_v10 = vcombine.high %v439_v62, %v443_v0  ;;  %v563_v15 = vld [vmem:[#allocation2 + $0xa38] sm:$0xff]  ;;  %v10994_v23 = vcombine.high %v431_v7, %v435_v8  ;;  %v10993_v30 = vcombine.low %v431_v7, %v435_v8 }
 0x1f5   :  { %v12226_v32 = vld [vmem:[#allocation6 + $0xe0] ss:$16 sps:$4 sm:$0xff]   ;;  %v12240_v41 = vld [vmem:[#allocation6 + $0xa4] ss:$16 sps:$4 sm:$0xff]  }
 0x1f6   :  { %3007 = vmatpush1.bf16.msra.mxu0 %v10929_v12  ;;  %v559_v12 = vld [vmem:[#allocation2 + $0xa18] sm:$0xff] }
 0x1f7   :  { %3048 = vmatpush1.bf16.msra.mxu1 %v11057_v19  ;;  %3008 = vmatprep.subr.bf16.mxu0 %v11050_v21  ;;  %v11001_v19 = vcombine.low %v439_v62, %v443_v0  ;;  %v11129_v21 = vcombine.low %v567_v3, %v571_v4  ;;  %v11122_v24 = vcombine.high %v559_v12, %v563_v15  ;;  %v12232_v38 = vld [vmem:[#allocation6 + $0xc0] ss:$16 sps:$4 sm:$0xff]   ;;  %v12243_v42 = vld [vmem:[#allocation6 + $0x2a4] ss:$16 sps:$4 sm:$0xff]  }
 0x1f8   :  { %3049 = vmatprep.subr.bf16.mxu1 %v11178_v26  ;;  %v2701_v26 = vadd.f32 %v13876_v20, %v13867_v57  ;;  %v12234_v57 = vld [vmem:[#allocation6 + $0xc4] ss:$16 sps:$4 sm:$0xff]   ;;  %v12235_v16 = vld [vmem:[#allocation6 + $0x2c0] ss:$16 sps:$4 sm:$0xff]  }
 0x1f9   :  { %v12237_v20 = vld [vmem:[#allocation6 + $0x2c4] ss:$16 sps:$4 sm:$0xff]   ;;  %v12238_v48 = vld [vmem:[#allocation6 + $0xa0] ss:$16 sps:$4 sm:$0xff]  }
 0x1fa   :  { %3009 = vmatpush2.bf16.msra.mxu0 %v11049_v46  ;;  %v12228_v46 = vld [vmem:[#allocation6 + $0xe4] ss:$16 sps:$4 sm:$0xff]   ;;  %v3075_v34 = vmax.f32 %v2701_v26, 0.0  ;;  %v12241_v49 = vld [vmem:[#allocation6 + $0x2a0] ss:$16 sps:$4 sm:$0xff]  }
 0x1fb   :  { %3050 = vmatpush2.bf16.msra.mxu1 %v11177_v29  ;;  %3010 = vmatprep.subr.bf16.mxu0 %v11042_v31  ;;  %v12231_v29 = vld [vmem:[#allocation6 + $0x2e4] ss:$16 sps:$4 sm:$0xff]   ;;  %v11121_v31 = vcombine.low %v559_v12, %v563_v15  ;;  %v12247_v60 = vld [vmem:[#allocation6 + $0x280] ss:$16 sps:$4 sm:$0xff]  }
 0x1fc   :  { %3051 = vmatprep.subr.bf16.mxu1 %v11170_v35  ;;  %v12229_v35 = vld [vmem:[#allocation6 + $0x2e0] ss:$16 sps:$4 sm:$0xff]   ;;  %v12249_v54 = vld [vmem:[#allocation6 + $0x284] ss:$16 sps:$4 sm:$0xff]  }
 0x1fd   :  { %v12255_v62 = vld [vmem:[#allocation6 + $0x264] ss:$16 sps:$4 sm:$0xff]   ;;  %v12253_v0 = vld [vmem:[#allocation6 + $0x260] ss:$16 sps:$4 sm:$0xff]  }
 0x1fe   :  { %3011 = vmatpush2.bf16.msra.mxu0 %v11041_v36  ;;  %v13887_v36 = vld [vmem:[#allocation4] sm:$0xff]  ;;  %v12261_v3 = vld [vmem:[#allocation6 + $0x244] ss:$16 sps:$4 sm:$0xff]   ;;  %v12259_v4 = vld [vmem:[#allocation6 + $0x240] ss:$16 sps:$4 sm:$0xff]  }
 0x1ff   :  { %3052 = vmatpush2.bf16.msra.mxu1 %v11169_v39  ;;  %3012 = vmatprep.subr.bf16.mxu0 %v11034_v40  ;;  %v637_v37 = vrot.slane %v13887_v36, %v13885_v28  ;;  %v13891_v39 = vpack.c.bf16 %v3075_v34, %v3075_v34  ;;  %v12267_v7 = vld [vmem:[#allocation6 + $0x224] ss:$16 sps:$4 sm:$0xff]   ;;  %v12265_v8 = vld [vmem:[#allocation6 + $0x220] ss:$16 sps:$4 sm:$0xff]  }
 0x200   :  { %3053 = vmatprep.subr.bf16.mxu1 %v11162_v5  ;;  %v12273_v12 = vld [vmem:[#allocation6 + $0x204] ss:$16 sps:$4 sm:$0xff]   ;;  %v12271_v15 = vld [vmem:[#allocation6 + $0x200] ss:$16 sps:$4 sm:$0xff]  }
 0x201   :  { %v2742_v5 = vadd.f32 %v13878_v27, %v637_v37  ;;  %v12280_v26 = vld [vmem:[#allocation6 + $0x1c0] ss:$16 sps:$4 sm:$0xff]   ;;  %v12297_v37 = vld [vmem:[#allocation6 + $0x384] ss:$16 sps:$4 sm:$0xff]  }
 0x202   :  { %3013 = vmatpush2.bf16.msra.mxu0 %v11033_v63  ;;  %v12289_v34 = vld [vmem:[#allocation6 + $0x3a0] ss:$16 sps:$4 sm:$0xff]  }
 0x203   :  { %3054 = vmatpush2.bf16.msra.mxu1 %v11161_v45  ;;  %3014 = vmatprep.subr.bf16.mxu0 %v11026_v47 }
 0x204   :  { %3055 = vmatprep.subr.bf16.mxu1 %v11154_v51  ;;  %v12246_v51 = vld [vmem:[#allocation6 + $0x84] ss:$16 sps:$4 sm:$0xff]  }
 0x206   :  { %3015 = vmatpush2.bf16.msra.mxu0 %v11025_v52 }
 0x207   :  { %3056 = vmatpush2.bf16.msra.mxu1 %v11153_v56  ;;  %3016 = vmatprep.subr.bf16.mxu0 %v11018_v58  ;;  %v12244_v58 = vld [vmem:[#allocation6 + $0x80] ss:$16 sps:$4 sm:$0xff]  }
 0x208   :  { %3057 = vmatprep.subr.bf16.mxu1 %v11146_v22  ;;  %v12252_v22 = vld [vmem:[#allocation6 + $0x64] ss:$16 sps:$4 sm:$0xff]  }
 0x20a   :  { %3017 = vmatpush2.bf16.msra.mxu0 %v11017_v61  ;;  %v12250_v61 = vld [vmem:[#allocation6 + $0x60] ss:$16 sps:$4 sm:$0xff]  }
 0x20b   :  { %3058 = vmatpush2.bf16.msra.mxu1 %v11145_v1  ;;  %3018 = vmatprep.subr.bf16.mxu0 %v11010_v2  ;;  %v12258_v1 = vld [vmem:[#allocation6 + $0x44] ss:$16 sps:$4 sm:$0xff]   ;;  %v12256_v2 = vld [vmem:[#allocation6 + $0x40] ss:$16 sps:$4 sm:$0xff]  }
 0x20c   :  { %3059 = vmatprep.subr.bf16.mxu1 %v11138_v6  ;;  %v12264_v6 = vld [vmem:[#allocation6 + $0x24] ss:$16 sps:$4 sm:$0xff]  }
 0x20e   :  { %3019 = vmatpush2.bf16.msra.mxu0 %v11009_v11  ;;  %v12262_v11 = vld [vmem:[#allocation6 + $0x20] ss:$16 sps:$4 sm:$0xff]  }
 0x20f   :  { %3060 = vmatpush2.bf16.msra.mxu1 %v11137_v9  ;;  %3020 = vmatprep.subr.bf16.mxu0 %v11002_v10  ;;  %v12270_v9 = vld [vmem:[#allocation6 + $0x4] ss:$16 sps:$4 sm:$0xff]   ;;  %v12268_v10 = vld [vmem:[#allocation6] ss:$16 sps:$4 sm:$0xff]  }
 0x210   :  { %3061 = vmatprep.subr.bf16.mxu1 %v11130_v18  ;;  %v12276_v18 = vld [vmem:[#allocation6 + $0x1e4] ss:$16 sps:$4 sm:$0xff]  }
 0x212   :  { %3021 = vmatpush2.bf16.msra.mxu0 %v11001_v19  ;;  %v12274_v19 = vld [vmem:[#allocation6 + $0x1e0] ss:$16 sps:$4 sm:$0xff]  }
 0x213   :  { %3062 = vmatpush2.bf16.msra.mxu1 %v11129_v21  ;;  %3022 = vmatprep.subr.bf16.mxu0 %v10994_v23  ;;  %v12279_v21 = vld [vmem:[#allocation6 + $0x3e4] ss:$16 sps:$4 sm:$0xff]   ;;  %v12277_v23 = vld [vmem:[#allocation6 + $0x3e0] ss:$16 sps:$4 sm:$0xff]  }
 0x214   :  { %3063 = vmatprep.subr.bf16.mxu1 %v11122_v24  ;;  %v12282_v24 = vld [vmem:[#allocation6 + $0x1c4] ss:$16 sps:$4 sm:$0xff]  }
 0x216   :  { %3023 = vmatpush2.bf16.msra.mxu0 %v10993_v30  ;;  %v12283_v30 = vld [vmem:[#allocation6 + $0x3c0] ss:$16 sps:$4 sm:$0xff]  }
 0x217   :  { %3064 = vmatpush2.bf16.msra.mxu1 %v11121_v31  ;;  %4648 = vmatprep.subr.bf16.mxu0 %v12228_v46  ;;  %v12285_v46 = vld [vmem:[#allocation6 + $0x3c4] ss:$16 sps:$4 sm:$0xff]   ;;  %v12286_v31 = vld [vmem:[#allocation6 + $0x1a0] ss:$16 sps:$4 sm:$0xff]  }
 0x218   :  { %4689 = vmatprep.subr.bf16.mxu1 %v12231_v29  ;;  %v12288_v29 = vld [vmem:[#allocation6 + $0x1a4] ss:$16 sps:$4 sm:$0xff]  }
 0x219   :  { %v13893_v40 = vpop.f32.mrf.mxu0  ;;  %3025 = vmatmul.mubr.bf16.vlgmr.msra.gmra.mxu0 %v13833_v33 }
 0x21a   :  { %v13897_v63 = vpop.f32.mrf.mxu1  ;;  %3066 = vmatmul.mubr.bf16.vlgmr.msra.gmra.mxu1 %v13843_v50  ;;  %4649 = vmatpush1.bf16.msra.mxu0 %v12226_v32  ;;  %v12291_v32 = vld [vmem:[#allocation6 + $0x3a4] ss:$16 sps:$4 sm:$0xff]  }
 0x21b   :  { %4680 = vmatprep.mubr.bf16.mxu0 %v13891_v39  ;;  %4690 = vmatpush1.bf16.msra.mxu1 %v12229_v35  ;;  %v2782_v43 = vpop.f32.mrf.mxu0  ;;  %v12294_v35 = vld [vmem:[#allocation6 + $0x184] ss:$16 sps:$4 sm:$0xff]  }
 0x21c   :  { %v2783_v45 = vadd.f32 %v2782_v43, %v2742_v5  ;;  %v2823_v47 = vpop.f32.mrf.mxu1  ;;  %4650 = vmatprep.subr.bf16.mxu0 %v12234_v57  ;;  %4691 = vmatprep.subr.bf16.mxu1 %v12237_v20  ;;  %v13905_v57 = vsub.s32 2, %v13796_v44  ;;  %v12292_v20 = vld [vmem:[#allocation6 + $0x180] ss:$16 sps:$4 sm:$0xff]  }
 0x21d   :  { %v2784_v33 = vpop.f32.mrf.mxu0  ;;  %v12301_v43 = vld [vmem:[#allocation6 + $0x360] ss:$16 sps:$4 sm:$0xff]  }
 0x21e   :  { %v2824_v52 = vadd.f32 %v2823_v47, %v2783_v45  ;;  %v2825_v27 = vpop.f32.mrf.mxu1  ;;  %4651 = vmatpush1.bf16.msra.mxu0 %v12232_v38  ;;  %v12295_v38 = vld [vmem:[#allocation6 + $0x380] ss:$16 sps:$4 sm:$0xff]   ;;  %v633_v5 = vrot.slane %v13887_v36, %v13905_v57  ;;  %v12306_v45 = vld [vmem:[#allocation6 + $0x144] ss:$16 sps:$4 sm:$0xff]  }
 0x21f   :  { %4692 = vmatpush1.bf16.msra.mxu1 %v12235_v16  ;;  %v2785_v50 = vpop.f32.mrf.mxu0  ;;  %4652 = vmatprep.subr.bf16.mxu0 %v12240_v41  ;;  %v12300_v16 = vld [vmem:[#allocation6 + $0x164] ss:$16 sps:$4 sm:$0xff]   ;;  %v12304_v33 = vld [vmem:[#allocation6 + $0x140] ss:$16 sps:$4 sm:$0xff]  }
 0x220   :  { %v3077_v55 = vmax.f32 %v2824_v52, 0.0  ;;  %v2826_v56 = vpop.f32.mrf.mxu1  ;;  %4693 = vmatprep.subr.bf16.mxu1 %v12243_v42  ;;  %v12303_v41 = vld [vmem:[#allocation6 + $0x364] ss:$16 sps:$4 sm:$0xff]   ;;  %v12298_v42 = vld [vmem:[#allocation6 + $0x160] ss:$16 sps:$4 sm:$0xff]  }
 0x221   :  { %v12309_v47 = vld [vmem:[#allocation6 + $0x344] ss:$16 sps:$4 sm:$0xff]   ;;  %v12313_v50 = vld [vmem:[#allocation6 + $0x320] ss:$16 sps:$4 sm:$0xff]  }
 0x222   :  { %v13901_v59 = vpack.c.bf16 %v3077_v55, %v3077_v55  ;;  %4653 = vmatpush1.bf16.msra.mxu0 %v12238_v48  ;;  %v2740_v48 = vadd.f32 %v13873_v14, %v633_v5  ;;  %v12315_v27 = vld [vmem:[#allocation6 + $0x324] ss:$16 sps:$4 sm:$0xff]  }
 0x223   :  { %4694 = vmatpush1.bf16.msra.mxu1 %v12241_v49  ;;  %4654 = vmatprep.subr.bf16.mxu0 %v12246_v51  ;;  %v12307_v49 = vld [vmem:[#allocation6 + $0x340] ss:$16 sps:$4 sm:$0xff]   ;;  %v12312_v51 = vld [vmem:[#allocation6 + $0x124] ss:$16 sps:$4 sm:$0xff]  }
 0x224   :  { %4721 = vmatprep.mubr.bf16.mxu1 %v13901_v59  ;;  %4695 = vmatprep.subr.bf16.mxu1 %v12249_v54  ;;  %v2781_v52 = vadd.f32 %v13893_v40, %v2740_v48  ;;  %v12310_v54 = vld [vmem:[#allocation6 + $0x120] ss:$16 sps:$4 sm:$0xff]   ;;  %v12318_v55 = vld [vmem:[#allocation6 + $0x104] ss:$16 sps:$4 sm:$0xff]  }
 0x225   :  { %v12321_v14 = vld [vmem:[#allocation6 + $0x304] ss:$16 sps:$4 sm:$0xff]   ;;  %v12343_v48 = vld [vmem:[#allocation6 + $0x400] ss:$16 sps:$4 sm:$0xff]  }
 0x226   :  { %4655 = vmatpush1.bf16.msra.mxu0 %v12244_v58  ;;  %v2822_v56 = vadd.f32 %v13897_v63, %v2781_v52  ;;  %v12316_v58 = vld [vmem:[#allocation6 + $0x100] ss:$16 sps:$4 sm:$0xff]   ;;  %v12324_v40 = vld [vmem:[#allocation6 + $0x4e4] ss:$16 sps:$4 sm:$0xff]  }
 0x227   :  { %4696 = vmatpush1.bf16.msra.mxu1 %v12247_v60  ;;  %4656 = vmatprep.subr.bf16.mxu0 %v12252_v22  ;;  %v3074_v60 = vmax.f32 %v13871_v13, 0.0  ;;  %v12319_v22 = vld [vmem:[#allocation6 + $0x300] ss:$16 sps:$4 sm:$0xff]   ;;  %v12327_v63 = vld [vmem:[#allocation6 + $0x4c4] ss:$16 sps:$4 sm:$0xff]  }
 0x228   :  { %4697 = vmatprep.subr.bf16.mxu1 %v12255_v62  ;;  %v12375_v62 = vld [vmem:[#allocation6 + $0x6e4] ss:$16 sps:$4 sm:$0xff]   ;;  %v12346_v52 = vld [vmem:[#allocation6 + $0x5e0] ss:$16 sps:$4 sm:$0xff]  }
 0x229   :  { %v12411_v5 = vld [vmem:[#allocation6 + $0x624] ss:$16 sps:$4 sm:$0xff]  }
 0x22a   :  { %4657 = vmatpush1.bf16.msra.mxu0 %v12250_v61  ;;  %v3076_v61 = vmax.f32 %v2822_v56, 0.0  ;;  %v12354_v56 = vld [vmem:[#allocation6 + $0x5a4] ss:$16 sps:$4 sm:$0xff]  }
 0x22b   :  { %4698 = vmatpush1.bf16.msra.mxu1 %v12253_v0  ;;  %4658 = vmatprep.subr.bf16.mxu0 %v12258_v1  ;;  %v12322_v0 = vld [vmem:[#allocation6 + $0x4e0] ss:$16 sps:$4 sm:$0xff]   ;;  %v13913_v1 = vpack.c.bf16 %v3074_v60, %v3074_v60 }
 0x22c   :  { %4699 = vmatprep.subr.bf16.mxu1 %v12261_v3  ;;  %v13915_v3 = vpack.c.bf16 %v3076_v61, %v3076_v61  ;;  %v12352_v60 = vld [vmem:[#allocation6 + $0x5a0] ss:$16 sps:$4 sm:$0xff]   ;;  %v12441_v61 = vld [vmem:[#allocation6 + $0x784] ss:$16 sps:$4 sm:$0xff]  }
 0x22e   :  { %4659 = vmatpush1.bf16.msra.mxu0 %v12256_v2  ;;  %v12373_v2 = vld [vmem:[#allocation6 + $0x6e0] ss:$16 sps:$4 sm:$0xff]  }
 0x22f   :  { %4700 = vmatpush1.bf16.msra.mxu1 %v12259_v4  ;;  %4660 = vmatprep.subr.bf16.mxu0 %v12264_v6  ;;  %v12381_v4 = vld [vmem:[#allocation6 + $0x6c4] ss:$16 sps:$4 sm:$0xff]  }
 0x230   :  { %4701 = vmatprep.subr.bf16.mxu1 %v12267_v7 }
 0x232   :  { %4661 = vmatpush1.bf16.msra.mxu0 %v12262_v11  ;;  %v12325_v11 = vld [vmem:[#allocation6 + $0x4c0] ss:$16 sps:$4 sm:$0xff]  }
 0x233   :  { %4702 = vmatpush1.bf16.msra.mxu1 %v12265_v8  ;;  %4662 = vmatprep.subr.bf16.mxu0 %v12270_v9  ;;  %v12330_v8 = vld [vmem:[#allocation6 + $0x4a4] ss:$16 sps:$4 sm:$0xff]   ;;  %v12379_v9 = vld [vmem:[#allocation6 + $0x6c0] ss:$16 sps:$4 sm:$0xff]  }
 0x234   :  { %4703 = vmatprep.subr.bf16.mxu1 %v12273_v12  ;;  %v12387_v12 = vld [vmem:[#allocation6 + $0x6a4] ss:$16 sps:$4 sm:$0xff]  }
 0x236   :  { %4663 = vmatpush1.bf16.msra.mxu0 %v12268_v10 }
 0x237   :  { %4704 = vmatpush1.bf16.msra.mxu1 %v12271_v15  ;;  %4664 = vmatprep.subr.bf16.mxu0 %v12276_v18 }
 0x238   :  { %4705 = vmatprep.subr.bf16.mxu1 %v12279_v21 }
 0x23a   :  { %4665 = vmatpush2.bf16.msra.mxu0 %v12274_v19  ;;  %v12328_v19 = vld [vmem:[#allocation6 + $0x4a0] ss:$16 sps:$4 sm:$0xff]  }
 0x23b   :  { %4706 = vmatpush2.bf16.msra.mxu1 %v12277_v23  ;;  %4666 = vmatprep.subr.bf16.mxu0 %v12282_v24  ;;  %v12333_v23 = vld [vmem:[#allocation6 + $0x484] ss:$16 sps:$4 sm:$0xff]   ;;  %v12385_v24 = vld [vmem:[#allocation6 + $0x6a0] ss:$16 sps:$4 sm:$0xff]  }
 0x23c   :  { %4707 = vmatprep.subr.bf16.mxu1 %v12285_v46  ;;  %v12393_v46 = vld [vmem:[#allocation6 + $0x684] ss:$16 sps:$4 sm:$0xff]  }
 0x23e   :  { %4667 = vmatpush2.bf16.msra.mxu0 %v12280_v26 }
 0x23f   :  { %4708 = vmatpush2.bf16.msra.mxu1 %v12283_v30  ;;  %4668 = vmatprep.subr.bf16.mxu0 %v12288_v29  ;;  %v12331_v30 = vld [vmem:[#allocation6 + $0x480] ss:$16 sps:$4 sm:$0xff]   ;;  %v12336_v29 = vld [vmem:[#allocation6 + $0x464] ss:$16 sps:$4 sm:$0xff]  }
 0x240   :  { %4709 = vmatprep.subr.bf16.mxu1 %v12291_v32  ;;  %v12399_v32 = vld [vmem:[#allocation6 + $0x664] ss:$16 sps:$4 sm:$0xff]  }
 0x242   :  { %4669 = vmatpush2.bf16.msra.mxu0 %v12286_v31  ;;  %v12391_v31 = vld [vmem:[#allocation6 + $0x680] ss:$16 sps:$4 sm:$0xff]  }
 0x243   :  { %4710 = vmatpush2.bf16.msra.mxu1 %v12289_v34  ;;  %4670 = vmatprep.subr.bf16.mxu0 %v12294_v35  ;;  %v12334_v34 = vld [vmem:[#allocation6 + $0x460] ss:$16 sps:$4 sm:$0xff]   ;;  %v12339_v35 = vld [vmem:[#allocation6 + $0x444] ss:$16 sps:$4 sm:$0xff]  }
 0x244   :  { %4711 = vmatprep.subr.bf16.mxu1 %v12297_v37  ;;  %v12397_v37 = vld [vmem:[#allocation6 + $0x660] ss:$16 sps:$4 sm:$0xff]  }
 0x246   :  { %4671 = vmatpush2.bf16.msra.mxu0 %v12292_v20  ;;  %v12405_v20 = vld [vmem:[#allocation6 + $0x644] ss:$16 sps:$4 sm:$0xff]  }
 0x247   :  { %4712 = vmatpush2.bf16.msra.mxu1 %v12295_v38  ;;  %4672 = vmatprep.subr.bf16.mxu0 %v12300_v16  ;;  %v12337_v38 = vld [vmem:[#allocation6 + $0x440] ss:$16 sps:$4 sm:$0xff]   ;;  %v12342_v16 = vld [vmem:[#allocation6 + $0x424] ss:$16 sps:$4 sm:$0xff]  }
 0x248   :  { %4713 = vmatprep.subr.bf16.mxu1 %v12303_v41  ;;  %v12403_v41 = vld [vmem:[#allocation6 + $0x640] ss:$16 sps:$4 sm:$0xff]  }
 0x24a   :  { %4673 = vmatpush2.bf16.msra.mxu0 %v12298_v42  ;;  %v12340_v42 = vld [vmem:[#allocation6 + $0x420] ss:$16 sps:$4 sm:$0xff]  }
 0x24b   :  { %4714 = vmatpush2.bf16.msra.mxu1 %v12301_v43  ;;  %4674 = vmatprep.subr.bf16.mxu0 %v12306_v45  ;;  %v12345_v43 = vld [vmem:[#allocation6 + $0x404] ss:$16 sps:$4 sm:$0xff]   ;;  %v12409_v45 = vld [vmem:[#allocation6 + $0x620] ss:$16 sps:$4 sm:$0xff]  }
 0x24c   :  { %4715 = vmatprep.subr.bf16.mxu1 %v12309_v47  ;;  %v12417_v47 = vld [vmem:[#allocation6 + $0x604] ss:$16 sps:$4 sm:$0xff]  }
 0x24e   :  { %4675 = vmatpush2.bf16.msra.mxu0 %v12304_v33  ;;  %v12348_v33 = vld [vmem:[#allocation6 + $0x5e4] ss:$16 sps:$4 sm:$0xff]  }
 0x24f   :  { %4716 = vmatpush2.bf16.msra.mxu1 %v12307_v49  ;;  %4676 = vmatprep.subr.bf16.mxu0 %v12312_v51  ;;  %v12415_v49 = vld [vmem:[#allocation6 + $0x600] ss:$16 sps:$4 sm:$0xff]   ;;  %v12423_v51 = vld [vmem:[#allocation6 + $0x7e4] ss:$16 sps:$4 sm:$0xff]  }
 0x250   :  { %4717 = vmatprep.subr.bf16.mxu1 %v12315_v27  ;;  %v12351_v27 = vld [vmem:[#allocation6 + $0x5c4] ss:$16 sps:$4 sm:$0xff]  }
 0x252   :  { %4677 = vmatpush2.bf16.msra.mxu0 %v12310_v54  ;;  %v12421_v54 = vld [vmem:[#allocation6 + $0x7e0] ss:$16 sps:$4 sm:$0xff]  }
 0x253   :  { %4718 = vmatpush2.bf16.msra.mxu1 %v12313_v50  ;;  %4678 = vmatprep.subr.bf16.mxu0 %v12318_v55  ;;  %v12429_v50 = vld [vmem:[#allocation6 + $0x7c4] ss:$16 sps:$4 sm:$0xff]   ;;  %v12349_v55 = vld [vmem:[#allocation6 + $0x5c0] ss:$16 sps:$4 sm:$0xff]  }
 0x254   :  { %4719 = vmatprep.subr.bf16.mxu1 %v12321_v14  ;;  %v12427_v14 = vld [vmem:[#allocation6 + $0x7c0] ss:$16 sps:$4 sm:$0xff]  }
 0x256   :  { %4679 = vmatpush2.bf16.msra.mxu0 %v12316_v58  ;;  %v12435_v58 = vld [vmem:[#allocation6 + $0x7a4] ss:$16 sps:$4 sm:$0xff]  }
 0x257   :  { %4720 = vmatpush2.bf16.msra.mxu1 %v12319_v22  ;;  %4730 = vmatprep.subr.bf16.mxu0 %v12324_v40  ;;  %v12357_v22 = vld [vmem:[#allocation6 + $0x584] ss:$16 sps:$4 sm:$0xff]   ;;  %v12433_v40 = vld [vmem:[#allocation6 + $0x7a0] ss:$16 sps:$4 sm:$0xff]  }
 0x258   :  { %4771 = vmatprep.subr.bf16.mxu1 %v12375_v62  ;;  %v12355_v62 = vld [vmem:[#allocation6 + $0x580] ss:$16 sps:$4 sm:$0xff]  }
 0x259   :  { %v13917_v13 = vpop.f32.mrf.mxu0  ;;  %4681 = vmatmul.mubr.bf16.vlgmr.msra.gmra.mxu0 %v13913_v1 }
 0x25a   :  { %v13920_v6 = vpop.f32.mrf.mxu1  ;;  %4722 = vmatmul.mubr.bf16.vlgmr.msra.gmra.mxu1 %v13915_v3  ;;  %4731 = vmatpush1.bf16.msra.mxu0 %v12322_v0  ;;  %v12360_v0 = vld [vmem:[#allocation6 + $0x564] ss:$16 sps:$4 sm:$0xff]  }
 0x25b   :  { %v13923_v7 = vpop.f32.mrf.mxu0  ;;  %4732 = vmatprep.subr.bf16.mxu0 %v12327_v63  ;;  %4772 = vmatpush1.bf16.msra.mxu1 %v12373_v2  ;;  %v12439_v63 = vld [vmem:[#allocation6 + $0x780] ss:$16 sps:$4 sm:$0xff]   ;;  %v12447_v2 = vld [vmem:[#allocation6 + $0x764] ss:$16 sps:$4 sm:$0xff]  }
 0x25c   :  { %v13925_v10 = vpop.f32.mrf.mxu1  ;;  %4773 = vmatprep.subr.bf16.mxu1 %v12381_v4  ;;  %v12358_v4 = vld [vmem:[#allocation6 + $0x560] ss:$16 sps:$4 sm:$0xff]  }
 0x25d   :  { %v2866_v15 = vpop.f32.mrf.mxu0 }
 0x25e   :  { %v2907_v18 = vpop.f32.mrf.mxu1  ;;  %4733 = vmatpush1.bf16.msra.mxu0 %v12325_v11  ;;  %v12363_v11 = vld [vmem:[#allocation6 + $0x544] ss:$16 sps:$4 sm:$0xff]  }
 0x25f   :  { %v2867_v21 = vpop.f32.mrf.mxu0  ;;  %4734 = vmatprep.subr.bf16.mxu0 %v12330_v8  ;;  %4774 = vmatpush1.bf16.msra.mxu1 %v12379_v9  ;;  %v12445_v8 = vld [vmem:[#allocation6 + $0x760] ss:$16 sps:$4 sm:$0xff]   ;;  %v12453_v9 = vld [vmem:[#allocation6 + $0x744] ss:$16 sps:$4 sm:$0xff]  }
 0x260   :  { %v2908_v26 = vpop.f32.mrf.mxu1  ;;  %4775 = vmatprep.subr.bf16.mxu1 %v12387_v12  ;;  %v12361_v12 = vld [vmem:[#allocation6 + $0x540] ss:$16 sps:$4 sm:$0xff]   ;;  %v12366_v15 = vld [vmem:[#allocation6 + $0x524] ss:$16 sps:$4 sm:$0xff]  }
 0x261   :  { %v12451_v18 = vld [vmem:[#allocation6 + $0x740] ss:$16 sps:$4 sm:$0xff]   ;;  %v12459_v21 = vld [vmem:[#allocation6 + $0x724] ss:$16 sps:$4 sm:$0xff]  }
 0x262   :  { %4735 = vmatpush1.bf16.msra.mxu0 %v12328_v19  ;;  %v13928_v19 = vsub.s32 4, %v13796_v44  ;;  %v12369_v26 = vld [vmem:[#allocation6 + $0x504] ss:$16 sps:$4 sm:$0xff]  }
 0x263   :  { %4736 = vmatprep.subr.bf16.mxu0 %v12333_v23  ;;  %4776 = vmatpush1.bf16.msra.mxu1 %v12385_v24  ;;  %v13931_v23 = vsub.s32 5, %v13796_v44  ;;  %v12364_v24 = vld [vmem:[#allocation6 + $0x520] ss:$16 sps:$4 sm:$0xff]  }
 0x264   :  { %4777 = vmatprep.subr.bf16.mxu1 %v12393_v46  ;;  %v12457_v46 = vld [vmem:[#allocation6 + $0x720] ss:$16 sps:$4 sm:$0xff]  }
 0x266   :  { %4737 = vmatpush1.bf16.msra.mxu0 %v12331_v30  ;;  %v641_v30 = vrot.slane %v13887_v36, %v13928_v19 }
 0x267   :  { %4738 = vmatprep.subr.bf16.mxu0 %v12336_v29  ;;  %4778 = vmatpush1.bf16.msra.mxu1 %v12391_v31  ;;  %v12465_v29 = vld [vmem:[#allocation6 + $0x704] ss:$16 sps:$4 sm:$0xff]   ;;  %v645_v31 = vrot.slane %v13887_v36, %v13931_v23 }
 0x268   :  { %4779 = vmatprep.subr.bf16.mxu1 %v12399_v32  ;;  %v12367_v32 = vld [vmem:[#allocation6 + $0x500] ss:$16 sps:$4 sm:$0xff]  }
 0x26a   :  { %4739 = vmatpush1.bf16.msra.mxu0 %v12334_v34  ;;  %v12372_v34 = vld [vmem:[#allocation6 + $0xec] ss:$16 sps:$4 sm:$0xff]  }
 0x26b   :  { %4740 = vmatprep.subr.bf16.mxu0 %v12339_v35  ;;  %4780 = vmatpush1.bf16.msra.mxu1 %v12397_v37  ;;  %v12463_v35 = vld [vmem:[#allocation6 + $0x700] ss:$16 sps:$4 sm:$0xff]   ;;  %v2863_v37 = vadd.f32 %v13917_v13, %v641_v30  ;;  %v652_v30 = vsub.s32 7, %v13796_v44 }
 0x26c   :  { %4781 = vmatprep.subr.bf16.mxu1 %v12405_v20  ;;  %v12471_v20 = vld [vmem:[#allocation6 + $0x2ec] ss:$16 sps:$4 sm:$0xff]  }
 0x26e   :  { %4741 = vmatpush1.bf16.msra.mxu0 %v12337_v38  ;;  %v2865_v38 = vadd.f32 %v13923_v7, %v645_v31  ;;  %v12448_v31 = vld [vmem:[#allocation6 + $0x148] ss:$16 sps:$4 sm:$0xff]  }
 0x26f   :  { %4742 = vmatprep.subr.bf16.mxu0 %v12342_v16  ;;  %4782 = vmatpush1.bf16.msra.mxu1 %v12403_v41  ;;  %v2904_v16 = vadd.f32 %v13920_v6, %v2863_v37  ;;  %v12370_v6 = vld [vmem:[#allocation6 + $0xe8] ss:$16 sps:$4 sm:$0xff]  }
 0x270   :  { %4783 = vmatprep.subr.bf16.mxu1 %v12411_v5  ;;  %v2906_v5 = vadd.f32 %v13925_v10, %v2865_v38  ;;  %v12376_v10 = vld [vmem:[#allocation6 + $0xc8] ss:$16 sps:$4 sm:$0xff]   ;;  %v12462_v38 = vld [vmem:[#allocation6 + $0x10c] ss:$16 sps:$4 sm:$0xff]  }
 0x271   :  { %v12454_v37 = vld [vmem:[#allocation6 + $0x128] ss:$16 sps:$4 sm:$0xff]  }
 0x272   :  { %4743 = vmatpush1.bf16.msra.mxu0 %v12340_v42 }
 0x273   :  { %4744 = vmatprep.subr.bf16.mxu0 %v12345_v43  ;;  %4784 = vmatpush1.bf16.msra.mxu1 %v12409_v45 }
 0x274   :  { %4785 = vmatprep.subr.bf16.mxu1 %v12417_v47 }
 0x276   :  { %4745 = vmatpush1.bf16.msra.mxu0 %v12343_v48 }
 0x277   :  { %4746 = vmatprep.subr.bf16.mxu0 %v12348_v33  ;;  %4786 = vmatpush1.bf16.msra.mxu1 %v12415_v49 }
 0x278   :  { %4787 = vmatprep.subr.bf16.mxu1 %v12423_v51 }
 0x27a   :  { %4747 = vmatpush2.bf16.msra.mxu0 %v12346_v52 }
 0x27b   :  { %4748 = vmatprep.subr.bf16.mxu0 %v12351_v27  ;;  %4788 = vmatpush2.bf16.msra.mxu1 %v12421_v54 }
 0x27c   :  { %4789 = vmatprep.subr.bf16.mxu1 %v12429_v50  ;;  %v12378_v50 = vld [vmem:[#allocation6 + $0xcc] ss:$16 sps:$4 sm:$0xff]  }
 0x27e   :  { %4749 = vmatpush2.bf16.msra.mxu0 %v12349_v55  ;;  %v12384_v55 = vld [vmem:[#allocation6 + $0xac] ss:$16 sps:$4 sm:$0xff]  }
 0x27f   :  { %4750 = vmatprep.subr.bf16.mxu0 %v12354_v56  ;;  %4790 = vmatpush2.bf16.msra.mxu1 %v12427_v14  ;;  %v12382_v56 = vld [vmem:[#allocation6 + $0xa8] ss:$16 sps:$4 sm:$0xff]   ;;  %v12390_v14 = vld [vmem:[#allocation6 + $0x8c] ss:$16 sps:$4 sm:$0xff]  }
 0x280   :  { %4791 = vmatprep.subr.bf16.mxu1 %v12435_v58  ;;  %v12388_v58 = vld [vmem:[#allocation6 + $0x88] ss:$16 sps:$4 sm:$0xff]  }
 0x282   :  { %4751 = vmatpush2.bf16.msra.mxu0 %v12352_v60  ;;  %v12396_v60 = vld [vmem:[#allocation6 + $0x6c] ss:$16 sps:$4 sm:$0xff]  }
 0x283   :  { %4752 = vmatprep.subr.bf16.mxu0 %v12357_v22  ;;  %4792 = vmatpush2.bf16.msra.mxu1 %v12433_v40  ;;  %v12394_v22 = vld [vmem:[#allocation6 + $0x68] ss:$16 sps:$4 sm:$0xff]   ;;  %v12402_v40 = vld [vmem:[#allocation6 + $0x4c] ss:$16 sps:$4 sm:$0xff]  }
 0x284   :  { %4793 = vmatprep.subr.bf16.mxu1 %v12441_v61  ;;  %v12400_v61 = vld [vmem:[#allocation6 + $0x48] ss:$16 sps:$4 sm:$0xff]  }
 0x286   :  { %4753 = vmatpush2.bf16.msra.mxu0 %v12355_v62  ;;  %v12408_v62 = vld [vmem:[#allocation6 + $0x2c] ss:$16 sps:$4 sm:$0xff]  }
 0x287   :  { %4754 = vmatprep.subr.bf16.mxu0 %v12360_v0  ;;  %4794 = vmatpush2.bf16.msra.mxu1 %v12439_v63  ;;  %v12414_v0 = vld [vmem:[#allocation6 + $0xc] ss:$16 sps:$4 sm:$0xff]   ;;  %v12412_v63 = vld [vmem:[#allocation6 + $0x8] ss:$16 sps:$4 sm:$0xff]  }
 0x288   :  { %4795 = vmatprep.subr.bf16.mxu1 %v12447_v2  ;;  %v12420_v2 = vld [vmem:[#allocation6 + $0x1ec] ss:$16 sps:$4 sm:$0xff]  }
 0x28a   :  { %4755 = vmatpush2.bf16.msra.mxu0 %v12358_v4  ;;  %v12418_v4 = vld [vmem:[#allocation6 + $0x1e8] ss:$16 sps:$4 sm:$0xff]  }
 0x28b   :  { %4756 = vmatprep.subr.bf16.mxu0 %v12363_v11  ;;  %4796 = vmatpush2.bf16.msra.mxu1 %v12445_v8  ;;  %v12426_v11 = vld [vmem:[#allocation6 + $0x1cc] ss:$16 sps:$4 sm:$0xff]   ;;  %v12424_v8 = vld [vmem:[#allocation6 + $0x1c8] ss:$16 sps:$4 sm:$0xff]  }
 0x28c   :  { %4797 = vmatprep.subr.bf16.mxu1 %v12453_v9  ;;  %v12432_v9 = vld [vmem:[#allocation6 + $0x1ac] ss:$16 sps:$4 sm:$0xff]  }
 0x28e   :  { %4757 = vmatpush2.bf16.msra.mxu0 %v12361_v12  ;;  %v12430_v12 = vld [vmem:[#allocation6 + $0x1a8] ss:$16 sps:$4 sm:$0xff]  }
 0x28f   :  { %4758 = vmatprep.subr.bf16.mxu0 %v12366_v15  ;;  %4798 = vmatpush2.bf16.msra.mxu1 %v12451_v18  ;;  %v12438_v15 = vld [vmem:[#allocation6 + $0x18c] ss:$16 sps:$4 sm:$0xff]   ;;  %v12436_v18 = vld [vmem:[#allocation6 + $0x188] ss:$16 sps:$4 sm:$0xff]  }
 0x290   :  { %4799 = vmatprep.subr.bf16.mxu1 %v12459_v21  ;;  %v12444_v21 = vld [vmem:[#allocation6 + $0x16c] ss:$16 sps:$4 sm:$0xff]  }
 0x292   :  { %4759 = vmatpush2.bf16.msra.mxu0 %v12364_v24  ;;  %v648_v24 = vsub.s32 6, %v13796_v44 }
 0x293   :  { %4760 = vmatprep.subr.bf16.mxu0 %v12369_v26  ;;  %4800 = vmatpush2.bf16.msra.mxu1 %v12457_v46  ;;  %v12442_v26 = vld [vmem:[#allocation6 + $0x168] ss:$16 sps:$4 sm:$0xff]   ;;  %v12450_v46 = vld [vmem:[#allocation6 + $0x14c] ss:$16 sps:$4 sm:$0xff]  }
 0x294   :  { %4801 = vmatprep.subr.bf16.mxu1 %v12465_v29  ;;  %v649_v29 = vrot.slane %v13887_v36, %v648_v24 }
 0x296   :  { %4761 = vmatpush2.bf16.msra.mxu0 %v12367_v32  ;;  %v12456_v32 = vld [vmem:[#allocation6 + $0x12c] ss:$16 sps:$4 sm:$0xff]  }
 0x297   :  { %4812 = vmatprep.subr.bf16.mxu0 %v12372_v34  ;;  %4802 = vmatpush2.bf16.msra.mxu1 %v12463_v35  ;;  %v653_v34 = vrot.slane %v13887_v36, %v652_v30  ;;  %v12468_v36 = vld [vmem:[#allocation6 + $0x4ec] ss:$16 sps:$4 sm:$0xff]  }
 0x298   :  { %4853 = vmatprep.subr.bf16.mxu1 %v12471_v20 }
 0x299   :  { %v2944_v41 = vpop.f32.mrf.mxu0 }
 0x29a   :  { %v2945_v42 = vadd.f32 %v2944_v41, %v2904_v16  ;;  %v13941_v43 = vpop.f32.mrf.mxu1 }
 0x29b   :  { %v2946_v45 = vpop.f32.mrf.mxu0  ;;  %v2986_v35 = vadd.f32 %v13941_v43, %v649_v29  ;;  %v12505_v29 = vld [vmem:[#allocation6 + $0x228] ss:$16 sps:$4 sm:$0xff]  }
 0x29c   :  { %v2947_v47 = vadd.f32 %v2946_v45, %v2906_v5  ;;  %v13943_v48 = vpop.f32.mrf.mxu1  ;;  %v3078_v13 = vmax.f32 %v2945_v42, 0.0 }
 0x29d   :  { %v2948_v33 = vpop.f32.mrf.mxu0  ;;  %v2988_v16 = vadd.f32 %v13943_v48, %v653_v34  ;;  %v12474_v48 = vld [vmem:[#allocation6 + $0x4cc] ss:$16 sps:$4 sm:$0xff]  }
 0x29e   :  { %v3079_v49 = vmax.f32 %v2947_v47, 0.0  ;;  %v2989_v7 = vpop.f32.mrf.mxu1  ;;  %v13947_v54 = vpack.c.bf16 %v3078_v13, %v3078_v13  ;;  %v12460_v33 = vld [vmem:[#allocation6 + $0x108] ss:$16 sps:$4 sm:$0xff]   ;;  %v12516_v34 = vld [vmem:[#allocation6 + $0x5ec] ss:$16 sps:$4 sm:$0xff]  }
 0x29f   :  { %v2949_v51 = vpop.f32.mrf.mxu0 }
 0x2a0   :  { %v13945_v52 = vpack.c.bf16 %v3079_v49, %v3079_v49  ;;  %v2990_v27 = vpop.f32.mrf.mxu1 }
 0x2a2   :  { %4762 = vmatprep.mubr.bf16.mxu0 %v13945_v52 }
 0x2a3   :  { %4763 = vmatmul.mubr.bf16.vlgmr.msra.gmra.mxu0 %v13947_v54 }
 0x2a4   :  { %4813 = vmatpush1.bf16.msra.mxu0 %v12370_v6  ;;  %4844 = vmatprep.mubr.bf16.mxu0 %v13891_v39  ;;  %v12406_v39 = vld [vmem:[#allocation6 + $0x28] ss:$16 sps:$4 sm:$0xff]  }
 0x2a5   :  { %4814 = vmatprep.subr.bf16.mxu0 %v12378_v50 }
 0x2a8   :  { %4815 = vmatpush1.bf16.msra.mxu0 %v12376_v10  ;;  %v12466_v10 = vld [vmem:[#allocation6 + $0x4e8] ss:$16 sps:$4 sm:$0xff]  }
 0x2a9   :  { %4816 = vmatprep.subr.bf16.mxu0 %v12384_v55 }
 0x2ac   :  { %4817 = vmatpush1.bf16.msra.mxu0 %v12382_v56  ;;  %v12469_v56 = vld [vmem:[#allocation6 + $0x2e8] ss:$16 sps:$4 sm:$0xff]  }
 0x2ad   :  { %4818 = vmatprep.subr.bf16.mxu0 %v12390_v14 }
 0x2b0   :  { %4819 = vmatpush1.bf16.msra.mxu0 %v12388_v58  ;;  %v12472_v58 = vld [vmem:[#allocation6 + $0x4c8] ss:$16 sps:$4 sm:$0xff]  }
 0x2b1   :  { %4820 = vmatprep.subr.bf16.mxu0 %v12396_v60  ;;  %v12477_v60 = vld [vmem:[#allocation6 + $0x2cc] ss:$16 sps:$4 sm:$0xff]  }
 0x2b4   :  { %4821 = vmatpush1.bf16.msra.mxu0 %v12394_v22  ;;  %v12480_v22 = vld [vmem:[#allocation6 + $0x4ac] ss:$16 sps:$4 sm:$0xff]  }
 0x2b5   :  { %4822 = vmatprep.subr.bf16.mxu0 %v12402_v40  ;;  %v12475_v40 = vld [vmem:[#allocation6 + $0x2c8] ss:$16 sps:$4 sm:$0xff]  }
 0x2b8   :  { %4823 = vmatpush1.bf16.msra.mxu0 %v12400_v61  ;;  %v12483_v61 = vld [vmem:[#allocation6 + $0x2ac] ss:$16 sps:$4 sm:$0xff]  }
 0x2b9   :  { %4824 = vmatprep.subr.bf16.mxu0 %v12408_v62  ;;  %v12486_v62 = vld [vmem:[#allocation6 + $0x48c] ss:$16 sps:$4 sm:$0xff]  }
 0x2bc   :  { %4825 = vmatpush1.bf16.msra.mxu0 %v12406_v39  ;;  %v12484_v39 = vld [vmem:[#allocation6 + $0x488] ss:$16 sps:$4 sm:$0xff]  }
 0x2bd   :  { %4826 = vmatprep.subr.bf16.mxu0 %v12414_v0  ;;  %v12489_v0 = vld [vmem:[#allocation6 + $0x28c] ss:$16 sps:$4 sm:$0xff]  }
 0x2c0   :  { %4827 = vmatpush1.bf16.msra.mxu0 %v12412_v63  ;;  %v12492_v63 = vld [vmem:[#allocation6 + $0x46c] ss:$16 sps:$4 sm:$0xff]  }
 0x2c1   :  { %4828 = vmatprep.subr.bf16.mxu0 %v12420_v2  ;;  %v12487_v2 = vld [vmem:[#allocation6 + $0x288] ss:$16 sps:$4 sm:$0xff]  }
 0x2c4   :  { %4829 = vmatpush2.bf16.msra.mxu0 %v12418_v4  ;;  %v12495_v4 = vld [vmem:[#allocation6 + $0x26c] ss:$16 sps:$4 sm:$0xff]  }
 0x2c5   :  { %4830 = vmatprep.subr.bf16.mxu0 %v12426_v11  ;;  %v12498_v11 = vld [vmem:[#allocation6 + $0x44c] ss:$16 sps:$4 sm:$0xff]  }
 0x2c8   :  { %4831 = vmatpush2.bf16.msra.mxu0 %v12424_v8  ;;  %v12493_v8 = vld [vmem:[#allocation6 + $0x268] ss:$16 sps:$4 sm:$0xff]  }
 0x2c9   :  { %4832 = vmatprep.subr.bf16.mxu0 %v12432_v9  ;;  %v12496_v9 = vld [vmem:[#allocation6 + $0x448] ss:$16 sps:$4 sm:$0xff]  }
 0x2cc   :  { %4833 = vmatpush2.bf16.msra.mxu0 %v12430_v12  ;;  %v12501_v12 = vld [vmem:[#allocation6 + $0x24c] ss:$16 sps:$4 sm:$0xff]  }
 0x2cd   :  { %4834 = vmatprep.subr.bf16.mxu0 %v12438_v15  ;;  %v12504_v15 = vld [vmem:[#allocation6 + $0x42c] ss:$16 sps:$4 sm:$0xff]  }
 0x2d0   :  { %4835 = vmatpush2.bf16.msra.mxu0 %v12436_v18  ;;  %v12499_v18 = vld [vmem:[#allocation6 + $0x248] ss:$16 sps:$4 sm:$0xff]  }
 0x2d1   :  { %4836 = vmatprep.subr.bf16.mxu0 %v12444_v21  ;;  %v12502_v21 = vld [vmem:[#allocation6 + $0x428] ss:$16 sps:$4 sm:$0xff]  }
 0x2d4   :  { %4837 = vmatpush2.bf16.msra.mxu0 %v12442_v26  ;;  %v12507_v26 = vld [vmem:[#allocation6 + $0x22c] ss:$16 sps:$4 sm:$0xff]  }
 0x2d5   :  { %4838 = vmatprep.subr.bf16.mxu0 %v12450_v46  ;;  %v12510_v46 = vld [vmem:[#allocation6 + $0x40c] ss:$16 sps:$4 sm:$0xff]  }
 0x2d8   :  { %4839 = vmatpush2.bf16.msra.mxu0 %v12448_v31  ;;  %v12508_v31 = vld [vmem:[#allocation6 + $0x408] ss:$16 sps:$4 sm:$0xff]  }
 0x2d9   :  { %v3026_v20 = vpop.f32.mrf.mxu0  ;;  %4840 = vmatprep.subr.bf16.mxu0 %v12456_v32  ;;  %v12513_v32 = vld [vmem:[#allocation6 + $0x20c] ss:$16 sps:$4 sm:$0xff]  }
 0x2da   :  { %v3027_v41 = vadd.f32 %v3026_v20, %v2986_v35  ;;  %v3067_v5 = vpop.f32.mrf.mxu1  ;;  %v12511_v35 = vld [vmem:[#allocation6 + $0x208] ss:$16 sps:$4 sm:$0xff]   ;;  %v12519_v20 = vld [vmem:[#allocation6 + $0x3ec] ss:$16 sps:$4 sm:$0xff]  }
 0x2db   :  { %v3028_v42 = vpop.f32.mrf.mxu0 }
 0x2dc   :  { %v3068_v45 = vadd.f32 %v3067_v5, %v3027_v41  ;;  %v3029_v47 = vadd.f32 %v3028_v42, %v2988_v16  ;;  %v3069_v13 = vpop.f32.mrf.mxu1  ;;  %4841 = vmatpush2.bf16.msra.mxu0 %v12454_v37  ;;  %v12514_v37 = vld [vmem:[#allocation6 + $0x5e8] ss:$16 sps:$4 sm:$0xff]   ;;  %v12525_v5 = vld [vmem:[#allocation6 + $0x3cc] ss:$16 sps:$4 sm:$0xff]  }
 0x2dd   :  { %v3030_v49 = vpop.f32.mrf.mxu0  ;;  %4842 = vmatprep.subr.bf16.mxu0 %v12462_v38  ;;  %v12522_v38 = vld [vmem:[#allocation6 + $0x5cc] ss:$16 sps:$4 sm:$0xff]   ;;  %v12517_v16 = vld [vmem:[#allocation6 + $0x3e8] ss:$16 sps:$4 sm:$0xff]  }
 0x2de   :  { %v3070_v7 = vadd.f32 %v3069_v13, %v3029_v47  ;;  %v3071_v43 = vpop.f32.mrf.mxu1  ;;  %v3080_v27 = vmax.f32 %v3068_v45, 0.0  ;;  %v12520_v41 = vld [vmem:[#allocation6 + $0x5c8] ss:$16 sps:$4 sm:$0xff]   ;;  %v12528_v42 = vld [vmem:[#allocation6 + $0x5ac] ss:$16 sps:$4 sm:$0xff]  }
 0x2df   :  { %v3031_v51 = vpop.f32.mrf.mxu0  ;;  %v12523_v45 = vld [vmem:[#allocation6 + $0x3c8] ss:$16 sps:$4 sm:$0xff]   ;;  %v12531_v13 = vld [vmem:[#allocation6 + $0x3ac] ss:$16 sps:$4 sm:$0xff]  }
 0x2e0   :  { %v3081_v6 = vmax.f32 %v3070_v7, 0.0  ;;  %v3072_v50 = vpop.f32.mrf.mxu1  ;;  %4843 = vmatpush2.bf16.msra.mxu0 %v12460_v33  ;;  %v13965_v14 = vpack.c.bf16 %v3080_v27, %v3080_v27  ;;  %v12526_v47 = vld [vmem:[#allocation6 + $0x5a8] ss:$16 sps:$4 sm:$0xff]   ;;  %v12534_v33 = vld [vmem:[#allocation6 + $0x58c] ss:$16 sps:$4 sm:$0xff]  }
 0x2e1   :  { %4894 = vmatprep.subr.bf16.mxu0 %v12468_v36  ;;  %v12529_v49 = vld [vmem:[#allocation6 + $0x3a8] ss:$16 sps:$4 sm:$0xff]   ;;  %v12537_v7 = vld [vmem:[#allocation6 + $0x38c] ss:$16 sps:$4 sm:$0xff]  }
 0x2e2   :  { %v13962_v55 = vpack.c.bf16 %v3081_v6, %v3081_v6  ;;  %v12532_v36 = vld [vmem:[#allocation6 + $0x588] ss:$16 sps:$4 sm:$0xff]   ;;  %v12540_v43 = vld [vmem:[#allocation6 + $0x56c] ss:$16 sps:$4 sm:$0xff]  }
 0x2e3   :  { %4845 = vmatmul.mubr.bf16.vlgmr.msra.gmra.mxu0 %v13913_v1  ;;  %v12478_v1 = vld [vmem:[#allocation6 + $0x4a8] ss:$16 sps:$4 sm:$0xff]   ;;  %v12543_v6 = vld [vmem:[#allocation6 + $0x36c] ss:$16 sps:$4 sm:$0xff]  }
 0x2e4   :  { %4895 = vmatpush1.bf16.msra.mxu0 %v12466_v10  ;;  %4926 = vmatprep.mubr.bf16.mxu0 %v13945_v52  ;;  %v12481_v52 = vld [vmem:[#allocation6 + $0x2a8] ss:$16 sps:$4 sm:$0xff]   ;;  %v12546_v50 = vld [vmem:[#allocation6 + $0x54c] ss:$16 sps:$4 sm:$0xff]  }
 0x2e5   :  { %4803 = vmatprep.mubr.bf16.mxu1 %v13962_v55  ;;  %4896 = vmatprep.subr.bf16.mxu0 %v12474_v48  ;;  %v12535_v51 = vld [vmem:[#allocation6 + $0x388] ss:$16 sps:$4 sm:$0xff]   ;;  %v13971_v48 = vld [vmem:[#allocation7] sm:$0xf] }
 0x2e6   :  { %4804 = vmatmul.mubr.bf16.vlgmr.msra.gmra.mxu1 %v13965_v14  ;;  %v12538_v27 = vld [vmem:[#allocation6 + $0x568] ss:$16 sps:$4 sm:$0xff]  }
 0x2e7   :  { %4854 = vmatpush1.bf16.msra.mxu1 %v12469_v56  ;;  %4885 = vmatprep.mubr.bf16.mxu1 %v13901_v59  ;;  %v12490_v59 = vld [vmem:[#allocation6 + $0x468] ss:$16 sps:$4 sm:$0xff]  }
 0x2e8   :  { %4897 = vmatpush1.bf16.msra.mxu0 %v12472_v58  ;;  %4855 = vmatprep.subr.bf16.mxu1 %v12477_v60  ;;  %v12541_v10 = vld [vmem:[#allocation6 + $0x368] ss:$16 sps:$4 sm:$0xff]   ;;  %v12549_v58 = vld [vmem:[#allocation6 + $0x34c] ss:$16 sps:$4 sm:$0xff]  }
 0x2e9   :  { %4898 = vmatprep.subr.bf16.mxu0 %v12480_v22  ;;  %v12544_v56 = vld [vmem:[#allocation6 + $0x548] ss:$16 sps:$4 sm:$0xff]   ;;  %v12552_v60 = vld [vmem:[#allocation6 + $0x52c] ss:$16 sps:$4 sm:$0xff]   ;;  %v3351_v22 = vrot.slane %v13971_v48, %v13854_v17 }
 0x2eb   :  { %4856 = vmatpush1.bf16.msra.mxu1 %v12475_v40  ;;  %v12547_v40 = vld [vmem:[#allocation6 + $0x348] ss:$16 sps:$4 sm:$0xff]  }
 0x2ec   :  { %4899 = vmatpush1.bf16.msra.mxu0 %v12478_v1  ;;  %4857 = vmatprep.subr.bf16.mxu1 %v12483_v61  ;;  %v12550_v1 = vld [vmem:[#allocation6 + $0x528] ss:$16 sps:$4 sm:$0xff]   ;;  %v3355_v61 = vrot.slane %v13971_v48, %v13857_v25 }
 0x2ed   :  { %4900 = vmatprep.subr.bf16.mxu0 %v12486_v62  ;;  %v12555_v62 = vld [vmem:[#allocation6 + $0x32c] ss:$16 sps:$4 sm:$0xff]  }
 0x2ef   :  { %4858 = vmatpush1.bf16.msra.mxu1 %v12481_v52 }
 0x2f0   :  { %4901 = vmatpush1.bf16.msra.mxu0 %v12484_v39  ;;  %4859 = vmatprep.subr.bf16.mxu1 %v12489_v0  ;;  %v12558_v39 = vld [vmem:[#allocation6 + $0x50c] ss:$16 sps:$4 sm:$0xff]  }
 0x2f1   :  { %4902 = vmatprep.subr.bf16.mxu0 %v12492_v63 }
 0x2f3   :  { %4860 = vmatpush1.bf16.msra.mxu1 %v12487_v2 }
 0x2f4   :  { %4903 = vmatpush1.bf16.msra.mxu0 %v12490_v59  ;;  %4861 = vmatprep.subr.bf16.mxu1 %v12495_v4  ;;  %v12553_v59 = vld [vmem:[#allocation6 + $0x328] ss:$16 sps:$4 sm:$0xff]  }
 0x2f5   :  { %4904 = vmatprep.subr.bf16.mxu0 %v12498_v11 }
 0x2f7   :  { %4862 = vmatpush1.bf16.msra.mxu1 %v12493_v8 }
 0x2f8   :  { %4905 = vmatpush1.bf16.msra.mxu0 %v12496_v9  ;;  %4863 = vmatprep.subr.bf16.mxu1 %v12501_v12  ;;  %v12556_v9 = vld [vmem:[#allocation6 + $0x508] ss:$16 sps:$4 sm:$0xff]   ;;  %v12561_v12 = vld [vmem:[#allocation6 + $0x30c] ss:$16 sps:$4 sm:$0xff]  }
 0x2f9   :  { %4906 = vmatprep.subr.bf16.mxu0 %v12504_v15 }
 0x2fb   :  { %4864 = vmatpush1.bf16.msra.mxu1 %v12499_v18  ;;  %v12612_v18 = vld [vmem:[#allocation9 + $0x74] ss:$8 sps:$4 sm:$0xff]  }
 0x2fc   :  { %4907 = vmatpush1.bf16.msra.mxu0 %v12502_v21  ;;  %4865 = vmatprep.subr.bf16.mxu1 %v12507_v26 }
 0x2fd   :  { %4908 = vmatprep.subr.bf16.mxu0 %v12510_v46 }
 0x2ff   :  { %4866 = vmatpush1.bf16.msra.mxu1 %v12505_v29  ;;  %v12559_v29 = vld [vmem:[#allocation6 + $0x308] ss:$16 sps:$4 sm:$0xff]  }
 0x300   :  { %4909 = vmatpush1.bf16.msra.mxu0 %v12508_v31  ;;  %4867 = vmatprep.subr.bf16.mxu1 %v12513_v32  ;;  %v12564_v32 = vld [vmem:[#allocation6 + $0x6ec] ss:$16 sps:$4 sm:$0xff]  }
 0x301   :  { %4910 = vmatprep.subr.bf16.mxu0 %v12516_v34  ;;  %v12610_v34 = vld [vmem:[#allocation9 + $0x70] ss:$8 sps:$4 sm:$0xff]  }
 0x303   :  { %4868 = vmatpush1.bf16.msra.mxu1 %v12511_v35  ;;  %v12615_v35 = vld [vmem:[#allocation9 + $0x64] ss:$8 sps:$4 sm:$0xff]  }
 0x304   :  { %4911 = vmatpush2.bf16.msra.mxu0 %v12514_v37  ;;  %4869 = vmatprep.subr.bf16.mxu1 %v12519_v20  ;;  %v12562_v37 = vld [vmem:[#allocation6 + $0x6e8] ss:$16 sps:$4 sm:$0xff]   ;;  %v12567_v20 = vld [vmem:[#allocation6 + $0x6cc] ss:$16 sps:$4 sm:$0xff]  }
 0x305   :  { %4912 = vmatprep.subr.bf16.mxu0 %v12522_v38  ;;  %v12613_v38 = vld [vmem:[#allocation9 + $0x60] ss:$8 sps:$4 sm:$0xff]  }
 0x307   :  { %4870 = vmatpush2.bf16.msra.mxu1 %v12517_v16  ;;  %v12618_v16 = vld [vmem:[#allocation9 + $0x54] ss:$8 sps:$4 sm:$0xff]  }
 0x308   :  { %4913 = vmatpush2.bf16.msra.mxu0 %v12520_v41  ;;  %4871 = vmatprep.subr.bf16.mxu1 %v12525_v5  ;;  %v12565_v41 = vld [vmem:[#allocation6 + $0x6c8] ss:$16 sps:$4 sm:$0xff]   ;;  %v12570_v5 = vld [vmem:[#allocation6 + $0x6ac] ss:$16 sps:$4 sm:$0xff]  }
 0x309   :  { %4914 = vmatprep.subr.bf16.mxu0 %v12528_v42  ;;  %v12616_v42 = vld [vmem:[#allocation9 + $0x50] ss:$8 sps:$4 sm:$0xff]  }
 0x30b   :  { %4872 = vmatpush2.bf16.msra.mxu1 %v12523_v45  ;;  %v12621_v45 = vld [vmem:[#allocation9 + $0x44] ss:$8 sps:$4 sm:$0xff]  }
 0x30c   :  { %4915 = vmatpush2.bf16.msra.mxu0 %v12526_v47  ;;  %4873 = vmatprep.subr.bf16.mxu1 %v12531_v13  ;;  %v12573_v47 = vld [vmem:[#allocation6 + $0x68c] ss:$16 sps:$4 sm:$0xff]  }
 0x30d   :  { %4916 = vmatprep.subr.bf16.mxu0 %v12534_v33  ;;  %v12619_v13 = vld [vmem:[#allocation9 + $0x40] ss:$8 sps:$4 sm:$0xff]   ;;  %v12624_v33 = vld [vmem:[#allocation9 + $0x34] ss:$8 sps:$4 sm:$0xff]  }
 0x30f   :  { %4874 = vmatpush2.bf16.msra.mxu1 %v12529_v49  ;;  %v12576_v49 = vld [vmem:[#allocation6 + $0x66c] ss:$16 sps:$4 sm:$0xff]  }
 0x310   :  { %4917 = vmatpush2.bf16.msra.mxu0 %v12532_v36  ;;  %4875 = vmatprep.subr.bf16.mxu1 %v12537_v7  ;;  %v12627_v36 = vld [vmem:[#allocation9 + $0x24] ss:$8 sps:$4 sm:$0xff]  }
 0x311   :  { %4918 = vmatprep.subr.bf16.mxu0 %v12540_v43  ;;  %v12574_v7 = vld [vmem:[#allocation6 + $0x668] ss:$16 sps:$4 sm:$0xff]   ;;  %v12579_v43 = vld [vmem:[#allocation6 + $0x64c] ss:$16 sps:$4 sm:$0xff]  }
 0x313   :  { %4876 = vmatpush2.bf16.msra.mxu1 %v12535_v51  ;;  %v12625_v51 = vld [vmem:[#allocation9 + $0x20] ss:$8 sps:$4 sm:$0xff]  }
 0x314   :  { %4919 = vmatpush2.bf16.msra.mxu0 %v12538_v27  ;;  %4877 = vmatprep.subr.bf16.mxu1 %v12543_v6  ;;  %v12630_v27 = vld [vmem:[#allocation9 + $0x14] ss:$8 sps:$4 sm:$0xff]  }
 0x315   :  { %4920 = vmatprep.subr.bf16.mxu0 %v12546_v50  ;;  %v12577_v6 = vld [vmem:[#allocation6 + $0x648] ss:$16 sps:$4 sm:$0xff]   ;;  %v12582_v50 = vld [vmem:[#allocation6 + $0x62c] ss:$16 sps:$4 sm:$0xff]  }
 0x317   :  { %4878 = vmatpush2.bf16.msra.mxu1 %v12541_v10  ;;  %v12628_v10 = vld [vmem:[#allocation9 + $0x10] ss:$8 sps:$4 sm:$0xff]  }
 0x318   :  { %4921 = vmatpush2.bf16.msra.mxu0 %v12544_v56  ;;  %4879 = vmatprep.subr.bf16.mxu1 %v12549_v58  ;;  %v12633_v56 = vld [vmem:[#allocation9 + $0x4] ss:$8 sps:$4 sm:$0xff]  }
 0x319   :  { %v4682_v52 = vpop.f32.mrf.mxu0  ;;  %4922 = vmatprep.subr.bf16.mxu0 %v12552_v60  ;;  %v12580_v58 = vld [vmem:[#allocation6 + $0x628] ss:$16 sps:$4 sm:$0xff]   ;;  %v12585_v60 = vld [vmem:[#allocation6 + $0x60c] ss:$16 sps:$4 sm:$0xff]  }
 0x31a   :  { %v4683_v0 = vadd.f32 %v4682_v52, %v3351_v22  ;;  %v4723_v63 = vpop.f32.mrf.mxu1  ;;  %v12631_v22 = vld [vmem:[#allocation9] ss:$8 sps:$4 sm:$0xff]   ;;  %v12639_v52 = vld [vmem:[#allocation9 + $0xe4] ss:$8 sps:$4 sm:$0xff]  }
 0x31b   :  { %4880 = vmatpush2.bf16.msra.mxu1 %v12547_v40  ;;  %v4684_v2 = vpop.f32.mrf.mxu0  ;;  %v12636_v40 = vld [vmem:[#allocation9 + $0xf4] ss:$8 sps:$4 sm:$0xff]  }
 0x31c   :  { %v13977_v4 = vadd.f32 %v4723_v63, %v4683_v0  ;;  %v4685_v11 = vadd.f32 %v4684_v2, %v3355_v61  ;;  %v4725_v8 = vpop.f32.mrf.mxu1  ;;  %4923 = vmatpush2.bf16.msra.mxu0 %v12550_v1  ;;  %4881 = vmatprep.subr.bf16.mxu1 %v12555_v62  ;;  %v12583_v1 = vld [vmem:[#allocation6 + $0x608] ss:$16 sps:$4 sm:$0xff]   ;;  %v12588_v61 = vld [vmem:[#allocation6 + $0x7ec] ss:$16 sps:$4 sm:$0xff]  }
 0x31d   :  { %v4686_v15 = vpop.f32.mrf.mxu0  ;;  %4924 = vmatprep.subr.bf16.mxu0 %v12558_v39  ;;  %v12634_v62 = vld [vmem:[#allocation9 + $0xf0] ss:$8 sps:$4 sm:$0xff]   ;;  %v12586_v39 = vld [vmem:[#allocation6 + $0x7e8] ss:$16 sps:$4 sm:$0xff]   ;;  %v12637_v63 = vld [vmem:[#allocation9 + $0xe0] ss:$8 sps:$4 sm:$0xff]  }
 0x31e   :  { %v13979_v21 = vadd.f32 %v4725_v8, %v4685_v11  ;;  %v4727_v26 = vpop.f32.mrf.mxu1  ;;  %v12591_v0 = vld [vmem:[#allocation6 + $0x7cc] ss:$16 sps:$4 sm:$0xff]   ;;  %v12642_v2 = vld [vmem:[#allocation9 + $0xd4] ss:$8 sps:$4 sm:$0xff]  }
 0x31f   :  { %4882 = vmatpush2.bf16.msra.mxu1 %v12553_v59  ;;  %v4687_v46 = vpop.f32.mrf.mxu0  ;;  %v12589_v59 = vld [vmem:[#allocation6 + $0x7c8] ss:$16 sps:$4 sm:$0xff]   ;;  %v12594_v11 = vld [vmem:[#allocation6 + $0x7ac] ss:$16 sps:$4 sm:$0xff]  }
 0x320   :  { %v4728_v31 = vpop.f32.mrf.mxu1  ;;  %4925 = vmatpush2.bf16.msra.mxu0 %v12556_v9  ;;  %4883 = vmatprep.subr.bf16.mxu1 %v12561_v12  ;;  %v12640_v8 = vld [vmem:[#allocation9 + $0xd0] ss:$8 sps:$4 sm:$0xff]   ;;  %v12645_v9 = vld [vmem:[#allocation9 + $0xc4] ss:$8 sps:$4 sm:$0xff]   ;;  %v12648_v26 = vld [vmem:[#allocation9 + $0xb4] ss:$8 sps:$4 sm:$0xff]  }
 0x321   :  { %5380 = vmatprep.subr.bf16.mxu0 %v12612_v18  ;;  %v12592_v12 = vld [vmem:[#allocation6 + $0x7a8] ss:$16 sps:$4 sm:$0xff]   ;;  %v12597_v15 = vld [vmem:[#allocation6 + $0x78c] ss:$16 sps:$4 sm:$0xff]  }
 0x322   :  { %v12643_v18 = vld [vmem:[#allocation9 + $0xc0] ss:$8 sps:$4 sm:$0xff]   ;;  %v12595_v46 = vld [vmem:[#allocation6 + $0x788] ss:$16 sps:$4 sm:$0xff]   ;;  %v12646_v31 = vld [vmem:[#allocation9 + $0xb0] ss:$8 sps:$4 sm:$0xff]  }
 0x323   :  { %4884 = vmatpush2.bf16.msra.mxu1 %v12559_v29  ;;  %4927 = vmatmul.mubr.bf16.vlgmr.msra.gmra.mxu0 %v13947_v54  ;;  %v12568_v54 = vld [vmem:[#allocation6 + $0x6a8] ss:$16 sps:$4 sm:$0xff]   ;;  %v12600_v29 = vld [vmem:[#allocation6 + $0x76c] ss:$16 sps:$4 sm:$0xff]  }
 0x324   :  { %4935 = vmatprep.subr.bf16.mxu1 %v12564_v32  ;;  %5381 = vmatpush1.bf16.msra.mxu0 %v12610_v34  ;;  %v12651_v32 = vld [vmem:[#allocation9 + $0xa4] ss:$8 sps:$4 sm:$0xff]  }
 0x325   :  { %5382 = vmatprep.subr.bf16.mxu0 %v12615_v35  ;;  %v12598_v34 = vld [vmem:[#allocation6 + $0x768] ss:$16 sps:$4 sm:$0xff]   ;;  %v12603_v35 = vld [vmem:[#allocation6 + $0x74c] ss:$16 sps:$4 sm:$0xff]  }
 0x326   :  { %4886 = vmatmul.mubr.bf16.vlgmr.msra.gmra.mxu1 %v13915_v3  ;;  %v12571_v3 = vld [vmem:[#allocation6 + $0x688] ss:$16 sps:$4 sm:$0xff]  }
 0x327   :  { %4936 = vmatpush1.bf16.msra.mxu1 %v12562_v37  ;;  %4967 = vmatprep.mubr.bf16.mxu1 %v13962_v55  ;;  %v12622_v55 = vld [vmem:[#allocation9 + $0x30] ss:$8 sps:$4 sm:$0xff]   ;;  %v12649_v37 = vld [vmem:[#allocation9 + $0xa0] ss:$8 sps:$4 sm:$0xff]  }
 0x328   :  { %4937 = vmatprep.subr.bf16.mxu1 %v12567_v20  ;;  %5383 = vmatpush1.bf16.msra.mxu0 %v12613_v38  ;;  %v12654_v20 = vld [vmem:[#allocation9 + $0x94] ss:$8 sps:$4 sm:$0xff]  }
 0x329   :  { %5384 = vmatprep.subr.bf16.mxu0 %v12618_v16  ;;  %v12601_v38 = vld [vmem:[#allocation6 + $0x748] ss:$16 sps:$4 sm:$0xff]   ;;  %v12606_v16 = vld [vmem:[#allocation6 + $0x72c] ss:$16 sps:$4 sm:$0xff]  }
 0x32b   :  { %4938 = vmatpush1.bf16.msra.mxu1 %v12565_v41  ;;  %v12652_v41 = vld [vmem:[#allocation9 + $0x90] ss:$8 sps:$4 sm:$0xff]  }
 0x32c   :  { %4939 = vmatprep.subr.bf16.mxu1 %v12570_v5  ;;  %5385 = vmatpush1.bf16.msra.mxu0 %v12616_v42  ;;  %v12657_v5 = vld [vmem:[#allocation9 + $0x84] ss:$8 sps:$4 sm:$0xff]  }
 0x32d   :  { %5386 = vmatprep.subr.bf16.mxu0 %v12621_v45  ;;  %v12604_v42 = vld [vmem:[#allocation6 + $0x728] ss:$16 sps:$4 sm:$0xff]   ;;  %v12609_v45 = vld [vmem:[#allocation6 + $0x70c] ss:$16 sps:$4 sm:$0xff]  }
 0x32f   :  { %4940 = vmatpush1.bf16.msra.mxu1 %v12568_v54  ;;  %v12655_v54 = vld [vmem:[#allocation9 + $0x80] ss:$8 sps:$4 sm:$0xff]  }
 0x330   :  { %4941 = vmatprep.subr.bf16.mxu1 %v12573_v47  ;;  %5387 = vmatpush1.bf16.msra.mxu0 %v12619_v13  ;;  %v12607_v47 = vld [vmem:[#allocation6 + $0x708] ss:$16 sps:$4 sm:$0xff]  }
 0x331   :  { %5388 = vmatprep.subr.bf16.mxu0 %v12624_v33 }
 0x333   :  { %4942 = vmatpush1.bf16.msra.mxu1 %v12571_v3 }
 0x334   :  { %4943 = vmatprep.subr.bf16.mxu1 %v12576_v49  ;;  %5389 = vmatpush1.bf16.msra.mxu0 %v12622_v55 }
 0x335   :  { %5390 = vmatprep.subr.bf16.mxu0 %v12627_v36 }
 0x337   :  { %4944 = vmatpush1.bf16.msra.mxu1 %v12574_v7  ;;  %v12658_v7 = vld [vmem:[#allocation9 + $0x170] ss:$8 sps:$4 sm:$0xff]  }
 0x338   :  { %4945 = vmatprep.subr.bf16.mxu1 %v12579_v43  ;;  %5391 = vmatpush1.bf16.msra.mxu0 %v12625_v51  ;;  %v12660_v43 = vld [vmem:[#allocation9 + $0x174] ss:$8 sps:$4 sm:$0xff]   ;;  %v12663_v51 = vld [vmem:[#allocation9 + $0x164] ss:$8 sps:$4 sm:$0xff]  }
 0x339   :  { %5392 = vmatprep.subr.bf16.mxu0 %v12630_v27  ;;  %v12661_v27 = vld [vmem:[#allocation9 + $0x160] ss:$8 sps:$4 sm:$0xff]  }
 0x33b   :  { %4946 = vmatpush1.bf16.msra.mxu1 %v12577_v6  ;;  %v12666_v6 = vld [vmem:[#allocation9 + $0x154] ss:$8 sps:$4 sm:$0xff]  }
 0x33c   :  { %4947 = vmatprep.subr.bf16.mxu1 %v12582_v50  ;;  %5393 = vmatpush1.bf16.msra.mxu0 %v12628_v10  ;;  %v12664_v50 = vld [vmem:[#allocation9 + $0x150] ss:$8 sps:$4 sm:$0xff]   ;;  %v12667_v10 = vld [vmem:[#allocation9 + $0x140] ss:$8 sps:$4 sm:$0xff]  }
 0x33d   :  { %5394 = vmatprep.subr.bf16.mxu0 %v12633_v56  ;;  %v12675_v56 = vld [vmem:[#allocation9 + $0x124] ss:$8 sps:$4 sm:$0xff]  }
 0x33f   :  { %4948 = vmatpush1.bf16.msra.mxu1 %v12580_v58  ;;  %v12673_v58 = vld [vmem:[#allocation9 + $0x120] ss:$8 sps:$4 sm:$0xff]  }
 0x340   :  { %4949 = vmatprep.subr.bf16.mxu1 %v12585_v60  ;;  %5395 = vmatpush1.bf16.msra.mxu0 %v12631_v22  ;;  %v12678_v60 = vld [vmem:[#allocation9 + $0x114] ss:$8 sps:$4 sm:$0xff]   ;;  %v12676_v22 = vld [vmem:[#allocation9 + $0x110] ss:$8 sps:$4 sm:$0xff]  }
 0x341   :  { %5396 = vmatprep.subr.bf16.mxu0 %v12636_v40  ;;  %v12681_v40 = vld [vmem:[#allocation9 + $0x104] ss:$8 sps:$4 sm:$0xff]  }
 0x343   :  { %4950 = vmatpush1.bf16.msra.mxu1 %v12583_v1  ;;  %v12679_v1 = vld [vmem:[#allocation9 + $0x100] ss:$8 sps:$4 sm:$0xff]  }
 0x344   :  { %4951 = vmatprep.subr.bf16.mxu1 %v12588_v61  ;;  %5397 = vmatpush2.bf16.msra.mxu0 %v12634_v62  ;;  %v12684_v61 = vld [vmem:[#allocation9 + $0x1f4] ss:$8 sps:$4 sm:$0xff]   ;;  %v12682_v62 = vld [vmem:[#allocation9 + $0x1f0] ss:$8 sps:$4 sm:$0xff]  }
 0x345   :  { %5398 = vmatprep.subr.bf16.mxu0 %v12639_v52  ;;  %v12687_v52 = vld [vmem:[#allocation9 + $0x1e4] ss:$8 sps:$4 sm:$0xff]  }
 0x347   :  { %4952 = vmatpush2.bf16.msra.mxu1 %v12586_v39  ;;  %v12685_v39 = vld [vmem:[#allocation9 + $0x1e0] ss:$8 sps:$4 sm:$0xff]  }
 0x348   :  { %4953 = vmatprep.subr.bf16.mxu1 %v12591_v0  ;;  %5399 = vmatpush2.bf16.msra.mxu0 %v12637_v63  ;;  %v12690_v0 = vld [vmem:[#allocation9 + $0x1d4] ss:$8 sps:$4 sm:$0xff]   ;;  %v12688_v63 = vld [vmem:[#allocation9 + $0x1d0] ss:$8 sps:$4 sm:$0xff]  }
 0x349   :  { %5400 = vmatprep.subr.bf16.mxu0 %v12642_v2  ;;  %v12693_v2 = vld [vmem:[#allocation9 + $0x1c4] ss:$8 sps:$4 sm:$0xff]  }
 0x34b   :  { %4954 = vmatpush2.bf16.msra.mxu1 %v12589_v59  ;;  %v12691_v59 = vld [vmem:[#allocation9 + $0x1c0] ss:$8 sps:$4 sm:$0xff]  }
 0x34c   :  { %4955 = vmatprep.subr.bf16.mxu1 %v12594_v11  ;;  %5401 = vmatpush2.bf16.msra.mxu0 %v12640_v8  ;;  %v12696_v11 = vld [vmem:[#allocation9 + $0x1b4] ss:$8 sps:$4 sm:$0xff]   ;;  %v12694_v8 = vld [vmem:[#allocation9 + $0x1b0] ss:$8 sps:$4 sm:$0xff]  }
 0x34d   :  { %5402 = vmatprep.subr.bf16.mxu0 %v12645_v9  ;;  %v12699_v9 = vld [vmem:[#allocation9 + $0x1a4] ss:$8 sps:$4 sm:$0xff]  }
 0x34f   :  { %4956 = vmatpush2.bf16.msra.mxu1 %v12592_v12  ;;  %v12697_v12 = vld [vmem:[#allocation9 + $0x1a0] ss:$8 sps:$4 sm:$0xff]  }
 0x350   :  { %4957 = vmatprep.subr.bf16.mxu1 %v12597_v15  ;;  %5403 = vmatpush2.bf16.msra.mxu0 %v12643_v18 }
 0x351   :  { %5404 = vmatprep.subr.bf16.mxu0 %v12648_v26 }
 0x353   :  { %4958 = vmatpush2.bf16.msra.mxu1 %v12595_v46  ;;  %v12702_v46 = vld [vmem:[#allocation9 + $0x194] ss:$8 sps:$4 sm:$0xff]  }
 0x354   :  { %4959 = vmatprep.subr.bf16.mxu1 %v12600_v29  ;;  %5405 = vmatpush2.bf16.msra.mxu0 %v12646_v31 }
 0x355   :  { %5406 = vmatprep.subr.bf16.mxu0 %v12651_v32  ;;  %v12700_v32 = vld [vmem:[#allocation9 + $0x190] ss:$8 sps:$4 sm:$0xff]  }
 0x357   :  { %4960 = vmatpush2.bf16.msra.mxu1 %v12598_v34 }
 0x358   :  { %4961 = vmatprep.subr.bf16.mxu1 %v12603_v35  ;;  %5407 = vmatpush2.bf16.msra.mxu0 %v12649_v37 }
 0x359   :  { %5408 = vmatprep.subr.bf16.mxu0 %v12654_v20 }
 0x35b   :  { %4962 = vmatpush2.bf16.msra.mxu1 %v12601_v38 }
 0x35c   :  { %4963 = vmatprep.subr.bf16.mxu1 %v12606_v16  ;;  %5409 = vmatpush2.bf16.msra.mxu0 %v12652_v41  ;;  %v12705_v16 = vld [vmem:[#allocation9 + $0x184] ss:$8 sps:$4 sm:$0xff]  }
 0x35d   :  { %5410 = vmatprep.subr.bf16.mxu0 %v12657_v5  ;;  %v12703_v5 = vld [vmem:[#allocation9 + $0x180] ss:$8 sps:$4 sm:$0xff]  }
 0x35f   :  { %4964 = vmatpush2.bf16.msra.mxu1 %v12604_v42 }
 0x360   :  { %4965 = vmatprep.subr.bf16.mxu1 %v12609_v45  ;;  %5411 = vmatpush2.bf16.msra.mxu0 %v12655_v54 }
 0x363   :  { %4966 = vmatpush2.bf16.msra.mxu1 %v12607_v47  ;;  %v4764_v13 = vpop.f32.mrf.mxu0  ;;  %v3359_v47 = vrot.slane %v13971_v48, %v13905_v57 }
 0x364   :  { %v13985_v33 = vadd.f32 %v4764_v13, %v13977_v4  ;;  %5421 = vmatprep.subr.bf16.mxu1 %v12660_v43  ;;  %v12669_v4 = vld [vmem:[#allocation9 + $0x144] ss:$8 sps:$4 sm:$0xff]   ;;  %v3363_v13 = vrot.slane %v13971_v48, %v13885_v28 }
 0x365   :  { %v4766_v3 = vpop.f32.mrf.mxu0  ;;  %v12712_v48 = vld [vmem:[#allocation12 + $0xc0] ss:$16 sps:$4 sm:$0xff]  }
 0x366   :  { %4968 = vmatmul.mubr.bf16.vlgmr.msra.gmra.mxu1 %v13965_v14  ;;  %v13989_v49 = vadd.f32 %v4766_v3, %v13979_v21  ;;  %v12672_v14 = vld [vmem:[#allocation9 + $0x134] ss:$8 sps:$4 sm:$0xff]   ;;  %v12670_v21 = vld [vmem:[#allocation9 + $0x130] ss:$8 sps:$4 sm:$0xff]  }
 0x367   :  { %v4768_v55 = vpop.f32.mrf.mxu0  ;;  %5422 = vmatpush1.bf16.msra.mxu1 %v12658_v7 }
 0x368   :  { %5423 = vmatprep.subr.bf16.mxu1 %v12663_v51 }
 0x369   :  { %v4769_v36 = vpop.f32.mrf.mxu0 }
 0x36b   :  { %5424 = vmatpush1.bf16.msra.mxu1 %v12661_v27 }
 0x36c   :  { %5425 = vmatprep.subr.bf16.mxu1 %v12666_v6 }
 0x36f   :  { %5426 = vmatpush1.bf16.msra.mxu1 %v12664_v50 }
 0x370   :  { %5427 = vmatprep.subr.bf16.mxu1 %v12669_v4 }
 0x373   :  { %5428 = vmatpush1.bf16.msra.mxu1 %v12667_v10 }
 0x374   :  { %5429 = vmatprep.subr.bf16.mxu1 %v12672_v14 }
 0x377   :  { %5430 = vmatpush1.bf16.msra.mxu1 %v12670_v21  ;;  %v12706_v21 = vld [vmem:[#allocation12 + $0xe0] ss:$16 sps:$4 sm:$0xff]  }
 0x378   :  { %5431 = vmatprep.subr.bf16.mxu1 %v12675_v56  ;;  %v12708_v56 = vld [vmem:[#allocation12 + $0xe4] ss:$16 sps:$4 sm:$0xff]  }
 0x379   :  { %5872 = vmatprep.subr.bf16.mxu0 %v12708_v56  ;;  %v12757_v56 = vld [vmem:[#allocation12 + $0x1e8] ss:$16 sps:$4 sm:$0xff]  }
 0x37b   :  { %5432 = vmatpush1.bf16.msra.mxu1 %v12673_v58  ;;  %v12711_v58 = vld [vmem:[#allocation12 + $0xec] ss:$16 sps:$4 sm:$0xff]  }
 0x37c   :  { %5433 = vmatprep.subr.bf16.mxu1 %v12678_v60  ;;  %v12714_v60 = vld [vmem:[#allocation12 + $0xc4] ss:$16 sps:$4 sm:$0xff]  }
 0x37f   :  { %5434 = vmatpush1.bf16.msra.mxu1 %v12676_v22  ;;  %v12720_v22 = vld [vmem:[#allocation12 + $0xa4] ss:$16 sps:$4 sm:$0xff]  }
 0x380   :  { %5435 = vmatprep.subr.bf16.mxu1 %v12681_v40  ;;  %v12718_v40 = vld [vmem:[#allocation12 + $0xa0] ss:$16 sps:$4 sm:$0xff]  }
 0x383   :  { %5436 = vmatpush1.bf16.msra.mxu1 %v12679_v1  ;;  %v12726_v1 = vld [vmem:[#allocation12 + $0x84] ss:$16 sps:$4 sm:$0xff]  }
 0x384   :  { %5437 = vmatprep.subr.bf16.mxu1 %v12684_v61  ;;  %v12724_v61 = vld [vmem:[#allocation12 + $0x80] ss:$16 sps:$4 sm:$0xff]  }
 0x387   :  { %5438 = vmatpush2.bf16.msra.mxu1 %v12682_v62  ;;  %v12732_v62 = vld [vmem:[#allocation12 + $0x64] ss:$16 sps:$4 sm:$0xff]  }
 0x388   :  { %5439 = vmatprep.subr.bf16.mxu1 %v12687_v52  ;;  %v12730_v52 = vld [vmem:[#allocation12 + $0x60] ss:$16 sps:$4 sm:$0xff]  }
 0x38b   :  { %5440 = vmatpush2.bf16.msra.mxu1 %v12685_v39  ;;  %v12738_v39 = vld [vmem:[#allocation12 + $0x44] ss:$16 sps:$4 sm:$0xff]  }
 0x38c   :  { %5441 = vmatprep.subr.bf16.mxu1 %v12690_v0  ;;  %v12736_v0 = vld [vmem:[#allocation12 + $0x40] ss:$16 sps:$4 sm:$0xff]  }
 0x38f   :  { %5442 = vmatpush2.bf16.msra.mxu1 %v12688_v63  ;;  %v12744_v63 = vld [vmem:[#allocation12 + $0x24] ss:$16 sps:$4 sm:$0xff]  }
 0x390   :  { %5443 = vmatprep.subr.bf16.mxu1 %v12693_v2  ;;  %v12742_v2 = vld [vmem:[#allocation12 + $0x20] ss:$16 sps:$4 sm:$0xff]  }
 0x393   :  { %5444 = vmatpush2.bf16.msra.mxu1 %v12691_v59  ;;  %v12750_v59 = vld [vmem:[#allocation12 + $0x4] ss:$16 sps:$4 sm:$0xff]  }
 0x394   :  { %5445 = vmatprep.subr.bf16.mxu1 %v12696_v11  ;;  %v12748_v11 = vld [vmem:[#allocation12] ss:$16 sps:$4 sm:$0xff]  }
 0x397   :  { %5446 = vmatpush2.bf16.msra.mxu1 %v12694_v8  ;;  %v12756_v8 = vld [vmem:[#allocation12 + $0x1e4] ss:$16 sps:$4 sm:$0xff]  }
 0x398   :  { %5447 = vmatprep.subr.bf16.mxu1 %v12699_v9  ;;  %v12754_v9 = vld [vmem:[#allocation12 + $0x1e0] ss:$16 sps:$4 sm:$0xff]  }
 0x39b   :  { %5448 = vmatpush2.bf16.msra.mxu1 %v12697_v12  ;;  %v12762_v12 = vld [vmem:[#allocation12 + $0x1c4] ss:$16 sps:$4 sm:$0xff]  }
 0x39c   :  { %5449 = vmatprep.subr.bf16.mxu1 %v12702_v46  ;;  %v12774_v46 = vld [vmem:[#allocation12 + $0x184] ss:$16 sps:$4 sm:$0xff]  }
 0x39f   :  { %5450 = vmatpush2.bf16.msra.mxu1 %v12700_v32  ;;  %v12778_v32 = vld [vmem:[#allocation12 + $0x160] ss:$16 sps:$4 sm:$0xff]  }
 0x3a0   :  { %5451 = vmatprep.subr.bf16.mxu1 %v12705_v16  ;;  %v12784_v16 = vld [vmem:[#allocation12 + $0x140] ss:$16 sps:$4 sm:$0xff]  }
 0x3a3   :  { %v4846_v15 = vpop.f32.mrf.mxu0  ;;  %5452 = vmatpush2.bf16.msra.mxu1 %v12703_v5 }
 0x3a4   :  { %v4847_v3 = vadd.f32 %v4846_v15, %v3359_v47  ;;  %5913 = vmatprep.subr.bf16.mxu1 %v12711_v58  ;;  %v12760_v15 = vld [vmem:[#allocation12 + $0x1c0] ss:$16 sps:$4 sm:$0xff]   ;;  %v12709_v47 = vld [vmem:[#allocation12 + $0xe8] ss:$16 sps:$4 sm:$0xff]   ;;  %v12765_v58 = vld [vmem:[#allocation12 + $0x1cc] ss:$16 sps:$4 sm:$0xff]  }
 0x3a5   :  { %v4848_v18 = vpop.f32.mrf.mxu0 }
 0x3a6   :  { %v4805_v26 = vpop.f32.mrf.mxu1  ;;  %v4849_v36 = vadd.f32 %v4848_v18, %v3363_v13  ;;  %v12768_v18 = vld [vmem:[#allocation12 + $0x1a4] ss:$16 sps:$4 sm:$0xff]  }
 0x3a7   :  { %v4806_v29 = vadd.f32 %v4805_v26, %v13985_v33  ;;  %v4850_v31 = vpop.f32.mrf.mxu0  ;;  %v12766_v26 = vld [vmem:[#allocation12 + $0x1a0] ss:$16 sps:$4 sm:$0xff]  }
 0x3a8   :  { %v4807_v34 = vpop.f32.mrf.mxu1  ;;  %v12780_v31 = vld [vmem:[#allocation12 + $0x164] ss:$16 sps:$4 sm:$0xff]  }
 0x3a9   :  { %v4808_v35 = vadd.f32 %v4807_v34, %v13989_v49  ;;  %v4851_v37 = vpop.f32.mrf.mxu0  ;;  %v4976_v20 = vmax.f32 %v4806_v29, 0.0  ;;  %v12772_v29 = vld [vmem:[#allocation12 + $0x180] ss:$16 sps:$4 sm:$0xff]  }
 0x3aa   :  { %v4809_v38 = vpop.f32.mrf.mxu1 }
 0x3ab   :  { %v4977_v41 = vmax.f32 %v4808_v35, 0.0  ;;  %v4980_v54 = vpack.c.bf16 %v4976_v20, %v4976_v20  ;;  %v12786_v35 = vld [vmem:[#allocation12 + $0x144] ss:$16 sps:$4 sm:$0xff]  }
 0x3ac   :  { %v4810_v42 = vpop.f32.mrf.mxu1 }
 0x3ad   :  { %v4981_v45 = vpack.c.bf16 %v4977_v41, %v4977_v41 }
 0x3af   :  { %5412 = vmatprep.mubr.bf16.mxu0 %v4981_v45 }
 0x3b0   :  { %5413 = vmatmul.mubr.bf16.vlgmr.msra.gmra.mxu0 %v4980_v54 }
 0x3b1   :  { %5873 = vmatpush1.bf16.msra.mxu0 %v12706_v21  ;;  %v12759_v21 = vld [vmem:[#allocation12 + $0x1ec] ss:$16 sps:$4 sm:$0xff]  }
 0x3b2   :  { %5874 = vmatprep.subr.bf16.mxu0 %v12714_v60  ;;  %v12763_v60 = vld [vmem:[#allocation12 + $0x1c8] ss:$16 sps:$4 sm:$0xff]  }
 0x3b5   :  { %5875 = vmatpush1.bf16.msra.mxu0 %v12712_v48  ;;  %v12771_v48 = vld [vmem:[#allocation12 + $0x1ac] ss:$16 sps:$4 sm:$0xff]  }
 0x3b6   :  { %5876 = vmatprep.subr.bf16.mxu0 %v12720_v22  ;;  %v12769_v22 = vld [vmem:[#allocation12 + $0x1a8] ss:$16 sps:$4 sm:$0xff]  }
 0x3b9   :  { %5877 = vmatpush1.bf16.msra.mxu0 %v12718_v40  ;;  %v12777_v40 = vld [vmem:[#allocation12 + $0x18c] ss:$16 sps:$4 sm:$0xff]  }
 0x3ba   :  { %5878 = vmatprep.subr.bf16.mxu0 %v12726_v1  ;;  %v12775_v1 = vld [vmem:[#allocation12 + $0x188] ss:$16 sps:$4 sm:$0xff]  }
 0x3bd   :  { %5879 = vmatpush1.bf16.msra.mxu0 %v12724_v61  ;;  %v12783_v61 = vld [vmem:[#allocation12 + $0x16c] ss:$16 sps:$4 sm:$0xff]  }
 0x3be   :  { %5880 = vmatprep.subr.bf16.mxu0 %v12732_v62  ;;  %v12781_v62 = vld [vmem:[#allocation12 + $0x168] ss:$16 sps:$4 sm:$0xff]  }
 0x3c1   :  { %5881 = vmatpush1.bf16.msra.mxu0 %v12730_v52  ;;  %v12789_v52 = vld [vmem:[#allocation12 + $0x14c] ss:$16 sps:$4 sm:$0xff]  }
 0x3c2   :  { %5882 = vmatprep.subr.bf16.mxu0 %v12738_v39  ;;  %v12787_v39 = vld [vmem:[#allocation12 + $0x148] ss:$16 sps:$4 sm:$0xff]  }
 0x3c5   :  { %5883 = vmatpush1.bf16.msra.mxu0 %v12736_v0 }
 0x3c6   :  { %5884 = vmatprep.subr.bf16.mxu0 %v12744_v63  ;;  %v12792_v63 = vld [vmem:[#allocation12 + $0x124] ss:$16 sps:$4 sm:$0xff]  }
 0x3c9   :  { %5885 = vmatpush1.bf16.msra.mxu0 %v12742_v2  ;;  %v12795_v2 = vld [vmem:[#allocation12 + $0x12c] ss:$16 sps:$4 sm:$0xff]  }
 0x3ca   :  { %5886 = vmatprep.subr.bf16.mxu0 %v12750_v59  ;;  %v12790_v59 = vld [vmem:[#allocation12 + $0x120] ss:$16 sps:$4 sm:$0xff]  }
 0x3cd   :  { %5887 = vmatpush1.bf16.msra.mxu0 %v12748_v11  ;;  %v12793_v11 = vld [vmem:[#allocation12 + $0x128] ss:$16 sps:$4 sm:$0xff]  }
 0x3ce   :  { %5888 = vmatprep.subr.bf16.mxu0 %v12756_v8 }
 0x3d1   :  { %5889 = vmatpush2.bf16.msra.mxu0 %v12754_v9 }
 0x3d2   :  { %5890 = vmatprep.subr.bf16.mxu0 %v12762_v12  ;;  %v12798_v12 = vld [vmem:[#allocation12 + $0x104] ss:$16 sps:$4 sm:$0xff]  }
 0x3d5   :  { %5891 = vmatpush2.bf16.msra.mxu0 %v12760_v15  ;;  %v12801_v15 = vld [vmem:[#allocation12 + $0x10c] ss:$16 sps:$4 sm:$0xff]  }
 0x3d6   :  { %5892 = vmatprep.subr.bf16.mxu0 %v12768_v18  ;;  %v12796_v18 = vld [vmem:[#allocation12 + $0x100] ss:$16 sps:$4 sm:$0xff]  }
 0x3d9   :  { %5893 = vmatpush2.bf16.msra.mxu0 %v12766_v26  ;;  %v12799_v26 = vld [vmem:[#allocation12 + $0x108] ss:$16 sps:$4 sm:$0xff]  }
 0x3da   :  { %5894 = vmatprep.subr.bf16.mxu0 %v12774_v46 }
 0x3dd   :  { %5895 = vmatpush2.bf16.msra.mxu0 %v12772_v29  ;;  %v6018_v29 = vld [vmem:[#allocation15 + $0x1c0] sm:$0xff] }
 0x3de   :  { %5896 = vmatprep.subr.bf16.mxu0 %v12780_v31  ;;  %v6022_v31 = vld [vmem:[#allocation15 + $0x1e0] sm:$0xff] }
 0x3e1   :  { %5897 = vmatpush2.bf16.msra.mxu0 %v12778_v32  ;;  %v6146_v32 = vld [vmem:[#allocation15 + $0x5c0] sm:$0xff] }
 0x3e2   :  { %5898 = vmatprep.subr.bf16.mxu0 %v12786_v35  ;;  %v11620_v35 = vcombine.high %v6018_v29, %v6022_v31 }
 0x3e3   :  { %v4928_v33 = vpop.f32.mrf.mxu0 }
 0x3e5   :  { %v4930_v49 = vpop.f32.mrf.mxu0  ;;  %5899 = vmatpush2.bf16.msra.mxu0 %v12784_v16  ;;  %v5048_v16 = vld [vmem:[#allocation10] sm:$0x3] }
 0x3e6   :  { %v4887_v55 = vpop.f32.mrf.mxu1  ;;  %5900 = vmatprep.subr.bf16.mxu0 %v12792_v63 }
 0x3e7   :  { %v4888_v7 = vadd.f32 %v4887_v55, %v4847_v3  ;;  %v4932_v43 = vpop.f32.mrf.mxu0  ;;  %v12715_v3 = vld [vmem:[#allocation12 + $0xc8] ss:$16 sps:$4 sm:$0xff]  }
 0x3e8   :  { %v4889_v51 = vpop.f32.mrf.mxu1  ;;  %v12721_v55 = vld [vmem:[#allocation12 + $0xa8] ss:$16 sps:$4 sm:$0xff]   ;;  %v12735_v43 = vld [vmem:[#allocation12 + $0x6c] ss:$16 sps:$4 sm:$0xff]  }
 0x3e9   :  { %v4890_v27 = vadd.f32 %v4889_v51, %v4849_v36  ;;  %v4933_v6 = vpop.f32.mrf.mxu0  ;;  %v4929_v50 = vadd.f32 %v4928_v33, %v4888_v7  ;;  %v12717_v33 = vld [vmem:[#allocation12 + $0xcc] ss:$16 sps:$4 sm:$0xff]   ;;  %v12727_v7 = vld [vmem:[#allocation12 + $0x88] ss:$16 sps:$4 sm:$0xff]   ;;  %5901 = vmatpush2.bf16.msra.mxu0 %v12790_v59 }
 0x3ea   :  { %v4891_v4 = vpop.f32.mrf.mxu1  ;;  %v12729_v36 = vld [vmem:[#allocation12 + $0x8c] ss:$16 sps:$4 sm:$0xff]   ;;  %v12733_v51 = vld [vmem:[#allocation12 + $0x68] ss:$16 sps:$4 sm:$0xff]   ;;  %5902 = vmatprep.subr.bf16.mxu0 %v12798_v12 }
 0x3eb   :  { %v4931_v10 = vadd.f32 %v4930_v49, %v4890_v27  ;;  %v12723_v49 = vld [vmem:[#allocation12 + $0xac] ss:$16 sps:$4 sm:$0xff]   ;;  %v12739_v6 = vld [vmem:[#allocation12 + $0x48] ss:$16 sps:$4 sm:$0xff]  }
 0x3ec   :  { %v4892_v14 = vpop.f32.mrf.mxu1  ;;  %v12741_v27 = vld [vmem:[#allocation12 + $0x4c] ss:$16 sps:$4 sm:$0xff]   ;;  %v12745_v4 = vld [vmem:[#allocation12 + $0x28] ss:$16 sps:$4 sm:$0xff]  }
 0x3ed   :  { %v12751_v14 = vld [vmem:[#allocation12 + $0x8] ss:$16 sps:$4 sm:$0xff]   ;;  %5903 = vmatpush2.bf16.msra.mxu0 %v12796_v18 }
 0x3ee   :  { %7540 = vmatprep.subr.bf16.mxu0 %v11620_v35  ;;  %v5986_v59 = vld [vmem:[#allocation15 + $0xc0] sm:$0xff] }
 0x426   :  { %v4969_v34 = vpop.f32.mrf.mxu1 }
 0x427   :  { %v4970_v37 = vadd.f32 %v4969_v34, %v4929_v50  ;;  %v12747_v50 = vld [vmem:[#allocation12 + $0x2c] ss:$16 sps:$4 sm:$0xff]   ;;  %v11619_v34 = vcombine.low %v6018_v29, %v6022_v31  ;;  %v5982_v29 = vld [vmem:[#allocation15 + $0xa0] sm:$0xff] }
 0x428   :  { %v4971_v20 = vpop.f32.mrf.mxu1  ;;  %v6106_v31 = vld [vmem:[#allocation15 + $0x480] sm:$0xff] }
 0x429   :  { %v4972_v38 = vadd.f32 %v4971_v20, %v4931_v10  ;;  %v4978_v41 = vmax.f32 %v4970_v37, 0.0  ;;  %v12753_v10 = vld [vmem:[#allocation12 + $0xc] ss:$16 sps:$4 sm:$0xff]   ;;  %v6150_v37 = vld [vmem:[#allocation15 + $0x5e0] sm:$0xff] }
 0x42a   :  { %v4973_v5 = vpop.f32.mrf.mxu1  ;;  %v11747_v20 = vcombine.low %v6146_v32, %v6150_v37 }
 0x42b   :  { %v4979_v42 = vmax.f32 %v4972_v38, 0.0  ;;  %v4982_v13 = vpack.c.bf16 %v4978_v41, %v4978_v41  ;;  %v11748_v38 = vcombine.high %v6146_v32, %v6150_v37  ;;  %v5053_v41 = vrot.slane %v5048_v16, %v13854_v17  ;;  %v6110_v32 = vld [vmem:[#allocation15 + $0x4a0] sm:$0xff] }
 0x42c   :  { %v4974_v45 = vpop.f32.mrf.mxu1  ;;  %v5057_v5 = vrot.slane %v5048_v16, %v13857_v25  ;;  %v5974_v16 = vld [vmem:[#allocation15 + $0x60] sm:$0xff] }
 0x42d   :  { %v4983_v54 = vpack.c.bf16 %v4979_v42, %v4979_v42 }
 0x42f   :  { %5453 = vmatprep.mubr.bf16.mxu1 %v4983_v54 }
 0x430   :  { %5454 = vmatmul.mubr.bf16.vlgmr.msra.gmra.mxu1 %v4982_v13 }
 0x431   :  { %5914 = vmatpush1.bf16.msra.mxu1 %v12709_v47 }
 0x432   :  { %5915 = vmatprep.subr.bf16.mxu1 %v12717_v33 }
 0x435   :  { %5916 = vmatpush1.bf16.msra.mxu1 %v12715_v3 }
 0x436   :  { %5917 = vmatprep.subr.bf16.mxu1 %v12723_v49 }
 0x439   :  { %5918 = vmatpush1.bf16.msra.mxu1 %v12721_v55  ;;  %v6010_v55 = vld [vmem:[#allocation15 + $0x180] sm:$0xff] }
 0x43a   :  { %5919 = vmatprep.subr.bf16.mxu1 %v12729_v36 }
 0x43d   :  { %5920 = vmatpush1.bf16.msra.mxu1 %v12727_v7  ;;  %v6014_v7 = vld [vmem:[#allocation15 + $0x1a0] sm:$0xff] }
 0x43e   :  { %5921 = vmatprep.subr.bf16.mxu1 %v12735_v43  ;;  %v6138_v43 = vld [vmem:[#allocation15 + $0x580] sm:$0xff] }
 0x441   :  { %5922 = vmatpush1.bf16.msra.mxu1 %v12733_v51  ;;  %v6142_v51 = vld [vmem:[#allocation15 + $0x5a0] sm:$0xff] }
 0x442   :  { %5923 = vmatprep.subr.bf16.mxu1 %v12741_v27 }
 0x445   :  { %5924 = vmatpush1.bf16.msra.mxu1 %v12739_v6 }
 0x446   :  { %5925 = vmatprep.subr.bf16.mxu1 %v12747_v50 }
 0x449   :  { %5926 = vmatpush1.bf16.msra.mxu1 %v12745_v4  ;;  %v11612_v4 = vcombine.high %v6010_v55, %v6014_v7 }
 0x44a   :  { %5927 = vmatprep.subr.bf16.mxu1 %v12753_v10  ;;  %v11740_v10 = vcombine.high %v6138_v43, %v6142_v51 }
 0x44d   :  { %5928 = vmatpush1.bf16.msra.mxu1 %v12751_v14  ;;  %v6002_v14 = vld [vmem:[#allocation15 + $0x140] sm:$0xff] }
 0x44e   :  { %5929 = vmatprep.subr.bf16.mxu1 %v12759_v21  ;;  %v6006_v21 = vld [vmem:[#allocation15 + $0x160] sm:$0xff] }
 0x451   :  { %5930 = vmatpush2.bf16.msra.mxu1 %v12757_v56  ;;  %v6130_v56 = vld [vmem:[#allocation15 + $0x540] sm:$0xff] }
 0x452   :  { %5931 = vmatprep.subr.bf16.mxu1 %v12765_v58  ;;  %v6134_v58 = vld [vmem:[#allocation15 + $0x560] sm:$0xff] }
 0x455   :  { %5932 = vmatpush2.bf16.msra.mxu1 %v12763_v60  ;;  %v11611_v60 = vcombine.low %v6010_v55, %v6014_v7 }
 0x456   :  { %5933 = vmatprep.subr.bf16.mxu1 %v12771_v48  ;;  %v11739_v48 = vcombine.low %v6138_v43, %v6142_v51  ;;  %v6082_v51 = vld [vmem:[#allocation15 + $0x3c0] sm:$0xff] }
 0x459   :  { %5934 = vmatpush2.bf16.msra.mxu1 %v12769_v22  ;;  %v11604_v22 = vcombine.high %v6002_v14, %v6006_v21 }
 0x45a   :  { %5935 = vmatprep.subr.bf16.mxu1 %v12777_v40  ;;  %v11732_v40 = vcombine.high %v6130_v56, %v6134_v58 }
 0x45d   :  { %5936 = vmatpush2.bf16.msra.mxu1 %v12775_v1  ;;  %v5994_v1 = vld [vmem:[#allocation15 + $0x100] sm:$0xff] }
 0x45e   :  { %5937 = vmatprep.subr.bf16.mxu1 %v12783_v61  ;;  %v5998_v61 = vld [vmem:[#allocation15 + $0x120] sm:$0xff] }
 0x45f   :  { %v11596_v63 = vcombine.high %v5994_v1, %v5998_v61  ;;  %v11595_v12 = vcombine.low %v5994_v1, %v5998_v61 }
 0x461   :  { %5938 = vmatpush2.bf16.msra.mxu1 %v12781_v62  ;;  %v6122_v62 = vld [vmem:[#allocation15 + $0x500] sm:$0xff] }
 0x462   :  { %5939 = vmatprep.subr.bf16.mxu1 %v12789_v52  ;;  %v6126_v52 = vld [vmem:[#allocation15 + $0x520] sm:$0xff] }
 0x465   :  { %5940 = vmatpush2.bf16.msra.mxu1 %v12787_v39  ;;  %v11603_v39 = vcombine.low %v6002_v14, %v6006_v21 }
 0x466   :  { %5941 = vmatprep.subr.bf16.mxu1 %v12795_v2  ;;  %v11724_v2 = vcombine.high %v6122_v62, %v6126_v52 }
 0x469   :  { %5942 = vmatpush2.bf16.msra.mxu1 %v12793_v11  ;;  %v5990_v11 = vld [vmem:[#allocation15 + $0xe0] sm:$0xff] }
 0x46a   :  { %5943 = vmatprep.subr.bf16.mxu1 %v12801_v15  ;;  %v11723_v15 = vcombine.low %v6122_v62, %v6126_v52  ;;  %v11588_v18 = vcombine.high %v5986_v59, %v5990_v11  ;;  %v6066_v62 = vld [vmem:[#allocation15 + $0x340] sm:$0xff] }
 0x46b   :  { %v6070_v52 = vld [vmem:[#allocation15 + $0x360] sm:$0xff] }
 0x46d   :  { %5944 = vmatpush2.bf16.msra.mxu1 %v12799_v26 }
 0x46e   :  { %7581 = vmatprep.subr.bf16.mxu1 %v11748_v38  ;;  %v5970_v38 = vld [vmem:[#allocation15 + $0x40] sm:$0xff] }
 0x46f   :  { %v11571_v55 = vcombine.low %v5970_v38, %v5974_v16 }
 0x470   :  { %v5414_v0 = vpop.f32.mrf.mxu0 }
 0x471   :  { %v5415_v42 = vadd.f32 %v5414_v0, %v5053_v41  ;;  %v11731_v0 = vcombine.low %v6130_v56, %v6134_v58  ;;  %v6098_v41 = vld [vmem:[#allocation15 + $0x440] sm:$0xff] }
 0x472   :  { %v5416_v8 = vpop.f32.mrf.mxu0  ;;  %v6074_v56 = vld [vmem:[#allocation15 + $0x380] sm:$0xff] }
 0x473   :  { %v5417_v54 = vadd.f32 %v5416_v8, %v5057_v5  ;;  %v6114_v8 = vld [vmem:[#allocation15 + $0x4c0] sm:$0xff] }
 0x474   :  { %v5418_v9 = vpop.f32.mrf.mxu0  ;;  %v6102_v5 = vld [vmem:[#allocation15 + $0x460] sm:$0xff] }
 0x475   :  { %v6118_v9 = vld [vmem:[#allocation15 + $0x4e0] sm:$0xff] }
 0x476   :  { %v5419_v46 = vpop.f32.mrf.mxu0  ;;  %v11716_v26 = vcombine.high %v6114_v8, %v6118_v9  ;;  %v11715_v35 = vcombine.low %v6114_v8, %v6118_v9  ;;  %v6078_v58 = vld [vmem:[#allocation15 + $0x3a0] sm:$0xff] }
 0x477   :  { %v5978_v46 = vld [vmem:[#allocation15 + $0x80] sm:$0xff]  ;;  %v11676_v1 = vcombine.high %v6074_v56, %v6078_v58 }
 0x478   :  { %v11580_v37 = vcombine.high %v5978_v46, %v5982_v29  ;;  %v6058_v8 = vld [vmem:[#allocation15 + $0x300] sm:$0xff] }
 0x479   :  { %v6062_v9 = vld [vmem:[#allocation15 + $0x320] sm:$0xff] }
 0x4f0   :  { %v5455_v45 = vpop.f32.mrf.mxu1 }
 0x4f1   :  { %v5456_v47 = vadd.f32 %v5455_v45, %v5415_v42  ;;  %v11579_v42 = vcombine.low %v5978_v46, %v5982_v29  ;;  %v11707_v45 = vcombine.low %v6106_v31, %v6110_v32  ;;  %v11660_v46 = vcombine.high %v6058_v8, %v6062_v9 }
 0x4f2   :  { %v5457_v13 = vpop.f32.mrf.mxu1 }
 0x4f3   :  { %v5458_v33 = vadd.f32 %v5457_v13, %v5417_v54  ;;  %v5462_v3 = vmax.f32 %v5456_v47, 0.0  ;;  %v11572_v54 = vcombine.high %v5970_v38, %v5974_v16  ;;  %v11700_v47 = vcombine.high %v6098_v41, %v6102_v5  ;;  %v5962_v13 = vld [vmem:[#allocation15] sm:$0xff] }
 0x4f4   :  { %v5459_v49 = vpop.f32.mrf.mxu1 }
 0x4f5   :  { %v5463_v36 = vmax.f32 %v5458_v33, 0.0  ;;  %v5464_v50 = vpack.c.bf16 %v5462_v3, %v5462_v3  ;;  %v5966_v33 = vld [vmem:[#allocation15 + $0x20] sm:$0xff] }
 0x4f6   :  { %v5460_v27 = vpop.f32.mrf.mxu1  ;;  %v6090_v3 = vld [vmem:[#allocation15 + $0x400] sm:$0xff]  ;;  %v11564_v7 = vcombine.high %v5962_v13, %v5966_v33 }
 0x4f7   :  { %v5465_v6 = vpack.c.bf16 %v5463_v36, %v5463_v36  ;;  %v6094_v49 = vld [vmem:[#allocation15 + $0x420] sm:$0xff]  ;;  %v11699_v36 = vcombine.low %v6098_v41, %v6102_v5 }
 0x4f8   :  { %v11692_v43 = vcombine.high %v6090_v3, %v6094_v49  ;;  %v6086_v27 = vld [vmem:[#allocation15 + $0x3e0] sm:$0xff] }
 0x4f9   :  { %5904 = vmatprep.mubr.bf16.mxu0 %v5465_v6  ;;  %5945 = vmatprep.mubr.bf16.mxu1 %v5465_v6  ;;  %v6210_v6 = vld [vmem:[#allocation15 + $0x7c0] sm:$0xff]  ;;  %v11684_v14 = vcombine.high %v6082_v51, %v6086_v27 }
 0x4fa   :  { %5905 = vmatmul.mubr.bf16.vlgmr.msra.gmra.mxu0 %v5464_v50  ;;  %5946 = vmatmul.mubr.bf16.vlgmr.msra.gmra.mxu1 %v5464_v50  ;;  %v6214_v50 = vld [vmem:[#allocation15 + $0x7e0] sm:$0xff] }
 0x4fb   :  { %7541 = vmatpush1.bf16.msra.mxu0 %v11619_v34  ;;  %7582 = vmatpush1.bf16.msra.mxu1 %v11747_v20  ;;  %v11587_v34 = vcombine.low %v5986_v59, %v5990_v11  ;;  %v11708_v20 = vcombine.high %v6106_v31, %v6110_v32  ;;  %v11812_v21 = vcombine.high %v6210_v6, %v6214_v50  ;;  %v6050_v31 = vld [vmem:[#allocation15 + $0x2c0] sm:$0xff] }
 0x4fc   :  { %7542 = vmatprep.subr.bf16.mxu0 %v11612_v4  ;;  %7583 = vmatprep.subr.bf16.mxu1 %v11740_v10  ;;  %v11563_v4 = vcombine.low %v5962_v13, %v5966_v33  ;;  %v11691_v10 = vcombine.low %v6090_v3, %v6094_v49  ;;  %v11668_v59 = vcombine.high %v6066_v62, %v6070_v52  ;;  %v6054_v32 = vld [vmem:[#allocation15 + $0x2e0] sm:$0xff] }
 0x4fd   :  { %v11652_v38 = vcombine.high %v6050_v31, %v6054_v32  ;;  %v6042_v41 = vld [vmem:[#allocation15 + $0x280] sm:$0xff] }
 0x4fe   :  { %v6046_v5 = vld [vmem:[#allocation15 + $0x2a0] sm:$0xff] }
 0x4ff   :  { %7543 = vmatpush1.bf16.msra.mxu0 %v11611_v60  ;;  %7584 = vmatpush1.bf16.msra.mxu1 %v11739_v48  ;;  %v6202_v60 = vld [vmem:[#allocation15 + $0x780] sm:$0xff]  ;;  %v11644_v13 = vcombine.high %v6042_v41, %v6046_v5  ;;  %v11643_v3 = vcombine.low %v6042_v41, %v6046_v5 }
 0x500   :  { %7544 = vmatprep.subr.bf16.mxu0 %v11604_v22  ;;  %7585 = vmatprep.subr.bf16.mxu1 %v11732_v40  ;;  %v6206_v48 = vld [vmem:[#allocation15 + $0x7a0] sm:$0xff]  ;;  %v11683_v22 = vcombine.low %v6082_v51, %v6086_v27  ;;  %v11811_v40 = vcombine.low %v6210_v6, %v6214_v50 }
 0x501   :  { %v11804_v61 = vcombine.high %v6202_v60, %v6206_v48  ;;  %v6166_v51 = vld [vmem:[#allocation15 + $0x660] sm:$0xff] }
 0x503   :  { %7545 = vmatpush1.bf16.msra.mxu0 %v11603_v39  ;;  %7586 = vmatpush1.bf16.msra.mxu1 %v11731_v0  ;;  %v6194_v39 = vld [vmem:[#allocation15 + $0x740] sm:$0xff] }
 0x504   :  { %7546 = vmatprep.subr.bf16.mxu0 %v11596_v63  ;;  %7587 = vmatprep.subr.bf16.mxu1 %v11724_v2  ;;  %v6198_v0 = vld [vmem:[#allocation15 + $0x760] sm:$0xff]  ;;  %v11675_v63 = vcombine.low %v6074_v56, %v6078_v58  ;;  %v11803_v2 = vcombine.low %v6202_v60, %v6206_v48 }
 0x505   :  { %v11796_v11 = vcombine.high %v6194_v39, %v6198_v0  ;;  %v6158_v56 = vld [vmem:[#allocation15 + $0x620] sm:$0xff] }
 0x507   :  { %7547 = vmatpush1.bf16.msra.mxu0 %v11595_v12  ;;  %7588 = vmatpush1.bf16.msra.mxu1 %v11723_v15  ;;  %v6186_v12 = vld [vmem:[#allocation15 + $0x700] sm:$0xff] }
 0x508   :  { %7548 = vmatprep.subr.bf16.mxu0 %v11588_v18  ;;  %7589 = vmatprep.subr.bf16.mxu1 %v11716_v26  ;;  %v6190_v15 = vld [vmem:[#allocation15 + $0x720] sm:$0xff]  ;;  %v11667_v18 = vcombine.low %v6066_v62, %v6070_v52  ;;  %v11795_v26 = vcombine.low %v6194_v39, %v6198_v0  ;;  %v6151_v62 = vld [vmem:[#allocation15 + $0x5e8] sm:$0xff] }
 0x509   :  { %v11788_v29 = vcombine.high %v6186_v12, %v6190_v15 }
 0x50b   :  { %7549 = vmatpush1.bf16.msra.mxu0 %v11587_v34  ;;  %7590 = vmatpush1.bf16.msra.mxu1 %v11715_v35  ;;  %v6178_v34 = vld [vmem:[#allocation15 + $0x6c0] sm:$0xff] }
 0x50c   :  { %7550 = vmatprep.subr.bf16.mxu0 %v11580_v37  ;;  %7591 = vmatprep.subr.bf16.mxu1 %v11708_v20  ;;  %v6182_v35 = vld [vmem:[#allocation15 + $0x6e0] sm:$0xff]  ;;  %v11659_v37 = vcombine.low %v6058_v8, %v6062_v9  ;;  %v11787_v20 = vcombine.low %v6186_v12, %v6190_v15 }
 0x50d   :  { %v11780_v16 = vcombine.high %v6178_v34, %v6182_v35 }
 0x50f   :  { %7551 = vmatpush1.bf16.msra.mxu0 %v11579_v42  ;;  %7592 = vmatpush1.bf16.msra.mxu1 %v11707_v45  ;;  %v6170_v42 = vld [vmem:[#allocation15 + $0x680] sm:$0xff] }
 0x510   :  { %7552 = vmatprep.subr.bf16.mxu0 %v11572_v54  ;;  %7593 = vmatprep.subr.bf16.mxu1 %v11700_v47  ;;  %v6174_v45 = vld [vmem:[#allocation15 + $0x6a0] sm:$0xff]  ;;  %v11651_v54 = vcombine.low %v6050_v31, %v6054_v32  ;;  %v11779_v47 = vcombine.low %v6178_v34, %v6182_v35 }
 0x511   :  { %v11772_v33 = vcombine.high %v6170_v42, %v6174_v45  ;;  %v11771_v49 = vcombine.low %v6170_v42, %v6174_v45  ;;  %v6015_v42 = vld [vmem:[#allocation15 + $0x1a8] sm:$0xff] }
 0x512   :  { %v6139_v45 = vld [vmem:[#allocation15 + $0x588] sm:$0xff] }
 0x513   :  { %7553 = vmatpush1.bf16.msra.mxu0 %v11571_v55  ;;  %7594 = vmatpush1.bf16.msra.mxu1 %v11699_v36  ;;  %v6034_v55 = vld [vmem:[#allocation15 + $0x240] sm:$0xff] }
 0x514   :  { %7554 = vmatprep.subr.bf16.mxu0 %v11564_v7  ;;  %7595 = vmatprep.subr.bf16.mxu1 %v11692_v43  ;;  %v6038_v36 = vld [vmem:[#allocation15 + $0x260] sm:$0xff] }
 0x515   :  { %v6162_v7 = vld [vmem:[#allocation15 + $0x640] sm:$0xff]  ;;  %v11636_v43 = vcombine.high %v6034_v55, %v6038_v36  ;;  %v11635_v27 = vcombine.low %v6034_v55, %v6038_v36 }
 0x516   :  { %v11763_v6 = vcombine.low %v6162_v7, %v6166_v51  ;;  %v11764_v50 = vcombine.high %v6162_v7, %v6166_v51  ;;  %v6007_v7 = vld [vmem:[#allocation15 + $0x168] sm:$0xff] }
 0x517   :  { %7555 = vmatpush1.bf16.msra.mxu0 %v11563_v4  ;;  %7596 = vmatpush1.bf16.msra.mxu1 %v11691_v10  ;;  %v6026_v4 = vld [vmem:[#allocation15 + $0x200] sm:$0xff]  ;;  %v6135_v51 = vld [vmem:[#allocation15 + $0x568] sm:$0xff] }
 0x518   :  { %7556 = vmatprep.subr.bf16.mxu0 %v11684_v14  ;;  %7597 = vmatprep.subr.bf16.mxu1 %v11812_v21  ;;  %v6030_v10 = vld [vmem:[#allocation15 + $0x220] sm:$0xff] }
 0x519   :  { %v6154_v14 = vld [vmem:[#allocation15 + $0x600] sm:$0xff]  ;;  %v11628_v21 = vcombine.high %v6026_v4, %v6030_v10  ;;  %v11627_v58 = vcombine.low %v6026_v4, %v6030_v10  ;;  %v5995_v10 = vld [vmem:[#allocation15 + $0x108] sm:$0xff] }
 0x51a   :  { %v11755_v60 = vcombine.low %v6154_v14, %v6158_v56  ;;  %v11756_v48 = vcombine.high %v6154_v14, %v6158_v56  ;;  %v5999_v14 = vld [vmem:[#allocation15 + $0x128] sm:$0xff] }
 0x51b   :  { %7557 = vmatpush2.bf16.msra.mxu0 %v11683_v22  ;;  %7598 = vmatpush2.bf16.msra.mxu1 %v11811_v40  ;;  %v6019_v22 = vld [vmem:[#allocation15 + $0x1c8] sm:$0xff] }
 0x51c   :  { %7558 = vmatprep.subr.bf16.mxu0 %v11676_v1  ;;  %7599 = vmatprep.subr.bf16.mxu1 %v11804_v61  ;;  %v6023_v40 = vld [vmem:[#allocation15 + $0x1e8] sm:$0xff] }
 0x51d   :  { %v6147_v1 = vld [vmem:[#allocation15 + $0x5c8] sm:$0xff]  ;;  %v11622_v61 = vcombine.high %v6019_v22, %v6023_v40  ;;  %v11621_v52 = vcombine.low %v6019_v22, %v6023_v40 }
 0x51e   :  { %v11749_v39 = vcombine.low %v6147_v1, %v6151_v62  ;;  %v11750_v0 = vcombine.high %v6147_v1, %v6151_v62  ;;  %v6127_v56 = vld [vmem:[#allocation15 + $0x528] sm:$0xff] }
 0x51f   :  { %7559 = vmatpush2.bf16.msra.mxu0 %v11675_v63  ;;  %7600 = vmatpush2.bf16.msra.mxu1 %v11803_v2  ;;  %v5530_v63 = vld [vmem:[#allocation13] sm:$0xf]  ;;  %v5987_v40 = vld [vmem:[#allocation15 + $0xc8] sm:$0xff] }
 0x520   :  { %7560 = vmatprep.subr.bf16.mxu0 %v11668_v59  ;;  %7601 = vmatprep.subr.bf16.mxu1 %v11796_v11  ;;  %v5535_v2 = vrot.slane %v5530_v63, %v13854_v17  ;;  %v5543_v59 = vrot.slane %v5530_v63, %v13905_v57  ;;  %v5539_v11 = vrot.slane %v5530_v63, %v13857_v25  ;;  %v5991_v1 = vld [vmem:[#allocation15 + $0xe8] sm:$0xff] }
 0x521   :  { %v5547_v8 = vrot.slane %v5530_v63, %v13885_v28  ;;  %v6119_v62 = vld [vmem:[#allocation15 + $0x4e8] sm:$0xff] }
 0x523   :  { %7561 = vmatpush2.bf16.msra.mxu0 %v11667_v18  ;;  %7602 = vmatpush2.bf16.msra.mxu1 %v11795_v26 }
 0x524   :  { %7562 = vmatprep.subr.bf16.mxu0 %v11660_v46  ;;  %7603 = vmatprep.subr.bf16.mxu1 %v11788_v29 }
 0x527   :  { %7563 = vmatpush2.bf16.msra.mxu0 %v11659_v37  ;;  %7604 = vmatpush2.bf16.msra.mxu1 %v11787_v20 }
 0x528   :  { %7564 = vmatprep.subr.bf16.mxu0 %v11652_v38  ;;  %7605 = vmatprep.subr.bf16.mxu1 %v11780_v16  ;;  %v6011_v16 = vld [vmem:[#allocation15 + $0x188] sm:$0xff] }
 0x529   :  { %v11614_v55 = vcombine.high %v6011_v16, %v6015_v42 }
 0x52b   :  { %7565 = vmatpush2.bf16.msra.mxu0 %v11651_v54  ;;  %7606 = vmatpush2.bf16.msra.mxu1 %v11779_v47  ;;  %v6143_v54 = vld [vmem:[#allocation15 + $0x5a8] sm:$0xff] }
 0x52c   :  { %7566 = vmatprep.subr.bf16.mxu0 %v11644_v13  ;;  %7607 = vmatprep.subr.bf16.mxu1 %v11772_v33  ;;  %v11742_v36 = vcombine.high %v6139_v45, %v6143_v54 }
 0x52f   :  { %7567 = vmatpush2.bf16.msra.mxu0 %v11643_v3  ;;  %7608 = vmatpush2.bf16.msra.mxu1 %v11771_v49  ;;  %v6003_v49 = vld [vmem:[#allocation15 + $0x148] sm:$0xff] }
 0x530   :  { %7568 = vmatprep.subr.bf16.mxu0 %v11636_v43  ;;  %7609 = vmatprep.subr.bf16.mxu1 %v11764_v50  ;;  %v6131_v43 = vld [vmem:[#allocation15 + $0x548] sm:$0xff]  ;;  %v11606_v50 = vcombine.high %v6003_v49, %v6007_v7 }
 0x531   :  { %v11734_v4 = vcombine.high %v6131_v43, %v6135_v51 }
 0x533   :  { %7569 = vmatpush2.bf16.msra.mxu0 %v11635_v27  ;;  %7610 = vmatpush2.bf16.msra.mxu1 %v11763_v6  ;;  %v11613_v27 = vcombine.low %v6011_v16, %v6015_v42  ;;  %v11741_v6 = vcombine.low %v6139_v45, %v6143_v54  ;;  %v6091_v16 = vld [vmem:[#allocation15 + $0x408] sm:$0xff] }
 0x534   :  { %7570 = vmatprep.subr.bf16.mxu0 %v11628_v21  ;;  %7611 = vmatprep.subr.bf16.mxu1 %v11756_v48  ;;  %v6123_v21 = vld [vmem:[#allocation15 + $0x508] sm:$0xff]  ;;  %v11598_v48 = vcombine.high %v5995_v10, %v5999_v14 }
 0x535   :  { %v11726_v22 = vcombine.high %v6123_v21, %v6127_v56 }
 0x537   :  { %7571 = vmatpush2.bf16.msra.mxu0 %v11627_v58  ;;  %7612 = vmatpush2.bf16.msra.mxu1 %v11755_v60  ;;  %v11605_v58 = vcombine.low %v6003_v49, %v6007_v7  ;;  %v11733_v60 = vcombine.low %v6131_v43, %v6135_v51  ;;  %v6083_v49 = vld [vmem:[#allocation15 + $0x3c8] sm:$0xff] }
 0x538   :  { %7622 = vmatprep.subr.bf16.mxu0 %v11622_v61  ;;  %7663 = vmatprep.subr.bf16.mxu1 %v11750_v0  ;;  %v6115_v61 = vld [vmem:[#allocation15 + $0x4c8] sm:$0xff]  ;;  %v11590_v0 = vcombine.high %v5987_v40, %v5991_v1 }
 0x539   :  { %v11718_v63 = vcombine.high %v6115_v61, %v6119_v62  ;;  %v6215_v7 = vld [vmem:[#allocation15 + $0x7e8] sm:$0xff] }
 0x5ba   :  { %v5906_v9 = vpop.f32.mrf.mxu0  ;;  %v5947_v12 = vpop.f32.mrf.mxu1 }
 0x5bb   :  { %v5907_v15 = vadd.f32 %v5906_v9, %v5535_v2  ;;  %v5948_v18 = vadd.f32 %v5947_v12, %v5543_v59  ;;  %v5979_v2 = vld [vmem:[#allocation15 + $0x88] sm:$0xff]  ;;  %v11589_v9 = vcombine.low %v5987_v40, %v5991_v1  ;;  %v11717_v12 = vcombine.low %v6115_v61, %v6119_v62 }
 0x5bc   :  { %v5908_v26 = vpop.f32.mrf.mxu0  ;;  %v5949_v46 = vpop.f32.mrf.mxu1  ;;  %v5983_v59 = vld [vmem:[#allocation15 + $0xa8] sm:$0xff] }
 0x5bd   :  { %v5909_v29 = vadd.f32 %v5908_v26, %v5539_v11  ;;  %v5950_v31 = vadd.f32 %v5949_v46, %v5547_v8  ;;  %v5954_v32 = vmax.f32 %v5907_v15, 0.0  ;;  %v5956_v34 = vmax.f32 %v5948_v18, 0.0  ;;  %v6107_v11 = vld [vmem:[#allocation15 + $0x488] sm:$0xff] }
 0x5be   :  { %v5910_v35 = vpop.f32.mrf.mxu0  ;;  %v5951_v37 = vpop.f32.mrf.mxu1  ;;  %v6111_v8 = vld [vmem:[#allocation15 + $0x4a8] sm:$0xff]  ;;  %v11582_v15 = vcombine.high %v5979_v2, %v5983_v59 }
 0x5bf   :  { %v5955_v20 = vmax.f32 %v5909_v29, 0.0  ;;  %v5957_v38 = vmax.f32 %v5950_v31, 0.0  ;;  %v14007_v33 = vpack.c.bf16 %v5954_v32, %v5954_v32  ;;  %v14009_v3 = vpack.c.bf16 %v5956_v34, %v5956_v34  ;;  %v5971_v26 = vld [vmem:[#allocation15 + $0x48] sm:$0xff] }
 0x5c0   :  { %v5911_v41 = vpop.f32.mrf.mxu0  ;;  %v5952_v5 = vpop.f32.mrf.mxu1  ;;  %v11710_v18 = vcombine.high %v6107_v11, %v6111_v8  ;;  %v5975_v46 = vld [vmem:[#allocation15 + $0x68] sm:$0xff]  ;;  %v11581_v32 = vcombine.low %v5979_v2, %v5983_v59  ;;  %v11709_v34 = vcombine.low %v6107_v11, %v6111_v8 }
 0x5c1   :  { %v14003_v47 = vpack.c.bf16 %v5955_v20, %v5955_v20  ;;  %v14005_v13 = vpack.c.bf16 %v5957_v38, %v5957_v38  ;;  %v6099_v29 = vld [vmem:[#allocation15 + $0x448] sm:$0xff]  ;;  %v11574_v35 = vcombine.high %v5971_v26, %v5975_v46  ;;  %v11573_v5 = vcombine.low %v5971_v26, %v5975_v46 }
 0x5c2   :  { %v6103_v31 = vld [vmem:[#allocation15 + $0x468] sm:$0xff] }
 0x5c3   :  { %7572 = vmatprep.mubr.bf16.mxu0 %v14003_v47  ;;  %7613 = vmatprep.mubr.bf16.mxu1 %v14005_v13  ;;  %v11702_v37 = vcombine.high %v6099_v29, %v6103_v31  ;;  %v5963_v20 = vld [vmem:[#allocation15 + $0x8] sm:$0xff]  ;;  %v11701_v42 = vcombine.low %v6099_v29, %v6103_v31 }
 0x5c4   :  { %7573 = vmatmul.mubr.bf16.vlgmr.msra.gmra.mxu0 %v14007_v33  ;;  %7614 = vmatmul.mubr.bf16.vlgmr.msra.gmra.mxu1 %v14009_v3  ;;  %v5967_v38 = vld [vmem:[#allocation15 + $0x28] sm:$0xff] }
 0x5c5   :  { %7623 = vmatpush1.bf16.msra.mxu0 %v11621_v52  ;;  %7664 = vmatpush1.bf16.msra.mxu1 %v11749_v39  ;;  %v11597_v52 = vcombine.low %v5995_v10, %v5999_v14  ;;  %v11725_v39 = vcombine.low %v6123_v21, %v6127_v56  ;;  %v6095_v41 = vld [vmem:[#allocation15 + $0x428] sm:$0xff]  ;;  %v11566_v45 = vcombine.high %v5963_v20, %v5967_v38 }
 0x5c6   :  { %7654 = vmatprep.mubr.bf16.mxu0 %v14003_v47  ;;  %7695 = vmatprep.mubr.bf16.mxu1 %v14005_v13  ;;  %v11694_v54 = vcombine.high %v6091_v16, %v6095_v41  ;;  %v11565_v43 = vcombine.low %v5963_v20, %v5967_v38  ;;  %v11693_v51 = vcombine.low %v6091_v16, %v6095_v41  ;;  %v6203_v10 = vld [vmem:[#allocation15 + $0x788] sm:$0xff] }
 0x5c7   :  { %7624 = vmatprep.subr.bf16.mxu0 %v11614_v55  ;;  %7665 = vmatprep.subr.bf16.mxu1 %v11742_v36  ;;  %v6087_v55 = vld [vmem:[#allocation15 + $0x3e8] sm:$0xff] }
 0x5c8   :  { %v6211_v36 = vld [vmem:[#allocation15 + $0x7c8] sm:$0xff]  ;;  %v11685_v21 = vcombine.low %v6083_v49, %v6087_v55 }
 0x5c9   :  { %7625 = vmatpush1.bf16.msra.mxu0 %v11613_v27  ;;  %7666 = vmatpush1.bf16.msra.mxu1 %v11741_v6  ;;  %v11686_v27 = vcombine.high %v6083_v49, %v6087_v55  ;;  %v11814_v6 = vcombine.high %v6211_v36, %v6215_v7  ;;  %v6207_v14 = vld [vmem:[#allocation15 + $0x7a8] sm:$0xff]  ;;  %v11813_v56 = vcombine.low %v6211_v36, %v6215_v7 }
 0x5ca   :  { %7626 = vmatprep.subr.bf16.mxu0 %v11606_v50  ;;  %7667 = vmatprep.subr.bf16.mxu1 %v11734_v4  ;;  %v6075_v50 = vld [vmem:[#allocation15 + $0x388] sm:$0xff]  ;;  %v11805_v62 = vcombine.low %v6203_v10, %v6207_v14 }
 0x5cb   :  { %v6079_v4 = vld [vmem:[#allocation15 + $0x3a8] sm:$0xff] }
 0x5cc   :  { %v6195_v40 = vld [vmem:[#allocation15 + $0x748] sm:$0xff]  ;;  %v11677_v61 = vcombine.low %v6075_v50, %v6079_v4 }
 0x5cd   :  { %7627 = vmatpush1.bf16.msra.mxu0 %v11605_v58  ;;  %7668 = vmatpush1.bf16.msra.mxu1 %v11733_v60  ;;  %v11678_v58 = vcombine.high %v6075_v50, %v6079_v4  ;;  %v11806_v60 = vcombine.high %v6203_v10, %v6207_v14  ;;  %v6199_v1 = vld [vmem:[#allocation15 + $0x768] sm:$0xff] }
 0x5ce   :  { %7628 = vmatprep.subr.bf16.mxu0 %v11598_v48  ;;  %7669 = vmatprep.subr.bf16.mxu1 %v11726_v22  ;;  %v6067_v48 = vld [vmem:[#allocation15 + $0x348] sm:$0xff]  ;;  %v11797_v8 = vcombine.low %v6195_v40, %v6199_v1 }
 0x5cf   :  { %v6071_v22 = vld [vmem:[#allocation15 + $0x368] sm:$0xff] }
 0x5d0   :  { %v6187_v2 = vld [vmem:[#allocation15 + $0x708] sm:$0xff]  ;;  %v11669_v11 = vcombine.low %v6067_v48, %v6071_v22 }
 0x5d1   :  { %7629 = vmatpush1.bf16.msra.mxu0 %v11597_v52  ;;  %7670 = vmatpush1.bf16.msra.mxu1 %v11725_v39  ;;  %v11670_v52 = vcombine.high %v6067_v48, %v6071_v22  ;;  %v11798_v39 = vcombine.high %v6195_v40, %v6199_v1  ;;  %v6191_v59 = vld [vmem:[#allocation15 + $0x728] sm:$0xff]  ;;  %v6148_v48 = vld [vmem:[#allocation15 + $0x5d0] sm:$0xff] }
 0x5d2   :  { %7630 = vmatprep.subr.bf16.mxu0 %v11590_v0  ;;  %7671 = vmatprep.subr.bf16.mxu1 %v11718_v63  ;;  %v6059_v0 = vld [vmem:[#allocation15 + $0x308] sm:$0xff]  ;;  %v11789_v31 = vcombine.low %v6187_v2, %v6191_v59  ;;  %v6152_v22 = vld [vmem:[#allocation15 + $0x5f0] sm:$0xff] }
 0x5d3   :  { %v6063_v63 = vld [vmem:[#allocation15 + $0x328] sm:$0xff] }
 0x5d4   :  { %v6179_v26 = vld [vmem:[#allocation15 + $0x6c8] sm:$0xff]  ;;  %v11661_v29 = vcombine.low %v6059_v0, %v6063_v63 }
 0x5d5   :  { %7631 = vmatpush1.bf16.msra.mxu0 %v11589_v9  ;;  %7672 = vmatpush1.bf16.msra.mxu1 %v11717_v12  ;;  %v11662_v9 = vcombine.high %v6059_v0, %v6063_v63  ;;  %v11790_v12 = vcombine.high %v6187_v2, %v6191_v59  ;;  %v6183_v46 = vld [vmem:[#allocation15 + $0x6e8] sm:$0xff]  ;;  %v6140_v0 = vld [vmem:[#allocation15 + $0x590] sm:$0xff]  ;;  %v11751_v59 = vcombine.low %v6148_v48, %v6152_v22 }
 0x5d6   :  { %7632 = vmatprep.subr.bf16.mxu0 %v11582_v15  ;;  %7673 = vmatprep.subr.bf16.mxu1 %v11710_v18  ;;  %v6051_v15 = vld [vmem:[#allocation15 + $0x2c8] sm:$0xff]  ;;  %v11781_v41 = vcombine.low %v6179_v26, %v6183_v46  ;;  %v6144_v63 = vld [vmem:[#allocation15 + $0x5b0] sm:$0xff] }
 0x5d7   :  { %v6055_v18 = vld [vmem:[#allocation15 + $0x2e8] sm:$0xff] }
 0x5d8   :  { %v6171_v20 = vld [vmem:[#allocation15 + $0x688] sm:$0xff]  ;;  %v11653_v16 = vcombine.low %v6051_v15, %v6055_v18 }
 0x5d9   :  { %7633 = vmatpush1.bf16.msra.mxu0 %v11581_v32  ;;  %7674 = vmatpush1.bf16.msra.mxu1 %v11709_v34  ;;  %v11654_v32 = vcombine.high %v6051_v15, %v6055_v18  ;;  %v11782_v34 = vcombine.high %v6179_v26, %v6183_v46  ;;  %v6175_v38 = vld [vmem:[#allocation15 + $0x6a8] sm:$0xff]  ;;  %v6132_v15 = vld [vmem:[#allocation15 + $0x550] sm:$0xff]  ;;  %v11743_v46 = vcombine.low %v6140_v0, %v6144_v63 }
 0x5da   :  { %7634 = vmatprep.subr.bf16.mxu0 %v11574_v35  ;;  %7675 = vmatprep.subr.bf16.mxu1 %v11702_v37  ;;  %v6043_v35 = vld [vmem:[#allocation15 + $0x288] sm:$0xff]  ;;  %v11773_v7 = vcombine.low %v6171_v20, %v6175_v38  ;;  %v6136_v18 = vld [vmem:[#allocation15 + $0x570] sm:$0xff] }
 0x5db   :  { %v6047_v37 = vld [vmem:[#allocation15 + $0x2a8] sm:$0xff] }
 0x5dc   :  { %v6163_v49 = vld [vmem:[#allocation15 + $0x648] sm:$0xff]  ;;  %v11645_v36 = vcombine.low %v6043_v35, %v6047_v37 }
 0x5dd   :  { %7635 = vmatpush1.bf16.msra.mxu0 %v11573_v5  ;;  %7676 = vmatpush1.bf16.msra.mxu1 %v11701_v42  ;;  %v11646_v5 = vcombine.high %v6043_v35, %v6047_v37  ;;  %v11774_v42 = vcombine.high %v6171_v20, %v6175_v38  ;;  %v6167_v55 = vld [vmem:[#allocation15 + $0x668] sm:$0xff]  ;;  %v6124_v35 = vld [vmem:[#allocation15 + $0x510] sm:$0xff]  ;;  %v11735_v38 = vcombine.low %v6132_v15, %v6136_v18 }
 0x5de   :  { %7636 = vmatprep.subr.bf16.mxu0 %v11566_v45  ;;  %7677 = vmatprep.subr.bf16.mxu1 %v11694_v54  ;;  %v6035_v45 = vld [vmem:[#allocation15 + $0x248] sm:$0xff]  ;;  %v11765_v14 = vcombine.low %v6163_v49, %v6167_v55  ;;  %v6128_v37 = vld [vmem:[#allocation15 + $0x530] sm:$0xff] }
 0x5df   :  { %v6039_v54 = vld [vmem:[#allocation15 + $0x268] sm:$0xff] }
 0x5e0   :  { %v6155_v50 = vld [vmem:[#allocation15 + $0x608] sm:$0xff]  ;;  %v11637_v10 = vcombine.low %v6035_v45, %v6039_v54 }
 0x5e1   :  { %7637 = vmatpush1.bf16.msra.mxu0 %v11565_v43  ;;  %7678 = vmatpush1.bf16.msra.mxu1 %v11693_v51  ;;  %v11638_v43 = vcombine.high %v6035_v45, %v6039_v54  ;;  %v11766_v51 = vcombine.high %v6163_v49, %v6167_v55  ;;  %v6159_v4 = vld [vmem:[#allocation15 + $0x628] sm:$0xff]  ;;  %v6116_v45 = vld [vmem:[#allocation15 + $0x4d0] sm:$0xff]  ;;  %v11727_v55 = vcombine.low %v6124_v35, %v6128_v37 }
 0x5e2   :  { %7638 = vmatprep.subr.bf16.mxu0 %v11686_v27  ;;  %7679 = vmatprep.subr.bf16.mxu1 %v11814_v6  ;;  %v6027_v27 = vld [vmem:[#allocation15 + $0x208] sm:$0xff]  ;;  %v11757_v1 = vcombine.low %v6155_v50, %v6159_v4  ;;  %v6120_v54 = vld [vmem:[#allocation15 + $0x4f0] sm:$0xff] }
 0x5e3   :  { %v6031_v6 = vld [vmem:[#allocation15 + $0x228] sm:$0xff] }
 0x5e4   :  { %v11629_v40 = vcombine.low %v6027_v27, %v6031_v6 }
 0x5e5   :  { %7639 = vmatpush2.bf16.msra.mxu0 %v11685_v21  ;;  %7680 = vmatpush2.bf16.msra.mxu1 %v11813_v56  ;;  %v11630_v21 = vcombine.high %v6027_v27, %v6031_v6  ;;  %v11758_v56 = vcombine.high %v6155_v50, %v6159_v4  ;;  %v6108_v27 = vld [vmem:[#allocation15 + $0x490] sm:$0xff]  ;;  %v11719_v4 = vcombine.low %v6116_v45, %v6120_v54 }
 0x5e6   :  { %7640 = vmatprep.subr.bf16.mxu0 %v11678_v58  ;;  %7681 = vmatprep.subr.bf16.mxu1 %v11806_v60  ;;  %v6020_v58 = vld [vmem:[#allocation15 + $0x1d0] sm:$0xff] }
 0x5e7   :  { %v6024_v60 = vld [vmem:[#allocation15 + $0x1f0] sm:$0xff] }
 0x5e8   :  { %v11623_v2 = vcombine.low %v6020_v58, %v6024_v60  ;;  %v6112_v6 = vld [vmem:[#allocation15 + $0x4b0] sm:$0xff] }
 0x5e9   :  { %7641 = vmatpush2.bf16.msra.mxu0 %v11677_v61  ;;  %7682 = vmatpush2.bf16.msra.mxu1 %v11805_v62  ;;  %v11624_v61 = vcombine.high %v6020_v58, %v6024_v60  ;;  %v11752_v62 = vcombine.high %v6148_v48, %v6152_v22  ;;  %v6100_v58 = vld [vmem:[#allocation15 + $0x450] sm:$0xff]  ;;  %v11711_v22 = vcombine.low %v6108_v27, %v6112_v6 }
 0x5ea   :  { %7642 = vmatprep.subr.bf16.mxu0 %v11670_v52  ;;  %7683 = vmatprep.subr.bf16.mxu1 %v11798_v39  ;;  %v6012_v52 = vld [vmem:[#allocation15 + $0x190] sm:$0xff] }
 0x5eb   :  { %v6016_v39 = vld [vmem:[#allocation15 + $0x1b0] sm:$0xff] }
 0x5ec   :  { %v11615_v26 = vcombine.low %v6012_v52, %v6016_v39  ;;  %v6104_v60 = vld [vmem:[#allocation15 + $0x470] sm:$0xff] }
 0x5ed   :  { %7643 = vmatpush2.bf16.msra.mxu0 %v11669_v11  ;;  %7684 = vmatpush2.bf16.msra.mxu1 %v11797_v8  ;;  %v11616_v11 = vcombine.high %v6012_v52, %v6016_v39  ;;  %v11744_v8 = vcombine.high %v6140_v0, %v6144_v63  ;;  %v6092_v52 = vld [vmem:[#allocation15 + $0x410] sm:$0xff]  ;;  %v11703_v63 = vcombine.low %v6100_v58, %v6104_v60 }
 0x5ee   :  { %7644 = vmatprep.subr.bf16.mxu0 %v11662_v9  ;;  %7685 = vmatprep.subr.bf16.mxu1 %v11790_v12  ;;  %v6004_v9 = vld [vmem:[#allocation15 + $0x150] sm:$0xff] }
 0x5ef   :  { %v6008_v12 = vld [vmem:[#allocation15 + $0x170] sm:$0xff] }
 0x5f0   :  { %v11607_v20 = vcombine.low %v6004_v9, %v6008_v12  ;;  %v6096_v39 = vld [vmem:[#allocation15 + $0x430] sm:$0xff] }
 0x5f1   :  { %7645 = vmatpush2.bf16.msra.mxu0 %v11661_v29  ;;  %7686 = vmatpush2.bf16.msra.mxu1 %v11789_v31  ;;  %v11608_v29 = vcombine.high %v6004_v9, %v6008_v12  ;;  %v11736_v31 = vcombine.high %v6132_v15, %v6136_v18  ;;  %v6212_v9 = vld [vmem:[#allocation15 + $0x7d0] sm:$0xff]  ;;  %v11695_v18 = vcombine.low %v6092_v52, %v6096_v39 }
 0x5f2   :  { %7646 = vmatprep.subr.bf16.mxu0 %v11654_v32  ;;  %7687 = vmatprep.subr.bf16.mxu1 %v11782_v34  ;;  %v5996_v32 = vld [vmem:[#allocation15 + $0x110] sm:$0xff] }
 0x5f3   :  { %v6000_v34 = vld [vmem:[#allocation15 + $0x130] sm:$0xff] }
 0x5f4   :  { %v11599_v49 = vcombine.low %v5996_v32, %v6000_v34  ;;  %v6216_v12 = vld [vmem:[#allocation15 + $0x7f0] sm:$0xff] }
 0x5f5   :  { %7647 = vmatpush2.bf16.msra.mxu0 %v11653_v16  ;;  %7688 = vmatpush2.bf16.msra.mxu1 %v11781_v41  ;;  %v11600_v16 = vcombine.high %v5996_v32, %v6000_v34  ;;  %v11728_v41 = vcombine.high %v6124_v35, %v6128_v37  ;;  %v6204_v32 = vld [vmem:[#allocation15 + $0x790] sm:$0xff]  ;;  %v11815_v37 = vcombine.low %v6212_v9, %v6216_v12 }
 0x5f6   :  { %7648 = vmatprep.subr.bf16.mxu0 %v11646_v5  ;;  %7689 = vmatprep.subr.bf16.mxu1 %v11774_v42  ;;  %v5988_v5 = vld [vmem:[#allocation15 + $0xd0] sm:$0xff] }
 0x5f7   :  { %v5992_v42 = vld [vmem:[#allocation15 + $0xf0] sm:$0xff] }
 0x5f8   :  { %v11591_v50 = vcombine.low %v5988_v5, %v5992_v42  ;;  %v6208_v34 = vld [vmem:[#allocation15 + $0x7b0] sm:$0xff] }
 0x5f9   :  { %7649 = vmatpush2.bf16.msra.mxu0 %v11645_v36  ;;  %7690 = vmatpush2.bf16.msra.mxu1 %v11773_v7  ;;  %v11592_v36 = vcombine.high %v5988_v5, %v5992_v42  ;;  %v11720_v7 = vcombine.high %v6116_v45, %v6120_v54  ;;  %v6196_v5 = vld [vmem:[#allocation15 + $0x750] sm:$0xff]  ;;  %v11807_v54 = vcombine.low %v6204_v32, %v6208_v34 }
 0x5fa   :  { %7650 = vmatprep.subr.bf16.mxu0 %v11638_v43  ;;  %7691 = vmatprep.subr.bf16.mxu1 %v11766_v51  ;;  %v5980_v43 = vld [vmem:[#allocation15 + $0x90] sm:$0xff] }
 0x5fb   :  { %v5984_v51 = vld [vmem:[#allocation15 + $0xb0] sm:$0xff] }
 0x5fc   :  { %v11583_v48 = vcombine.low %v5980_v43, %v5984_v51  ;;  %v6200_v42 = vld [vmem:[#allocation15 + $0x770] sm:$0xff] }
 0x5fd   :  { %7651 = vmatpush2.bf16.msra.mxu0 %v11637_v10  ;;  %7692 = vmatpush2.bf16.msra.mxu1 %v11765_v14  ;;  %v11584_v10 = vcombine.high %v5980_v43, %v5984_v51  ;;  %v11712_v14 = vcombine.high %v6108_v27, %v6112_v6  ;;  %v6188_v43 = vld [vmem:[#allocation15 + $0x710] sm:$0xff]  ;;  %v11799_v6 = vcombine.low %v6196_v5, %v6200_v42 }
 0x5fe   :  { %7652 = vmatprep.subr.bf16.mxu0 %v11630_v21  ;;  %7693 = vmatprep.subr.bf16.mxu1 %v11758_v56  ;;  %v5972_v21 = vld [vmem:[#allocation15 + $0x50] sm:$0xff] }
 0x5ff   :  { %v5976_v56 = vld [vmem:[#allocation15 + $0x70] sm:$0xff] }
 0x600   :  { %v11575_v0 = vcombine.low %v5972_v21, %v5976_v56  ;;  %v6192_v51 = vld [vmem:[#allocation15 + $0x730] sm:$0xff] }
 0x601   :  { %7653 = vmatpush2.bf16.msra.mxu0 %v11629_v40  ;;  %7694 = vmatpush2.bf16.msra.mxu1 %v11757_v1  ;;  %v11576_v40 = vcombine.high %v5972_v21, %v5976_v56  ;;  %v11704_v1 = vcombine.high %v6100_v58, %v6104_v60  ;;  %v6180_v21 = vld [vmem:[#allocation15 + $0x6d0] sm:$0xff]  ;;  %v11791_v60 = vcombine.low %v6188_v43, %v6192_v51 }
 0x602   :  { %7704 = vmatprep.subr.bf16.mxu0 %v11624_v61  ;;  %7745 = vmatprep.subr.bf16.mxu1 %v11752_v62  ;;  %v5964_v61 = vld [vmem:[#allocation15 + $0x10] sm:$0xff] }
 0x603   :  { %v5968_v62 = vld [vmem:[#allocation15 + $0x30] sm:$0xff] }
 0x604   :  { %7655 = vmatmul.mubr.bf16.vlgmr.msra.gmra.mxu0 %v14007_v33  ;;  %7696 = vmatmul.mubr.bf16.vlgmr.msra.gmra.mxu1 %v14009_v3  ;;  %v11567_v15 = vcombine.low %v5964_v61, %v5968_v62  ;;  %v6184_v56 = vld [vmem:[#allocation15 + $0x6f0] sm:$0xff] }
 0x605   :  { %7705 = vmatpush1.bf16.msra.mxu0 %v11623_v2  ;;  %7736 = vmatprep.mubr.bf16.mxu0 %v14003_v47  ;;  %v11568_v2 = vcombine.high %v5964_v61, %v5968_v62  ;;  %v6172_v61 = vld [vmem:[#allocation15 + $0x690] sm:$0xff] }
 0x606   :  { %7746 = vmatpush1.bf16.msra.mxu1 %v11751_v59  ;;  %7777 = vmatprep.mubr.bf16.mxu1 %v14005_v13  ;;  %v11696_v59 = vcombine.high %v6092_v52, %v6096_v39  ;;  %v6176_v62 = vld [vmem:[#allocation15 + $0x6b0] sm:$0xff]  ;;  %v11783_v39 = vcombine.low %v6180_v21, %v6184_v56 }
 0x607   :  { %7706 = vmatprep.subr.bf16.mxu0 %v11616_v11  ;;  %7747 = vmatprep.subr.bf16.mxu1 %v11744_v8  ;;  %v6084_v11 = vld [vmem:[#allocation15 + $0x3d0] sm:$0xff] }
 0x608   :  { %v6088_v8 = vld [vmem:[#allocation15 + $0x3f0] sm:$0xff] }
 0x609   :  { %7707 = vmatpush1.bf16.msra.mxu0 %v11615_v26  ;;  %v11688_v26 = vcombine.high %v6084_v11, %v6088_v8  ;;  %v11687_v35 = vcombine.low %v6084_v11, %v6088_v8  ;;  %v6164_v11 = vld [vmem:[#allocation15 + $0x650] sm:$0xff] }
 0x60a   :  { %7748 = vmatpush1.bf16.msra.mxu1 %v11743_v46  ;;  %7708 = vmatprep.subr.bf16.mxu0 %v11608_v29  ;;  %v11816_v46 = vcombine.high %v6212_v9, %v6216_v12  ;;  %v6076_v29 = vld [vmem:[#allocation15 + $0x390] sm:$0xff]  ;;  %v11775_v12 = vcombine.low %v6172_v61, %v6176_v62 }
 0x60b   :  { %7749 = vmatprep.subr.bf16.mxu1 %v11736_v31  ;;  %v6080_v31 = vld [vmem:[#allocation15 + $0x3b0] sm:$0xff] }
 0x60c   :  { %v11679_v45 = vcombine.low %v6076_v29, %v6080_v31  ;;  %v6168_v8 = vld [vmem:[#allocation15 + $0x670] sm:$0xff] }
 0x60d   :  { %7709 = vmatpush1.bf16.msra.mxu0 %v11607_v20  ;;  %v11680_v20 = vcombine.high %v6076_v29, %v6080_v31  ;;  %v6156_v29 = vld [vmem:[#allocation15 + $0x610] sm:$0xff] }
 0x60e   :  { %7750 = vmatpush1.bf16.msra.mxu1 %v11735_v38  ;;  %7710 = vmatprep.subr.bf16.mxu0 %v11600_v16  ;;  %v11808_v38 = vcombine.high %v6204_v32, %v6208_v34  ;;  %v6068_v16 = vld [vmem:[#allocation15 + $0x350] sm:$0xff]  ;;  %v11767_v34 = vcombine.low %v6164_v11, %v6168_v8 }
 0x60f   :  { %7751 = vmatprep.subr.bf16.mxu1 %v11728_v41  ;;  %v6072_v41 = vld [vmem:[#allocation15 + $0x370] sm:$0xff] }
 0x610   :  { %v11671_v27 = vcombine.low %v6068_v16, %v6072_v41  ;;  %v6160_v31 = vld [vmem:[#allocation15 + $0x630] sm:$0xff] }
 0x611   :  { %7711 = vmatpush1.bf16.msra.mxu0 %v11599_v49  ;;  %v11672_v49 = vcombine.high %v6068_v16, %v6072_v41  ;;  %v6149_v16 = vld [vmem:[#allocation15 + $0x5d8] sm:$0xff] }
 0x612   :  { %7752 = vmatpush1.bf16.msra.mxu1 %v11727_v55  ;;  %7712 = vmatprep.subr.bf16.mxu0 %v11592_v36  ;;  %v11800_v55 = vcombine.high %v6196_v5, %v6200_v42  ;;  %v6060_v36 = vld [vmem:[#allocation15 + $0x310] sm:$0xff]  ;;  %v6153_v41 = vld [vmem:[#allocation15 + $0x5f8] sm:$0xff]  ;;  %v11759_v42 = vcombine.low %v6156_v29, %v6160_v31 }
 0x613   :  { %7753 = vmatprep.subr.bf16.mxu1 %v11720_v7  ;;  %v6064_v7 = vld [vmem:[#allocation15 + $0x330] sm:$0xff] }
 0x614   :  { %v11663_v58 = vcombine.low %v6060_v36, %v6064_v7 }
 0x615   :  { %7713 = vmatpush1.bf16.msra.mxu0 %v11591_v50  ;;  %v11664_v50 = vcombine.high %v6060_v36, %v6064_v7  ;;  %v6141_v7 = vld [vmem:[#allocation15 + $0x598] sm:$0xff] }
 0x616   :  { %7754 = vmatpush1.bf16.msra.mxu1 %v11719_v4  ;;  %7714 = vmatprep.subr.bf16.mxu0 %v11584_v10  ;;  %v11792_v4 = vcombine.high %v6188_v43, %v6192_v51  ;;  %v6052_v10 = vld [vmem:[#allocation15 + $0x2d0] sm:$0xff]  ;;  %v6145_v43 = vld [vmem:[#allocation15 + $0x5b8] sm:$0xff]  ;;  %v11753_v51 = vcombine.low %v6149_v16, %v6153_v41 }
 0x617   :  { %7755 = vmatprep.subr.bf16.mxu1 %v11712_v14  ;;  %v6056_v14 = vld [vmem:[#allocation15 + $0x2f0] sm:$0xff] }
 0x618   :  { %v11655_v52 = vcombine.low %v6052_v10, %v6056_v14 }
 0x619   :  { %7715 = vmatpush1.bf16.msra.mxu0 %v11583_v48  ;;  %v11656_v48 = vcombine.high %v6052_v10, %v6056_v14  ;;  %v6133_v10 = vld [vmem:[#allocation15 + $0x558] sm:$0xff] }
 0x61a   :  { %7756 = vmatpush1.bf16.msra.mxu1 %v11711_v22  ;;  %7716 = vmatprep.subr.bf16.mxu0 %v11576_v40  ;;  %v11784_v22 = vcombine.high %v6180_v21, %v6184_v56  ;;  %v6044_v40 = vld [vmem:[#allocation15 + $0x290] sm:$0xff]  ;;  %v6137_v14 = vld [vmem:[#allocation15 + $0x578] sm:$0xff]  ;;  %v11745_v56 = vcombine.low %v6141_v7, %v6145_v43 }
 0x61b   :  { %7757 = vmatprep.subr.bf16.mxu1 %v11704_v1  ;;  %v6048_v1 = vld [vmem:[#allocation15 + $0x2b0] sm:$0xff] }
 0x61c   :  { %v11647_v9 = vcombine.low %v6044_v40, %v6048_v1 }
 0x61d   :  { %7717 = vmatpush1.bf16.msra.mxu0 %v11575_v0  ;;  %v11648_v0 = vcombine.high %v6044_v40, %v6048_v1  ;;  %v6125_v40 = vld [vmem:[#allocation15 + $0x518] sm:$0xff] }
 0x61e   :  { %7758 = vmatpush1.bf16.msra.mxu1 %v11703_v63  ;;  %7718 = vmatprep.subr.bf16.mxu0 %v11568_v2  ;;  %v11776_v63 = vcombine.high %v6172_v61, %v6176_v62  ;;  %v6036_v2 = vld [vmem:[#allocation15 + $0x250] sm:$0xff]  ;;  %v6129_v1 = vld [vmem:[#allocation15 + $0x538] sm:$0xff]  ;;  %v11737_v62 = vcombine.low %v6133_v10, %v6137_v14 }
 0x61f   :  { %7759 = vmatprep.subr.bf16.mxu1 %v11696_v59  ;;  %v6040_v59 = vld [vmem:[#allocation15 + $0x270] sm:$0xff] }
 0x620   :  { %v11639_v32 = vcombine.low %v6036_v2, %v6040_v59 }
 0x621   :  { %7719 = vmatpush1.bf16.msra.mxu0 %v11567_v15  ;;  %v11640_v15 = vcombine.high %v6036_v2, %v6040_v59  ;;  %v6121_v2 = vld [vmem:[#allocation15 + $0x4f8] sm:$0xff]  ;;  %v11729_v59 = vcombine.low %v6125_v40, %v6129_v1 }
 0x622   :  { %7760 = vmatpush1.bf16.msra.mxu1 %v11695_v18  ;;  %7720 = vmatprep.subr.bf16.mxu0 %v11688_v26  ;;  %v11768_v18 = vcombine.high %v6164_v11, %v6168_v8  ;;  %v6028_v26 = vld [vmem:[#allocation15 + $0x210] sm:$0xff] }
 0x623   :  { %7761 = vmatprep.subr.bf16.mxu1 %v11816_v46  ;;  %v6032_v46 = vld [vmem:[#allocation15 + $0x230] sm:$0xff] }
 0x624   :  { %v11631_v5 = vcombine.low %v6028_v26, %v6032_v46 }
 0x625   :  { %7721 = vmatpush2.bf16.msra.mxu0 %v11687_v35  ;;  %v11632_v35 = vcombine.high %v6028_v26, %v6032_v46 }
 0x626   :  { %7762 = vmatpush2.bf16.msra.mxu1 %v11815_v37  ;;  %7722 = vmatprep.subr.bf16.mxu0 %v11680_v20  ;;  %v11760_v37 = vcombine.high %v6156_v29, %v6160_v31  ;;  %v6021_v20 = vld [vmem:[#allocation15 + $0x1d8] sm:$0xff] }
 0x627   :  { %7763 = vmatprep.subr.bf16.mxu1 %v11808_v38  ;;  %v6025_v38 = vld [vmem:[#allocation15 + $0x1f8] sm:$0xff] }
 0x628   :  { %v11625_v36 = vcombine.low %v6021_v20, %v6025_v38 }
 0x629   :  { %7723 = vmatpush2.bf16.msra.mxu0 %v11679_v45  ;;  %v11626_v45 = vcombine.high %v6021_v20, %v6025_v38 }
 0x62a   :  { %7764 = vmatpush2.bf16.msra.mxu1 %v11807_v54  ;;  %7724 = vmatprep.subr.bf16.mxu0 %v11672_v49  ;;  %v11754_v54 = vcombine.high %v6149_v16, %v6153_v41  ;;  %v6013_v49 = vld [vmem:[#allocation15 + $0x198] sm:$0xff] }
 0x62b   :  { %7765 = vmatprep.subr.bf16.mxu1 %v11800_v55  ;;  %v6017_v55 = vld [vmem:[#allocation15 + $0x1b8] sm:$0xff] }
 0x62c   :  { %v11617_v21 = vcombine.low %v6013_v49, %v6017_v55 }
 0x62d   :  { %7725 = vmatpush2.bf16.msra.mxu0 %v11671_v27  ;;  %v11618_v27 = vcombine.high %v6013_v49, %v6017_v55 }
 0x62e   :  { %7766 = vmatpush2.bf16.msra.mxu1 %v11799_v6  ;;  %7726 = vmatprep.subr.bf16.mxu0 %v11664_v50  ;;  %v6005_v6 = vld [vmem:[#allocation15 + $0x158] sm:$0xff] }
 0x62f   :  { %7767 = vmatprep.subr.bf16.mxu1 %v11792_v4  ;;  %v6009_v50 = vld [vmem:[#allocation15 + $0x178] sm:$0xff]  ;;  %v11746_v4 = vcombine.high %v6141_v7, %v6145_v43 }
 0x630   :  { %v11609_v61 = vcombine.low %v6005_v6, %v6009_v50  ;;  %v6085_v43 = vld [vmem:[#allocation15 + $0x3d8] sm:$0xff] }
 0x631   :  { %7727 = vmatpush2.bf16.msra.mxu0 %v11663_v58  ;;  %v11610_v58 = vcombine.high %v6005_v6, %v6009_v50  ;;  %v6217_v6 = vld [vmem:[#allocation15 + $0x7f8] sm:$0xff] }
 0x632   :  { %7768 = vmatpush2.bf16.msra.mxu1 %v11791_v60  ;;  %7728 = vmatprep.subr.bf16.mxu0 %v11656_v48  ;;  %v11738_v60 = vcombine.high %v6133_v10, %v6137_v14  ;;  %v5997_v48 = vld [vmem:[#allocation15 + $0x118] sm:$0xff] }
 0x633   :  { %7769 = vmatprep.subr.bf16.mxu1 %v11784_v22  ;;  %v6001_v22 = vld [vmem:[#allocation15 + $0x138] sm:$0xff] }
 0x635   :  { %7729 = vmatpush2.bf16.msra.mxu0 %v11655_v52  ;;  %v11602_v52 = vcombine.high %v5997_v48, %v6001_v22 }
 0x636   :  { %7770 = vmatpush2.bf16.msra.mxu1 %v11783_v39  ;;  %7730 = vmatprep.subr.bf16.mxu0 %v11648_v0  ;;  %v5989_v39 = vld [vmem:[#allocation15 + $0xd8] sm:$0xff] }
 0x637   :  { %7771 = vmatprep.subr.bf16.mxu1 %v11776_v63  ;;  %v5993_v0 = vld [vmem:[#allocation15 + $0xf8] sm:$0xff] }
 0x638   :  { %v6117_v63 = vld [vmem:[#allocation15 + $0x4d8] sm:$0xff]  ;;  %v11594_v11 = vcombine.high %v5989_v39, %v5993_v0  ;;  %v11593_v26 = vcombine.low %v5989_v39, %v5993_v0 }
 0x639   :  { %7731 = vmatpush2.bf16.msra.mxu0 %v11647_v9  ;;  %v11722_v8 = vcombine.high %v6117_v63, %v6121_v2  ;;  %v5981_v9 = vld [vmem:[#allocation15 + $0x98] sm:$0xff]  ;;  %v11721_v46 = vcombine.low %v6117_v63, %v6121_v2 }
 0x63a   :  { %7772 = vmatpush2.bf16.msra.mxu1 %v11775_v12  ;;  %7732 = vmatprep.subr.bf16.mxu0 %v11640_v15  ;;  %v5985_v12 = vld [vmem:[#allocation15 + $0xb8] sm:$0xff] }
 0x63b   :  { %7773 = vmatprep.subr.bf16.mxu1 %v11768_v18  ;;  %v6109_v15 = vld [vmem:[#allocation15 + $0x498] sm:$0xff]  ;;  %v11586_v29 = vcombine.high %v5981_v9, %v5985_v12  ;;  %v11585_v20 = vcombine.low %v5981_v9, %v5985_v12 }
 0x63c   :  { %v6113_v18 = vld [vmem:[#allocation15 + $0x4b8] sm:$0xff] }
 0x63d   :  { %7733 = vmatpush2.bf16.msra.mxu0 %v11639_v32  ;;  %v11714_v31 = vcombine.high %v6109_v15, %v6113_v18  ;;  %v5973_v32 = vld [vmem:[#allocation15 + $0x58] sm:$0xff]  ;;  %v11713_v38 = vcombine.low %v6109_v15, %v6113_v18 }
 0x63e   :  { %7774 = vmatpush2.bf16.msra.mxu1 %v11767_v34  ;;  %7734 = vmatprep.subr.bf16.mxu0 %v11632_v35  ;;  %v5977_v34 = vld [vmem:[#allocation15 + $0x78] sm:$0xff] }
 0x63f   :  { %7775 = vmatprep.subr.bf16.mxu1 %v11760_v37  ;;  %v6101_v35 = vld [vmem:[#allocation15 + $0x458] sm:$0xff]  ;;  %v11578_v16 = vcombine.high %v5973_v32, %v5977_v34  ;;  %v11577_v49 = vcombine.low %v5973_v32, %v5977_v34 }
 0x640   :  { %v6105_v37 = vld [vmem:[#allocation15 + $0x478] sm:$0xff] }
 0x641   :  { %7735 = vmatpush2.bf16.msra.mxu0 %v11631_v5  ;;  %v11706_v41 = vcombine.high %v6101_v35, %v6105_v37  ;;  %v5965_v5 = vld [vmem:[#allocation15 + $0x18] sm:$0xff]  ;;  %v11705_v55 = vcombine.low %v6101_v35, %v6105_v37 }
 0x642   :  { %7776 = vmatpush2.bf16.msra.mxu1 %v11759_v42  ;;  %7786 = vmatprep.subr.bf16.mxu0 %v11626_v45  ;;  %v5969_v42 = vld [vmem:[#allocation15 + $0x38] sm:$0xff] }
 0x643   :  { %7827 = vmatprep.subr.bf16.mxu1 %v11754_v54  ;;  %v6093_v45 = vld [vmem:[#allocation15 + $0x418] sm:$0xff]  ;;  %v11569_v50 = vcombine.low %v5965_v5, %v5969_v42 }
 0x644   :  { %7737 = vmatmul.mubr.bf16.vlgmr.msra.gmra.mxu0 %v14007_v33  ;;  %v6097_v54 = vld [vmem:[#allocation15 + $0x438] sm:$0xff] }
 0x645   :  { %7778 = vmatmul.mubr.bf16.vlgmr.msra.gmra.mxu1 %v14009_v3  ;;  %7787 = vmatpush1.bf16.msra.mxu0 %v11625_v36  ;;  %v11570_v36 = vcombine.high %v5965_v5, %v5969_v42  ;;  %v11698_v7 = vcombine.high %v6093_v45, %v6097_v54 }
 0x646   :  { %7818 = vmatprep.mubr.bf16.mxu0 %v14003_v47  ;;  %7828 = vmatpush1.bf16.msra.mxu1 %v11753_v51  ;;  %v11730_v47 = vcombine.high %v6125_v40, %v6129_v1  ;;  %v6089_v51 = vld [vmem:[#allocation15 + $0x3f8] sm:$0xff] }
 0x647   :  { %7859 = vmatprep.mubr.bf16.mxu1 %v14005_v13  ;;  %7788 = vmatprep.subr.bf16.mxu0 %v11618_v27  ;;  %v11601_v13 = vcombine.low %v5997_v48, %v6001_v22  ;;  %v6213_v27 = vld [vmem:[#allocation15 + $0x7d8] sm:$0xff]  ;;  %v11690_v10 = vcombine.high %v6085_v43, %v6089_v51  ;;  %v11689_v48 = vcombine.low %v6085_v43, %v6089_v51 }
 0x648   :  { %7829 = vmatprep.subr.bf16.mxu1 %v11746_v4  ;;  %v11697_v4 = vcombine.low %v6093_v45, %v6097_v54  ;;  %v11818_v14 = vcombine.high %v6213_v27, %v6217_v6  ;;  %v11817_v22 = vcombine.low %v6213_v27, %v6217_v6 }
 0x649   :  { %7789 = vmatpush1.bf16.msra.mxu0 %v11617_v21  ;;  %v6077_v21 = vld [vmem:[#allocation15 + $0x398] sm:$0xff] }
 0x64a   :  { %7830 = vmatpush1.bf16.msra.mxu1 %v11745_v56  ;;  %7790 = vmatprep.subr.bf16.mxu0 %v11610_v58  ;;  %v6081_v56 = vld [vmem:[#allocation15 + $0x3b8] sm:$0xff] }
 0x64b   :  { %7831 = vmatprep.subr.bf16.mxu1 %v11738_v60  ;;  %v6205_v58 = vld [vmem:[#allocation15 + $0x798] sm:$0xff]  ;;  %v11682_v40 = vcombine.high %v6077_v21, %v6081_v56  ;;  %v11681_v39 = vcombine.low %v6077_v21, %v6081_v56 }
 0x64c   :  { %v6209_v60 = vld [vmem:[#allocation15 + $0x7b8] sm:$0xff] }
 0x64d   :  { %7791 = vmatpush1.bf16.msra.mxu0 %v11609_v61  ;;  %v11810_v1 = vcombine.high %v6205_v58, %v6209_v60  ;;  %v6069_v61 = vld [vmem:[#allocation15 + $0x358] sm:$0xff]  ;;  %v11809_v0 = vcombine.low %v6205_v58, %v6209_v60 }
 0x64e   :  { %7832 = vmatpush1.bf16.msra.mxu1 %v11737_v62  ;;  %7792 = vmatprep.subr.bf16.mxu0 %v11602_v52  ;;  %v6073_v62 = vld [vmem:[#allocation15 + $0x378] sm:$0xff] }
 0x64f   :  { %7833 = vmatprep.subr.bf16.mxu1 %v11730_v47  ;;  %v6197_v52 = vld [vmem:[#allocation15 + $0x758] sm:$0xff]  ;;  %v11674_v63 = vcombine.high %v6069_v61, %v6073_v62  ;;  %v11673_v9 = vcombine.low %v6069_v61, %v6073_v62  ;;  %v14025_v62 = vld [vmem:[#allocation16] sm:$0xff] }
 0x650   :  { %v6201_v47 = vld [vmem:[#allocation15 + $0x778] sm:$0xff] }
 0x651   :  { %7793 = vmatpush1.bf16.msra.mxu0 %v11601_v13  ;;  %v11802_v2 = vcombine.high %v6197_v52, %v6201_v47  ;;  %v6061_v13 = vld [vmem:[#allocation15 + $0x318] sm:$0xff]  ;;  %v11801_v12 = vcombine.low %v6197_v52, %v6201_v47  ;;  %v12807_v52 = vld [vmem:[#allocation18 + $0x124] ss:$24 sps:$4 sm:$0xff]  }
 0x652   :  { %7834 = vmatpush1.bf16.msra.mxu1 %v11729_v59  ;;  %7794 = vmatprep.subr.bf16.mxu0 %v11594_v11  ;;  %v6065_v59 = vld [vmem:[#allocation15 + $0x338] sm:$0xff] }
 0x653   :  { %7835 = vmatprep.subr.bf16.mxu1 %v11722_v8  ;;  %v6189_v11 = vld [vmem:[#allocation15 + $0x718] sm:$0xff]  ;;  %v11666_v15 = vcombine.high %v6061_v13, %v6065_v59  ;;  %v11665_v32 = vcombine.low %v6061_v13, %v6065_v59  ;;  %v12805_v13 = vld [vmem:[#allocation18 + $0x120] ss:$24 sps:$4 sm:$0xff]  }
 0x654   :  { %v6193_v8 = vld [vmem:[#allocation15 + $0x738] sm:$0xff] }
 0x655   :  { %7795 = vmatpush1.bf16.msra.mxu0 %v11593_v26  ;;  %v11794_v18 = vcombine.high %v6189_v11, %v6193_v8  ;;  %v6053_v26 = vld [vmem:[#allocation15 + $0x2d8] sm:$0xff]  ;;  %v11793_v34 = vcombine.low %v6189_v11, %v6193_v8 }
 0x656   :  { %7836 = vmatpush1.bf16.msra.mxu1 %v11721_v46  ;;  %7796 = vmatprep.subr.bf16.mxu0 %v11586_v29  ;;  %v6057_v46 = vld [vmem:[#allocation15 + $0x2f8] sm:$0xff] }
 0x657   :  { %7837 = vmatprep.subr.bf16.mxu1 %v11714_v31  ;;  %v6181_v29 = vld [vmem:[#allocation15 + $0x6d8] sm:$0xff]  ;;  %v11658_v35 = vcombine.high %v6053_v26, %v6057_v46  ;;  %v11657_v5 = vcombine.low %v6053_v26, %v6057_v46 }
 0x658   :  { %v6185_v31 = vld [vmem:[#allocation15 + $0x6f8] sm:$0xff] }
 0x659   :  { %7797 = vmatpush1.bf16.msra.mxu0 %v11585_v20  ;;  %v11786_v37 = vcombine.high %v6181_v29, %v6185_v31  ;;  %v6045_v20 = vld [vmem:[#allocation15 + $0x298] sm:$0xff]  ;;  %v11785_v42 = vcombine.low %v6181_v29, %v6185_v31 }
 0x65a   :  { %7838 = vmatpush1.bf16.msra.mxu1 %v11713_v38  ;;  %7798 = vmatprep.subr.bf16.mxu0 %v11578_v16  ;;  %v6049_v38 = vld [vmem:[#allocation15 + $0x2b8] sm:$0xff] }
 0x65b   :  { %7839 = vmatprep.subr.bf16.mxu1 %v11706_v41  ;;  %v6173_v16 = vld [vmem:[#allocation15 + $0x698] sm:$0xff]  ;;  %v11650_v45 = vcombine.high %v6045_v20, %v6049_v38  ;;  %v11649_v43 = vcombine.low %v6045_v20, %v6049_v38  ;;  %v12811_v20 = vld [vmem:[#allocation18 + $0xc0] ss:$24 sps:$4 sm:$0xff]  }
 0x65c   :  { %v6177_v41 = vld [vmem:[#allocation15 + $0x6b8] sm:$0xff] }
 0x65d   :  { %7799 = vmatpush1.bf16.msra.mxu0 %v11577_v49  ;;  %v11778_v54 = vcombine.high %v6173_v16, %v6177_v41  ;;  %v6037_v49 = vld [vmem:[#allocation15 + $0x258] sm:$0xff]  ;;  %v11777_v51 = vcombine.low %v6173_v16, %v6177_v41  ;;  %v12832_v16 = vld [vmem:[#allocation18 + $0x3c0] ss:$24 sps:$4 sm:$0xff]  }
 0x65e   :  { %7840 = vmatpush1.bf16.msra.mxu1 %v11705_v55  ;;  %7800 = vmatprep.subr.bf16.mxu0 %v11570_v36  ;;  %v6041_v55 = vld [vmem:[#allocation15 + $0x278] sm:$0xff] }
 0x65f   :  { %7841 = vmatprep.subr.bf16.mxu1 %v11698_v7  ;;  %v6165_v36 = vld [vmem:[#allocation15 + $0x658] sm:$0xff]  ;;  %v11642_v27 = vcombine.high %v6037_v49, %v6041_v55  ;;  %v11641_v21 = vcombine.low %v6037_v49, %v6041_v55  ;;  %v12823_v49 = vld [vmem:[#allocation18 + $0x60] ss:$24 sps:$4 sm:$0xff]  }
 0x660   :  { %v6169_v7 = vld [vmem:[#allocation15 + $0x678] sm:$0xff] }
 0x661   :  { %7801 = vmatpush1.bf16.msra.mxu0 %v11569_v50  ;;  %v11770_v6 = vcombine.high %v6165_v36, %v6169_v7  ;;  %v6029_v50 = vld [vmem:[#allocation15 + $0x218] sm:$0xff]  ;;  %v11769_v56 = vcombine.low %v6165_v36, %v6169_v7  ;;  %v12844_v36 = vld [vmem:[#allocation18 + $0x360] ss:$24 sps:$4 sm:$0xff]  }
 0x662   :  { %7842 = vmatpush1.bf16.msra.mxu1 %v11697_v4  ;;  %7802 = vmatprep.subr.bf16.mxu0 %v11690_v10  ;;  %v6033_v4 = vld [vmem:[#allocation15 + $0x238] sm:$0xff] }
 0x663   :  { %7843 = vmatprep.subr.bf16.mxu1 %v11818_v14  ;;  %v6157_v10 = vld [vmem:[#allocation15 + $0x618] sm:$0xff]  ;;  %v11634_v58 = vcombine.high %v6029_v50, %v6033_v4 }
 0x664   :  { %v6161_v14 = vld [vmem:[#allocation15 + $0x638] sm:$0xff] }
 0x665   :  { %7803 = vmatpush2.bf16.msra.mxu0 %v11689_v48  ;;  %v11762_v60 = vcombine.high %v6157_v10, %v6161_v14  ;;  %v11633_v48 = vcombine.low %v6029_v50, %v6033_v4  ;;  %v12802_v61 = vld [vmem:[#allocation18 + $0x150] ss:$24 sps:$4 sm:$0xff]   ;;  %v12810_v8 = vld [vmem:[#allocation18 + $0xf4] ss:$24 sps:$4 sm:$0xff]   ;;  %v12835_v50 = vld [vmem:[#allocation18] ss:$24 sps:$4 sm:$0xff]  }
 0x666   :  { %7844 = vmatpush2.bf16.msra.mxu1 %v11817_v22  ;;  %7804 = vmatprep.subr.bf16.mxu0 %v11682_v40  ;;  %v11761_v22 = vcombine.low %v6157_v10, %v6161_v14  ;;  %v12804_v40 = vld [vmem:[#allocation18 + $0x154] ss:$24 sps:$4 sm:$0xff]   ;;  %v12814_v47 = vld [vmem:[#allocation18 + $0x450] ss:$24 sps:$4 sm:$0xff]   ;;  %v12856_v10 = vld [vmem:[#allocation18 + $0x300] ss:$24 sps:$4 sm:$0xff]  }
 0x667   :  { %7845 = vmatprep.subr.bf16.mxu1 %v11810_v1  ;;  %v12816_v1 = vld [vmem:[#allocation18 + $0x454] ss:$24 sps:$4 sm:$0xff]   ;;  %v12808_v46 = vld [vmem:[#allocation18 + $0xf0] ss:$24 sps:$4 sm:$0xff]  }
 0x668   :  { %v12819_v38 = vld [vmem:[#allocation18 + $0x94] ss:$24 sps:$4 sm:$0xff]  }
 0x669   :  { %7805 = vmatpush2.bf16.msra.mxu0 %v11681_v39  ;;  %v6227_v39 = vrot.slane %v14025_v62, %v13857_v25  ;;  %v12840_v41 = vld [vmem:[#allocation18 + $0x394] ss:$24 sps:$4 sm:$0xff]  }
 0x66a   :  { %7846 = vmatpush2.bf16.msra.mxu1 %v11809_v0  ;;  %7806 = vmatprep.subr.bf16.mxu0 %v11674_v63  ;;  %v12822_v0 = vld [vmem:[#allocation18 + $0x424] ss:$24 sps:$4 sm:$0xff]   ;;  %v12831_v55 = vld [vmem:[#allocation18 + $0x34] ss:$24 sps:$4 sm:$0xff]  }
 0x66b   :  { %7847 = vmatprep.subr.bf16.mxu1 %v11802_v2  ;;  %v12852_v7 = vld [vmem:[#allocation18 + $0x334] ss:$24 sps:$4 sm:$0xff]  }
 0x66c   :  { %v12843_v4 = vld [vmem:[#allocation18 + $0x2d4] ss:$24 sps:$4 sm:$0xff]  }
 0x66d   :  { %7807 = vmatpush2.bf16.msra.mxu0 %v11673_v9  ;;  %v12820_v9 = vld [vmem:[#allocation18 + $0x420] ss:$24 sps:$4 sm:$0xff]   ;;  %v12864_v14 = vld [vmem:[#allocation18 + $0x5d4] ss:$24 sps:$4 sm:$0xff]  }
 0x66e   :  { %7848 = vmatpush2.bf16.msra.mxu1 %v11801_v12  ;;  %7808 = vmatprep.subr.bf16.mxu0 %v11666_v15  ;;  %v12828_v15 = vld [vmem:[#allocation18 + $0x3f4] ss:$24 sps:$4 sm:$0xff]  }
 0x66f   :  { %7849 = vmatprep.subr.bf16.mxu1 %v11794_v18 }
 0x671   :  { %7809 = vmatpush2.bf16.msra.mxu0 %v11665_v32  ;;  %v12826_v32 = vld [vmem:[#allocation18 + $0x3f0] ss:$24 sps:$4 sm:$0xff]  }
 0x672   :  { %7850 = vmatpush2.bf16.msra.mxu1 %v11793_v34  ;;  %7810 = vmatprep.subr.bf16.mxu0 %v11658_v35  ;;  %v12834_v35 = vld [vmem:[#allocation18 + $0x3c4] ss:$24 sps:$4 sm:$0xff]  }
 0x673   :  { %7851 = vmatprep.subr.bf16.mxu1 %v11786_v37 }
 0x675   :  { %7811 = vmatpush2.bf16.msra.mxu0 %v11657_v5  ;;  %v12817_v5 = vld [vmem:[#allocation18 + $0x90] ss:$24 sps:$4 sm:$0xff]  }
 0x676   :  { %7852 = vmatpush2.bf16.msra.mxu1 %v11785_v42  ;;  %7812 = vmatprep.subr.bf16.mxu0 %v11650_v45  ;;  %v12825_v42 = vld [vmem:[#allocation18 + $0x64] ss:$24 sps:$4 sm:$0xff]   ;;  %v12838_v45 = vld [vmem:[#allocation18 + $0x390] ss:$24 sps:$4 sm:$0xff]  }
 0x677   :  { %7853 = vmatprep.subr.bf16.mxu1 %v11778_v54  ;;  %v12846_v54 = vld [vmem:[#allocation18 + $0x364] ss:$24 sps:$4 sm:$0xff]  }
 0x679   :  { %7813 = vmatpush2.bf16.msra.mxu0 %v11649_v43  ;;  %v12829_v43 = vld [vmem:[#allocation18 + $0x30] ss:$24 sps:$4 sm:$0xff]  }
 0x67a   :  { %7854 = vmatpush2.bf16.msra.mxu1 %v11777_v51  ;;  %7814 = vmatprep.subr.bf16.mxu0 %v11642_v27  ;;  %v12837_v51 = vld [vmem:[#allocation18 + $0x4] ss:$24 sps:$4 sm:$0xff]   ;;  %v12850_v27 = vld [vmem:[#allocation18 + $0x330] ss:$24 sps:$4 sm:$0xff]  }
 0x67b   :  { %7855 = vmatprep.subr.bf16.mxu1 %v11770_v6  ;;  %v12858_v6 = vld [vmem:[#allocation18 + $0x304] ss:$24 sps:$4 sm:$0xff]  }
 0x67d   :  { %7815 = vmatpush2.bf16.msra.mxu0 %v11641_v21  ;;  %v12841_v21 = vld [vmem:[#allocation18 + $0x2d0] ss:$24 sps:$4 sm:$0xff]  }
 0x67e   :  { %7856 = vmatpush2.bf16.msra.mxu1 %v11769_v56  ;;  %7816 = vmatprep.subr.bf16.mxu0 %v11634_v58  ;;  %v12849_v56 = vld [vmem:[#allocation18 + $0x2a4] ss:$24 sps:$4 sm:$0xff]   ;;  %v12862_v58 = vld [vmem:[#allocation18 + $0x5d0] ss:$24 sps:$4 sm:$0xff]  }
 0x67f   :  { %7857 = vmatprep.subr.bf16.mxu1 %v11762_v60  ;;  %v12870_v60 = vld [vmem:[#allocation18 + $0x5a4] ss:$24 sps:$4 sm:$0xff]  }
 0x681   :  { %7817 = vmatpush2.bf16.msra.mxu0 %v11633_v48  ;;  %v12847_v48 = vld [vmem:[#allocation18 + $0x2a0] ss:$24 sps:$4 sm:$0xff]  }
 0x682   :  { %7858 = vmatpush2.bf16.msra.mxu1 %v11761_v22  ;;  %10220 = vmatprep.subr.bf16.mxu0 %v12804_v40  ;;  %v12855_v22 = vld [vmem:[#allocation18 + $0x274] ss:$24 sps:$4 sm:$0xff]   ;;  %v12868_v40 = vld [vmem:[#allocation18 + $0x5a0] ss:$24 sps:$4 sm:$0xff]  }
 0x683   :  { %10261 = vmatprep.subr.bf16.mxu1 %v12816_v1  ;;  %v12876_v1 = vld [vmem:[#allocation18 + $0x574] ss:$24 sps:$4 sm:$0xff]  }
 0x684   :  { %7819 = vmatmul.mubr.bf16.vlgmr.msra.gmra.mxu0 %v14007_v33  ;;  %v14030_v63 = vpop.f32.mrf.mxu0  ;;  %v14032_v2 = vpop.f32.mrf.mxu1 }
 0x685   :  { %7860 = vmatmul.mubr.bf16.vlgmr.msra.gmra.mxu1 %v14009_v3  ;;  %10221 = vmatpush1.bf16.msra.mxu0 %v12802_v61  ;;  %v12813_v3 = vld [vmem:[#allocation18 + $0xc4] ss:$24 sps:$4 sm:$0xff]   ;;  %v12853_v61 = vld [vmem:[#allocation18 + $0x270] ss:$24 sps:$4 sm:$0xff]  }
 0x686   :  { %v7576_v59 = vpop.f32.mrf.mxu0  ;;  %v7617_v11 = vpop.f32.mrf.mxu1  ;;  %10222 = vmatprep.subr.bf16.mxu0 %v12807_v52  ;;  %10262 = vmatpush1.bf16.msra.mxu1 %v12814_v47  ;;  %v12861_v52 = vld [vmem:[#allocation18 + $0x244] ss:$24 sps:$4 sm:$0xff]   ;;  %v12874_v47 = vld [vmem:[#allocation18 + $0x570] ss:$24 sps:$4 sm:$0xff]  }
 0x687   :  { %v7577_v12 = vadd.f32 %v7576_v59, %v6227_v39  ;;  %10263 = vmatprep.subr.bf16.mxu1 %v12822_v0  ;;  %v12882_v39 = vld [vmem:[#allocation18 + $0x544] ss:$24 sps:$4 sm:$0xff]   ;;  %v12859_v0 = vld [vmem:[#allocation18 + $0x240] ss:$24 sps:$4 sm:$0xff]  }
 0x688   :  { %v7578_v18 = vpop.f32.mrf.mxu0  ;;  %v7619_v26 = vpop.f32.mrf.mxu1  ;;  %v12880_v59 = vld [vmem:[#allocation18 + $0x540] ss:$24 sps:$4 sm:$0xff]  }
 0x689   :  { %v7618_v33 = vadd.f32 %v7617_v11, %v7577_v12  ;;  %10223 = vmatpush1.bf16.msra.mxu0 %v12805_v13  ;;  %v12867_v13 = vld [vmem:[#allocation18 + $0x214] ss:$24 sps:$4 sm:$0xff]   ;;  %v12873_v12 = vld [vmem:[#allocation18 + $0x1e4] ss:$24 sps:$4 sm:$0xff]   ;;  %v12871_v26 = vld [vmem:[#allocation18 + $0x1e0] ss:$24 sps:$4 sm:$0xff]  }
 0x68a   :  { %v7579_v29 = vpop.f32.mrf.mxu0  ;;  %v7620_v31 = vpop.f32.mrf.mxu1  ;;  %10224 = vmatprep.subr.bf16.mxu0 %v12810_v8  ;;  %10264 = vmatpush1.bf16.msra.mxu1 %v12820_v9  ;;  %v12888_v11 = vld [vmem:[#allocation18 + $0x514] ss:$24 sps:$4 sm:$0xff]   ;;  %v12865_v8 = vld [vmem:[#allocation18 + $0x210] ss:$24 sps:$4 sm:$0xff]   ;;  %v6223_v9 = vrot.slane %v14025_v62, %v13854_v17  ;;  %v12891_v18 = vld [vmem:[#allocation18 + $0x4e4] ss:$24 sps:$4 sm:$0xff]  }
 0x68b   :  { %v7869_v34 = vmax.f32 %v7618_v33, 0.0  ;;  %10265 = vmatprep.subr.bf16.mxu1 %v12828_v15  ;;  %v12886_v15 = vld [vmem:[#allocation18 + $0x510] ss:$24 sps:$4 sm:$0xff]   ;;  %v12889_v29 = vld [vmem:[#allocation18 + $0x4e0] ss:$24 sps:$4 sm:$0xff]  }
 0x68c   :  { %v7575_v33 = vadd.f32 %v14030_v63, %v6223_v9  ;;  %v12894_v31 = vld [vmem:[#allocation18 + $0x4b4] ss:$24 sps:$4 sm:$0xff]   ;;  %v12895_v63 = vld [vmem:[#allocation18 + $0x480] ss:$24 sps:$4 sm:$0xff]  }
 0x68d   :  { %v14035_v37 = vpack.c.bf16 %v7869_v34, %v7869_v34  ;;  %10225 = vmatpush1.bf16.msra.mxu0 %v12808_v46  ;;  %v12879_v46 = vld [vmem:[#allocation18 + $0x1b4] ss:$24 sps:$4 sm:$0xff]   ;;  %v12885_v34 = vld [vmem:[#allocation18 + $0x184] ss:$24 sps:$4 sm:$0xff]   ;;  %v12913_v9 = vld [vmem:[#allocation18 + $0x660] ss:$24 sps:$4 sm:$0xff]  }
 0x68e   :  { %10226 = vmatprep.subr.bf16.mxu0 %v12813_v3  ;;  %10266 = vmatpush1.bf16.msra.mxu1 %v12826_v32  ;;  %v12877_v3 = vld [vmem:[#allocation18 + $0x1b0] ss:$24 sps:$4 sm:$0xff]   ;;  %v7616_v32 = vadd.f32 %v14032_v2, %v7575_v33  ;;  %v12964_v33 = vld [vmem:[#allocation18 + $0x9c0] ss:$24 sps:$4 sm:$0xff]  }
 0x68f   :  { %10252 = vmatprep.mubr.bf16.mxu0 %v14035_v37  ;;  %10267 = vmatprep.subr.bf16.mxu1 %v12834_v35  ;;  %v12892_v35 = vld [vmem:[#allocation18 + $0x4b0] ss:$24 sps:$4 sm:$0xff]  }
 0x690   :  { %v12898_v2 = vld [vmem:[#allocation18 + $0x750] ss:$24 sps:$4 sm:$0xff]  }
 0x691   :  { %10227 = vmatpush1.bf16.msra.mxu0 %v12811_v20  ;;  %v12897_v20 = vld [vmem:[#allocation18 + $0x484] ss:$24 sps:$4 sm:$0xff]  }
 0x692   :  { %10228 = vmatprep.subr.bf16.mxu0 %v12819_v38  ;;  %10268 = vmatpush1.bf16.msra.mxu1 %v12832_v16  ;;  %v12883_v38 = vld [vmem:[#allocation18 + $0x180] ss:$24 sps:$4 sm:$0xff]   ;;  %v7868_v16 = vmax.f32 %v7616_v32, 0.0  ;;  %v12924_v32 = vld [vmem:[#allocation18 + $0x8d4] ss:$24 sps:$4 sm:$0xff]  }
 0x693   :  { %10269 = vmatprep.subr.bf16.mxu1 %v12840_v41  ;;  %v12900_v41 = vld [vmem:[#allocation18 + $0x754] ss:$24 sps:$4 sm:$0xff]  }
 0x695   :  { %10229 = vmatpush1.bf16.msra.mxu0 %v12817_v5  ;;  %v12948_v5 = vld [vmem:[#allocation18 + $0xa54] ss:$24 sps:$4 sm:$0xff]  }
 0x696   :  { %10230 = vmatprep.subr.bf16.mxu0 %v12825_v42  ;;  %10270 = vmatpush1.bf16.msra.mxu1 %v12838_v45  ;;  %v6231_v42 = vrot.slane %v14025_v62, %v13905_v57  ;;  %v14044_v45 = vpack.c.bf16 %v7868_v16, %v7868_v16  ;;  %v12984_v16 = vld [vmem:[#allocation18 + $0x934] ss:$24 sps:$4 sm:$0xff]  }
 0x697   :  { %10271 = vmatprep.subr.bf16.mxu1 %v12846_v54  ;;  %v12903_v54 = vld [vmem:[#allocation18 + $0x724] ss:$24 sps:$4 sm:$0xff]  }
 0x699   :  { %10231 = vmatpush1.bf16.msra.mxu0 %v12823_v49  ;;  %v6235_v49 = vrot.slane %v14025_v62, %v13885_v28 }
 0x69a   :  { %10232 = vmatprep.subr.bf16.mxu0 %v12831_v55  ;;  %10272 = vmatpush1.bf16.msra.mxu1 %v12844_v36 }
 0x69b   :  { %10273 = vmatprep.subr.bf16.mxu1 %v12852_v7 }
 0x69d   :  { %10233 = vmatpush1.bf16.msra.mxu0 %v12829_v43  ;;  %v12901_v43 = vld [vmem:[#allocation18 + $0x720] ss:$24 sps:$4 sm:$0xff]  }
 0x69e   :  { %10234 = vmatprep.subr.bf16.mxu0 %v12837_v51  ;;  %10274 = vmatpush1.bf16.msra.mxu1 %v12850_v27 }
 0x69f   :  { %10275 = vmatprep.subr.bf16.mxu1 %v12858_v6  ;;  %v12906_v6 = vld [vmem:[#allocation18 + $0x6f4] ss:$24 sps:$4 sm:$0xff]  }
 0x6a1   :  { %10235 = vmatpush1.bf16.msra.mxu0 %v12835_v50 }
 0x6a2   :  { %10236 = vmatprep.subr.bf16.mxu0 %v12843_v4  ;;  %10276 = vmatpush1.bf16.msra.mxu1 %v12856_v10 }
 0x6a3   :  { %10277 = vmatprep.subr.bf16.mxu1 %v12864_v14 }
 0x6a5   :  { %10237 = vmatpush2.bf16.msra.mxu0 %v12841_v21 }
 0x6a6   :  { %10238 = vmatprep.subr.bf16.mxu0 %v12849_v56  ;;  %10278 = vmatpush2.bf16.msra.mxu1 %v12862_v58  ;;  %v12904_v56 = vld [vmem:[#allocation18 + $0x6f0] ss:$24 sps:$4 sm:$0xff]  }
 0x6a7   :  { %10279 = vmatprep.subr.bf16.mxu1 %v12870_v60 }
 0x6a9   :  { %10239 = vmatpush2.bf16.msra.mxu0 %v12847_v48 }
 0x6aa   :  { %10240 = vmatprep.subr.bf16.mxu0 %v12855_v22  ;;  %10280 = vmatpush2.bf16.msra.mxu1 %v12868_v40  ;;  %v12909_v22 = vld [vmem:[#allocation18 + $0x6c4] ss:$24 sps:$4 sm:$0xff]  }
 0x6ab   :  { %10281 = vmatprep.subr.bf16.mxu1 %v12876_v1 }
 0x6ad   :  { %10241 = vmatpush2.bf16.msra.mxu0 %v12853_v61  ;;  %v12907_v61 = vld [vmem:[#allocation18 + $0x6c0] ss:$24 sps:$4 sm:$0xff]  }
 0x6ae   :  { %10242 = vmatprep.subr.bf16.mxu0 %v12861_v52  ;;  %10282 = vmatpush2.bf16.msra.mxu1 %v12874_v47  ;;  %v12946_v52 = vld [vmem:[#allocation18 + $0xa50] ss:$24 sps:$4 sm:$0xff]  }
 0x6af   :  { %10283 = vmatprep.subr.bf16.mxu1 %v12882_v39  ;;  %v12912_v39 = vld [vmem:[#allocation18 + $0x694] ss:$24 sps:$4 sm:$0xff]  }
 0x6b1   :  { %10243 = vmatpush2.bf16.msra.mxu0 %v12859_v0  ;;  %v12954_v0 = vld [vmem:[#allocation18 + $0xa24] ss:$24 sps:$4 sm:$0xff]  }
 0x6b2   :  { %10244 = vmatprep.subr.bf16.mxu0 %v12867_v13  ;;  %10284 = vmatpush2.bf16.msra.mxu1 %v12880_v59  ;;  %v12910_v13 = vld [vmem:[#allocation18 + $0x690] ss:$24 sps:$4 sm:$0xff]   ;;  %v12952_v59 = vld [vmem:[#allocation18 + $0xa20] ss:$24 sps:$4 sm:$0xff]  }
 0x6b3   :  { %10285 = vmatprep.subr.bf16.mxu1 %v12888_v11  ;;  %v12915_v11 = vld [vmem:[#allocation18 + $0x664] ss:$24 sps:$4 sm:$0xff]  }
 0x6b5   :  { %10245 = vmatpush2.bf16.msra.mxu0 %v12865_v8  ;;  %v12960_v8 = vld [vmem:[#allocation18 + $0x9f4] ss:$24 sps:$4 sm:$0xff]  }
 0x6b6   :  { %10246 = vmatprep.subr.bf16.mxu0 %v12873_v12  ;;  %10286 = vmatpush2.bf16.msra.mxu1 %v12886_v15  ;;  %v12958_v12 = vld [vmem:[#allocation18 + $0x9f0] ss:$24 sps:$4 sm:$0xff]   ;;  %v12918_v15 = vld [vmem:[#allocation18 + $0x634] ss:$24 sps:$4 sm:$0xff]  }
 0x6b7   :  { %10287 = vmatprep.subr.bf16.mxu1 %v12891_v18  ;;  %v12966_v18 = vld [vmem:[#allocation18 + $0x9c4] ss:$24 sps:$4 sm:$0xff]  }
 0x6b9   :  { %10247 = vmatpush2.bf16.msra.mxu0 %v12871_v26  ;;  %v12916_v26 = vld [vmem:[#allocation18 + $0x630] ss:$24 sps:$4 sm:$0xff]  }
 0x6ba   :  { %10248 = vmatprep.subr.bf16.mxu0 %v12879_v46  ;;  %10288 = vmatpush2.bf16.msra.mxu1 %v12889_v29  ;;  %v12921_v46 = vld [vmem:[#allocation18 + $0x604] ss:$24 sps:$4 sm:$0xff]   ;;  %v12972_v29 = vld [vmem:[#allocation18 + $0x994] ss:$24 sps:$4 sm:$0xff]  }
 0x6bb   :  { %10289 = vmatprep.subr.bf16.mxu1 %v12894_v31  ;;  %v12919_v31 = vld [vmem:[#allocation18 + $0x600] ss:$24 sps:$4 sm:$0xff]  }
 0x6bd   :  { %10249 = vmatpush2.bf16.msra.mxu0 %v12877_v3  ;;  %v12970_v3 = vld [vmem:[#allocation18 + $0x990] ss:$24 sps:$4 sm:$0xff]  }
 0x6be   :  { %10250 = vmatprep.subr.bf16.mxu0 %v12885_v34  ;;  %10290 = vmatpush2.bf16.msra.mxu1 %v12892_v35  ;;  %v12978_v34 = vld [vmem:[#allocation18 + $0x964] ss:$24 sps:$4 sm:$0xff]   ;;  %v12922_v35 = vld [vmem:[#allocation18 + $0x8d0] ss:$24 sps:$4 sm:$0xff]  }
 0x6bf   :  { %10291 = vmatprep.subr.bf16.mxu1 %v12897_v20  ;;  %v12976_v20 = vld [vmem:[#allocation18 + $0x960] ss:$24 sps:$4 sm:$0xff]  }
 0x6c1   :  { %10251 = vmatpush2.bf16.msra.mxu0 %v12883_v38  ;;  %v12927_v38 = vld [vmem:[#allocation18 + $0x8a4] ss:$24 sps:$4 sm:$0xff]  }
 0x6c2   :  { %10292 = vmatpush2.bf16.msra.mxu1 %v12895_v63  ;;  %10302 = vmatprep.subr.bf16.mxu0 %v12900_v41  ;;  %v12925_v63 = vld [vmem:[#allocation18 + $0x8a0] ss:$24 sps:$4 sm:$0xff]   ;;  %v12982_v41 = vld [vmem:[#allocation18 + $0x930] ss:$24 sps:$4 sm:$0xff]  }
 0x6c3   :  { %10343 = vmatprep.subr.bf16.mxu1 %v12948_v5  ;;  %v12930_v5 = vld [vmem:[#allocation18 + $0x874] ss:$24 sps:$4 sm:$0xff]  }
 0x6c4   :  { %v7656_v55 = vpop.f32.mrf.mxu0  ;;  %v7697_v36 = vpop.f32.mrf.mxu1  ;;  %10253 = vmatmul.mubr.bf16.vlgmr.msra.gmra.mxu0 %v14044_v45 }
 0x6c5   :  { %v7657_v7 = vadd.f32 %v7656_v55, %v6231_v42  ;;  %10303 = vmatpush1.bf16.msra.mxu0 %v12898_v2  ;;  %v12990_v42 = vld [vmem:[#allocation18 + $0x904] ss:$24 sps:$4 sm:$0xff]   ;;  %v12928_v2 = vld [vmem:[#allocation18 + $0x870] ss:$24 sps:$4 sm:$0xff]   ;;  %v12996_v55 = vld [vmem:[#allocation18 + $0xbd4] ss:$24 sps:$4 sm:$0xff]  }
 0x6c6   :  { %v7658_v51 = vpop.f32.mrf.mxu0  ;;  %v7699_v27 = vpop.f32.mrf.mxu1  ;;  %10304 = vmatprep.subr.bf16.mxu0 %v12903_v54  ;;  %v12988_v54 = vld [vmem:[#allocation18 + $0x900] ss:$24 sps:$4 sm:$0xff]  }
 0x6c7   :  { %v7698_v50 = vadd.f32 %v7697_v36, %v7657_v7  ;;  %v7659_v4 = vadd.f32 %v7658_v51, %v6235_v49  ;;  %v12933_v49 = vld [vmem:[#allocation18 + $0x844] ss:$24 sps:$4 sm:$0xff]   ;;  %v12931_v36 = vld [vmem:[#allocation18 + $0x840] ss:$24 sps:$4 sm:$0xff]   ;;  %v12994_v7 = vld [vmem:[#allocation18 + $0xbd0] ss:$24 sps:$4 sm:$0xff]  }
 0x6c8   :  { %v7660_v10 = vpop.f32.mrf.mxu0  ;;  %v7701_v14 = vpop.f32.mrf.mxu1  ;;  %v13002_v51 = vld [vmem:[#allocation18 + $0xba4] ss:$24 sps:$4 sm:$0xff]  }
 0x6c9   :  { %v7700_v21 = vadd.f32 %v7699_v27, %v7659_v4  ;;  %10305 = vmatpush1.bf16.msra.mxu0 %v12901_v43  ;;  %v7870_v58 = vmax.f32 %v7698_v50, 0.0  ;;  %v12936_v43 = vld [vmem:[#allocation18 + $0x814] ss:$24 sps:$4 sm:$0xff]   ;;  %v12934_v27 = vld [vmem:[#allocation18 + $0x810] ss:$24 sps:$4 sm:$0xff]  }
 0x6ca   :  { %v7661_v60 = vpop.f32.mrf.mxu0  ;;  %v7702_v48 = vpop.f32.mrf.mxu1  ;;  %10306 = vmatprep.subr.bf16.mxu0 %v12906_v6  ;;  %v13000_v6 = vld [vmem:[#allocation18 + $0xba0] ss:$24 sps:$4 sm:$0xff]   ;;  %v12939_v50 = vld [vmem:[#allocation18 + $0x7e4] ss:$24 sps:$4 sm:$0xff]   ;;  %v13008_v4 = vld [vmem:[#allocation18 + $0xb74] ss:$24 sps:$4 sm:$0xff]  }
 0x6cb   :  { %v7871_v40 = vmax.f32 %v7700_v21, 0.0  ;;  %v14051_v47 = vpack.c.bf16 %v7870_v58, %v7870_v58  ;;  %v12937_v10 = vld [vmem:[#allocation18 + $0x7e0] ss:$24 sps:$4 sm:$0xff]   ;;  %v13006_v14 = vld [vmem:[#allocation18 + $0xb70] ss:$24 sps:$4 sm:$0xff]  }
 0x6cc   :  { %v12942_v21 = vld [vmem:[#allocation18 + $0x7b4] ss:$24 sps:$4 sm:$0xff]   ;;  %v12940_v58 = vld [vmem:[#allocation18 + $0x7b0] ss:$24 sps:$4 sm:$0xff]   ;;  %v13012_v60 = vld [vmem:[#allocation18 + $0xb40] ss:$24 sps:$4 sm:$0xff]  }
 0x6cd   :  { %v14049_v1 = vpack.c.bf16 %v7871_v40, %v7871_v40  ;;  %10307 = vmatpush1.bf16.msra.mxu0 %v12904_v56  ;;  %v13014_v56 = vld [vmem:[#allocation18 + $0xb44] ss:$24 sps:$4 sm:$0xff]   ;;  %v12943_v40 = vld [vmem:[#allocation18 + $0x780] ss:$24 sps:$4 sm:$0xff]  }
 0x6ce   :  { %10308 = vmatprep.subr.bf16.mxu0 %v12909_v22  ;;  %v12945_v48 = vld [vmem:[#allocation18 + $0x784] ss:$24 sps:$4 sm:$0xff]   ;;  %v13020_v22 = vld [vmem:[#allocation18 + $0xb14] ss:$24 sps:$4 sm:$0xff]  }
 0x6cf   :  { %10293 = vmatprep.mubr.bf16.mxu1 %v14049_v1 }
 0x6d0   :  { %10294 = vmatmul.mubr.bf16.vlgmr.msra.gmra.mxu1 %v14051_v47 }
 0x6d1   :  { %10309 = vmatpush1.bf16.msra.mxu0 %v12907_v61  ;;  %10344 = vmatpush1.bf16.msra.mxu1 %v12946_v52  ;;  %v13018_v61 = vld [vmem:[#allocation18 + $0xb10] ss:$24 sps:$4 sm:$0xff]   ;;  %v12951_v52 = vld [vmem:[#allocation18 + $0x15c] ss:$24 sps:$4 sm:$0xff]  }
 0x6d2   :  { %10310 = vmatprep.subr.bf16.mxu0 %v12912_v39  ;;  %10345 = vmatprep.subr.bf16.mxu1 %v12954_v0  ;;  %v13026_v39 = vld [vmem:[#allocation18 + $0xae4] ss:$24 sps:$4 sm:$0xff]   ;;  %v6239_v0 = vrot.slane %v14025_v62, %v13928_v19 }
 0x6d5   :  { %10311 = vmatpush1.bf16.msra.mxu0 %v12910_v13  ;;  %10346 = vmatpush1.bf16.msra.mxu1 %v12952_v59  ;;  %v13024_v13 = vld [vmem:[#allocation18 + $0xae0] ss:$24 sps:$4 sm:$0xff]   ;;  %v13032_v59 = vld [vmem:[#allocation18 + $0xab4] ss:$24 sps:$4 sm:$0xff]  }
 0x6d6   :  { %10312 = vmatprep.subr.bf16.mxu0 %v12915_v11  ;;  %10347 = vmatprep.subr.bf16.mxu1 %v12960_v8  ;;  %v6243_v11 = vrot.slane %v14025_v62, %v13931_v23 }
 0x6d9   :  { %10313 = vmatpush1.bf16.msra.mxu0 %v12913_v9  ;;  %10348 = vmatpush1.bf16.msra.mxu1 %v12958_v12 }
 0x6da   :  { %10314 = vmatprep.subr.bf16.mxu0 %v12918_v15  ;;  %10349 = vmatprep.subr.bf16.mxu1 %v12966_v18  ;;  %v13030_v15 = vld [vmem:[#allocation18 + $0xab0] ss:$24 sps:$4 sm:$0xff]  }
 0x6dd   :  { %10315 = vmatpush1.bf16.msra.mxu0 %v12916_v26  ;;  %10350 = vmatpush1.bf16.msra.mxu1 %v12964_v33  ;;  %v13038_v26 = vld [vmem:[#allocation18 + $0xa84] ss:$24 sps:$4 sm:$0xff]  }
 0x6de   :  { %10316 = vmatprep.subr.bf16.mxu0 %v12921_v46  ;;  %10351 = vmatprep.subr.bf16.mxu1 %v12972_v29 }
 0x6e1   :  { %10317 = vmatpush1.bf16.msra.mxu0 %v12919_v31  ;;  %10352 = vmatpush1.bf16.msra.mxu1 %v12970_v3 }
 0x6e2   :  { %10318 = vmatprep.subr.bf16.mxu0 %v12924_v32  ;;  %10353 = vmatprep.subr.bf16.mxu1 %v12978_v34  ;;  %v13036_v34 = vld [vmem:[#allocation18 + $0xa80] ss:$24 sps:$4 sm:$0xff]  }
 0x6e5   :  { %10319 = vmatpush2.bf16.msra.mxu0 %v12922_v35  ;;  %10354 = vmatpush1.bf16.msra.mxu1 %v12976_v20 }
 0x6e6   :  { %10320 = vmatprep.subr.bf16.mxu0 %v12927_v38  ;;  %10355 = vmatprep.subr.bf16.mxu1 %v12984_v16  ;;  %v13044_v38 = vld [vmem:[#allocation18 + $0x45c] ss:$24 sps:$4 sm:$0xff]  }
 0x6e9   :  { %10321 = vmatpush2.bf16.msra.mxu0 %v12925_v63  ;;  %10356 = vmatpush1.bf16.msra.mxu1 %v12982_v41 }
 0x6ea   :  { %10322 = vmatprep.subr.bf16.mxu0 %v12930_v5  ;;  %10357 = vmatprep.subr.bf16.mxu1 %v12990_v42  ;;  %v12949_v5 = vld [vmem:[#allocation18 + $0x158] ss:$24 sps:$4 sm:$0xff]  }
 0x6ed   :  { %10323 = vmatpush2.bf16.msra.mxu0 %v12928_v2  ;;  %10358 = vmatpush1.bf16.msra.mxu1 %v12988_v54  ;;  %v12957_v2 = vld [vmem:[#allocation18 + $0x12c] ss:$24 sps:$4 sm:$0xff]   ;;  %v12955_v54 = vld [vmem:[#allocation18 + $0x128] ss:$24 sps:$4 sm:$0xff]  }
 0x6ee   :  { %10324 = vmatprep.subr.bf16.mxu0 %v12933_v49  ;;  %10359 = vmatprep.subr.bf16.mxu1 %v12996_v55  ;;  %v12963_v49 = vld [vmem:[#allocation18 + $0xfc] ss:$24 sps:$4 sm:$0xff]   ;;  %v12961_v55 = vld [vmem:[#allocation18 + $0xf8] ss:$24 sps:$4 sm:$0xff]  }
 0x6f1   :  { %10325 = vmatpush2.bf16.msra.mxu0 %v12931_v36  ;;  %10360 = vmatpush2.bf16.msra.mxu1 %v12994_v7  ;;  %v12969_v36 = vld [vmem:[#allocation18 + $0xcc] ss:$24 sps:$4 sm:$0xff]   ;;  %v12967_v7 = vld [vmem:[#allocation18 + $0xc8] ss:$24 sps:$4 sm:$0xff]  }
 0x6f2   :  { %10326 = vmatprep.subr.bf16.mxu0 %v12936_v43  ;;  %10361 = vmatprep.subr.bf16.mxu1 %v13002_v51  ;;  %v12975_v43 = vld [vmem:[#allocation18 + $0x9c] ss:$24 sps:$4 sm:$0xff]   ;;  %v12973_v51 = vld [vmem:[#allocation18 + $0x98] ss:$24 sps:$4 sm:$0xff]  }
 0x6f5   :  { %10327 = vmatpush2.bf16.msra.mxu0 %v12934_v27  ;;  %10362 = vmatpush2.bf16.msra.mxu1 %v13000_v6  ;;  %v12981_v27 = vld [vmem:[#allocation18 + $0x6c] ss:$24 sps:$4 sm:$0xff]   ;;  %v12979_v6 = vld [vmem:[#allocation18 + $0x68] ss:$24 sps:$4 sm:$0xff]  }
 0x6f6   :  { %10328 = vmatprep.subr.bf16.mxu0 %v12939_v50  ;;  %10363 = vmatprep.subr.bf16.mxu1 %v13008_v4  ;;  %v12987_v50 = vld [vmem:[#allocation18 + $0x3c] ss:$24 sps:$4 sm:$0xff]   ;;  %v12985_v4 = vld [vmem:[#allocation18 + $0x38] ss:$24 sps:$4 sm:$0xff]  }
 0x6f9   :  { %10329 = vmatpush2.bf16.msra.mxu0 %v12937_v10  ;;  %10364 = vmatpush2.bf16.msra.mxu1 %v13006_v14  ;;  %v12993_v10 = vld [vmem:[#allocation18 + $0xc] ss:$24 sps:$4 sm:$0xff]   ;;  %v12991_v14 = vld [vmem:[#allocation18 + $0x8] ss:$24 sps:$4 sm:$0xff]  }
 0x6fa   :  { %10330 = vmatprep.subr.bf16.mxu0 %v12942_v21  ;;  %10365 = vmatprep.subr.bf16.mxu1 %v13014_v56  ;;  %v12999_v21 = vld [vmem:[#allocation18 + $0x2dc] ss:$24 sps:$4 sm:$0xff]   ;;  %v12997_v56 = vld [vmem:[#allocation18 + $0x2d8] ss:$24 sps:$4 sm:$0xff]  }
 0x6fd   :  { %10331 = vmatpush2.bf16.msra.mxu0 %v12940_v58  ;;  %10366 = vmatpush2.bf16.msra.mxu1 %v13012_v60  ;;  %v13005_v58 = vld [vmem:[#allocation18 + $0x2ac] ss:$24 sps:$4 sm:$0xff]   ;;  %v13003_v60 = vld [vmem:[#allocation18 + $0x2a8] ss:$24 sps:$4 sm:$0xff]  }
 0x6fe   :  { %10332 = vmatprep.subr.bf16.mxu0 %v12945_v48  ;;  %10367 = vmatprep.subr.bf16.mxu1 %v13020_v22  ;;  %v13011_v48 = vld [vmem:[#allocation18 + $0x27c] ss:$24 sps:$4 sm:$0xff]   ;;  %v13009_v22 = vld [vmem:[#allocation18 + $0x278] ss:$24 sps:$4 sm:$0xff]  }
 0x701   :  { %10333 = vmatpush2.bf16.msra.mxu0 %v12943_v40  ;;  %10368 = vmatpush2.bf16.msra.mxu1 %v13018_v61  ;;  %v13017_v40 = vld [vmem:[#allocation18 + $0x24c] ss:$24 sps:$4 sm:$0xff]   ;;  %v13015_v61 = vld [vmem:[#allocation18 + $0x248] ss:$24 sps:$4 sm:$0xff]  }
 0x702   :  { %10384 = vmatprep.subr.bf16.mxu0 %v12951_v52  ;;  %10369 = vmatprep.subr.bf16.mxu1 %v13026_v39  ;;  %v13023_v52 = vld [vmem:[#allocation18 + $0x21c] ss:$24 sps:$4 sm:$0xff]   ;;  %v13021_v39 = vld [vmem:[#allocation18 + $0x218] ss:$24 sps:$4 sm:$0xff]  }
 0x704   :  { %v7738_v8 = vpop.f32.mrf.mxu0 }
 0x705   :  { %v7739_v9 = vadd.f32 %v7738_v8, %v6239_v0  ;;  %v7779_v12 = vpop.f32.mrf.mxu1  ;;  %10370 = vmatpush2.bf16.msra.mxu1 %v13024_v13  ;;  %v13029_v0 = vld [vmem:[#allocation18 + $0x1ec] ss:$24 sps:$4 sm:$0xff]   ;;  %v13027_v13 = vld [vmem:[#allocation18 + $0x1e8] ss:$24 sps:$4 sm:$0xff]   ;;  %v6251_v8 = vrot.slane %v14025_v62, %v652_v30  ;;  %v13047_v30 = vld [vmem:[#allocation18 + $0x75c] ss:$24 sps:$4 sm:$0xff]  }
 0x706   :  { %v7740_v18 = vpop.f32.mrf.mxu0  ;;  %10371 = vmatprep.subr.bf16.mxu1 %v13032_v59  ;;  %v6247_v59 = vrot.slane %v14025_v62, %v648_v24 }
 0x707   :  { %v7780_v33 = vadd.f32 %v7779_v12, %v7739_v9  ;;  %v7741_v46 = vadd.f32 %v7740_v18, %v6243_v11  ;;  %v7781_v29 = vpop.f32.mrf.mxu1  ;;  %v13035_v11 = vld [vmem:[#allocation18 + $0x1bc] ss:$24 sps:$4 sm:$0xff]   ;;  %v13033_v18 = vld [vmem:[#allocation18 + $0x1b8] ss:$24 sps:$4 sm:$0xff]  }
 0x708   :  { %v7742_v31 = vpop.f32.mrf.mxu0 }
 0x709   :  { %v7782_v3 = vadd.f32 %v7781_v29, %v7741_v46  ;;  %v7783_v32 = vpop.f32.mrf.mxu1  ;;  %10372 = vmatpush2.bf16.msra.mxu1 %v13030_v15  ;;  %v7872_v35 = vmax.f32 %v7780_v33, 0.0  ;;  %v13041_v33 = vld [vmem:[#allocation18 + $0x18c] ss:$24 sps:$4 sm:$0xff]  }
 0x70a   :  { %v7743_v20 = vpop.f32.mrf.mxu0  ;;  %10373 = vmatprep.subr.bf16.mxu1 %v13038_v26 }
 0x70b   :  { %v7873_v16 = vmax.f32 %v7782_v3, 0.0  ;;  %v7784_v63 = vpop.f32.mrf.mxu1  ;;  %v14061_v42 = vpack.c.bf16 %v7872_v35, %v7872_v35 }
 0x70c   :  { %v13045_v63 = vld [vmem:[#allocation18 + $0x758] ss:$24 sps:$4 sm:$0xff]  }
 0x70d   :  { %v14059_v41 = vpack.c.bf16 %v7873_v16, %v7873_v16  ;;  %10374 = vmatpush2.bf16.msra.mxu1 %v13036_v34  ;;  %v13039_v34 = vld [vmem:[#allocation18 + $0x188] ss:$24 sps:$4 sm:$0xff]   ;;  %v13042_v16 = vld [vmem:[#allocation18 + $0x458] ss:$24 sps:$4 sm:$0xff]  }
 0x70e   :  { %10425 = vmatprep.subr.bf16.mxu1 %v13044_v38 }
 0x70f   :  { %10334 = vmatprep.mubr.bf16.mxu0 %v14059_v41 }
 0x710   :  { %10335 = vmatmul.mubr.bf16.vlgmr.msra.gmra.mxu0 %v14061_v42 }
 0x711   :  { %10385 = vmatpush1.bf16.msra.mxu0 %v12949_v5  ;;  %10416 = vmatprep.mubr.bf16.mxu0 %v14035_v37 }
 0x712   :  { %10386 = vmatprep.subr.bf16.mxu0 %v12957_v2  ;;  %v13050_v2 = vld [vmem:[#allocation18 + $0x42c] ss:$24 sps:$4 sm:$0xff]  }
 0x715   :  { %10387 = vmatpush1.bf16.msra.mxu0 %v12955_v54  ;;  %v13053_v54 = vld [vmem:[#allocation18 + $0x72c] ss:$24 sps:$4 sm:$0xff]  }
 0x716   :  { %10388 = vmatprep.subr.bf16.mxu0 %v12963_v49  ;;  %v13048_v49 = vld [vmem:[#allocation18 + $0x428] ss:$24 sps:$4 sm:$0xff]  }
 0x719   :  { %10389 = vmatpush1.bf16.msra.mxu0 %v12961_v55  ;;  %v13051_v55 = vld [vmem:[#allocation18 + $0x728] ss:$24 sps:$4 sm:$0xff]  }
 0x71a   :  { %10390 = vmatprep.subr.bf16.mxu0 %v12969_v36  ;;  %v13056_v36 = vld [vmem:[#allocation18 + $0x3fc] ss:$24 sps:$4 sm:$0xff]  }
 0x71d   :  { %10391 = vmatpush1.bf16.msra.mxu0 %v12967_v7  ;;  %v13059_v7 = vld [vmem:[#allocation18 + $0x6fc] ss:$24 sps:$4 sm:$0xff]  }
 0x71e   :  { %10392 = vmatprep.subr.bf16.mxu0 %v12975_v43  ;;  %v13054_v43 = vld [vmem:[#allocation18 + $0x3f8] ss:$24 sps:$4 sm:$0xff]  }
 0x721   :  { %10393 = vmatpush1.bf16.msra.mxu0 %v12973_v51  ;;  %v13057_v51 = vld [vmem:[#allocation18 + $0x6f8] ss:$24 sps:$4 sm:$0xff]  }
 0x722   :  { %10394 = vmatprep.subr.bf16.mxu0 %v12981_v27  ;;  %v13062_v27 = vld [vmem:[#allocation18 + $0x3cc] ss:$24 sps:$4 sm:$0xff]  }
 0x725   :  { %10395 = vmatpush1.bf16.msra.mxu0 %v12979_v6  ;;  %v13065_v6 = vld [vmem:[#allocation18 + $0x6cc] ss:$24 sps:$4 sm:$0xff]  }
 0x726   :  { %10396 = vmatprep.subr.bf16.mxu0 %v12987_v50  ;;  %v13060_v50 = vld [vmem:[#allocation18 + $0x3c8] ss:$24 sps:$4 sm:$0xff]  }
 0x729   :  { %10397 = vmatpush1.bf16.msra.mxu0 %v12985_v4  ;;  %v13063_v4 = vld [vmem:[#allocation18 + $0x6c8] ss:$24 sps:$4 sm:$0xff]  }
 0x72a   :  { %10398 = vmatprep.subr.bf16.mxu0 %v12993_v10  ;;  %v13068_v10 = vld [vmem:[#allocation18 + $0x39c] ss:$24 sps:$4 sm:$0xff]  }
 0x72d   :  { %10399 = vmatpush1.bf16.msra.mxu0 %v12991_v14  ;;  %v13071_v14 = vld [vmem:[#allocation18 + $0x69c] ss:$24 sps:$4 sm:$0xff]  }
 0x72e   :  { %10400 = vmatprep.subr.bf16.mxu0 %v12999_v21  ;;  %v13066_v21 = vld [vmem:[#allocation18 + $0x398] ss:$24 sps:$4 sm:$0xff]  }
 0x731   :  { %10401 = vmatpush2.bf16.msra.mxu0 %v12997_v56  ;;  %v13069_v56 = vld [vmem:[#allocation18 + $0x698] ss:$24 sps:$4 sm:$0xff]  }
 0x732   :  { %10402 = vmatprep.subr.bf16.mxu0 %v13005_v58  ;;  %v13074_v58 = vld [vmem:[#allocation18 + $0x36c] ss:$24 sps:$4 sm:$0xff]  }
 0x735   :  { %10403 = vmatpush2.bf16.msra.mxu0 %v13003_v60  ;;  %v13077_v60 = vld [vmem:[#allocation18 + $0x66c] ss:$24 sps:$4 sm:$0xff]  }
 0x736   :  { %10404 = vmatprep.subr.bf16.mxu0 %v13011_v48  ;;  %v13072_v48 = vld [vmem:[#allocation18 + $0x368] ss:$24 sps:$4 sm:$0xff]  }
 0x739   :  { %10405 = vmatpush2.bf16.msra.mxu0 %v13009_v22  ;;  %v13075_v22 = vld [vmem:[#allocation18 + $0x668] ss:$24 sps:$4 sm:$0xff]  }
 0x73a   :  { %10406 = vmatprep.subr.bf16.mxu0 %v13017_v40  ;;  %v13080_v40 = vld [vmem:[#allocation18 + $0x33c] ss:$24 sps:$4 sm:$0xff]  }
 0x73d   :  { %10407 = vmatpush2.bf16.msra.mxu0 %v13015_v61  ;;  %v13083_v61 = vld [vmem:[#allocation18 + $0x63c] ss:$24 sps:$4 sm:$0xff]  }
 0x73e   :  { %10408 = vmatprep.subr.bf16.mxu0 %v13023_v52  ;;  %v13078_v52 = vld [vmem:[#allocation18 + $0x338] ss:$24 sps:$4 sm:$0xff]  }
 0x741   :  { %10409 = vmatpush2.bf16.msra.mxu0 %v13021_v39  ;;  %v13081_v39 = vld [vmem:[#allocation18 + $0x638] ss:$24 sps:$4 sm:$0xff]  }
 0x742   :  { %10410 = vmatprep.subr.bf16.mxu0 %v13029_v0  ;;  %v13086_v0 = vld [vmem:[#allocation18 + $0x30c] ss:$24 sps:$4 sm:$0xff]  }
 0x744   :  { %v7820_v9 = vpop.f32.mrf.mxu0 }
 0x745   :  { %v7821_v12 = vadd.f32 %v7820_v9, %v6247_v59  ;;  %v7861_v15 = vpop.f32.mrf.mxu1  ;;  %10411 = vmatpush2.bf16.msra.mxu0 %v13027_v13  ;;  %v13089_v13 = vld [vmem:[#allocation18 + $0x60c] ss:$24 sps:$4 sm:$0xff]   ;;  %v13084_v59 = vld [vmem:[#allocation18 + $0x308] ss:$24 sps:$4 sm:$0xff]   ;;  %v13095_v9 = vld [vmem:[#allocation18 + $0x8dc] ss:$24 sps:$4 sm:$0xff]  }
 0x746   :  { %v7822_v26 = vpop.f32.mrf.mxu0  ;;  %10412 = vmatprep.subr.bf16.mxu0 %v13035_v11  ;;  %v13087_v11 = vld [vmem:[#allocation18 + $0x608] ss:$24 sps:$4 sm:$0xff]  }
 0x747   :  { %v7862_v46 = vadd.f32 %v7861_v15, %v7821_v12  ;;  %v7823_v29 = vadd.f32 %v7822_v26, %v6251_v8  ;;  %v7863_v31 = vpop.f32.mrf.mxu1  ;;  %v13092_v8 = vld [vmem:[#allocation18 + $0x5dc] ss:$24 sps:$4 sm:$0xff]   ;;  %v13090_v12 = vld [vmem:[#allocation18 + $0x5d8] ss:$24 sps:$4 sm:$0xff]   ;;  %v13101_v26 = vld [vmem:[#allocation18 + $0x8ac] ss:$24 sps:$4 sm:$0xff]  }
 0x748   :  { %v7824_v3 = vpop.f32.mrf.mxu0  ;;  %v13093_v15 = vld [vmem:[#allocation18 + $0x8d8] ss:$24 sps:$4 sm:$0xff]  }
 0x749   :  { %v7864_v32 = vadd.f32 %v7863_v31, %v7823_v29  ;;  %v7865_v24 = vpop.f32.mrf.mxu1  ;;  %10413 = vmatpush2.bf16.msra.mxu0 %v13033_v18  ;;  %v7874_v35 = vmax.f32 %v7862_v46, 0.0  ;;  %v13098_v18 = vld [vmem:[#allocation18 + $0x5ac] ss:$24 sps:$4 sm:$0xff]   ;;  %v13099_v46 = vld [vmem:[#allocation18 + $0x8a8] ss:$24 sps:$4 sm:$0xff]  }
 0x74a   :  { %v7825_v44 = vpop.f32.mrf.mxu0  ;;  %10414 = vmatprep.subr.bf16.mxu0 %v13041_v33  ;;  %v13096_v33 = vld [vmem:[#allocation18 + $0x5a8] ss:$24 sps:$4 sm:$0xff]   ;;  %v13104_v29 = vld [vmem:[#allocation18 + $0x57c] ss:$24 sps:$4 sm:$0xff]   ;;  %v13102_v3 = vld [vmem:[#allocation18 + $0x578] ss:$24 sps:$4 sm:$0xff]  }
 0x74b   :  { %v7875_v62 = vmax.f32 %v7864_v32, 0.0  ;;  %v7866_v20 = vpop.f32.mrf.mxu1  ;;  %v14074_v5 = vpack.c.bf16 %v7874_v35, %v7874_v35  ;;  %v13107_v31 = vld [vmem:[#allocation18 + $0x87c] ss:$24 sps:$4 sm:$0xff]   ;;  %v13105_v32 = vld [vmem:[#allocation18 + $0x878] ss:$24 sps:$4 sm:$0xff]  }
 0x74c   :  { %v13110_v24 = vld [vmem:[#allocation18 + $0x54c] ss:$24 sps:$4 sm:$0xff]   ;;  %v13108_v35 = vld [vmem:[#allocation18 + $0x548] ss:$24 sps:$4 sm:$0xff]   ;;  %v13114_v20 = vld [vmem:[#allocation18 + $0x518] ss:$24 sps:$4 sm:$0xff]  }
 0x74d   :  { %v14072_v38 = vpack.c.bf16 %v7875_v62, %v7875_v62  ;;  %10415 = vmatpush2.bf16.msra.mxu0 %v13039_v34  ;;  %v13113_v34 = vld [vmem:[#allocation18 + $0x84c] ss:$24 sps:$4 sm:$0xff]   ;;  %v13111_v44 = vld [vmem:[#allocation18 + $0x848] ss:$24 sps:$4 sm:$0xff]   ;;  %v13119_v62 = vld [vmem:[#allocation18 + $0x81c] ss:$24 sps:$4 sm:$0xff]  }
 0x74e   :  { %10466 = vmatprep.subr.bf16.mxu0 %v13047_v30  ;;  %v13116_v30 = vld [vmem:[#allocation18 + $0x51c] ss:$24 sps:$4 sm:$0xff]  }
 0x74f   :  { %10375 = vmatprep.mubr.bf16.mxu1 %v14072_v38 }
 0x750   :  { %10417 = vmatmul.mubr.bf16.vlgmr.msra.gmra.mxu0 %v14044_v45  ;;  %10376 = vmatmul.mubr.bf16.vlgmr.msra.gmra.mxu1 %v14074_v5 }
 0x751   :  { %10426 = vmatpush1.bf16.msra.mxu1 %v13042_v16  ;;  %10467 = vmatpush1.bf16.msra.mxu0 %v13045_v63  ;;  %v13117_v16 = vld [vmem:[#allocation18 + $0x818] ss:$24 sps:$4 sm:$0xff]   ;;  %v13122_v63 = vld [vmem:[#allocation18 + $0x4ec] ss:$24 sps:$4 sm:$0xff]  }
 0x752   :  { %10498 = vmatprep.mubr.bf16.mxu0 %v14059_v41  ;;  %10457 = vmatprep.mubr.bf16.mxu1 %v14049_v1 }
 0x753   :  { %10427 = vmatprep.subr.bf16.mxu1 %v13050_v2  ;;  %10468 = vmatprep.subr.bf16.mxu0 %v13053_v54  ;;  %v13125_v2 = vld [vmem:[#allocation18 + $0x7ec] ss:$24 sps:$4 sm:$0xff]   ;;  %v13120_v54 = vld [vmem:[#allocation18 + $0x4e8] ss:$24 sps:$4 sm:$0xff]  }
 0x755   :  { %10428 = vmatpush1.bf16.msra.mxu1 %v13048_v49  ;;  %10469 = vmatpush1.bf16.msra.mxu0 %v13051_v55  ;;  %v13123_v49 = vld [vmem:[#allocation18 + $0x7e8] ss:$24 sps:$4 sm:$0xff]   ;;  %v13128_v55 = vld [vmem:[#allocation18 + $0x4bc] ss:$24 sps:$4 sm:$0xff]  }
 0x756   :  { %10429 = vmatprep.subr.bf16.mxu1 %v13056_v36  ;;  %10470 = vmatprep.subr.bf16.mxu0 %v13059_v7  ;;  %v13131_v36 = vld [vmem:[#allocation18 + $0x7bc] ss:$24 sps:$4 sm:$0xff]  }
 0x759   :  { %10430 = vmatpush1.bf16.msra.mxu1 %v13054_v43  ;;  %10471 = vmatpush1.bf16.msra.mxu0 %v13057_v51  ;;  %v13126_v43 = vld [vmem:[#allocation18 + $0x4b8] ss:$24 sps:$4 sm:$0xff]  }
 0x75a   :  { %10431 = vmatprep.subr.bf16.mxu1 %v13062_v27  ;;  %10472 = vmatprep.subr.bf16.mxu0 %v13065_v6  ;;  %v13129_v51 = vld [vmem:[#allocation18 + $0x7b8] ss:$24 sps:$4 sm:$0xff]   ;;  %v13134_v6 = vld [vmem:[#allocation18 + $0x48c] ss:$24 sps:$4 sm:$0xff]  }
 0x75d   :  { %10432 = vmatpush1.bf16.msra.mxu1 %v13060_v50  ;;  %10473 = vmatpush1.bf16.msra.mxu0 %v13063_v4  ;;  %v13137_v50 = vld [vmem:[#allocation18 + $0x78c] ss:$24 sps:$4 sm:$0xff]  }
 0x75e   :  { %10433 = vmatprep.subr.bf16.mxu1 %v13068_v10  ;;  %10474 = vmatprep.subr.bf16.mxu0 %v13071_v14  ;;  %v14081_v4 = vld [vmem:[#allocation19] sm:$0x3f] }
 0x75f   :  { %v13132_v14 = vld [vmem:[#allocation18 + $0x488] ss:$24 sps:$4 sm:$0xff]  }
 0x761   :  { %10434 = vmatpush1.bf16.msra.mxu1 %v13066_v21  ;;  %10475 = vmatpush1.bf16.msra.mxu0 %v13069_v56  ;;  %v13135_v21 = vld [vmem:[#allocation18 + $0x788] ss:$24 sps:$4 sm:$0xff]  }
 0x762   :  { %10435 = vmatprep.subr.bf16.mxu1 %v13074_v58  ;;  %10476 = vmatprep.subr.bf16.mxu0 %v13077_v60  ;;  %v13140_v58 = vld [vmem:[#allocation18 + $0xa5c] ss:$24 sps:$4 sm:$0xff]  }
 0x763   :  { %v13143_v60 = vld [vmem:[#allocation18 + $0x164] ss:$24 sps:$4 sm:$0xff]  }
 0x765   :  { %10436 = vmatpush1.bf16.msra.mxu1 %v13072_v48  ;;  %10477 = vmatpush1.bf16.msra.mxu0 %v13075_v22  ;;  %v8273_v48 = vrot.slane %v14081_v4, %v13854_v17  ;;  %v8277_v22 = vrot.slane %v14081_v4, %v13857_v25  ;;  %v13144_v17 = vld [vmem:[#allocation18 + $0xa28] ss:$24 sps:$4 sm:$0xff]  }
 0x766   :  { %10437 = vmatprep.subr.bf16.mxu1 %v13080_v40  ;;  %10478 = vmatprep.subr.bf16.mxu0 %v13083_v61  ;;  %v13138_v40 = vld [vmem:[#allocation18 + $0xa58] ss:$24 sps:$4 sm:$0xff]  }
 0x767   :  { %v13141_v61 = vld [vmem:[#allocation18 + $0x160] ss:$24 sps:$4 sm:$0xff]  }
 0x769   :  { %10438 = vmatpush1.bf16.msra.mxu1 %v13078_v52  ;;  %10479 = vmatpush1.bf16.msra.mxu0 %v13081_v39  ;;  %v13146_v39 = vld [vmem:[#allocation18 + $0xa2c] ss:$24 sps:$4 sm:$0xff]  }
 0x76a   :  { %10439 = vmatprep.subr.bf16.mxu1 %v13086_v0  ;;  %10480 = vmatprep.subr.bf16.mxu0 %v13089_v13  ;;  %v13149_v0 = vld [vmem:[#allocation18 + $0x134] ss:$24 sps:$4 sm:$0xff]  }
 0x76d   :  { %10440 = vmatpush1.bf16.msra.mxu1 %v13084_v59  ;;  %10481 = vmatpush1.bf16.msra.mxu0 %v13087_v11 }
 0x76e   :  { %10441 = vmatprep.subr.bf16.mxu1 %v13092_v8  ;;  %10482 = vmatprep.subr.bf16.mxu0 %v13095_v9  ;;  %v13147_v8 = vld [vmem:[#allocation18 + $0x130] ss:$24 sps:$4 sm:$0xff]   ;;  %v13152_v9 = vld [vmem:[#allocation18 + $0x9fc] ss:$24 sps:$4 sm:$0xff]  }
 0x771   :  { %10442 = vmatpush2.bf16.msra.mxu1 %v13090_v12  ;;  %10483 = vmatpush2.bf16.msra.mxu0 %v13093_v15  ;;  %v13155_v15 = vld [vmem:[#allocation18 + $0x104] ss:$24 sps:$4 sm:$0xff]  }
 0x772   :  { %10443 = vmatprep.subr.bf16.mxu1 %v13098_v18  ;;  %10484 = vmatprep.subr.bf16.mxu0 %v13101_v26  ;;  %v13150_v26 = vld [vmem:[#allocation18 + $0x9f8] ss:$24 sps:$4 sm:$0xff]  }
 0x775   :  { %10444 = vmatpush2.bf16.msra.mxu1 %v13096_v33  ;;  %10485 = vmatpush2.bf16.msra.mxu0 %v13099_v46  ;;  %v13153_v46 = vld [vmem:[#allocation18 + $0x100] ss:$24 sps:$4 sm:$0xff]  }
 0x776   :  { %10445 = vmatprep.subr.bf16.mxu1 %v13104_v29  ;;  %10486 = vmatprep.subr.bf16.mxu0 %v13107_v31  ;;  %v13158_v29 = vld [vmem:[#allocation18 + $0x9cc] ss:$24 sps:$4 sm:$0xff]  }
 0x777   :  { %v13161_v31 = vld [vmem:[#allocation18 + $0xd4] ss:$24 sps:$4 sm:$0xff]  }
 0x779   :  { %10446 = vmatpush2.bf16.msra.mxu1 %v13102_v3  ;;  %10487 = vmatpush2.bf16.msra.mxu0 %v13105_v32  ;;  %v13159_v3 = vld [vmem:[#allocation18 + $0xd0] ss:$24 sps:$4 sm:$0xff]   ;;  %v13164_v32 = vld [vmem:[#allocation18 + $0x99c] ss:$24 sps:$4 sm:$0xff]  }
 0x77a   :  { %10447 = vmatprep.subr.bf16.mxu1 %v13110_v24  ;;  %10488 = vmatprep.subr.bf16.mxu0 %v13113_v34  ;;  %v13167_v24 = vld [vmem:[#allocation18 + $0xa4] ss:$24 sps:$4 sm:$0xff]   ;;  %v13162_v34 = vld [vmem:[#allocation18 + $0x998] ss:$24 sps:$4 sm:$0xff]  }
 0x77d   :  { %10448 = vmatpush2.bf16.msra.mxu1 %v13108_v35  ;;  %10489 = vmatpush2.bf16.msra.mxu0 %v13111_v44  ;;  %v13165_v35 = vld [vmem:[#allocation18 + $0xa0] ss:$24 sps:$4 sm:$0xff]   ;;  %v13170_v44 = vld [vmem:[#allocation18 + $0x96c] ss:$24 sps:$4 sm:$0xff]  }
 0x77e   :  { %10449 = vmatprep.subr.bf16.mxu1 %v13116_v30  ;;  %10490 = vmatprep.subr.bf16.mxu0 %v13119_v62  ;;  %v13173_v30 = vld [vmem:[#allocation18 + $0x74] ss:$24 sps:$4 sm:$0xff]   ;;  %v13168_v62 = vld [vmem:[#allocation18 + $0x968] ss:$24 sps:$4 sm:$0xff]  }
 0x781   :  { %10450 = vmatpush2.bf16.msra.mxu1 %v13114_v20  ;;  %10491 = vmatpush2.bf16.msra.mxu0 %v13117_v16  ;;  %v13171_v20 = vld [vmem:[#allocation18 + $0x70] ss:$24 sps:$4 sm:$0xff]   ;;  %v13176_v16 = vld [vmem:[#allocation18 + $0x93c] ss:$24 sps:$4 sm:$0xff]  }
 0x782   :  { %10451 = vmatprep.subr.bf16.mxu1 %v13122_v63  ;;  %10492 = vmatprep.subr.bf16.mxu0 %v13125_v2  ;;  %v13179_v63 = vld [vmem:[#allocation18 + $0x44] ss:$24 sps:$4 sm:$0xff]   ;;  %v13174_v2 = vld [vmem:[#allocation18 + $0x938] ss:$24 sps:$4 sm:$0xff]  }
 0x784   :  { %v10254_v7 = vpop.f32.mrf.mxu0 }
 0x785   :  { %10452 = vmatpush2.bf16.msra.mxu1 %v13120_v54  ;;  %10493 = vmatpush2.bf16.msra.mxu0 %v13123_v49  ;;  %v10255_v52 = vadd.f32 %v10254_v7, %v8273_v48  ;;  %v13177_v54 = vld [vmem:[#allocation18 + $0x40] ss:$24 sps:$4 sm:$0xff]   ;;  %v13182_v49 = vld [vmem:[#allocation18 + $0x90c] ss:$24 sps:$4 sm:$0xff]   ;;  %v13183_v7 = vld [vmem:[#allocation18 + $0x10] ss:$24 sps:$4 sm:$0xff]  }
 0x786   :  { %v10256_v27 = vpop.f32.mrf.mxu0  ;;  %10453 = vmatprep.subr.bf16.mxu1 %v13128_v55  ;;  %10494 = vmatprep.subr.bf16.mxu0 %v13131_v36  ;;  %v13185_v55 = vld [vmem:[#allocation18 + $0x14] ss:$24 sps:$4 sm:$0xff]   ;;  %v13180_v36 = vld [vmem:[#allocation18 + $0x908] ss:$24 sps:$4 sm:$0xff]  }
 0x787   :  { %v10257_v59 = vadd.f32 %v10256_v27, %v8277_v22  ;;  %v13186_v27 = vld [vmem:[#allocation18 + $0xbd8] ss:$24 sps:$4 sm:$0xff]   ;;  %v13206_v22 = vld [vmem:[#allocation18 + $0xb4c] ss:$24 sps:$4 sm:$0xff]  }
 0x788   :  { %v10258_v10 = vpop.f32.mrf.mxu0  ;;  %v13201_v48 = vld [vmem:[#allocation18 + $0x280] ss:$24 sps:$4 sm:$0xff]  }
 0x789   :  { %10454 = vmatpush2.bf16.msra.mxu1 %v13126_v43  ;;  %10495 = vmatpush2.bf16.msra.mxu0 %v13129_v51  ;;  %v13188_v43 = vld [vmem:[#allocation18 + $0xbdc] ss:$24 sps:$4 sm:$0xff]  }
 0x78a   :  { %v10259_v56 = vpop.f32.mrf.mxu0  ;;  %10455 = vmatprep.subr.bf16.mxu1 %v13134_v6  ;;  %10496 = vmatprep.subr.bf16.mxu0 %v13137_v50  ;;  %v13191_v51 = vld [vmem:[#allocation18 + $0x2e4] ss:$24 sps:$4 sm:$0xff]   ;;  %v13189_v6 = vld [vmem:[#allocation18 + $0x2e0] ss:$24 sps:$4 sm:$0xff]   ;;  %v13197_v10 = vld [vmem:[#allocation18 + $0x2b4] ss:$24 sps:$4 sm:$0xff]  }
 0x78b   :  { %v13194_v50 = vld [vmem:[#allocation18 + $0xbac] ss:$24 sps:$4 sm:$0xff]   ;;  %v13200_v56 = vld [vmem:[#allocation18 + $0xb7c] ss:$24 sps:$4 sm:$0xff]  }
 0x78d   :  { %10456 = vmatpush2.bf16.msra.mxu1 %v13132_v14  ;;  %10497 = vmatpush2.bf16.msra.mxu0 %v13135_v21  ;;  %v13192_v14 = vld [vmem:[#allocation18 + $0xba8] ss:$24 sps:$4 sm:$0xff]  }
 0x78e   :  { %10507 = vmatprep.subr.bf16.mxu1 %v13140_v58  ;;  %10548 = vmatprep.subr.bf16.mxu0 %v13143_v60  ;;  %v13195_v21 = vld [vmem:[#allocation18 + $0x2b0] ss:$24 sps:$4 sm:$0xff]   ;;  %v13203_v58 = vld [vmem:[#allocation18 + $0x284] ss:$24 sps:$4 sm:$0xff]  }
 0x78f   :  { %v13198_v60 = vld [vmem:[#allocation18 + $0xb78] ss:$24 sps:$4 sm:$0xff]  }
 0x790   :  { %10458 = vmatmul.mubr.bf16.vlgmr.msra.gmra.mxu1 %v14051_v47  ;;  %10499 = vmatmul.mubr.bf16.vlgmr.msra.gmra.mxu0 %v14061_v42  ;;  %v10295_v13 = vpop.f32.mrf.mxu1 }
 0x791   :  { %v14089_v11 = vadd.f32 %v10295_v13, %v10255_v52  ;;  %10508 = vmatpush1.bf16.msra.mxu1 %v13138_v40  ;;  %10539 = vmatprep.mubr.bf16.mxu1 %v14072_v38  ;;  %v13209_v40 = vld [vmem:[#allocation18 + $0x254] ss:$24 sps:$4 sm:$0xff]   ;;  %v13207_v52 = vld [vmem:[#allocation18 + $0x250] ss:$24 sps:$4 sm:$0xff]  }
 0x792   :  { %10549 = vmatpush1.bf16.msra.mxu0 %v13141_v61  ;;  %10580 = vmatprep.mubr.bf16.mxu0 %v14035_v37  ;;  %v10297_v25 = vpop.f32.mrf.mxu1  ;;  %v13156_v37 = vld [vmem:[#allocation18 + $0x9c8] ss:$24 sps:$4 sm:$0xff]   ;;  %v13210_v13 = vld [vmem:[#allocation18 + $0xb18] ss:$24 sps:$4 sm:$0xff]  }
 0x793   :  { %v14093_v12 = vadd.f32 %v10297_v25, %v10257_v59  ;;  %10509 = vmatprep.subr.bf16.mxu1 %v13146_v39  ;;  %10550 = vmatprep.subr.bf16.mxu0 %v13149_v0  ;;  %v13204_v61 = vld [vmem:[#allocation18 + $0xb48] ss:$24 sps:$4 sm:$0xff]   ;;  %v13212_v39 = vld [vmem:[#allocation18 + $0xb1c] ss:$24 sps:$4 sm:$0xff]  }
 0x794   :  { %v10299_v18 = vpop.f32.mrf.mxu1  ;;  %v13215_v0 = vld [vmem:[#allocation18 + $0x224] ss:$24 sps:$4 sm:$0xff]   ;;  %v13213_v59 = vld [vmem:[#allocation18 + $0x220] ss:$24 sps:$4 sm:$0xff]   ;;  %v13221_v25 = vld [vmem:[#allocation18 + $0x1f4] ss:$24 sps:$4 sm:$0xff]  }
 0x795   :  { %10510 = vmatpush1.bf16.msra.mxu1 %v13144_v17  ;;  %v13218_v17 = vld [vmem:[#allocation18 + $0xaec] ss:$24 sps:$4 sm:$0xff]  }
 0x796   :  { %10551 = vmatpush1.bf16.msra.mxu0 %v13147_v8  ;;  %v10300_v33 = vpop.f32.mrf.mxu1  ;;  %10511 = vmatprep.subr.bf16.mxu1 %v13152_v9  ;;  %v13216_v8 = vld [vmem:[#allocation18 + $0xae8] ss:$24 sps:$4 sm:$0xff]   ;;  %v13227_v18 = vld [vmem:[#allocation18 + $0x1c4] ss:$24 sps:$4 sm:$0xff]  }
 0x797   :  { %10552 = vmatprep.subr.bf16.mxu0 %v13155_v15  ;;  %v13219_v9 = vld [vmem:[#allocation18 + $0x1f0] ss:$24 sps:$4 sm:$0xff]   ;;  %v13224_v15 = vld [vmem:[#allocation18 + $0xabc] ss:$24 sps:$4 sm:$0xff]   ;;  %v13225_v33 = vld [vmem:[#allocation18 + $0x1c0] ss:$24 sps:$4 sm:$0xff]  }
 0x799   :  { %10512 = vmatpush1.bf16.msra.mxu1 %v13150_v26  ;;  %v13222_v26 = vld [vmem:[#allocation18 + $0xab8] ss:$24 sps:$4 sm:$0xff]  }
 0x79a   :  { %10553 = vmatpush1.bf16.msra.mxu0 %v13153_v46  ;;  %10513 = vmatprep.subr.bf16.mxu1 %v13158_v29  ;;  %v13230_v46 = vld [vmem:[#allocation18 + $0xa8c] ss:$24 sps:$4 sm:$0xff]  }
 0x79b   :  { %10554 = vmatprep.subr.bf16.mxu0 %v13161_v31  ;;  %v13233_v29 = vld [vmem:[#allocation18 + $0x194] ss:$24 sps:$4 sm:$0xff]   ;;  %v13228_v31 = vld [vmem:[#allocation18 + $0xa88] ss:$24 sps:$4 sm:$0xff]  }
 0x79d   :  { %10514 = vmatpush1.bf16.msra.mxu1 %v13156_v37  ;;  %v13231_v37 = vld [vmem:[#allocation18 + $0x190] ss:$24 sps:$4 sm:$0xff]  }
 0x79e   :  { %10555 = vmatpush1.bf16.msra.mxu0 %v13159_v3  ;;  %10515 = vmatprep.subr.bf16.mxu1 %v13164_v32  ;;  %v13236_v3 = vld [vmem:[#allocation18 + $0x464] ss:$24 sps:$4 sm:$0xff]  }
 0x79f   :  { %10556 = vmatprep.subr.bf16.mxu0 %v13167_v24  ;;  %v13239_v32 = vld [vmem:[#allocation18 + $0x764] ss:$24 sps:$4 sm:$0xff]   ;;  %v13234_v24 = vld [vmem:[#allocation18 + $0x460] ss:$24 sps:$4 sm:$0xff]  }
 0x7a1   :  { %10516 = vmatpush1.bf16.msra.mxu1 %v13162_v34  ;;  %v13237_v34 = vld [vmem:[#allocation18 + $0x760] ss:$24 sps:$4 sm:$0xff]  }
 0x7a2   :  { %10557 = vmatpush1.bf16.msra.mxu0 %v13165_v35  ;;  %10517 = vmatprep.subr.bf16.mxu1 %v13170_v44  ;;  %v13242_v35 = vld [vmem:[#allocation18 + $0x434] ss:$24 sps:$4 sm:$0xff]  }
 0x7a3   :  { %10558 = vmatprep.subr.bf16.mxu0 %v13173_v30  ;;  %v13245_v30 = vld [vmem:[#allocation18 + $0x734] ss:$24 sps:$4 sm:$0xff]  }
 0x7a5   :  { %10518 = vmatpush1.bf16.msra.mxu1 %v13168_v62 }
 0x7a6   :  { %10559 = vmatpush1.bf16.msra.mxu0 %v13171_v20  ;;  %10519 = vmatprep.subr.bf16.mxu1 %v13176_v16  ;;  %v13240_v20 = vld [vmem:[#allocation18 + $0x430] ss:$24 sps:$4 sm:$0xff]  }
 0x7a7   :  { %10560 = vmatprep.subr.bf16.mxu0 %v13179_v63  ;;  %v13243_v63 = vld [vmem:[#allocation18 + $0x730] ss:$24 sps:$4 sm:$0xff]  }
 0x7a9   :  { %10520 = vmatpush1.bf16.msra.mxu1 %v13174_v2  ;;  %v13248_v2 = vld [vmem:[#allocation18 + $0x404] ss:$24 sps:$4 sm:$0xff]  }
 0x7aa   :  { %10561 = vmatpush1.bf16.msra.mxu0 %v13177_v54  ;;  %10521 = vmatprep.subr.bf16.mxu1 %v13182_v49  ;;  %v13251_v49 = vld [vmem:[#allocation18 + $0x704] ss:$24 sps:$4 sm:$0xff]  }
 0x7ab   :  { %10562 = vmatprep.subr.bf16.mxu0 %v13185_v55 }
 0x7ad   :  { %10522 = vmatpush1.bf16.msra.mxu1 %v13180_v36  ;;  %v13249_v36 = vld [vmem:[#allocation18 + $0x700] ss:$24 sps:$4 sm:$0xff]  }
 0x7ae   :  { %10563 = vmatpush1.bf16.msra.mxu0 %v13183_v7  ;;  %10523 = vmatprep.subr.bf16.mxu1 %v13188_v43  ;;  %v13257_v7 = vld [vmem:[#allocation18 + $0x6d4] ss:$24 sps:$4 sm:$0xff]   ;;  %v13252_v43 = vld [vmem:[#allocation18 + $0x3d0] ss:$24 sps:$4 sm:$0xff]  }
 0x7af   :  { %10564 = vmatprep.subr.bf16.mxu0 %v13191_v51  ;;  %v13263_v51 = vld [vmem:[#allocation18 + $0x6a4] ss:$24 sps:$4 sm:$0xff]  }
 0x7b1   :  { %10524 = vmatpush2.bf16.msra.mxu1 %v13186_v27  ;;  %v13258_v27 = vld [vmem:[#allocation18 + $0x3a0] ss:$24 sps:$4 sm:$0xff]  }
 0x7b2   :  { %10565 = vmatpush2.bf16.msra.mxu0 %v13189_v6  ;;  %10525 = vmatprep.subr.bf16.mxu1 %v13194_v50  ;;  %v13261_v6 = vld [vmem:[#allocation18 + $0x6a0] ss:$24 sps:$4 sm:$0xff]   ;;  %v13266_v50 = vld [vmem:[#allocation18 + $0x374] ss:$24 sps:$4 sm:$0xff]  }
 0x7b3   :  { %10566 = vmatprep.subr.bf16.mxu0 %v13197_v10  ;;  %v13269_v10 = vld [vmem:[#allocation18 + $0x674] ss:$24 sps:$4 sm:$0xff]  }
 0x7b5   :  { %10526 = vmatpush2.bf16.msra.mxu1 %v13192_v14  ;;  %v13264_v14 = vld [vmem:[#allocation18 + $0x370] ss:$24 sps:$4 sm:$0xff]  }
 0x7b6   :  { %10567 = vmatpush2.bf16.msra.mxu0 %v13195_v21  ;;  %10527 = vmatprep.subr.bf16.mxu1 %v13200_v56  ;;  %v13267_v21 = vld [vmem:[#allocation18 + $0x670] ss:$24 sps:$4 sm:$0xff]   ;;  %v13272_v56 = vld [vmem:[#allocation18 + $0x344] ss:$24 sps:$4 sm:$0xff]  }
 0x7b7   :  { %10568 = vmatprep.subr.bf16.mxu0 %v13203_v58  ;;  %v13275_v58 = vld [vmem:[#allocation18 + $0x644] ss:$24 sps:$4 sm:$0xff]  }
 0x7b9   :  { %10528 = vmatpush2.bf16.msra.mxu1 %v13198_v60  ;;  %v13270_v60 = vld [vmem:[#allocation18 + $0x340] ss:$24 sps:$4 sm:$0xff]  }
 0x7ba   :  { %10569 = vmatpush2.bf16.msra.mxu0 %v13201_v48  ;;  %10529 = vmatprep.subr.bf16.mxu1 %v13206_v22  ;;  %v13273_v48 = vld [vmem:[#allocation18 + $0x640] ss:$24 sps:$4 sm:$0xff]   ;;  %v13278_v22 = vld [vmem:[#allocation18 + $0x314] ss:$24 sps:$4 sm:$0xff]  }
 0x7bb   :  { %10570 = vmatprep.subr.bf16.mxu0 %v13209_v40  ;;  %v13281_v40 = vld [vmem:[#allocation18 + $0x614] ss:$24 sps:$4 sm:$0xff]  }
 0x7bd   :  { %10530 = vmatpush2.bf16.msra.mxu1 %v13204_v61  ;;  %v13276_v61 = vld [vmem:[#allocation18 + $0x310] ss:$24 sps:$4 sm:$0xff]  }
 0x7be   :  { %10571 = vmatpush2.bf16.msra.mxu0 %v13207_v52  ;;  %10531 = vmatprep.subr.bf16.mxu1 %v13212_v39  ;;  %v13279_v52 = vld [vmem:[#allocation18 + $0x610] ss:$24 sps:$4 sm:$0xff]   ;;  %v13284_v39 = vld [vmem:[#allocation18 + $0x5e4] ss:$24 sps:$4 sm:$0xff]  }
 0x7bf   :  { %10572 = vmatprep.subr.bf16.mxu0 %v13215_v0  ;;  %v13287_v0 = vld [vmem:[#allocation18 + $0x8e4] ss:$24 sps:$4 sm:$0xff]  }
 0x7c1   :  { %10532 = vmatpush2.bf16.msra.mxu1 %v13210_v13  ;;  %v13282_v13 = vld [vmem:[#allocation18 + $0x5e0] ss:$24 sps:$4 sm:$0xff]  }
 0x7c2   :  { %10573 = vmatpush2.bf16.msra.mxu0 %v13213_v59  ;;  %10533 = vmatprep.subr.bf16.mxu1 %v13218_v17  ;;  %v13285_v59 = vld [vmem:[#allocation18 + $0x8e0] ss:$24 sps:$4 sm:$0xff]   ;;  %v13290_v17 = vld [vmem:[#allocation18 + $0x5b4] ss:$24 sps:$4 sm:$0xff]  }
 0x7c3   :  { %10574 = vmatprep.subr.bf16.mxu0 %v13221_v25  ;;  %v13293_v25 = vld [vmem:[#allocation18 + $0x8b4] ss:$24 sps:$4 sm:$0xff]  }
 0x7c5   :  { %10534 = vmatpush2.bf16.msra.mxu1 %v13216_v8  ;;  %v13288_v8 = vld [vmem:[#allocation18 + $0x5b0] ss:$24 sps:$4 sm:$0xff]  }
 0x7c6   :  { %10575 = vmatpush2.bf16.msra.mxu0 %v13219_v9  ;;  %10535 = vmatprep.subr.bf16.mxu1 %v13224_v15  ;;  %v13291_v9 = vld [vmem:[#allocation18 + $0x8b0] ss:$24 sps:$4 sm:$0xff]   ;;  %v13296_v15 = vld [vmem:[#allocation18 + $0x584] ss:$24 sps:$4 sm:$0xff]  }
 0x7c7   :  { %10576 = vmatprep.subr.bf16.mxu0 %v13227_v18  ;;  %v13299_v18 = vld [vmem:[#allocation18 + $0x884] ss:$24 sps:$4 sm:$0xff]  }
 0x7c9   :  { %10536 = vmatpush2.bf16.msra.mxu1 %v13222_v26  ;;  %v13294_v26 = vld [vmem:[#allocation18 + $0x580] ss:$24 sps:$4 sm:$0xff]  }
 0x7ca   :  { %10577 = vmatpush2.bf16.msra.mxu0 %v13225_v33  ;;  %10537 = vmatprep.subr.bf16.mxu1 %v13230_v46  ;;  %v13297_v33 = vld [vmem:[#allocation18 + $0x880] ss:$24 sps:$4 sm:$0xff]   ;;  %v13302_v46 = vld [vmem:[#allocation18 + $0x554] ss:$24 sps:$4 sm:$0xff]  }
 0x7cb   :  { %10578 = vmatprep.subr.bf16.mxu0 %v13233_v29  ;;  %v13305_v29 = vld [vmem:[#allocation18 + $0x854] ss:$24 sps:$4 sm:$0xff]  }
 0x7cd   :  { %10538 = vmatpush2.bf16.msra.mxu1 %v13228_v31  ;;  %v13300_v31 = vld [vmem:[#allocation18 + $0x550] ss:$24 sps:$4 sm:$0xff]  }
 0x7ce   :  { %10579 = vmatpush2.bf16.msra.mxu0 %v13231_v37  ;;  %10589 = vmatprep.subr.bf16.mxu1 %v13236_v3  ;;  %v13303_v37 = vld [vmem:[#allocation18 + $0x850] ss:$24 sps:$4 sm:$0xff]   ;;  %v13308_v3 = vld [vmem:[#allocation18 + $0x524] ss:$24 sps:$4 sm:$0xff]  }
 0x7cf   :  { %10630 = vmatprep.subr.bf16.mxu0 %v13239_v32  ;;  %v13311_v32 = vld [vmem:[#allocation18 + $0x824] ss:$24 sps:$4 sm:$0xff]  }
 0x7d0   :  { %10540 = vmatmul.mubr.bf16.vlgmr.msra.gmra.mxu1 %v14074_v5  ;;  %v10336_v44 = vpop.f32.mrf.mxu0 }
 0x7d1   :  { %10581 = vmatmul.mubr.bf16.vlgmr.msra.gmra.mxu0 %v14044_v45  ;;  %v14098_v62 = vadd.f32 %v10336_v44, %v14089_v11  ;;  %10590 = vmatpush1.bf16.msra.mxu1 %v13234_v24  ;;  %v13246_v11 = vld [vmem:[#allocation18 + $0x400] ss:$24 sps:$4 sm:$0xff]   ;;  %v13317_v44 = vld [vmem:[#allocation18 + $0x7f4] ss:$24 sps:$4 sm:$0xff]  }
 0x7d2   :  { %10621 = vmatprep.mubr.bf16.mxu1 %v14049_v1  ;;  %10631 = vmatpush1.bf16.msra.mxu0 %v13237_v34  ;;  %v10338_v16 = vpop.f32.mrf.mxu0  ;;  %v13254_v1 = vld [vmem:[#allocation18 + $0x3d4] ss:$24 sps:$4 sm:$0xff]   ;;  %v13306_v24 = vld [vmem:[#allocation18 + $0x520] ss:$24 sps:$4 sm:$0xff]  }
 0x7d3   :  { %10662 = vmatprep.mubr.bf16.mxu0 %v14059_v41  ;;  %v14103_v54 = vadd.f32 %v10338_v16, %v14093_v12  ;;  %10591 = vmatprep.subr.bf16.mxu1 %v13242_v35  ;;  %v13255_v41 = vld [vmem:[#allocation18 + $0x6d0] ss:$24 sps:$4 sm:$0xff]   ;;  %v13260_v12 = vld [vmem:[#allocation18 + $0x3a4] ss:$24 sps:$4 sm:$0xff]   ;;  %v13309_v34 = vld [vmem:[#allocation18 + $0x820] ss:$24 sps:$4 sm:$0xff]  }
 0x7d4   :  { %10632 = vmatprep.subr.bf16.mxu0 %v13245_v30  ;;  %v10340_v45 = vpop.f32.mrf.mxu0  ;;  %v13314_v35 = vld [vmem:[#allocation18 + $0x4f4] ss:$24 sps:$4 sm:$0xff]   ;;  %v13312_v30 = vld [vmem:[#allocation18 + $0x4f0] ss:$24 sps:$4 sm:$0xff]   ;;  %v13320_v16 = vld [vmem:[#allocation18 + $0x4c4] ss:$24 sps:$4 sm:$0xff]  }
 0x7d5   :  { %10592 = vmatpush1.bf16.msra.mxu1 %v13240_v20  ;;  %v13315_v20 = vld [vmem:[#allocation18 + $0x7f0] ss:$24 sps:$4 sm:$0xff]   ;;  %v13326_v45 = vld [vmem:[#allocation18 + $0x494] ss:$24 sps:$4 sm:$0xff]  }
 0x7d6   :  { %10633 = vmatpush1.bf16.msra.mxu0 %v13243_v63  ;;  %v10341_v55 = vpop.f32.mrf.mxu0  ;;  %10593 = vmatprep.subr.bf16.mxu1 %v13248_v2  ;;  %v13323_v63 = vld [vmem:[#allocation18 + $0x7c4] ss:$24 sps:$4 sm:$0xff]   ;;  %v13318_v2 = vld [vmem:[#allocation18 + $0x4c0] ss:$24 sps:$4 sm:$0xff]  }
 0x7d7   :  { %10634 = vmatprep.subr.bf16.mxu0 %v13251_v49  ;;  %v13321_v49 = vld [vmem:[#allocation18 + $0x7c0] ss:$24 sps:$4 sm:$0xff]   ;;  %v13324_v55 = vld [vmem:[#allocation18 + $0x490] ss:$24 sps:$4 sm:$0xff]  }
 0x7d9   :  { %10594 = vmatpush1.bf16.msra.mxu1 %v13246_v11  ;;  %v13329_v11 = vld [vmem:[#allocation18 + $0x794] ss:$24 sps:$4 sm:$0xff]  }
 0x7da   :  { %10635 = vmatpush1.bf16.msra.mxu0 %v13249_v36  ;;  %10595 = vmatprep.subr.bf16.mxu1 %v13254_v1  ;;  %v13327_v36 = vld [vmem:[#allocation18 + $0x790] ss:$24 sps:$4 sm:$0xff]   ;;  %v13332_v1 = vld [vmem:[#allocation18 + $0xa64] ss:$24 sps:$4 sm:$0xff]  }
 0x7db   :  { %10636 = vmatprep.subr.bf16.mxu0 %v13257_v7  ;;  %v13330_v7 = vld [vmem:[#allocation18 + $0xa60] ss:$24 sps:$4 sm:$0xff]  }
 0x7dd   :  { %10596 = vmatpush1.bf16.msra.mxu1 %v13252_v43  ;;  %v13335_v43 = vld [vmem:[#allocation18 + $0xa34] ss:$24 sps:$4 sm:$0xff]  }
 0x7de   :  { %10637 = vmatpush1.bf16.msra.mxu0 %v13255_v41  ;;  %10597 = vmatprep.subr.bf16.mxu1 %v13260_v12 }
 0x7df   :  { %10638 = vmatprep.subr.bf16.mxu0 %v13263_v51 }
 0x7e1   :  { %10598 = vmatpush1.bf16.msra.mxu1 %v13258_v27  ;;  %v13333_v27 = vld [vmem:[#allocation18 + $0xa30] ss:$24 sps:$4 sm:$0xff]  }
 0x7e2   :  { %10639 = vmatpush1.bf16.msra.mxu0 %v13261_v6  ;;  %10599 = vmatprep.subr.bf16.mxu1 %v13266_v50 }
 0x7e3   :  { %10640 = vmatprep.subr.bf16.mxu0 %v13269_v10  ;;  %v13338_v10 = vld [vmem:[#allocation18 + $0xa04] ss:$24 sps:$4 sm:$0xff]  }
 0x7e5   :  { %10600 = vmatpush1.bf16.msra.mxu1 %v13264_v14 }
 0x7e6   :  { %10641 = vmatpush1.bf16.msra.mxu0 %v13267_v21  ;;  %10601 = vmatprep.subr.bf16.mxu1 %v13272_v56 }
 0x7e7   :  { %10642 = vmatprep.subr.bf16.mxu0 %v13275_v58 }
 0x7e9   :  { %10602 = vmatpush1.bf16.msra.mxu1 %v13270_v60 }
 0x7ea   :  { %10643 = vmatpush1.bf16.msra.mxu0 %v13273_v48  ;;  %10603 = vmatprep.subr.bf16.mxu1 %v13278_v22  ;;  %v13341_v22 = vld [vmem:[#allocation18 + $0x9d4] ss:$24 sps:$4 sm:$0xff]  }
 0x7eb   :  { %10644 = vmatprep.subr.bf16.mxu0 %v13281_v40  ;;  %v13339_v40 = vld [vmem:[#allocation18 + $0x9d0] ss:$24 sps:$4 sm:$0xff]  }
 0x7ed   :  { %10604 = vmatpush1.bf16.msra.mxu1 %v13276_v61  ;;  %v13344_v61 = vld [vmem:[#allocation18 + $0x9a4] ss:$24 sps:$4 sm:$0xff]  }
 0x7ee   :  { %10645 = vmatpush1.bf16.msra.mxu0 %v13279_v52  ;;  %10605 = vmatprep.subr.bf16.mxu1 %v13284_v39  ;;  %v13342_v52 = vld [vmem:[#allocation18 + $0x9a0] ss:$24 sps:$4 sm:$0xff]   ;;  %v13345_v39 = vld [vmem:[#allocation18 + $0x970] ss:$24 sps:$4 sm:$0xff]  }
 0x7ef   :  { %10646 = vmatprep.subr.bf16.mxu0 %v13287_v0  ;;  %v13350_v0 = vld [vmem:[#allocation18 + $0x944] ss:$24 sps:$4 sm:$0xff]  }
 0x7f1   :  { %10606 = vmatpush2.bf16.msra.mxu1 %v13282_v13 }
 0x7f2   :  { %10647 = vmatpush2.bf16.msra.mxu0 %v13285_v59  ;;  %10607 = vmatprep.subr.bf16.mxu1 %v13290_v17  ;;  %v13348_v17 = vld [vmem:[#allocation18 + $0x940] ss:$24 sps:$4 sm:$0xff]  }
 0x7f3   :  { %10648 = vmatprep.subr.bf16.mxu0 %v13293_v25 }
 0x7f5   :  { %10608 = vmatpush2.bf16.msra.mxu1 %v13288_v8  ;;  %v13353_v8 = vld [vmem:[#allocation18 + $0x914] ss:$24 sps:$4 sm:$0xff]  }
 0x7f6   :  { %10649 = vmatpush2.bf16.msra.mxu0 %v13291_v9  ;;  %10609 = vmatprep.subr.bf16.mxu1 %v13296_v15  ;;  %v13351_v15 = vld [vmem:[#allocation18 + $0x910] ss:$24 sps:$4 sm:$0xff]  }
 0x7f7   :  { %10650 = vmatprep.subr.bf16.mxu0 %v13299_v18  ;;  %v13356_v18 = vld [vmem:[#allocation18 + $0xbe4] ss:$24 sps:$4 sm:$0xff]  }
 0x7f9   :  { %10610 = vmatpush2.bf16.msra.mxu1 %v13294_v26  ;;  %v13354_v26 = vld [vmem:[#allocation18 + $0xbe0] ss:$24 sps:$4 sm:$0xff]  }
 0x7fa   :  { %10651 = vmatpush2.bf16.msra.mxu0 %v13297_v33  ;;  %10611 = vmatprep.subr.bf16.mxu1 %v13302_v46  ;;  %v13359_v33 = vld [vmem:[#allocation18 + $0xbb4] ss:$24 sps:$4 sm:$0xff]   ;;  %v13357_v46 = vld [vmem:[#allocation18 + $0xbb0] ss:$24 sps:$4 sm:$0xff]  }
 0x7fb   :  { %10652 = vmatprep.subr.bf16.mxu0 %v13305_v29  ;;  %v13362_v29 = vld [vmem:[#allocation18 + $0xb84] ss:$24 sps:$4 sm:$0xff]  }
 0x7fd   :  { %10612 = vmatpush2.bf16.msra.mxu1 %v13300_v31 }
 0x7fe   :  { %10653 = vmatpush2.bf16.msra.mxu0 %v13303_v37  ;;  %10613 = vmatprep.subr.bf16.mxu1 %v13308_v3  ;;  %v13360_v37 = vld [vmem:[#allocation18 + $0xb80] ss:$24 sps:$4 sm:$0xff]  }
 0x7ff   :  { %10654 = vmatprep.subr.bf16.mxu0 %v13311_v32  ;;  %v13365_v32 = vld [vmem:[#allocation18 + $0xb54] ss:$24 sps:$4 sm:$0xff]  }
 0x801   :  { %10614 = vmatpush2.bf16.msra.mxu1 %v13306_v24 }
 0x802   :  { %10655 = vmatpush2.bf16.msra.mxu0 %v13309_v34  ;;  %10615 = vmatprep.subr.bf16.mxu1 %v13314_v35  ;;  %v13363_v34 = vld [vmem:[#allocation18 + $0xb50] ss:$24 sps:$4 sm:$0xff]   ;;  %v13368_v35 = vld [vmem:[#allocation18 + $0xb24] ss:$24 sps:$4 sm:$0xff]  }
 0x803   :  { %10656 = vmatprep.subr.bf16.mxu0 %v13317_v44  ;;  %v13366_v44 = vld [vmem:[#allocation18 + $0xb20] ss:$24 sps:$4 sm:$0xff]  }
 0x805   :  { %10616 = vmatpush2.bf16.msra.mxu1 %v13312_v30  ;;  %v13371_v30 = vld [vmem:[#allocation18 + $0xaf4] ss:$24 sps:$4 sm:$0xff]  }
 0x806   :  { %10657 = vmatpush2.bf16.msra.mxu0 %v13315_v20  ;;  %10617 = vmatprep.subr.bf16.mxu1 %v13320_v16  ;;  %v13369_v20 = vld [vmem:[#allocation18 + $0xaf0] ss:$24 sps:$4 sm:$0xff]   ;;  %v13374_v16 = vld [vmem:[#allocation18 + $0xac4] ss:$24 sps:$4 sm:$0xff]  }
 0x807   :  { %10658 = vmatprep.subr.bf16.mxu0 %v13323_v63  ;;  %v13372_v63 = vld [vmem:[#allocation18 + $0xac0] ss:$24 sps:$4 sm:$0xff]  }
 0x809   :  { %10618 = vmatpush2.bf16.msra.mxu1 %v13318_v2  ;;  %v13377_v2 = vld [vmem:[#allocation18 + $0xa94] ss:$24 sps:$4 sm:$0xff]  }
 0x80a   :  { %10659 = vmatpush2.bf16.msra.mxu0 %v13321_v49  ;;  %10619 = vmatprep.subr.bf16.mxu1 %v13326_v45  ;;  %v13375_v49 = vld [vmem:[#allocation18 + $0xa90] ss:$24 sps:$4 sm:$0xff]   ;;  %v8281_v45 = vrot.slane %v14081_v4, %v13905_v57 }
 0x80b   :  { %10660 = vmatprep.subr.bf16.mxu0 %v13329_v11 }
 0x80d   :  { %10620 = vmatpush2.bf16.msra.mxu1 %v13324_v55 }
 0x80e   :  { %10661 = vmatpush2.bf16.msra.mxu0 %v13327_v36  ;;  %10671 = vmatprep.subr.bf16.mxu1 %v13332_v1 }
 0x810   :  { %v14105_v41 = vpop.f32.mrf.mxu0  ;;  %10622 = vmatmul.mubr.bf16.vlgmr.msra.gmra.mxu1 %v14051_v47  ;;  %v10377_v12 = vpop.f32.mrf.mxu1 }
 0x811   :  { %10663 = vmatmul.mubr.bf16.vlgmr.msra.gmra.mxu0 %v14061_v42  ;;  %v10378_v51 = vadd.f32 %v10377_v12, %v14098_v62  ;;  %10672 = vmatpush1.bf16.msra.mxu1 %v13330_v7  ;;  %v13336_v42 = vld [vmem:[#allocation18 + $0xa00] ss:$24 sps:$4 sm:$0xff]   ;;  %v10419_v11 = vadd.f32 %v14105_v41, %v8281_v45 }
 0x812   :  { %10703 = vmatprep.mubr.bf16.mxu1 %v14072_v38  ;;  %v14111_v6 = vpop.f32.mrf.mxu0  ;;  %v10379_v50 = vpop.f32.mrf.mxu1  ;;  %10673 = vmatprep.subr.bf16.mxu1 %v13335_v43 }
 0x813   :  { %v10712_v14 = vsub.f32 0.0, %v10378_v51  ;;  %v10380_v21 = vadd.f32 %v10379_v50, %v14103_v54  ;;  %v13347_v54 = vld [vmem:[#allocation18 + $0x974] ss:$24 sps:$4 sm:$0xff]  }
 0x814   :  { %v10422_v56 = vpop.f32.mrf.mxu0  ;;  %v10381_v58 = vpop.f32.mrf.mxu1 }
 0x815   :  { %v10718_v47 = vmul.f32 1.442695, %v10712_v14  ;;  %v10713_v60 = vsub.f32 0.0, %v10380_v21  ;;  %10674 = vmatpush1.bf16.msra.mxu1 %v13333_v27  ;;  %v8285_v14 = vrot.slane %v14081_v4, %v13885_v28 }
 0x816   :  { %v10423_v48 = vpop.f32.mrf.mxu0  ;;  %v10382_v62 = vpop.f32.mrf.mxu1  ;;  %10675 = vmatprep.subr.bf16.mxu1 %v13338_v10 }
 0x817   :  { %13378 = vpow2.f32 %v10718_v47  ;;  %v10720_v38 = vmul.f32 1.442695, %v10713_v60  ;;  %v10421_v57 = vadd.f32 %v14111_v6, %v8285_v14 }
 0x819   :  { %13380 = vpow2.f32 %v10720_v38  ;;  %10676 = vmatpush1.bf16.msra.mxu1 %v13336_v42 }
 0x81a   :  { %10677 = vmatprep.subr.bf16.mxu1 %v13341_v22 }
 0x81d   :  { %10678 = vmatpush1.bf16.msra.mxu1 %v13339_v40 }
 0x81e   :  { %10679 = vmatprep.subr.bf16.mxu1 %v13344_v61 }
 0x821   :  { %10680 = vmatpush1.bf16.msra.mxu1 %v13342_v52 }
 0x822   :  { %10681 = vmatprep.subr.bf16.mxu1 %v13347_v54 }
 0x824   :  { %v13379_v13 = vpop.eup %13378 }
 0x825   :  { %v10730_v59 = vadd.f32 1.0, %v13379_v13  ;;  %10682 = vmatpush1.bf16.msra.mxu1 %v13345_v39 }
 0x826   :  { %v13381_v25 = vpop.eup %13380  ;;  %10683 = vmatprep.subr.bf16.mxu1 %v13350_v0 }
 0x827   :  { %v10731_v9 = vadd.f32 1.0, %v13381_v25  ;;  %13382 = vrcp.f32 %v10730_v59 }
 0x829   :  { %13384 = vrcp.f32 %v10731_v9  ;;  %10684 = vmatpush1.bf16.msra.mxu1 %v13348_v17 }
 0x82a   :  { %10685 = vmatprep.subr.bf16.mxu1 %v13353_v8 }
 0x82d   :  { %10686 = vmatpush1.bf16.msra.mxu1 %v13351_v15 }
 0x82e   :  { %10687 = vmatprep.subr.bf16.mxu1 %v13356_v18 }
 0x831   :  { %10688 = vmatpush2.bf16.msra.mxu1 %v13354_v26 }
 0x832   :  { %10689 = vmatprep.subr.bf16.mxu1 %v13359_v33 }
 0x834   :  { %v14114_v31 = vpop.eup %13382 }
 0x835   :  { %10690 = vmatpush2.bf16.msra.mxu1 %v13357_v46 }
 0x836   :  { %v14116_v3 = vpop.eup %13384  ;;  %10691 = vmatprep.subr.bf16.mxu1 %v13362_v29 }
 0x837   :  { %v10754_v24 = vcombine.low %v14114_v31, %v14116_v3  ;;  %v8293_v31 = vrot.slane %v14081_v4, %v13931_v23 }
 0x839   :  { %10692 = vmatpush2.bf16.msra.mxu1 %v13360_v37  ;;  %v10762_v25 = vrot.slane %v10754_v24, %v13799_v53 }
 0x83a   :  { %10693 = vmatprep.subr.bf16.mxu1 %v13365_v32 }
 0x83d   :  { %10694 = vmatpush2.bf16.msra.mxu1 %v13363_v34  ;;  %v8289_v34 = vrot.slane %v14081_v4, %v13928_v19 }
 0x83e   :  { %10695 = vmatprep.subr.bf16.mxu1 %v13368_v35 }
 0x841   :  { %10696 = vmatpush2.bf16.msra.mxu1 %v13366_v44 }
 0x842   :  { %10697 = vmatprep.subr.bf16.mxu1 %v13371_v30 }
 0x845   :  { %10698 = vmatpush2.bf16.msra.mxu1 %v13369_v20 }
 0x846   :  { %10699 = vmatprep.subr.bf16.mxu1 %v13374_v16 }
 0x849   :  { %10700 = vmatpush2.bf16.msra.mxu1 %v13372_v63 }
 0x84a   :  { %10701 = vmatprep.subr.bf16.mxu1 %v13377_v2 }
 0x84d   :  { %10702 = vmatpush2.bf16.msra.mxu1 %v13375_v49 }
 0x850   :  { %v10459_v55 = vpop.f32.mrf.mxu1  ;;  %v10500_v36 = vpop.f32.mrf.mxu0  ;;  %10704 = vmatmul.mubr.bf16.vlgmr.msra.gmra.mxu1 %v14074_v5 }
 0x851   :  { %v10460_v1 = vadd.f32 %v10459_v55, %v10419_v11 }
 0x852   :  { %v10461_v7 = vpop.f32.mrf.mxu1  ;;  %v10502_v43 = vpop.f32.mrf.mxu0 }
 0x853   :  { %v10501_v12 = vadd.f32 %v10500_v36, %v10460_v1  ;;  %v10462_v21 = vadd.f32 %v10461_v7, %v10421_v57 }
 0x854   :  { %v10463_v51 = vpop.f32.mrf.mxu1  ;;  %v10504_v27 = vpop.f32.mrf.mxu0 }
 0x855   :  { %v10503_v41 = vadd.f32 %v10502_v43, %v10462_v21 }
 0x856   :  { %v10464_v50 = vpop.f32.mrf.mxu1  ;;  %v10505_v10 = vpop.f32.mrf.mxu0 }
 0x890   :  { %v10541_v56 = vpop.f32.mrf.mxu1 }
 0x891   :  { %v10542_v58 = vadd.f32 %v10541_v56, %v10501_v12  ;;  %v10582_v47 = vpop.f32.mrf.mxu0 }
 0x892   :  { %v10543_v60 = vpop.f32.mrf.mxu1 }
 0x893   :  { %v10714_v5 = vsub.f32 0.0, %v10542_v58  ;;  %v10544_v42 = vadd.f32 %v10543_v60, %v10503_v41  ;;  %v10584_v48 = vpop.f32.mrf.mxu0 }
 0x894   :  { %v10545_v62 = vpop.f32.mrf.mxu1  ;;  %v10585_v3 = vadd.f32 %v10584_v48, %v8293_v31 }
 0x895   :  { %v10722_v22 = vmul.f32 1.442695, %v10714_v5  ;;  %v10715_v38 = vsub.f32 0.0, %v10544_v42  ;;  %v10586_v40 = vpop.f32.mrf.mxu0 }
 0x896   :  { %v10546_v61 = vpop.f32.mrf.mxu1 }
 0x897   :  { %13386 = vpow2.f32 %v10722_v22  ;;  %v10724_v52 = vmul.f32 1.442695, %v10715_v38  ;;  %v10587_v54 = vpop.f32.mrf.mxu0 }
 0x899   :  { %13388 = vpow2.f32 %v10724_v52 }
 0x8a4   :  { %v13387_v28 = vpop.eup %13386 }
 0x8a5   :  { %v10732_v6 = vadd.f32 1.0, %v13387_v28 }
 0x8a6   :  { %v13389_v39 = vpop.eup %13388 }
 0x8a7   :  { %v10733_v0 = vadd.f32 1.0, %v13389_v39  ;;  %13390 = vrcp.f32 %v10732_v6 }
 0x8a9   :  { %13392 = vrcp.f32 %v10733_v0 }
 0x8b4   :  { %v13391_v13 = vpop.eup %13390 }
 0x8b6   :  { %v13393_v59 = vpop.eup %13392 }
 0x8b7   :  { %v10755_v17 = vcombine.low %v13391_v13, %v13393_v59 }
 0x8b9   :  { %v10769_v8 = vrot.slane %v10755_v17, %v13799_v53  ;;  %v10583_v53 = vadd.f32 %v10582_v47, %v8289_v34 }
 0x8bb   :  { %v10770_v9 = vcombine.low %v10762_v25, %v10769_v8 }
 0x8bd   :  { %10781 = vst [vmem:[%s14155_s13] sm:$0xff] %v10770_v9 }
 0x8d0   :  { %v10623_v15 = vpop.f32.mrf.mxu1 }
 0x8d1   :  { %v10664_v18 = vpop.f32.mrf.mxu0  ;;  %v10624_v24 = vadd.f32 %v10623_v15, %v10583_v53 }
 0x8d2   :  { %v10625_v26 = vpop.f32.mrf.mxu1 }
 0x8d3   :  { %v10666_v33 = vpop.f32.mrf.mxu0  ;;  %v10626_v35 = vadd.f32 %v10625_v26, %v10585_v3  ;;  %v10665_v44 = vadd.f32 %v10664_v18, %v10624_v24 }
 0x8d4   :  { %v10627_v46 = vpop.f32.mrf.mxu1 }
 0x8d5   :  { %v10668_v29 = vpop.f32.mrf.mxu0  ;;  %v10667_v20 = vadd.f32 %v10666_v33, %v10626_v35 }
 0x8d6   :  { %v10628_v37 = vpop.f32.mrf.mxu1 }
 0x8d7   :  { %v10669_v32 = vpop.f32.mrf.mxu0 }
 0x910   :  { %v10705_v30 = vpop.f32.mrf.mxu1 }
 0x911   :  { %v10706_v16 = vadd.f32 %v10705_v30, %v10665_v44 }
 0x912   :  { %v10707_v63 = vpop.f32.mrf.mxu1 }
 0x913   :  { %v10716_v2 = vsub.f32 0.0, %v10706_v16  ;;  %v10708_v49 = vadd.f32 %v10707_v63, %v10667_v20 }
 0x914   :  { %v10709_v45 = vpop.f32.mrf.mxu1 }
 0x915   :  { %v10726_v11 = vmul.f32 1.442695, %v10716_v2  ;;  %v10717_v55 = vsub.f32 0.0, %v10708_v49 }
 0x916   :  { %v10710_v36 = vpop.f32.mrf.mxu1 }
 0x917   :  { %13394 = vpow2.f32 %v10726_v11  ;;  %v10728_v19 = vmul.f32 1.442695, %v10717_v55 }
 0x919   :  { %13396 = vpow2.f32 %v10728_v19 }
 0x924   :  { %v13395_v1 = vpop.eup %13394 }
 0x925   :  { %v10734_v23 = vadd.f32 1.0, %v13395_v1 }
 0x926   :  { %v13397_v4 = vpop.eup %13396 }
 0x927   :  { %v10735_v7 = vadd.f32 1.0, %v13397_v4  ;;  %13398 = vrcp.f32 %v10734_v23 }
 0x929   :  { %13400 = vrcp.f32 %v10735_v7 }
 0x934   :  { %v13399_v43 = vpop.eup %13398 }
 0x936   :  { %v13401_v12 = vpop.eup %13400 }
 0x937   :  { %v10771_v51 = vcombine.low %v13399_v43, %v13401_v12 }
 0x939   :  { %12203 = vst.sshfl [vmem:[%s14155_s13 + $0x8] sm:$0x33 pattern:$0x76325410] %v10771_v51 }
 0x93a   :  { %10787 = vsyncpa [#allocation3], 1 }
 0x93b   :  { %10788 = vsyncpa [#allocation5], 1 }
 0x93c   :  { %10789 = vsyncpa [#allocation8], 1 }
 0x93d   :  { %10790 = vsyncpa [#allocation11], 1 }
 0x93e   :  { %10791 = vsyncpa [#allocation14], 1 }
 0x93f   :  { %10792 = vsyncpa [#allocation17], 1 }
 0x940   :  { %10793 = vsyncpa [#allocation20], 1 }

</bundles_post_ra>
